<compile_context>
chip_gen: v7x
topology: tpu7x:2x2x1
jax: 0.10.0
libtpu: 0.0.40
codegen_flags: <defaults>
</compile_context>

<pallas_src>
import functools

import jax
import jax.numpy as jnp
import numpy as np
from jax.experimental import pallas as pl
from jax.experimental.pallas import tpu as pltpu

# Model hyper-parameters from the PyTorch module.
C_OUT = 40                  # Conv2d out_channels
C_PAD = 128                 # channels padded to a full lane tile
KH, KW = 32, 40             # Conv2d kernel_size
POOL_KH, POOL_KW = 1, 75    # MaxPool2d kernel_size
POOL_S = 10                 # MaxPool2d stride (int -> applied to both dims)
KW_GROUP = 8                # kw taps per dot -> K = KW_GROUP*KH = 256 (v6e/v7x
                            # MXU depth).  On v5e use 4 (K=128 fills a pass).
assert KW % KW_GROUP == 0


def _fused_conv_elu_pool_kernel(x_ref, w_ref, b_ref, o_ref, *, b_tile,
                                hp_count, wp_count, wo):
    # x_ref: (B_TILE, W, H) bf16  -- transposed images (image-W on sublanes,
    #        image-H on lanes).
    # w_ref: (KW//KW_GROUP, KW_GROUP*KH, C_PAD) bf16, lane-dense;
    #        w_ref[g, t*KH + kh, c] = torch_w[c, 0, kh, g*KW_GROUP + t].
    # b_ref: (1, C_PAD) f32, lane-dense.
    # o_ref: (B_TILE, Hp, Wp, C_PAD) f32, lane-dense pooled output.
    for b in range(b_tile):            # small static loop over images
        for hp in range(hp_count):     # TODO(synk): lax.fori_loop if Hp large
            oh = hp * POOL_S           # only conv rows the pool actually reads
            # Column band: colband[j, kh] = img[oh + kh, j], shape (W, KH).
            colband = x_ref[b, :, oh:oh + KH]

            # Conv row oh as KW//KW_GROUP chained accumulating matmuls,
            # each contracting K = KW_GROUP*KH on the MXU:
            #   acc[ow, c] = sum_kw sum_kh img[oh+kh, ow+kw] * w[c, kh, kw]
            acc = None
            for g in range(KW // KW_GROUP):
                # lhs[ow, t*KH + kh] = img[oh+kh, ow + g*KW_GROUP + t]
                # (static sublane-offset slices; kw_max + Wo == W, in range).
                pieces = [colband[g * KW_GROUP + t: g * KW_GROUP + t + wo, :]
                          for t in range(KW_GROUP)]
                lhs = jnp.concatenate(pieces, axis=1)        # (Wo, 256) bf16
                d = jnp.dot(lhs, w_ref[g],
                            preferred_element_type=jnp.float32)  # (Wo, C_PAD)
                acc = d if acc is None else acc + d

            # MaxPool2d((1, 75), stride=10) along W: sublane-axis max, one
            # (1, C_PAD) lane-dense vector per window.
            maxima = [jnp.max(acc[wp * POOL_S: wp * POOL_S + POOL_KW, :],
                              axis=0, keepdims=True)
                      for wp in range(wp_count)]
            pooled = jnp.concatenate(maxima, axis=0)         # (Wp, C_PAD) f32

            # Bias + ELU after the pool (exact: both commute with max).
            pooled = pooled + b_ref[...]
            act = jnp.where(pooled > 0.0, pooled,
                            jnp.exp(jnp.minimum(pooled, 0.0)) - 1.0)

            # One lane-dense store for the whole hp row.
            o_ref[b, hp] = act.astype(o_ref.dtype)


def _pick_batch_tile(n, target=16):
    """Largest divisor of n <= target, preferring an even grid length (v7x)."""
    best_even, best_any = None, 1
    for d in range(1, min(n, target) + 1):
        if n % d == 0:
            best_any = d
            if (n // d) % 2 == 0:
                best_even = d
    return best_even if best_even is not None else best_any


def cnn_forward(x, w, b):
    batch, step, H, W = x.shape
    N = batch * step
    Ho, Wo = H - KH + 1, W - KW + 1
    Hp = (Ho - POOL_KH) // POOL_S + 1
    Wp = (Wo - POOL_KW) // POOL_S + 1

    # Layout plumbing: transposed images so in-kernel kw shifts are sublane
    # slices (each image byte still read from HBM once by the kernel).
    img_t = jnp.transpose(x.reshape(N, H, W), (0, 2, 1)).astype(jnp.bfloat16)

    # Weights (C,1,KH,KW) -> (KW//G, G*KH, C_PAD), lane-dense, bf16.
    wt = jnp.transpose(w.reshape(C_OUT, KH, KW), (2, 1, 0))       # [kw, kh, c]
    wt = wt.reshape(KW // KW_GROUP, KW_GROUP * KH, C_OUT)         # [g, t*KH+kh, c]
    w2 = jnp.pad(wt, ((0, 0), (0, 0), (0, C_PAD - C_OUT))).astype(jnp.bfloat16)
    b2 = jnp.pad(b.astype(jnp.float32), (0, C_PAD - C_OUT)).reshape(1, C_PAD)

    b_tile = _pick_batch_tile(N)
    grid = (N // b_tile,)

    kernel = functools.partial(_fused_conv_elu_pool_kernel, b_tile=b_tile,
                               hp_count=Hp, wp_count=Wp, wo=Wo)

    pooled = pl.pallas_call(
        kernel,
        out_shape=jax.ShapeDtypeStruct((N, Hp, Wp, C_PAD), jnp.float32),
        grid=grid,
        in_specs=[
            pl.BlockSpec((b_tile, W, H), lambda n: (n, 0, 0)),        # images
            pl.BlockSpec((KW // KW_GROUP, KW_GROUP * KH, C_PAD),
                         lambda n: (0, 0, 0)),                        # weights
            pl.BlockSpec((1, C_PAD), lambda n: (0, 0)),               # bias
        ],
        out_specs=pl.BlockSpec((b_tile, Hp, Wp, C_PAD),
                               lambda n: (n, 0, 0, 0)),
        compiler_params=pltpu.CompilerParams(
            dimension_semantics=("parallel",)),
    )(img_t, w2, b2)

    # Back to PyTorch NCHW flatten order (tiny glue on the pooled result).
    out = jnp.transpose(pooled[..., :C_OUT], (0, 3, 1, 2))        # (N,C,Hp,Wp)
    return out.reshape(batch, step, C_OUT * Hp * Wp)


def cnn_reference(x, w, b):
    """Pure-JAX (XLA, float32) reference mirroring the PyTorch forward."""
    batch, step, H, W = x.shape
    N = batch * step
    x2 = x.reshape(N, 1, H, W).astype(jnp.float32)
    conv = jax.lax.conv_general_dilated(
        x2, w.astype(jnp.float32), window_strides=(1, 1), padding="VALID",
        dimension_numbers=("NCHW", "OIHW", "NCHW"))
    conv = conv + b.reshape(1, C_OUT, 1, 1)
    act = jnp.where(conv > 0, conv, jnp.exp(jnp.minimum(conv, 0.0)) - 1.0)
    pooled = jax.lax.reduce_window(
        act, -jnp.inf, jax.lax.max,
        window_dimensions=(1, 1, POOL_KH, POOL_KW),
        window_strides=(1, 1, POOL_S, POOL_S),
        padding="VALID")
    return pooled.reshape(batch, step, -1)


if __name__ == "__main__":
    # Smallest shapes consistent with the module: need h >= 32 and
    # w - 39 >= 75 for the (1, 75) pool window.
    batch, step, H, W = 2, 3, 33, 134

    key = jax.random.PRNGKey(0)
    kx, kwgt, kb = jax.random.split(key, 3)
    x = jax.random.normal(kx, (batch, step, H, W), dtype=jnp.float32)

    # Deterministic Conv2d(1, 40, (32, 40)) parameters (PyTorch-style uniform).
    fan_in = 1 * KH * KW
    bound = 1.0 / (fan_in ** 0.5)
    w = jax.random.uniform(kwgt, (C_OUT, 1, KH, KW), minval=-bound,
                           maxval=bound, dtype=jnp.float32)
    b = jax.random.uniform(kb, (C_OUT,), minval=-bound, maxval=bound,
                           dtype=jnp.float32)

    out = jax.jit(cnn_forward)(x, w, b)
    out = jax.block_until_ready(out)

    ref = cnn_reference(x, w, b)
    Hp = (H - KH + 1 - POOL_KH) // POOL_S + 1
    Wp = (W - KW + 1 - POOL_KW) // POOL_S + 1
    assert out.shape == ref.shape == (batch, step, C_OUT * Hp * Wp), (
        out.shape, ref.shape)
    # Tolerance accounts for bf16 MXU inputs (f32 accumulation) vs f32 ref.
    np.testing.assert_allclose(np.asarray(out), np.asarray(ref),
                               rtol=2e-2, atol=2e-2)
    print("KERNEL_OK")
</pallas_src>

<mosaic_0001>
module attributes {stable_mosaic.version = 11 : i64} {
  func.func @_fused_conv_elu_pool_kernel(%arg0: i32, %arg1: memref<3x134x33xbf16, #tpu.memory_space<vmem>>, %arg2: memref<5x256x128xbf16, #tpu.memory_space<vmem>>, %arg3: memref<1x128xf32, #tpu.memory_space<vmem>>, %arg4: memref<3x1x3x128xf32, #tpu.memory_space<vmem>>) attributes {dimension_semantics = [#tpu.dimension_semantics<parallel>], iteration_bounds = array<i64: 2>, scalar_prefetch = 0 : i64, scratch_operands = 0 : i64, tpu.core_type = #tpu.core_type<tc>, window_params = [{transform_indices = @transform_0, window_bounds = array<i64: 3, 134, 33>}, {pipeline_mode = #tpu.pipeline_mode<synchronous>, transform_indices = @transform_1, window_bounds = array<i64: 5, 256, 128>}, {pipeline_mode = #tpu.pipeline_mode<synchronous>, transform_indices = @transform_2, window_bounds = array<i64: 1, 128>}, {transform_indices = @transform_3, window_bounds = array<i64: 3, 1, 3, 128>}]} {
    %c0 = arith.constant 0 : index
    %c0_0 = arith.constant 0 : index
    %c0_1 = arith.constant 0 : index
    %0 = vector.load %arg1[%c0, %c0_0, %c0_1] : memref<3x134x33xbf16, #tpu.memory_space<vmem>>, vector<1x134x32xbf16>
    %1 = vector.shape_cast %0 : vector<1x134x32xbf16> to vector<134x32xbf16>
    %2 = vector.extract_strided_slice %1 {offsets = [0, 0], sizes = [95, 32], strides = [1, 1]} : vector<134x32xbf16> to vector<95x32xbf16>
    %3 = vector.extract_strided_slice %1 {offsets = [1, 0], sizes = [95, 32], strides = [1, 1]} : vector<134x32xbf16> to vector<95x32xbf16>
    %4 = vector.extract_strided_slice %1 {offsets = [2, 0], sizes = [95, 32], strides = [1, 1]} : vector<134x32xbf16> to vector<95x32xbf16>
    %5 = vector.extract_strided_slice %1 {offsets = [3, 0], sizes = [95, 32], strides = [1, 1]} : vector<134x32xbf16> to vector<95x32xbf16>
    %6 = vector.extract_strided_slice %1 {offsets = [4, 0], sizes = [95, 32], strides = [1, 1]} : vector<134x32xbf16> to vector<95x32xbf16>
    %7 = vector.extract_strided_slice %1 {offsets = [5, 0], sizes = [95, 32], strides = [1, 1]} : vector<134x32xbf16> to vector<95x32xbf16>
    %8 = vector.extract_strided_slice %1 {offsets = [6, 0], sizes = [95, 32], strides = [1, 1]} : vector<134x32xbf16> to vector<95x32xbf16>
    %9 = vector.extract_strided_slice %1 {offsets = [7, 0], sizes = [95, 32], strides = [1, 1]} : vector<134x32xbf16> to vector<95x32xbf16>
    %10 = tpu.concatenate %2, %3, %4, %5, %6, %7, %8, %9 in 1 : vector<95x32xbf16>, vector<95x32xbf16>, vector<95x32xbf16>, vector<95x32xbf16>, vector<95x32xbf16>, vector<95x32xbf16>, vector<95x32xbf16>, vector<95x32xbf16> -> vector<95x256xbf16>
    %c0_2 = arith.constant 0 : index
    %c0_3 = arith.constant 0 : index
    %c0_4 = arith.constant 0 : index
    %11 = vector.load %arg2[%c0_2, %c0_3, %c0_4] : memref<5x256x128xbf16, #tpu.memory_space<vmem>>, vector<1x256x128xbf16>
    %12 = vector.shape_cast %11 : vector<1x256x128xbf16> to vector<256x128xbf16>
    %cst = arith.constant dense<0.000000e+00> : vector<95x128xf32>
    %13 = tpu.matmul %10, %12, %cst {dimension_numbers = #tpu.dot_dimension_numbers<[1], [0], [0], [1], [0, 0, 1, 1], [], []>} : vector<95x256xbf16>, vector<256x128xbf16>, vector<95x128xf32> -> vector<95x128xf32>
    %14 = vector.extract_strided_slice %1 {offsets = [8, 0], sizes = [95, 32], strides = [1, 1]} : vector<134x32xbf16> to vector<95x32xbf16>
    %15 = vector.extract_strided_slice %1 {offsets = [9, 0], sizes = [95, 32], strides = [1, 1]} : vector<134x32xbf16> to vector<95x32xbf16>
    %16 = vector.extract_strided_slice %1 {offsets = [10, 0], sizes = [95, 32], strides = [1, 1]} : vector<134x32xbf16> to vector<95x32xbf16>
    %17 = vector.extract_strided_slice %1 {offsets = [11, 0], sizes = [95, 32], strides = [1, 1]} : vector<134x32xbf16> to vector<95x32xbf16>
    %18 = vector.extract_strided_slice %1 {offsets = [12, 0], sizes = [95, 32], strides = [1, 1]} : vector<134x32xbf16> to vector<95x32xbf16>
    %19 = vector.extract_strided_slice %1 {offsets = [13, 0], sizes = [95, 32], strides = [1, 1]} : vector<134x32xbf16> to vector<95x32xbf16>
    %20 = vector.extract_strided_slice %1 {offsets = [14, 0], sizes = [95, 32], strides = [1, 1]} : vector<134x32xbf16> to vector<95x32xbf16>
    %21 = vector.extract_strided_slice %1 {offsets = [15, 0], sizes = [95, 32], strides = [1, 1]} : vector<134x32xbf16> to vector<95x32xbf16>
    %22 = tpu.concatenate %14, %15, %16, %17, %18, %19, %20, %21 in 1 : vector<95x32xbf16>, vector<95x32xbf16>, vector<95x32xbf16>, vector<95x32xbf16>, vector<95x32xbf16>, vector<95x32xbf16>, vector<95x32xbf16>, vector<95x32xbf16> -> vector<95x256xbf16>
    %c1 = arith.constant 1 : index
    %c0_5 = arith.constant 0 : index
    %c0_6 = arith.constant 0 : index
    %23 = vector.load %arg2[%c1, %c0_5, %c0_6] : memref<5x256x128xbf16, #tpu.memory_space<vmem>>, vector<1x256x128xbf16>
    %24 = vector.shape_cast %23 : vector<1x256x128xbf16> to vector<256x128xbf16>
    %cst_7 = arith.constant dense<0.000000e+00> : vector<95x128xf32>
    %25 = tpu.matmul %22, %24, %cst_7 {dimension_numbers = #tpu.dot_dimension_numbers<[1], [0], [0], [1], [0, 0, 1, 1], [], []>} : vector<95x256xbf16>, vector<256x128xbf16>, vector<95x128xf32> -> vector<95x128xf32>
    %26 = arith.addf %13, %25 : vector<95x128xf32>
    %27 = vector.extract_strided_slice %1 {offsets = [16, 0], sizes = [95, 32], strides = [1, 1]} : vector<134x32xbf16> to vector<95x32xbf16>
    %28 = vector.extract_strided_slice %1 {offsets = [17, 0], sizes = [95, 32], strides = [1, 1]} : vector<134x32xbf16> to vector<95x32xbf16>
    %29 = vector.extract_strided_slice %1 {offsets = [18, 0], sizes = [95, 32], strides = [1, 1]} : vector<134x32xbf16> to vector<95x32xbf16>
    %30 = vector.extract_strided_slice %1 {offsets = [19, 0], sizes = [95, 32], strides = [1, 1]} : vector<134x32xbf16> to vector<95x32xbf16>
    %31 = vector.extract_strided_slice %1 {offsets = [20, 0], sizes = [95, 32], strides = [1, 1]} : vector<134x32xbf16> to vector<95x32xbf16>
    %32 = vector.extract_strided_slice %1 {offsets = [21, 0], sizes = [95, 32], strides = [1, 1]} : vector<134x32xbf16> to vector<95x32xbf16>
    %33 = vector.extract_strided_slice %1 {offsets = [22, 0], sizes = [95, 32], strides = [1, 1]} : vector<134x32xbf16> to vector<95x32xbf16>
    %34 = vector.extract_strided_slice %1 {offsets = [23, 0], sizes = [95, 32], strides = [1, 1]} : vector<134x32xbf16> to vector<95x32xbf16>
    %35 = tpu.concatenate %27, %28, %29, %30, %31, %32, %33, %34 in 1 : vector<95x32xbf16>, vector<95x32xbf16>, vector<95x32xbf16>, vector<95x32xbf16>, vector<95x32xbf16>, vector<95x32xbf16>, vector<95x32xbf16>, vector<95x32xbf16> -> vector<95x256xbf16>
    %c2 = arith.constant 2 : index
    %c0_8 = arith.constant 0 : index
    %c0_9 = arith.constant 0 : index
    %36 = vector.load %arg2[%c2, %c0_8, %c0_9] : memref<5x256x128xbf16, #tpu.memory_space<vmem>>, vector<1x256x128xbf16>
    %37 = vector.shape_cast %36 : vector<1x256x128xbf16> to vector<256x128xbf16>
    %cst_10 = arith.constant dense<0.000000e+00> : vector<95x128xf32>
    %38 = tpu.matmul %35, %37, %cst_10 {dimension_numbers = #tpu.dot_dimension_numbers<[1], [0], [0], [1], [0, 0, 1, 1], [], []>} : vector<95x256xbf16>, vector<256x128xbf16>, vector<95x128xf32> -> vector<95x128xf32>
    %39 = arith.addf %26, %38 : vector<95x128xf32>
    %40 = vector.extract_strided_slice %1 {offsets = [24, 0], sizes = [95, 32], strides = [1, 1]} : vector<134x32xbf16> to vector<95x32xbf16>
    %41 = vector.extract_strided_slice %1 {offsets = [25, 0], sizes = [95, 32], strides = [1, 1]} : vector<134x32xbf16> to vector<95x32xbf16>
    %42 = vector.extract_strided_slice %1 {offsets = [26, 0], sizes = [95, 32], strides = [1, 1]} : vector<134x32xbf16> to vector<95x32xbf16>
    %43 = vector.extract_strided_slice %1 {offsets = [27, 0], sizes = [95, 32], strides = [1, 1]} : vector<134x32xbf16> to vector<95x32xbf16>
    %44 = vector.extract_strided_slice %1 {offsets = [28, 0], sizes = [95, 32], strides = [1, 1]} : vector<134x32xbf16> to vector<95x32xbf16>
    %45 = vector.extract_strided_slice %1 {offsets = [29, 0], sizes = [95, 32], strides = [1, 1]} : vector<134x32xbf16> to vector<95x32xbf16>
    %46 = vector.extract_strided_slice %1 {offsets = [30, 0], sizes = [95, 32], strides = [1, 1]} : vector<134x32xbf16> to vector<95x32xbf16>
    %47 = vector.extract_strided_slice %1 {offsets = [31, 0], sizes = [95, 32], strides = [1, 1]} : vector<134x32xbf16> to vector<95x32xbf16>
    %48 = tpu.concatenate %40, %41, %42, %43, %44, %45, %46, %47 in 1 : vector<95x32xbf16>, vector<95x32xbf16>, vector<95x32xbf16>, vector<95x32xbf16>, vector<95x32xbf16>, vector<95x32xbf16>, vector<95x32xbf16>, vector<95x32xbf16> -> vector<95x256xbf16>
    %c3 = arith.constant 3 : index
    %c0_11 = arith.constant 0 : index
    %c0_12 = arith.constant 0 : index
    %49 = vector.load %arg2[%c3, %c0_11, %c0_12] : memref<5x256x128xbf16, #tpu.memory_space<vmem>>, vector<1x256x128xbf16>
    %50 = vector.shape_cast %49 : vector<1x256x128xbf16> to vector<256x128xbf16>
    %cst_13 = arith.constant dense<0.000000e+00> : vector<95x128xf32>
    %51 = tpu.matmul %48, %50, %cst_13 {dimension_numbers = #tpu.dot_dimension_numbers<[1], [0], [0], [1], [0, 0, 1, 1], [], []>} : vector<95x256xbf16>, vector<256x128xbf16>, vector<95x128xf32> -> vector<95x128xf32>
    %52 = arith.addf %39, %51 : vector<95x128xf32>
    %53 = vector.extract_strided_slice %1 {offsets = [32, 0], sizes = [95, 32], strides = [1, 1]} : vector<134x32xbf16> to vector<95x32xbf16>
    %54 = vector.extract_strided_slice %1 {offsets = [33, 0], sizes = [95, 32], strides = [1, 1]} : vector<134x32xbf16> to vector<95x32xbf16>
    %55 = vector.extract_strided_slice %1 {offsets = [34, 0], sizes = [95, 32], strides = [1, 1]} : vector<134x32xbf16> to vector<95x32xbf16>
    %56 = vector.extract_strided_slice %1 {offsets = [35, 0], sizes = [95, 32], strides = [1, 1]} : vector<134x32xbf16> to vector<95x32xbf16>
    %57 = vector.extract_strided_slice %1 {offsets = [36, 0], sizes = [95, 32], strides = [1, 1]} : vector<134x32xbf16> to vector<95x32xbf16>
    %58 = vector.extract_strided_slice %1 {offsets = [37, 0], sizes = [95, 32], strides = [1, 1]} : vector<134x32xbf16> to vector<95x32xbf16>
    %59 = vector.extract_strided_slice %1 {offsets = [38, 0], sizes = [95, 32], strides = [1, 1]} : vector<134x32xbf16> to vector<95x32xbf16>
    %60 = vector.extract_strided_slice %1 {offsets = [39, 0], sizes = [95, 32], strides = [1, 1]} : vector<134x32xbf16> to vector<95x32xbf16>
    %61 = tpu.concatenate %53, %54, %55, %56, %57, %58, %59, %60 in 1 : vector<95x32xbf16>, vector<95x32xbf16>, vector<95x32xbf16>, vector<95x32xbf16>, vector<95x32xbf16>, vector<95x32xbf16>, vector<95x32xbf16>, vector<95x32xbf16> -> vector<95x256xbf16>
    %c4 = arith.constant 4 : index
    %c0_14 = arith.constant 0 : index
    %c0_15 = arith.constant 0 : index
    %62 = vector.load %arg2[%c4, %c0_14, %c0_15] : memref<5x256x128xbf16, #tpu.memory_space<vmem>>, vector<1x256x128xbf16>
    %63 = vector.shape_cast %62 : vector<1x256x128xbf16> to vector<256x128xbf16>
    %cst_16 = arith.constant dense<0.000000e+00> : vector<95x128xf32>
    %64 = tpu.matmul %61, %63, %cst_16 {dimension_numbers = #tpu.dot_dimension_numbers<[1], [0], [0], [1], [0, 0, 1, 1], [], []>} : vector<95x256xbf16>, vector<256x128xbf16>, vector<95x128xf32> -> vector<95x128xf32>
    %65 = arith.addf %52, %64 : vector<95x128xf32>
    %66 = vector.extract_strided_slice %65 {offsets = [0, 0], sizes = [75, 128], strides = [1, 1]} : vector<95x128xf32> to vector<75x128xf32>
    %cst_17 = arith.constant dense<0xFF800000> : vector<128xf32>
    %67 = vector.multi_reduction <maximumf>, %66, %cst_17 [0] : vector<75x128xf32> to vector<128xf32>
    %68 = vector.shape_cast %67 : vector<128xf32> to vector<1x128xf32>
    %69 = vector.extract_strided_slice %65 {offsets = [10, 0], sizes = [75, 128], strides = [1, 1]} : vector<95x128xf32> to vector<75x128xf32>
    %cst_18 = arith.constant dense<0xFF800000> : vector<128xf32>
    %70 = vector.multi_reduction <maximumf>, %69, %cst_18 [0] : vector<75x128xf32> to vector<128xf32>
    %71 = vector.shape_cast %70 : vector<128xf32> to vector<1x128xf32>
    %72 = vector.extract_strided_slice %65 {offsets = [20, 0], sizes = [75, 128], strides = [1, 1]} : vector<95x128xf32> to vector<75x128xf32>
    %cst_19 = arith.constant dense<0xFF800000> : vector<128xf32>
    %73 = vector.multi_reduction <maximumf>, %72, %cst_19 [0] : vector<75x128xf32> to vector<128xf32>
    %74 = vector.shape_cast %73 : vector<128xf32> to vector<1x128xf32>
    %75 = tpu.concatenate %68, %71, %74 in 0 : vector<1x128xf32>, vector<1x128xf32>, vector<1x128xf32> -> vector<3x128xf32>
    %c0_20 = arith.constant 0 : index
    %c0_21 = arith.constant 0 : index
    %76 = vector.load %arg3[%c0_20, %c0_21] : memref<1x128xf32, #tpu.memory_space<vmem>>, vector<1x128xf32>
    %77 = vector.broadcast %76 : vector<1x128xf32> to vector<3x128xf32>
    %78 = arith.addf %75, %77 : vector<3x128xf32>
    %cst_22 = arith.constant 0.000000e+00 : f32
    %79 = vector.broadcast %cst_22 : f32 to vector<3x128xf32>
    %80 = arith.cmpf ogt, %78, %79 : vector<3x128xf32>
    %cst_23 = arith.constant 0.000000e+00 : f32
    %81 = vector.broadcast %cst_23 : f32 to vector<3x128xf32>
    %82 = arith.minimumf %78, %81 : vector<3x128xf32>
    %83 = math.exp %82 : vector<3x128xf32>
    %cst_24 = arith.constant 1.000000e+00 : f32
    %84 = vector.broadcast %cst_24 : f32 to vector<3x128xf32>
    %85 = arith.subf %83, %84 : vector<3x128xf32>
    %86 = arith.select %80, %78, %85 : vector<3x128xi1>, vector<3x128xf32>
    %c0_25 = arith.constant 0 : index
    %c0_26 = arith.constant 0 : index
    %c0_27 = arith.constant 0 : index
    %c0_28 = arith.constant 0 : index
    %87 = vector.load %arg4[%c0_25, %c0_26, %c0_27, %c0_28] : memref<3x1x3x128xf32, #tpu.memory_space<vmem>>, vector<1x1x3x128xf32>
    %88 = vector.shape_cast %87 : vector<1x1x3x128xf32> to vector<3x128xf32>
    %89 = vector.shape_cast %86 : vector<3x128xf32> to vector<1x1x3x128xf32>
    tpu.vector_store %arg4[%c0_25, %c0_26, %c0_27, %c0_28], %89 {strides = array<i32>} : memref<3x1x3x128xf32, #tpu.memory_space<vmem>>, vector<1x1x3x128xf32>,
    %c1_29 = arith.constant 1 : index
    %c0_30 = arith.constant 0 : index
    %c0_31 = arith.constant 0 : index
    %90 = vector.load %arg1[%c1_29, %c0_30, %c0_31] : memref<3x134x33xbf16, #tpu.memory_space<vmem>>, vector<1x134x32xbf16>
    %91 = vector.shape_cast %90 : vector<1x134x32xbf16> to vector<134x32xbf16>
    %92 = vector.extract_strided_slice %91 {offsets = [0, 0], sizes = [95, 32], strides = [1, 1]} : vector<134x32xbf16> to vector<95x32xbf16>
    %93 = vector.extract_strided_slice %91 {offsets = [1, 0], sizes = [95, 32], strides = [1, 1]} : vector<134x32xbf16> to vector<95x32xbf16>
    %94 = vector.extract_strided_slice %91 {offsets = [2, 0], sizes = [95, 32], strides = [1, 1]} : vector<134x32xbf16> to vector<95x32xbf16>
    %95 = vector.extract_strided_slice %91 {offsets = [3, 0], sizes = [95, 32], strides = [1, 1]} : vector<134x32xbf16> to vector<95x32xbf16>
    %96 = vector.extract_strided_slice %91 {offsets = [4, 0], sizes = [95, 32], strides = [1, 1]} : vector<134x32xbf16> to vector<95x32xbf16>
    %97 = vector.extract_strided_slice %91 {offsets = [5, 0], sizes = [95, 32], strides = [1, 1]} : vector<134x32xbf16> to vector<95x32xbf16>
    %98 = vector.extract_strided_slice %91 {offsets = [6, 0], sizes = [95, 32], strides = [1, 1]} : vector<134x32xbf16> to vector<95x32xbf16>
    %99 = vector.extract_strided_slice %91 {offsets = [7, 0], sizes = [95, 32], strides = [1, 1]} : vector<134x32xbf16> to vector<95x32xbf16>
    %100 = tpu.concatenate %92, %93, %94, %95, %96, %97, %98, %99 in 1 : vector<95x32xbf16>, vector<95x32xbf16>, vector<95x32xbf16>, vector<95x32xbf16>, vector<95x32xbf16>, vector<95x32xbf16>, vector<95x32xbf16>, vector<95x32xbf16> -> vector<95x256xbf16>
    %c0_32 = arith.constant 0 : index
    %c0_33 = arith.constant 0 : index
    %c0_34 = arith.constant 0 : index
    %101 = vector.load %arg2[%c0_32, %c0_33, %c0_34] : memref<5x256x128xbf16, #tpu.memory_space<vmem>>, vector<1x256x128xbf16>
    %102 = vector.shape_cast %101 : vector<1x256x128xbf16> to vector<256x128xbf16>
    %cst_35 = arith.constant dense<0.000000e+00> : vector<95x128xf32>
    %103 = tpu.matmul %100, %102, %cst_35 {dimension_numbers = #tpu.dot_dimension_numbers<[1], [0], [0], [1], [0, 0, 1, 1], [], []>} : vector<95x256xbf16>, vector<256x128xbf16>, vector<95x128xf32> -> vector<95x128xf32>
    %104 = vector.extract_strided_slice %91 {offsets = [8, 0], sizes = [95, 32], strides = [1, 1]} : vector<134x32xbf16> to vector<95x32xbf16>
    %105 = vector.extract_strided_slice %91 {offsets = [9, 0], sizes = [95, 32], strides = [1, 1]} : vector<134x32xbf16> to vector<95x32xbf16>
    %106 = vector.extract_strided_slice %91 {offsets = [10, 0], sizes = [95, 32], strides = [1, 1]} : vector<134x32xbf16> to vector<95x32xbf16>
    %107 = vector.extract_strided_slice %91 {offsets = [11, 0], sizes = [95, 32], strides = [1, 1]} : vector<134x32xbf16> to vector<95x32xbf16>
    %108 = vector.extract_strided_slice %91 {offsets = [12, 0], sizes = [95, 32], strides = [1, 1]} : vector<134x32xbf16> to vector<95x32xbf16>
    %109 = vector.extract_strided_slice %91 {offsets = [13, 0], sizes = [95, 32], strides = [1, 1]} : vector<134x32xbf16> to vector<95x32xbf16>
    %110 = vector.extract_strided_slice %91 {offsets = [14, 0], sizes = [95, 32], strides = [1, 1]} : vector<134x32xbf16> to vector<95x32xbf16>
    %111 = vector.extract_strided_slice %91 {offsets = [15, 0], sizes = [95, 32], strides = [1, 1]} : vector<134x32xbf16> to vector<95x32xbf16>
    %112 = tpu.concatenate %104, %105, %106, %107, %108, %109, %110, %111 in 1 : vector<95x32xbf16>, vector<95x32xbf16>, vector<95x32xbf16>, vector<95x32xbf16>, vector<95x32xbf16>, vector<95x32xbf16>, vector<95x32xbf16>, vector<95x32xbf16> -> vector<95x256xbf16>
    %c1_36 = arith.constant 1 : index
    %c0_37 = arith.constant 0 : index
    %c0_38 = arith.constant 0 : index
    %113 = vector.load %arg2[%c1_36, %c0_37, %c0_38] : memref<5x256x128xbf16, #tpu.memory_space<vmem>>, vector<1x256x128xbf16>
    %114 = vector.shape_cast %113 : vector<1x256x128xbf16> to vector<256x128xbf16>
    %cst_39 = arith.constant dense<0.000000e+00> : vector<95x128xf32>
    %115 = tpu.matmul %112, %114, %cst_39 {dimension_numbers = #tpu.dot_dimension_numbers<[1], [0], [0], [1], [0, 0, 1, 1], [], []>} : vector<95x256xbf16>, vector<256x128xbf16>, vector<95x128xf32> -> vector<95x128xf32>
    %116 = arith.addf %103, %115 : vector<95x128xf32>
    %117 = vector.extract_strided_slice %91 {offsets = [16, 0], sizes = [95, 32], strides = [1, 1]} : vector<134x32xbf16> to vector<95x32xbf16>
    %118 = vector.extract_strided_slice %91 {offsets = [17, 0], sizes = [95, 32], strides = [1, 1]} : vector<134x32xbf16> to vector<95x32xbf16>
    %119 = vector.extract_strided_slice %91 {offsets = [18, 0], sizes = [95, 32], strides = [1, 1]} : vector<134x32xbf16> to vector<95x32xbf16>
    %120 = vector.extract_strided_slice %91 {offsets = [19, 0], sizes = [95, 32], strides = [1, 1]} : vector<134x32xbf16> to vector<95x32xbf16>
    %121 = vector.extract_strided_slice %91 {offsets = [20, 0], sizes = [95, 32], strides = [1, 1]} : vector<134x32xbf16> to vector<95x32xbf16>
    %122 = vector.extract_strided_slice %91 {offsets = [21, 0], sizes = [95, 32], strides = [1, 1]} : vector<134x32xbf16> to vector<95x32xbf16>
    %123 = vector.extract_strided_slice %91 {offsets = [22, 0], sizes = [95, 32], strides = [1, 1]} : vector<134x32xbf16> to vector<95x32xbf16>
    %124 = vector.extract_strided_slice %91 {offsets = [23, 0], sizes = [95, 32], strides = [1, 1]} : vector<134x32xbf16> to vector<95x32xbf16>
    %125 = tpu.concatenate %117, %118, %119, %120, %121, %122, %123, %124 in 1 : vector<95x32xbf16>, vector<95x32xbf16>, vector<95x32xbf16>, vector<95x32xbf16>, vector<95x32xbf16>, vector<95x32xbf16>, vector<95x32xbf16>, vector<95x32xbf16> -> vector<95x256xbf16>
    %c2_40 = arith.constant 2 : index
    %c0_41 = arith.constant 0 : index
    %c0_42 = arith.constant 0 : index
    %126 = vector.load %arg2[%c2_40, %c0_41, %c0_42] : memref<5x256x128xbf16, #tpu.memory_space<vmem>>, vector<1x256x128xbf16>
    %127 = vector.shape_cast %126 : vector<1x256x128xbf16> to vector<256x128xbf16>
    %cst_43 = arith.constant dense<0.000000e+00> : vector<95x128xf32>
    %128 = tpu.matmul %125, %127, %cst_43 {dimension_numbers = #tpu.dot_dimension_numbers<[1], [0], [0], [1], [0, 0, 1, 1], [], []>} : vector<95x256xbf16>, vector<256x128xbf16>, vector<95x128xf32> -> vector<95x128xf32>
    %129 = arith.addf %116, %128 : vector<95x128xf32>
    %130 = vector.extract_strided_slice %91 {offsets = [24, 0], sizes = [95, 32], strides = [1, 1]} : vector<134x32xbf16> to vector<95x32xbf16>
    %131 = vector.extract_strided_slice %91 {offsets = [25, 0], sizes = [95, 32], strides = [1, 1]} : vector<134x32xbf16> to vector<95x32xbf16>
    %132 = vector.extract_strided_slice %91 {offsets = [26, 0], sizes = [95, 32], strides = [1, 1]} : vector<134x32xbf16> to vector<95x32xbf16>
    %133 = vector.extract_strided_slice %91 {offsets = [27, 0], sizes = [95, 32], strides = [1, 1]} : vector<134x32xbf16> to vector<95x32xbf16>
    %134 = vector.extract_strided_slice %91 {offsets = [28, 0], sizes = [95, 32], strides = [1, 1]} : vector<134x32xbf16> to vector<95x32xbf16>
    %135 = vector.extract_strided_slice %91 {offsets = [29, 0], sizes = [95, 32], strides = [1, 1]} : vector<134x32xbf16> to vector<95x32xbf16>
    %136 = vector.extract_strided_slice %91 {offsets = [30, 0], sizes = [95, 32], strides = [1, 1]} : vector<134x32xbf16> to vector<95x32xbf16>
    %137 = vector.extract_strided_slice %91 {offsets = [31, 0], sizes = [95, 32], strides = [1, 1]} : vector<134x32xbf16> to vector<95x32xbf16>
    %138 = tpu.concatenate %130, %131, %132, %133, %134, %135, %136, %137 in 1 : vector<95x32xbf16>, vector<95x32xbf16>, vector<95x32xbf16>, vector<95x32xbf16>, vector<95x32xbf16>, vector<95x32xbf16>, vector<95x32xbf16>, vector<95x32xbf16> -> vector<95x256xbf16>
    %c3_44 = arith.constant 3 : index
    %c0_45 = arith.constant 0 : index
    %c0_46 = arith.constant 0 : index
    %139 = vector.load %arg2[%c3_44, %c0_45, %c0_46] : memref<5x256x128xbf16, #tpu.memory_space<vmem>>, vector<1x256x128xbf16>
    %140 = vector.shape_cast %139 : vector<1x256x128xbf16> to vector<256x128xbf16>
    %cst_47 = arith.constant dense<0.000000e+00> : vector<95x128xf32>
    %141 = tpu.matmul %138, %140, %cst_47 {dimension_numbers = #tpu.dot_dimension_numbers<[1], [0], [0], [1], [0, 0, 1, 1], [], []>} : vector<95x256xbf16>, vector<256x128xbf16>, vector<95x128xf32> -> vector<95x128xf32>
    %142 = arith.addf %129, %141 : vector<95x128xf32>
    %143 = vector.extract_strided_slice %91 {offsets = [32, 0], sizes = [95, 32], strides = [1, 1]} : vector<134x32xbf16> to vector<95x32xbf16>
    %144 = vector.extract_strided_slice %91 {offsets = [33, 0], sizes = [95, 32], strides = [1, 1]} : vector<134x32xbf16> to vector<95x32xbf16>
    %145 = vector.extract_strided_slice %91 {offsets = [34, 0], sizes = [95, 32], strides = [1, 1]} : vector<134x32xbf16> to vector<95x32xbf16>
    %146 = vector.extract_strided_slice %91 {offsets = [35, 0], sizes = [95, 32], strides = [1, 1]} : vector<134x32xbf16> to vector<95x32xbf16>
    %147 = vector.extract_strided_slice %91 {offsets = [36, 0], sizes = [95, 32], strides = [1, 1]} : vector<134x32xbf16> to vector<95x32xbf16>
    %148 = vector.extract_strided_slice %91 {offsets = [37, 0], sizes = [95, 32], strides = [1, 1]} : vector<134x32xbf16> to vector<95x32xbf16>
    %149 = vector.extract_strided_slice %91 {offsets = [38, 0], sizes = [95, 32], strides = [1, 1]} : vector<134x32xbf16> to vector<95x32xbf16>
    %150 = vector.extract_strided_slice %91 {offsets = [39, 0], sizes = [95, 32], strides = [1, 1]} : vector<134x32xbf16> to vector<95x32xbf16>
    %151 = tpu.concatenate %143, %144, %145, %146, %147, %148, %149, %150 in 1 : vector<95x32xbf16>, vector<95x32xbf16>, vector<95x32xbf16>, vector<95x32xbf16>, vector<95x32xbf16>, vector<95x32xbf16>, vector<95x32xbf16>, vector<95x32xbf16> -> vector<95x256xbf16>
    %c4_48 = arith.constant 4 : index
    %c0_49 = arith.constant 0 : index
    %c0_50 = arith.constant 0 : index
    %152 = vector.load %arg2[%c4_48, %c0_49, %c0_50] : memref<5x256x128xbf16, #tpu.memory_space<vmem>>, vector<1x256x128xbf16>
    %153 = vector.shape_cast %152 : vector<1x256x128xbf16> to vector<256x128xbf16>
    %cst_51 = arith.constant dense<0.000000e+00> : vector<95x128xf32>
    %154 = tpu.matmul %151, %153, %cst_51 {dimension_numbers = #tpu.dot_dimension_numbers<[1], [0], [0], [1], [0, 0, 1, 1], [], []>} : vector<95x256xbf16>, vector<256x128xbf16>, vector<95x128xf32> -> vector<95x128xf32>
    %155 = arith.addf %142, %154 : vector<95x128xf32>
    %156 = vector.extract_strided_slice %155 {offsets = [0, 0], sizes = [75, 128], strides = [1, 1]} : vector<95x128xf32> to vector<75x128xf32>
    %cst_52 = arith.constant dense<0xFF800000> : vector<128xf32>
    %157 = vector.multi_reduction <maximumf>, %156, %cst_52 [0] : vector<75x128xf32> to vector<128xf32>
    %158 = vector.shape_cast %157 : vector<128xf32> to vector<1x128xf32>
    %159 = vector.extract_strided_slice %155 {offsets = [10, 0], sizes = [75, 128], strides = [1, 1]} : vector<95x128xf32> to vector<75x128xf32>
    %cst_53 = arith.constant dense<0xFF800000> : vector<128xf32>
    %160 = vector.multi_reduction <maximumf>, %159, %cst_53 [0] : vector<75x128xf32> to vector<128xf32>
    %161 = vector.shape_cast %160 : vector<128xf32> to vector<1x128xf32>
    %162 = vector.extract_strided_slice %155 {offsets = [20, 0], sizes = [75, 128], strides = [1, 1]} : vector<95x128xf32> to vector<75x128xf32>
    %cst_54 = arith.constant dense<0xFF800000> : vector<128xf32>
    %163 = vector.multi_reduction <maximumf>, %162, %cst_54 [0] : vector<75x128xf32> to vector<128xf32>
    %164 = vector.shape_cast %163 : vector<128xf32> to vector<1x128xf32>
    %165 = tpu.concatenate %158, %161, %164 in 0 : vector<1x128xf32>, vector<1x128xf32>, vector<1x128xf32> -> vector<3x128xf32>
    %c0_55 = arith.constant 0 : index
    %c0_56 = arith.constant 0 : index
    %166 = vector.load %arg3[%c0_55, %c0_56] : memref<1x128xf32, #tpu.memory_space<vmem>>, vector<1x128xf32>
    %167 = vector.broadcast %166 : vector<1x128xf32> to vector<3x128xf32>
    %168 = arith.addf %165, %167 : vector<3x128xf32>
    %cst_57 = arith.constant 0.000000e+00 : f32
    %169 = vector.broadcast %cst_57 : f32 to vector<3x128xf32>
    %170 = arith.cmpf ogt, %168, %169 : vector<3x128xf32>
    %cst_58 = arith.constant 0.000000e+00 : f32
    %171 = vector.broadcast %cst_58 : f32 to vector<3x128xf32>
    %172 = arith.minimumf %168, %171 : vector<3x128xf32>
    %173 = math.exp %172 : vector<3x128xf32>
    %cst_59 = arith.constant 1.000000e+00 : f32
    %174 = vector.broadcast %cst_59 : f32 to vector<3x128xf32>
    %175 = arith.subf %173, %174 : vector<3x128xf32>
    %176 = arith.select %170, %168, %175 : vector<3x128xi1>, vector<3x128xf32>
    %c1_60 = arith.constant 1 : index
    %c0_61 = arith.constant 0 : index
    %c0_62 = arith.constant 0 : index
    %c0_63 = arith.constant 0 : index
    %177 = vector.load %arg4[%c1_60, %c0_61, %c0_62, %c0_63] : memref<3x1x3x128xf32, #tpu.memory_space<vmem>>, vector<1x1x3x128xf32>
    %178 = vector.shape_cast %177 : vector<1x1x3x128xf32> to vector<3x128xf32>
    %179 = vector.shape_cast %176 : vector<3x128xf32> to vector<1x1x3x128xf32>
    tpu.vector_store %arg4[%c1_60, %c0_61, %c0_62, %c0_63], %179 {strides = array<i32>} : memref<3x1x3x128xf32, #tpu.memory_space<vmem>>, vector<1x1x3x128xf32>,
    %c2_64 = arith.constant 2 : index
    %c0_65 = arith.constant 0 : index
    %c0_66 = arith.constant 0 : index
    %180 = vector.load %arg1[%c2_64, %c0_65, %c0_66] : memref<3x134x33xbf16, #tpu.memory_space<vmem>>, vector<1x134x32xbf16>
    %181 = vector.shape_cast %180 : vector<1x134x32xbf16> to vector<134x32xbf16>
    %182 = vector.extract_strided_slice %181 {offsets = [0, 0], sizes = [95, 32], strides = [1, 1]} : vector<134x32xbf16> to vector<95x32xbf16>
    %183 = vector.extract_strided_slice %181 {offsets = [1, 0], sizes = [95, 32], strides = [1, 1]} : vector<134x32xbf16> to vector<95x32xbf16>
    %184 = vector.extract_strided_slice %181 {offsets = [2, 0], sizes = [95, 32], strides = [1, 1]} : vector<134x32xbf16> to vector<95x32xbf16>
    %185 = vector.extract_strided_slice %181 {offsets = [3, 0], sizes = [95, 32], strides = [1, 1]} : vector<134x32xbf16> to vector<95x32xbf16>
    %186 = vector.extract_strided_slice %181 {offsets = [4, 0], sizes = [95, 32], strides = [1, 1]} : vector<134x32xbf16> to vector<95x32xbf16>
    %187 = vector.extract_strided_slice %181 {offsets = [5, 0], sizes = [95, 32], strides = [1, 1]} : vector<134x32xbf16> to vector<95x32xbf16>
    %188 = vector.extract_strided_slice %181 {offsets = [6, 0], sizes = [95, 32], strides = [1, 1]} : vector<134x32xbf16> to vector<95x32xbf16>
    %189 = vector.extract_strided_slice %181 {offsets = [7, 0], sizes = [95, 32], strides = [1, 1]} : vector<134x32xbf16> to vector<95x32xbf16>
    %190 = tpu.concatenate %182, %183, %184, %185, %186, %187, %188, %189 in 1 : vector<95x32xbf16>, vector<95x32xbf16>, vector<95x32xbf16>, vector<95x32xbf16>, vector<95x32xbf16>, vector<95x32xbf16>, vector<95x32xbf16>, vector<95x32xbf16> -> vector<95x256xbf16>
    %c0_67 = arith.constant 0 : index
    %c0_68 = arith.constant 0 : index
    %c0_69 = arith.constant 0 : index
    %191 = vector.load %arg2[%c0_67, %c0_68, %c0_69] : memref<5x256x128xbf16, #tpu.memory_space<vmem>>, vector<1x256x128xbf16>
    %192 = vector.shape_cast %191 : vector<1x256x128xbf16> to vector<256x128xbf16>
    %cst_70 = arith.constant dense<0.000000e+00> : vector<95x128xf32>
    %193 = tpu.matmul %190, %192, %cst_70 {dimension_numbers = #tpu.dot_dimension_numbers<[1], [0], [0], [1], [0, 0, 1, 1], [], []>} : vector<95x256xbf16>, vector<256x128xbf16>, vector<95x128xf32> -> vector<95x128xf32>
    %194 = vector.extract_strided_slice %181 {offsets = [8, 0], sizes = [95, 32], strides = [1, 1]} : vector<134x32xbf16> to vector<95x32xbf16>
    %195 = vector.extract_strided_slice %181 {offsets = [9, 0], sizes = [95, 32], strides = [1, 1]} : vector<134x32xbf16> to vector<95x32xbf16>
    %196 = vector.extract_strided_slice %181 {offsets = [10, 0], sizes = [95, 32], strides = [1, 1]} : vector<134x32xbf16> to vector<95x32xbf16>
    %197 = vector.extract_strided_slice %181 {offsets = [11, 0], sizes = [95, 32], strides = [1, 1]} : vector<134x32xbf16> to vector<95x32xbf16>
    %198 = vector.extract_strided_slice %181 {offsets = [12, 0], sizes = [95, 32], strides = [1, 1]} : vector<134x32xbf16> to vector<95x32xbf16>
    %199 = vector.extract_strided_slice %181 {offsets = [13, 0], sizes = [95, 32], strides = [1, 1]} : vector<134x32xbf16> to vector<95x32xbf16>
    %200 = vector.extract_strided_slice %181 {offsets = [14, 0], sizes = [95, 32], strides = [1, 1]} : vector<134x32xbf16> to vector<95x32xbf16>
    %201 = vector.extract_strided_slice %181 {offsets = [15, 0], sizes = [95, 32], strides = [1, 1]} : vector<134x32xbf16> to vector<95x32xbf16>
    %202 = tpu.concatenate %194, %195, %196, %197, %198, %199, %200, %201 in 1 : vector<95x32xbf16>, vector<95x32xbf16>, vector<95x32xbf16>, vector<95x32xbf16>, vector<95x32xbf16>, vector<95x32xbf16>, vector<95x32xbf16>, vector<95x32xbf16> -> vector<95x256xbf16>
    %c1_71 = arith.constant 1 : index
    %c0_72 = arith.constant 0 : index
    %c0_73 = arith.constant 0 : index
    %203 = vector.load %arg2[%c1_71, %c0_72, %c0_73] : memref<5x256x128xbf16, #tpu.memory_space<vmem>>, vector<1x256x128xbf16>
    %204 = vector.shape_cast %203 : vector<1x256x128xbf16> to vector<256x128xbf16>
    %cst_74 = arith.constant dense<0.000000e+00> : vector<95x128xf32>
    %205 = tpu.matmul %202, %204, %cst_74 {dimension_numbers = #tpu.dot_dimension_numbers<[1], [0], [0], [1], [0, 0, 1, 1], [], []>} : vector<95x256xbf16>, vector<256x128xbf16>, vector<95x128xf32> -> vector<95x128xf32>
    %206 = arith.addf %193, %205 : vector<95x128xf32>
    %207 = vector.extract_strided_slice %181 {offsets = [16, 0], sizes = [95, 32], strides = [1, 1]} : vector<134x32xbf16> to vector<95x32xbf16>
    %208 = vector.extract_strided_slice %181 {offsets = [17, 0], sizes = [95, 32], strides = [1, 1]} : vector<134x32xbf16> to vector<95x32xbf16>
    %209 = vector.extract_strided_slice %181 {offsets = [18, 0], sizes = [95, 32], strides = [1, 1]} : vector<134x32xbf16> to vector<95x32xbf16>
    %210 = vector.extract_strided_slice %181 {offsets = [19, 0], sizes = [95, 32], strides = [1, 1]} : vector<134x32xbf16> to vector<95x32xbf16>
    %211 = vector.extract_strided_slice %181 {offsets = [20, 0], sizes = [95, 32], strides = [1, 1]} : vector<134x32xbf16> to vector<95x32xbf16>
    %212 = vector.extract_strided_slice %181 {offsets = [21, 0], sizes = [95, 32], strides = [1, 1]} : vector<134x32xbf16> to vector<95x32xbf16>
    %213 = vector.extract_strided_slice %181 {offsets = [22, 0], sizes = [95, 32], strides = [1, 1]} : vector<134x32xbf16> to vector<95x32xbf16>
    %214 = vector.extract_strided_slice %181 {offsets = [23, 0], sizes = [95, 32], strides = [1, 1]} : vector<134x32xbf16> to vector<95x32xbf16>
    %215 = tpu.concatenate %207, %208, %209, %210, %211, %212, %213, %214 in 1 : vector<95x32xbf16>, vector<95x32xbf16>, vector<95x32xbf16>, vector<95x32xbf16>, vector<95x32xbf16>, vector<95x32xbf16>, vector<95x32xbf16>, vector<95x32xbf16> -> vector<95x256xbf16>
    %c2_75 = arith.constant 2 : index
    %c0_76 = arith.constant 0 : index
    %c0_77 = arith.constant 0 : index
    %216 = vector.load %arg2[%c2_75, %c0_76, %c0_77] : memref<5x256x128xbf16, #tpu.memory_space<vmem>>, vector<1x256x128xbf16>
    %217 = vector.shape_cast %216 : vector<1x256x128xbf16> to vector<256x128xbf16>
    %cst_78 = arith.constant dense<0.000000e+00> : vector<95x128xf32>
    %218 = tpu.matmul %215, %217, %cst_78 {dimension_numbers = #tpu.dot_dimension_numbers<[1], [0], [0], [1], [0, 0, 1, 1], [], []>} : vector<95x256xbf16>, vector<256x128xbf16>, vector<95x128xf32> -> vector<95x128xf32>
    %219 = arith.addf %206, %218 : vector<95x128xf32>
    %220 = vector.extract_strided_slice %181 {offsets = [24, 0], sizes = [95, 32], strides = [1, 1]} : vector<134x32xbf16> to vector<95x32xbf16>
    %221 = vector.extract_strided_slice %181 {offsets = [25, 0], sizes = [95, 32], strides = [1, 1]} : vector<134x32xbf16> to vector<95x32xbf16>
    %222 = vector.extract_strided_slice %181 {offsets = [26, 0], sizes = [95, 32], strides = [1, 1]} : vector<134x32xbf16> to vector<95x32xbf16>
    %223 = vector.extract_strided_slice %181 {offsets = [27, 0], sizes = [95, 32], strides = [1, 1]} : vector<134x32xbf16> to vector<95x32xbf16>
    %224 = vector.extract_strided_slice %181 {offsets = [28, 0], sizes = [95, 32], strides = [1, 1]} : vector<134x32xbf16> to vector<95x32xbf16>
    %225 = vector.extract_strided_slice %181 {offsets = [29, 0], sizes = [95, 32], strides = [1, 1]} : vector<134x32xbf16> to vector<95x32xbf16>
    %226 = vector.extract_strided_slice %181 {offsets = [30, 0], sizes = [95, 32], strides = [1, 1]} : vector<134x32xbf16> to vector<95x32xbf16>
    %227 = vector.extract_strided_slice %181 {offsets = [31, 0], sizes = [95, 32], strides = [1, 1]} : vector<134x32xbf16> to vector<95x32xbf16>
    %228 = tpu.concatenate %220, %221, %222, %223, %224, %225, %226, %227 in 1 : vector<95x32xbf16>, vector<95x32xbf16>, vector<95x32xbf16>, vector<95x32xbf16>, vector<95x32xbf16>, vector<95x32xbf16>, vector<95x32xbf16>, vector<95x32xbf16> -> vector<95x256xbf16>
    %c3_79 = arith.constant 3 : index
    %c0_80 = arith.constant 0 : index
    %c0_81 = arith.constant 0 : index
    %229 = vector.load %arg2[%c3_79, %c0_80, %c0_81] : memref<5x256x128xbf16, #tpu.memory_space<vmem>>, vector<1x256x128xbf16>
    %230 = vector.shape_cast %229 : vector<1x256x128xbf16> to vector<256x128xbf16>
    %cst_82 = arith.constant dense<0.000000e+00> : vector<95x128xf32>
    %231 = tpu.matmul %228, %230, %cst_82 {dimension_numbers = #tpu.dot_dimension_numbers<[1], [0], [0], [1], [0, 0, 1, 1], [], []>} : vector<95x256xbf16>, vector<256x128xbf16>, vector<95x128xf32> -> vector<95x128xf32>
    %232 = arith.addf %219, %231 : vector<95x128xf32>
    %233 = vector.extract_strided_slice %181 {offsets = [32, 0], sizes = [95, 32], strides = [1, 1]} : vector<134x32xbf16> to vector<95x32xbf16>
    %234 = vector.extract_strided_slice %181 {offsets = [33, 0], sizes = [95, 32], strides = [1, 1]} : vector<134x32xbf16> to vector<95x32xbf16>
    %235 = vector.extract_strided_slice %181 {offsets = [34, 0], sizes = [95, 32], strides = [1, 1]} : vector<134x32xbf16> to vector<95x32xbf16>
    %236 = vector.extract_strided_slice %181 {offsets = [35, 0], sizes = [95, 32], strides = [1, 1]} : vector<134x32xbf16> to vector<95x32xbf16>
    %237 = vector.extract_strided_slice %181 {offsets = [36, 0], sizes = [95, 32], strides = [1, 1]} : vector<134x32xbf16> to vector<95x32xbf16>
    %238 = vector.extract_strided_slice %181 {offsets = [37, 0], sizes = [95, 32], strides = [1, 1]} : vector<134x32xbf16> to vector<95x32xbf16>
    %239 = vector.extract_strided_slice %181 {offsets = [38, 0], sizes = [95, 32], strides = [1, 1]} : vector<134x32xbf16> to vector<95x32xbf16>
    %240 = vector.extract_strided_slice %181 {offsets = [39, 0], sizes = [95, 32], strides = [1, 1]} : vector<134x32xbf16> to vector<95x32xbf16>
    %241 = tpu.concatenate %233, %234, %235, %236, %237, %238, %239, %240 in 1 : vector<95x32xbf16>, vector<95x32xbf16>, vector<95x32xbf16>, vector<95x32xbf16>, vector<95x32xbf16>, vector<95x32xbf16>, vector<95x32xbf16>, vector<95x32xbf16> -> vector<95x256xbf16>
    %c4_83 = arith.constant 4 : index
    %c0_84 = arith.constant 0 : index
    %c0_85 = arith.constant 0 : index
    %242 = vector.load %arg2[%c4_83, %c0_84, %c0_85] : memref<5x256x128xbf16, #tpu.memory_space<vmem>>, vector<1x256x128xbf16>
    %243 = vector.shape_cast %242 : vector<1x256x128xbf16> to vector<256x128xbf16>
    %cst_86 = arith.constant dense<0.000000e+00> : vector<95x128xf32>
    %244 = tpu.matmul %241, %243, %cst_86 {dimension_numbers = #tpu.dot_dimension_numbers<[1], [0], [0], [1], [0, 0, 1, 1], [], []>} : vector<95x256xbf16>, vector<256x128xbf16>, vector<95x128xf32> -> vector<95x128xf32>
    %245 = arith.addf %232, %244 : vector<95x128xf32>
    %246 = vector.extract_strided_slice %245 {offsets = [0, 0], sizes = [75, 128], strides = [1, 1]} : vector<95x128xf32> to vector<75x128xf32>
    %cst_87 = arith.constant dense<0xFF800000> : vector<128xf32>
    %247 = vector.multi_reduction <maximumf>, %246, %cst_87 [0] : vector<75x128xf32> to vector<128xf32>
    %248 = vector.shape_cast %247 : vector<128xf32> to vector<1x128xf32>
    %249 = vector.extract_strided_slice %245 {offsets = [10, 0], sizes = [75, 128], strides = [1, 1]} : vector<95x128xf32> to vector<75x128xf32>
    %cst_88 = arith.constant dense<0xFF800000> : vector<128xf32>
    %250 = vector.multi_reduction <maximumf>, %249, %cst_88 [0] : vector<75x128xf32> to vector<128xf32>
    %251 = vector.shape_cast %250 : vector<128xf32> to vector<1x128xf32>
    %252 = vector.extract_strided_slice %245 {offsets = [20, 0], sizes = [75, 128], strides = [1, 1]} : vector<95x128xf32> to vector<75x128xf32>
    %cst_89 = arith.constant dense<0xFF800000> : vector<128xf32>
    %253 = vector.multi_reduction <maximumf>, %252, %cst_89 [0] : vector<75x128xf32> to vector<128xf32>
    %254 = vector.shape_cast %253 : vector<128xf32> to vector<1x128xf32>
    %255 = tpu.concatenate %248, %251, %254 in 0 : vector<1x128xf32>, vector<1x128xf32>, vector<1x128xf32> -> vector<3x128xf32>
    %c0_90 = arith.constant 0 : index
    %c0_91 = arith.constant 0 : index
    %256 = vector.load %arg3[%c0_90, %c0_91] : memref<1x128xf32, #tpu.memory_space<vmem>>, vector<1x128xf32>
    %257 = vector.broadcast %256 : vector<1x128xf32> to vector<3x128xf32>
    %258 = arith.addf %255, %257 : vector<3x128xf32>
    %cst_92 = arith.constant 0.000000e+00 : f32
    %259 = vector.broadcast %cst_92 : f32 to vector<3x128xf32>
    %260 = arith.cmpf ogt, %258, %259 : vector<3x128xf32>
    %cst_93 = arith.constant 0.000000e+00 : f32
    %261 = vector.broadcast %cst_93 : f32 to vector<3x128xf32>
    %262 = arith.minimumf %258, %261 : vector<3x128xf32>
    %263 = math.exp %262 : vector<3x128xf32>
    %cst_94 = arith.constant 1.000000e+00 : f32
    %264 = vector.broadcast %cst_94 : f32 to vector<3x128xf32>
    %265 = arith.subf %263, %264 : vector<3x128xf32>
    %266 = arith.select %260, %258, %265 : vector<3x128xi1>, vector<3x128xf32>
    %c2_95 = arith.constant 2 : index
    %c0_96 = arith.constant 0 : index
    %c0_97 = arith.constant 0 : index
    %c0_98 = arith.constant 0 : index
    %267 = vector.load %arg4[%c2_95, %c0_96, %c0_97, %c0_98] : memref<3x1x3x128xf32, #tpu.memory_space<vmem>>, vector<1x1x3x128xf32>
    %268 = vector.shape_cast %267 : vector<1x1x3x128xf32> to vector<3x128xf32>
    %269 = vector.shape_cast %266 : vector<3x128xf32> to vector<1x1x3x128xf32>
    tpu.vector_store %arg4[%c2_95, %c0_96, %c0_97, %c0_98], %269 {strides = array<i32>} : memref<3x1x3x128xf32, #tpu.memory_space<vmem>>, vector<1x1x3x128xf32>,
    return
  }
  func.func @transform_0(%arg0: i32) -> (i32, i32, i32) {
    %c0_i32 = arith.constant 0 : i32
    %c0_i32_0 = arith.constant 0 : i32
    %c0_i32_1 = arith.constant 0 : i32
    return %arg0, %c0_i32, %c0_i32_0 : i32, i32, i32
  }
  func.func @transform_1(%arg0: i32) -> (i32, i32, i32) {
    %c0_i32 = arith.constant 0 : i32
    %c0_i32_0 = arith.constant 0 : i32
    %c0_i32_1 = arith.constant 0 : i32
    %c0_i32_2 = arith.constant 0 : i32
    return %c0_i32, %c0_i32_0, %c0_i32_1 : i32, i32, i32
  }
  func.func @transform_2(%arg0: i32) -> (i32, i32) {
    %c0_i32 = arith.constant 0 : i32
    %c0_i32_0 = arith.constant 0 : i32
    %c0_i32_1 = arith.constant 0 : i32
    return %c0_i32, %c0_i32_0 : i32, i32
  }
  func.func @transform_3(%arg0: i32) -> (i32, i32, i32, i32) {
    %c0_i32 = arith.constant 0 : i32
    %c0_i32_0 = arith.constant 0 : i32
    %c0_i32_1 = arith.constant 0 : i32
    %c0_i32_2 = arith.constant 0 : i32
    return %arg0, %c0_i32, %c0_i32_0, %c0_i32_1 : i32, i32, i32, i32
  }
}

</mosaic_0001>

<bundles_post_ra>
// kernel: cnn_forward.1
= control target key start
LH: loop header
LB: loop body
LE: loop exit
PB: predicated region body
PF: predicated region fallthrough
CT: control target
= control target key end

     0   :  { %s8727_s12 = smov 0   ;;  %s13722_s0 = inlined_call_operand.vmem [shape: bf16[6,134,33], index: 0, kind: input, shape index: {}]   ;;  %s13723_s1 = inlined_call_operand.vmem [shape: bf16[5,256,128], index: 1, kind: input, shape index: {}]   ;;  %s13724_s2 = inlined_call_operand.vmem [shape: f32[1,128], index: 2, kind: input, shape index: {}]   ;;  %s13725_s3 = inlined_call_operand.vmem [shape: f32[6,1,3,128], index: 3, kind: output, shape index: {}]  }
   0x1 LB: > { %s6835_s13 = sadd.s32 4294967295, %s8702_s12   ;;  %p6839_p0 = scmp.ge.s32.totalorder %s8702_s12, 1  ;;  %s8702_s12 = sphi %s8727_s12, %s13_s12  }
   0x2   : > { %p139_p1 = scmp.lt.s32.totalorder %s8702_s12, 3 }
   0x4   : > { %p140_p2 = pnand %p6839_p0, %p139_p1 }
   0x6   : > { %143 = sbr.rel (%p140_p2) target bundleno = 1053 (0x41d), region = 32 }
   0xd   : > { %s164_s14 = smul.u32 3, %s6835_s13  ;;  %v8390_v0 = vld [vmem:[%s13723_s1 + $0xc0] sm:$0xff]   ;;  %v8392_v2 = vld [vmem:[%s13723_s1 + $0xc8] sm:$0xff]   ;;  %vm413_vm0 = vcmask 1044480   ;;  %vm288_vm1 = vcmask 1046528   ;;  %v8396_v19 = vld [vmem:[%s13723_s1 + $0xd0] sm:$0xff]  }
   0xe   : > { %7570 = vmatprep.subr.bf16.mxu0 %v8390_v0  ;;  %v8391_v1 = vld [vmem:[%s13723_s1 + $0x80] sm:$0xff]   ;;  %v8394_v4 = vld [vmem:[%s13723_s1 + $0x88] sm:$0xff]   ;;  %vm373_vm2 = vsmask.f32 5376  ;;  %vm225_vm3 = vsmask.f32 7424 }
   0xf   : > { %p165_p3 = scmp.lt.s32.totalorder %s164_s14, 5  ;;  %7571 = vmatpush3.bf16.msra.mxu0 %v8391_v1  ;;  %v8393_v3 = vld [vmem:[%s13723_s1 + $0x40] sm:$0xff]   ;;  %v8397_v28 = vld [vmem:[%s13723_s1 + $0x48] sm:$0xff]   ;;  %s8704_s8 = smov 64   ;;  %vm439_vm4 = vsmask.f32 4352 }
  0x10   : > { %7572 = vmatprep.subr.bf16.mxu0 %v8392_v2  ;;  %7622 = vmatprep.subr.bf16.mxu1 %v8393_v3  ;;  %v8395_v5 = vld [vmem:[%s13723_s1] sm:$0xff]   ;;  %vm314_vm5 = vsmask.f32 6400  ;;  %v8398_v45 = vld [vmem:[%s13723_s1 + $0x90] sm:$0xff]   ;;  %v8399_v50 = vld [vmem:[%s13723_s1 + $0x8] sm:$0xff]   ;;  %s8705_s19 = smov 32  }
  0x11   : > { %s14045_s14 = smov (!%p165_p3, %s164_s14), 5  ;;  %7623 = vmatpush3.bf16.msra.mxu1 %v8395_v5  ;;  %v8400_v51 = vld [vmem:[%s13723_s1 + $0xd8] sm:$0xff]   ;;  %v8401_v56 = vld [vmem:[%s13723_s1 + $0x50] sm:$0xff]   ;;  %s8706_s11 = smov 96   ;;  %vm359_vm6 = vcmask 1045504   ;;  %vm479_vm7 = vcmask 261120  }
  0x12   : > { %s8366_s21 = smul.u32 68, %s14045_s14  ;;  %7624 = vmatprep.subr.bf16.mxu1 %v8397_v28  ;;  %v8402_v61 = vld [vmem:[%s13723_s1 + $0x98] sm:$0xff]   ;;  %vm492_vm8 = vcmask 523264   ;;  %vm505_vm9 = vcmask 785408   ;;  %vm2338_vm10 = vcmask 1047554   ;;  %vm2355_vm11 = vcmask 1047556  }
  0x13   : > { %7573 = vmatpush3.bf16.msra.mxu0 %v8394_v4  ;;  %vm2326_vm12 = vcmask 1042432   ;;  %vm2372_vm13 = vcmask 1040384   ;;  %vm2374_vm14 = vcmask 1041408  }
  0x14   : > { %s8756_s28 = scalar_lea.vmem %s13722_s0, %s8366_s21  ;;  %7574 = vmatprep.subr.bf16.mxu0 %v8396_v19 }
  0x15   : > { %v179_v6 = vld [vmem:[%s8756_s28 + $0x4] sm:$0xf]  ;;  %v180_v7 = vld [vmem:[%s8756_s28 + $0x8] sm:$0xf]  ;;  %v181_v8 = vld [vmem:[%s8756_s28 + $0xc] sm:$0xf]  ;;  %7625 = vmatpush3.bf16.msra.mxu1 %v8399_v50 }
  0x16   : > { %v182_v9 = vld [vmem:[%s8756_s28 + $0x10] sm:$0xf]  ;;  %v183_v10 = vld [vmem:[%s8756_s28 + $0x14] sm:$0xf]  ;;  %v8767_v11 = vld [vmem:[%s8756_s28 + $0x18] sm:$0xf]  ;;  %v8769_v12 = vcombine.low %v179_v6, %v180_v7  ;;  %v8773_v14 = vcombine.low %v180_v7, %v181_v8  ;;  %7626 = vmatprep.subr.bf16.mxu1 %v8401_v56 }
  0x17   : > { %v8771_v13 = vcombine.low %v181_v8, %v182_v9  ;;  %v8775_v15 = vcombine.low %v182_v9, %v183_v10  ;;  %v8778_v16 = vcombine.low %v183_v10, %v8767_v11  ;;  %v178_v18 = vld [vmem:[%s8756_s28] sm:$0xf]  ;;  %7575 = vmatpush3.bf16.msra.mxu0 %v8398_v45 }
  0x18   : > { %v793_v17 = vrot.slane %v8769_v12, 3  ;;  %v672_v21 = vrot.slane %v8769_v12, 1  ;;  %v8789_v23 = vshrl.u32 %v8769_v12, 16  ;;  %v8792_v24 = vshll.u32 %v8769_v12, 16  ;;  %7576 = vmatprep.subr.bf16.mxu0 %v8400_v51 }
  0x19   : > { %v794_v20 = vrot.slane %v8771_v13, 3  ;;  %v673_v22 = vrot.slane %v8771_v13, 1  ;;  %v8795_v25 = vshll.u32 %v8771_v13, 16  ;;  %v8798_v26 = vshrl.u32 %v8771_v13, 16 }
  0x1a   : > { %v8800_v27 = vcombine.low %v178_v18, %v179_v6  ;;  %v754_v31 = vrot.slane %v8789_v23, 2  ;;  %v415_v32 = vrot.slane %v8773_v14, 3  ;;  %v755_v33 = vrot.slane %v8792_v24, 3 }
  0x1b   : > { %v795_v29 = vsel %vm413_vm0, %v793_v17, %v794_v20  ;;  %v674_v30 = vsel %vm288_vm1, %v672_v21, %v673_v22  ;;  %v757_v34 = vrot.slane %v8798_v26, 2  ;;  %v758_v35 = vrot.slane %v8795_v25, 3  ;;  %7577 = vmatpush3.bf16.msra.mxu0 %v8402_v61  ;;  %v8403_v21 = vld [vmem:[%s13723_s1 + $0x10] sm:$0xff]   ;;  %v8413_v61 = vld [vmem:[%s13723_s1 + $0xa8] sm:$0xff]  }
  0x1c   : > { %806 = vrot.lane.b32.xlu1 %v795_v29, %s8704_s8  ;;  %685 = vrot.lane.b32.xlu0 %v674_v30, %s8704_s8  ;;  %v414_v36 = vrot.slane %v8800_v27, 3  ;;  %v615_v37 = vrot.slane %v8792_v24, 1  ;;  %v620_v38 = vrot.slane %v8795_v25, 1  ;;  %v289_v39 = vrot.slane %v8800_v27, 1 }
  0x1d   : > { %v290_v40 = vrot.slane %v8773_v14, 1  ;;  %v756_v41 = vor.u32 %v755_v33, %v754_v31  ;;  %v8823_v42 = vor.u32 %v758_v35, %v757_v34  ;;  %v8829_v44 = vshrl.u32 %v8800_v27, 16  ;;  %7627 = vmatpush3.bf16.msra.mxu1 %v8403_v21  ;;  %v8405_v35 = vld [vmem:[%s13723_s1 + $0x58] sm:$0xff]   ;;  %v8419_v21 = vld [vmem:[%s13723_s1 + $0x28] sm:$0xff]  }
  0x1e   : > { %v416_v43 = vsel %vm413_vm0, %v414_v36, %v415_v32  ;;  %v616_v46 = vor.u32 %v615_v37, %v8789_v23  ;;  %v8839_v48 = vshll.u32 %v8800_v27, 16  ;;  %v8842_v49 = vshll.u32 %v8773_v14, 16  ;;  %v8406_v36 = vld [vmem:[%s13723_s1 + $0xa0] sm:$0xff]   ;;  %7628 = vmatprep.subr.bf16.mxu1 %v8405_v35 }
  0x1f   : > { %v291_v47 = vsel %vm288_vm1, %v289_v39, %v290_v40  ;;  %v760_v52 = vsel %vm373_vm2, %v756_v41, %v8823_v42  ;;  %v8854_v53 = vshrl.u32 %v8773_v14, 16  ;;  %v374_v54 = vrot.slane %v8829_v44, 2 }
  0x20   : > { %427 = vrot.lane.b32.xlu1 %v416_v43, %s8704_s8  ;;  %v818_v55 = vrot.slane %v8789_v23, 3  ;;  %781 = vrot.lane.b32.xlu0 %v760_v52, %s8705_s19  ;;  %v621_v57 = vsel %vm225_vm3, %v616_v46, %v620_v38  ;;  %v375_v58 = vrot.slane %v8839_v48, 3  ;;  %v378_v59 = vrot.slane %v8842_v49, 3 }
  0x21   : > { %v231_v60 = vrot.slane %v8839_v48, 1  ;;  %v377_v62 = vrot.slane %v8854_v53, 2  ;;  %v236_v63 = vrot.slane %v8842_v49, 1  ;;  %v819_v0 = vrot.slane %v8792_v24, 4 }
  0x22   : > { %v821_v1 = vrot.slane %v8798_v26, 3  ;;  %v376_v2 = vor.u32 %v375_v58, %v374_v54  ;;  %v822_v4 = vrot.slane %v8795_v25, 4  ;;  %v697_v5 = vrot.slane %v8789_v23, 1  ;;  %v8404_v23 = vld [vmem:[%s13723_s1 + $0xe0] sm:$0xff]  }
  0x23   : > { %v232_v3 = vor.u32 %v231_v60, %v8829_v44  ;;  %v8879_v6 = vor.u32 %v378_v59, %v377_v62  ;;  %v820_v7 = vor.u32 %v819_v0, %v818_v55  ;;  %v698_v8 = vrot.slane %v8792_v24, 2  ;;  %7578 = vmatprep.subr.bf16.mxu0 %v8404_v23  ;;  %v8412_v58 = vld [vmem:[%s13723_s1 + $0x60] sm:$0xff]   ;;  %v8420_v23 = vld [vmem:[%s13723_s1 + $0xf8] sm:$0xff]  }
  0x24   : > { %302 = vrot.lane.b32.xlu1 %v291_v47, %s8704_s8  ;;  %v700_v9 = vrot.slane %v8798_v26, 1  ;;  %657 = vrot.lane.b32.xlu0 %v621_v57, %s8705_s19  ;;  %v8887_v17 = vor.u32 %v822_v4, %v821_v1  ;;  %v701_v18 = vrot.slane %v8795_v25, 2  ;;  %v315_v19 = vrot.slane %v8829_v44, 1  ;;  %v8414_v25 = vld [vmem:[%s13723_s1 + $0x20] sm:$0xff]  }
  0x25   : > { %v237_v10 = vsel %vm225_vm3, %v232_v3, %v236_v63  ;;  %v380_v24 = vsel %vm373_vm2, %v376_v2, %v8879_v6  ;;  %v699_v28 = vor.u32 %v698_v8, %v697_v5  ;;  %v316_v29 = vrot.slane %v8839_v48, 2  ;;  %7579 = vmatpush3.bf16.msra.mxu0 %v8406_v36  ;;  %v8416_v3 = vld [vmem:[%s13723_s1 + $0xf0] sm:$0xff]   ;;  %v8417_v5 = vld [vmem:[%s13723_s1 + $0x68] sm:$0xff]   ;;  %v8422_v36 = vld [vmem:[%s13723_s1 + $0xb8] sm:$0xff]  }
  0x26   : > { %v318_v30 = vrot.slane %v8854_v53, 1  ;;  %v8901_v31 = vor.u32 %v701_v18, %v700_v9  ;;  %v319_v33 = vrot.slane %v8842_v49, 2  ;;  %v440_v34 = vrot.slane %v8829_v44, 3  ;;  %v8407_v44 = vld [vmem:[%s13723_s1 + $0x18] sm:$0xff]  }
  0x27   : > { %v824_v37 = vsel %vm439_vm4, %v820_v7, %v8887_v17  ;;  %v441_v39 = vrot.slane %v8839_v48, 4  ;;  %v443_v41 = vrot.slane %v8854_v53, 3  ;;  %v444_v43 = vrot.slane %v8842_v49, 4  ;;  %v8411_v48 = vld [vmem:[%s13723_s1 + $0xe8] sm:$0xff]   ;;  %7629 = vmatpush3.bf16.msra.mxu1 %v8407_v44 }
  0x28   : > { %401 = vrot.lane.b32.xlu1 %v380_v24, %s8705_s19  ;;  %273 = vrot.lane.b32.xlu0 %v237_v10, %s8705_s19  ;;  %v703_v45 = vsel %vm314_vm5, %v699_v28, %v8901_v31  ;;  %v317_v46 = vor.u32 %v316_v29, %v315_v19  ;;  %v8923_v47 = vor.u32 %v319_v33, %v318_v30  ;;  %v8926_v50 = vshll.u32 %v8778_v16, 16  ;;  %v8418_v10 = vld [vmem:[%s13723_s1 + $0xb0] sm:$0xff]   ;;  %v185_v24 = vld [vmem:[%s8756_s28 + $0x1c] sm:$0xf] }
  0x29   : > { %v442_v51 = vor.u32 %v441_v39, %v440_v34  ;;  %v8931_v52 = vor.u32 %v444_v43, %v443_v41  ;;  %v8934_v54 = vshrl.u32 %v8778_v16, 16  ;;  %v8937_v55 = vshll.u32 %v8775_v15, 16  ;;  %7580 = vmatprep.subr.bf16.mxu0 %v8411_v48  ;;  %7630 = vmatprep.subr.bf16.mxu1 %v8412_v58  ;;  %v8998_v28 = vld [vmem:[%s8756_s28 + $0x20] sm:$0xf]  ;;  %v8421_v30 = vld [vmem:[%s13723_s1 + $0x70] sm:$0xff]   ;;  %v8425_v58 = vld [vmem:[%s13723_s1 + $0x38] sm:$0xff]  }
  0x2a   : > { %v762_v56 = vrot.slane %v8926_v50, 3  ;;  %v8941_v57 = vshrl.u32 %v8775_v15, 16  ;;  %v624_v59 = vor.u32 %v8798_v26, %v620_v38  ;;  %v321_v62 = vsel %vm314_vm5, %v317_v46, %v8923_v47  ;;  %7581 = vmatpush3.bf16.msra.mxu0 %v8413_v61  ;;  %v8423_v41 = vld [vmem:[%s13723_s1 + $0x30] sm:$0xff]  }
  0x2b   : > { %v761_v60 = vrot.slane %v8934_v54, 2  ;;  %v628_v0 = vrot.slane %v8926_v50, 1  ;;  %v382_v2 = vrot.slane %v8937_v55, 3  ;;  %v446_v26 = vsel %vm439_vm4, %v442_v51, %v8931_v52  ;;  %7631 = vmatpush3.bf16.msra.mxu1 %v8414_v25  ;;  %7582 = vmatprep.subr.bf16.mxu0 %v8416_v3 }
  0x2c   : > { %845 = vrot.lane.b32.xlu1 %v824_v37, %s8706_s11  ;;  %729 = vrot.lane.b32.xlu0 %v703_v45, %s8706_s11  ;;  %v381_v1 = vrot.slane %v8941_v57, 2  ;;  %v825_v4 = vrot.slane %v8934_v54, 3  ;;  %v826_v9 = vrot.slane %v8926_v50, 4  ;;  %v796_v19 = vrot.slane %v8778_v16, 3 }
  0x2d   : > { %v8965_v38 = vor.u32 %v762_v56, %v761_v60  ;;  %v629_v7 = vsel %vm225_vm3, %v624_v59, %v628_v0  ;;  %7632 = vmatprep.subr.bf16.mxu1 %v8417_v5  ;;  %v675_v34 = vrot.slane %v8778_v16, 1  ;;  %v244_v35 = vrot.slane %v8937_v55, 1 }
  0x2e   : > { %v8979_v8 = vor.u32 %v382_v2, %v381_v1  ;;  %7583 = vmatpush3.bf16.msra.mxu0 %v8418_v10  ;;  %v9004_v29 = vor.u32 %v826_v9, %v825_v4  ;;  %v797_v33 = vsel %vm413_vm0, %v794_v20, %v796_v19  ;;  %v9022_v37 = vcombine.low %v185_v24, %v8998_v28 }
  0x2f   : > { %v764_v18 = vsel %vm373_vm2, %v8823_v42, %v8965_v38  ;;  %7633 = vmatpush3.bf16.msra.mxu1 %v8419_v21  ;;  %7584 = vmatprep.subr.bf16.mxu0 %v8420_v23  ;;  %v704_v39 = vrot.slane %v8934_v54, 1  ;;  %v676_v43 = vsel %vm288_vm1, %v673_v22, %v675_v34  ;;  %v240_v44 = vor.u32 %v8854_v53, %v236_v63  ;;  %v187_v21 = vld [vmem:[%s8756_s28 + $0x24] sm:$0xf] }
  0x30   : > { %347 = vrot.lane.b32.xlu1 %v321_v62, %s8706_s11  ;;  %467 = vrot.lane.b32.xlu0 %v446_v26, %s8706_s11  ;;  %v384_v42 = vsel %vm373_vm2, %v8879_v6, %v8979_v8  ;;  %v417_v6 = vrot.slane %v8775_v15, 3  ;;  %v828_v20 = vsel %vm439_vm4, %v8887_v17, %v9004_v29  ;;  %v705_v45 = vrot.slane %v8926_v50, 2  ;;  %v8424_v17 = vld [vmem:[%s13723_s1 + $0x78] sm:$0xff]  }
  0x31   : > { %7634 = vmatprep.subr.bf16.mxu1 %v8421_v30  ;;  %v292_v46 = vrot.slane %v8775_v15, 1  ;;  %v322_v48 = vrot.slane %v8941_v57, 1  ;;  %v9047_v51 = vcombine.low %v8767_v11, %v185_v24  ;;  %v323_v22 = vrot.slane %v8937_v55, 2 }
  0x32   : > { %7585 = vmatpush3.bf16.msra.mxu0 %v8422_v36  ;;  %v447_v49 = vrot.slane %v8941_v57, 3  ;;  %v418_v53 = vsel %vm413_vm0, %v415_v32, %v417_v6  ;;  %v448_v63 = vrot.slane %v8937_v55, 4  ;;  %v9060_v11 = vshll.u32 %v9022_v37, 16 }
  0x33   : > { %7635 = vmatpush3.bf16.msra.mxu1 %v8423_v41  ;;  %v9063_v56 = vshrl.u32 %v9022_v37, 16  ;;  %v245_v59 = vsel %vm225_vm3, %v240_v44, %v244_v35  ;;  %v9071_v60 = vor.u32 %v705_v45, %v704_v39  ;;  %v293_v32 = vsel %vm288_vm1, %v290_v40, %v292_v46 }
  0x34   : > { %659 = vrot.lane.b32.xlu1 %v629_v7, %s8705_s19  ;;  %783 = vrot.lane.b32.xlu0 %v764_v18, %s8705_s19  ;;  %v9080_v61 = vor.u32 %v323_v22, %v322_v48  ;;  %v9083_v62 = vshll.u32 %v9047_v51, 16  ;;  %v9086_v1 = vshrl.u32 %v9047_v51, 16  ;;  %v9091_v25 = vor.u32 %v448_v63, %v447_v49 }
  0x35   : > { %7636 = vmatprep.subr.bf16.mxu1 %v8424_v17  ;;  %v707_v2 = vsel %vm314_vm5, %v8901_v31, %v9071_v60  ;;  %v765_v26 = vrot.slane %v9063_v56, 2  ;;  %v766_v3 = vrot.slane %v9060_v11, 3  ;;  %v636_v40 = vrot.slane %v9060_v11, 1 }
  0x36   : > { %v325_v4 = vsel %vm314_vm5, %v8923_v47, %v9080_v61  ;;  %v632_v31 = vor.u32 %v8934_v54, %v628_v0  ;;  %v385_v5 = vrot.slane %v9086_v1, 2  ;;  %v386_v7 = vrot.slane %v9083_v62, 3 }
  0x37   : > { %7637 = vmatpush3.bf16.msra.mxu1 %v8425_v58  ;;  %v450_v9 = vsel %vm439_vm4, %v8931_v52, %v9091_v25  ;;  %v9109_v10 = vor.u32 %v766_v3, %v765_v26  ;;  %v829_v54 = vrot.slane %v9063_v56, 3  ;;  %v830_v0 = vrot.slane %v9060_v11, 4 }
  0x38   : > { %403 = vrot.lane.b32.xlu1 %v384_v42, %s8705_s19  ;;  %808 = vrot.lane.b32.xlu0 %v797_v33, %s8704_s8  ;;  %v637_v47 = vsel %vm225_vm3, %v632_v31, %v636_v40  ;;  %v9114_v50 = vor.u32 %v386_v7, %v385_v5  ;;  %v798_v52 = vrot.slane %v9022_v37, 3  ;;  %v9131_v42 = vld [vmem:[%s8756_s28 + $0x28] sm:$0xf]  ;;  %v677_v30 = vrot.slane %v9022_v37, 1  ;;  %v189_v7 = vld [vmem:[%s8756_s28 + $0x2c] sm:$0xf] }
  0x39   : > { %v768_v18 = vsel %vm373_vm2, %v8965_v38, %v9109_v10  ;;  %v9128_v24 = vor.u32 %v830_v0, %v829_v54  ;;  %v419_v33 = vrot.slane %v9047_v51, 3  ;;  %v248_v36 = vor.u32 %v8941_v57, %v244_v35  ;;  %v9241_v54 = vld [vmem:[%s8756_s28 + $0x30] sm:$0xf] }
  0x3a   : > { %v388_v23 = vsel %vm373_vm2, %v8979_v8, %v9114_v50  ;;  %v799_v38 = vsel %vm413_vm0, %v796_v19, %v798_v52  ;;  %v678_v19 = vsel %vm288_vm1, %v675_v34, %v677_v30  ;;  %v252_v39 = vrot.slane %v9083_v62, 1 }
  0x3b   : > { %v832_v8 = vsel %vm439_vm4, %v9004_v29, %v9128_v24  ;;  %v708_v41 = vrot.slane %v9063_v56, 1  ;;  %v709_v29 = vrot.slane %v9060_v11, 2  ;;  %v294_v55 = vrot.slane %v9047_v51, 1 }
  0x3c   : > { %847 = vrot.lane.b32.xlu1 %v828_v20, %s8706_s11  ;;  %687 = vrot.lane.b32.xlu0 %v676_v43, %s8704_s8  ;;  %v9149_v20 = vcombine.low %v187_v21, %v9131_v42  ;;  %v9160_v43 = vcombine.low %v8998_v28, %v187_v21  ;;  %v326_v57 = vrot.slane %v9086_v1, 1  ;;  %v327_v35 = vrot.slane %v9083_v62, 2 }
  0x3d   : > { %v451_v44 = vrot.slane %v9086_v1, 3  ;;  %v452_v34 = vrot.slane %v9083_v62, 4  ;;  %v420_v28 = vsel %vm413_vm0, %v417_v6, %v419_v33  ;;  %v253_v48 = vsel %vm225_vm3, %v248_v36, %v252_v39 }
  0x3e   : > { %v9175_v45 = vshll.u32 %v9149_v20, 16  ;;  %v9178_v17 = vshrl.u32 %v9149_v20, 16  ;;  %v9181_v22 = vor.u32 %v709_v29, %v708_v41  ;;  %v9185_v49 = vshll.u32 %v9160_v43, 16 }
  0x3f   : > { %v295_v6 = vsel %vm288_vm1, %v292_v46, %v294_v55  ;;  %v9196_v63 = vshrl.u32 %v9160_v43, 16  ;;  %v9201_v58 = vor.u32 %v452_v34, %v451_v44  ;;  %v800_v5 = vrot.slane %v9149_v20, 3 }
  0x40   : > { %429 = vrot.lane.b32.xlu1 %v418_v53, %s8704_s8  ;;  %275 = vrot.lane.b32.xlu0 %v245_v59, %s8705_s19  ;;  %v9193_v53 = vor.u32 %v327_v35, %v326_v57  ;;  %v711_v11 = vsel %vm314_vm5, %v9071_v60, %v9181_v22  ;;  %v769_v59 = vrot.slane %v9178_v17, 2  ;;  %v390_v62 = vrot.slane %v9185_v49, 3  ;;  %v9277_v35 = vld [vmem:[%s8756_s28 + $0x3c] sm:$0xf] }
  0x41   : > { %v644_v60 = vrot.slane %v9175_v45, 1  ;;  %v389_v26 = vrot.slane %v9196_v63, 2  ;;  %v454_v3 = vsel %vm439_vm4, %v9091_v25, %v9201_v58  ;;  %v834_v31 = vrot.slane %v9175_v45, 4 }
  0x42   : > { %v329_v46 = vsel %vm314_vm5, %v9080_v61, %v9193_v53  ;;  %v679_v0 = vrot.slane %v9149_v20, 1  ;;  %v421_v21 = vrot.slane %v9160_v43, 3  ;;  %v713_v36 = vrot.slane %v9175_v45, 2 }
  0x43   : > { %v296_v41 = vrot.slane %v9160_v43, 1  ;;  %v330_v29 = vrot.slane %v9196_v63, 1  ;;  %v331_v57 = vrot.slane %v9185_v49, 2 }
  0x44   : > { %304 = vrot.lane.b32.xlu1 %v293_v32, %s8704_s8  ;;  %731 = vrot.lane.b32.xlu0 %v707_v2, %s8706_s11  ;;  %v770_v32 = vrot.slane %v9175_v45, 3  ;;  %v640_v2 = vor.u32 %v9063_v56, %v636_v40  ;;  %v9224_v56 = vor.u32 %v390_v62, %v389_v26  ;;  %v833_v40 = vrot.slane %v9178_v17, 3 }
  0x46   : > { %v645_v61 = vsel %vm225_vm3, %v640_v2, %v644_v60 }
  0x48   : > { %349 = vrot.lane.b32.xlu1 %v325_v4, %s8706_s11  ;;  %469 = vrot.lane.b32.xlu0 %v450_v9, %s8706_s11  ;;  %v9217_v4 = vor.u32 %v770_v32, %v769_v59  ;;  %v392_v9 = vsel %vm373_vm2, %v9114_v50, %v9224_v56  ;;  %v9316_v59 = vor.u32 %v331_v57, %v330_v29  ;;  %v8434_v29 = vld [vmem:[%s13723_s1 + $0x140] sm:$0xff]  }
  0x49   : > { %7674 = vmatprep.subr.bf16.mxu0 %v8434_v29 }
  0x4a   : > { %v772_v25 = vsel %vm373_vm2, %v9109_v10, %v9217_v4  ;;  %v801_v10 = vsel %vm413_vm0, %v798_v52, %v800_v5  ;;  %v680_v52 = vsel %vm288_vm1, %v677_v30, %v679_v0  ;;  %v456_v30 = vrot.slane %v9185_v49, 4 }
  0x4c   : > { %661 = vrot.lane.b32.xlu1 %v637_v47, %s8705_s19  ;;  %785 = vrot.lane.b32.xlu0 %v768_v18, %s8705_s19  ;;  %v9238_v47 = vor.u32 %v834_v31, %v833_v40  ;;  %v9251_v18 = vcombine.low %v189_v7, %v9241_v54  ;;  %v648_v40 = vor.u32 %v9178_v17, %v644_v60 }
  0x4e   : > { %v836_v50 = vsel %vm439_vm4, %v9128_v24, %v9238_v47  ;;  %v9271_v24 = vcombine.low %v9131_v42, %v189_v7  ;;  %v422_v42 = vsel %vm413_vm0, %v419_v33, %v421_v21  ;;  %v9345_v7 = vld [vmem:[%s8756_s28 + $0x58] sm:$0xf] }
  0x50   : > { %405 = vrot.lane.b32.xlu1 %v388_v23, %s8705_s19  ;;  %810 = vrot.lane.b32.xlu0 %v799_v38, %s8704_s8  ;;  %v260_v23 = vrot.slane %v9185_v49, 1  ;;  %v256_v38 = vor.u32 %v9086_v1, %v252_v39  ;;  %v455_v1 = vrot.slane %v9196_v63, 3  ;;  %v9307_v33 = vshrl.u32 %v9271_v24, 16 }
  0x52   : > { %v261_v44 = vsel %vm225_vm3, %v256_v38, %v260_v23  ;;  %v9321_v62 = vor.u32 %v456_v30, %v455_v1  ;;  %v9374_v38 = vld [vmem:[%s8756_s28 + $0x34] sm:$0xf] }
  0x53   : > { %v9399_v57 = vcombine.low %v9374_v38, %v9374_v38 }
  0x54   : > { %849 = vrot.lane.b32.xlu1 %v832_v8, %s8706_s11  ;;  %689 = vrot.lane.b32.xlu0 %v678_v19, %s8704_s8  ;;  %v712_v8 = vrot.slane %v9178_v17, 1  ;;  %v9268_v19 = vld [vmem:[%s8756_s28 + $0x38] sm:$0xf]  ;;  %v458_v31 = vsel %vm439_vm4, %v9201_v58, %v9321_v62 }
  0x55   : > { %v9290_v39 = vcombine.low %v9268_v19, %v9277_v35 }
  0x56   : > { %v9295_v34 = vor.u32 %v713_v36, %v712_v8  ;;  %v9381_v8 = vrot.slane %v9251_v18, 1  ;;  %v9384_v36 = vrot.slane %v9271_v24, 3 }
  0x58   : > { %431 = vrot.lane.b32.xlu1 %v420_v28, %s8704_s8  ;;  %277 = vrot.lane.b32.xlu0 %v253_v48, %s8705_s19  ;;  %v9298_v28 = vshll.u32 %v9251_v18, 16  ;;  %v9301_v48 = vshrl.u32 %v9251_v18, 16  ;;  %v715_v32 = vsel %vm314_vm5, %v9181_v22, %v9295_v34  ;;  %v333_v22 = vsel %vm314_vm5, %v9193_v53, %v9316_v59 }
  0x59   : > { %v682_v1 = vsel %vm288_vm1, %v679_v0, %v9381_v8  ;;  %v424_v49 = vsel %vm413_vm0, %v421_v21, %v9384_v36  ;;  %v334_v0 = vrot.slane %v9307_v33, 1 }
  0x5a   : > { %v774_v2 = vrot.slane %v9298_v28, 3  ;;  %v652_v26 = vrot.slane %v9298_v28, 1  ;;  %v837_v53 = vrot.slane %v9301_v48, 3  ;;  %v838_v58 = vrot.slane %v9298_v28, 4 }
  0x5c   : > { %306 = vrot.lane.b32.xlu1 %v295_v6, %s8704_s8  ;;  %733 = vrot.lane.b32.xlu0 %v711_v11, %s8706_s11  ;;  %v9304_v6 = vshll.u32 %v9271_v24, 16  ;;  %v297_v11 = vsel %vm288_vm1, %v294_v55, %v296_v41  ;;  %v9330_v55 = vld [vmem:[%s8756_s28 + $0x54] sm:$0xf]  ;;  %v653_v45 = vsel %vm225_vm3, %v648_v40, %v652_v26  ;;  %v7083_v40 = vld [vmem:[%s8756_s28 + $0x70] sm:$0xf] }
  0x5e   : > { %v268_v30 = vrot.slane %v9304_v6, 1  ;;  %v460_v21 = vrot.slane %v9304_v6, 4 }
  0x60   : > { %351 = vrot.lane.b32.xlu1 %v329_v46, %s8706_s11  ;;  %471 = vrot.lane.b32.xlu0 %v454_v3, %s8706_s11  ;;  %v773_v46 = vrot.slane %v9301_v48, 2  ;;  %v393_v3 = vrot.slane %v9307_v33, 2 }
  0x64   : > { %663 = vrot.lane.b32.xlu1 %v645_v61, %s8705_s19  ;;  %787 = vrot.lane.b32.xlu0 %v772_v25, %s8705_s19  ;;  %v394_v61 = vrot.slane %v9304_v6, 3  ;;  %v9342_v25 = vor.u32 %v774_v2, %v773_v46  ;;  %v9428_v46 = vshll.u32 %v9399_v57, 16  ;;  %v9432_v2 = vcombine.low %v9241_v54, %v9241_v54 }
  0x66   : > { %v9356_v17 = vor.u32 %v394_v61, %v393_v3  ;;  %v776_v60 = vsel %vm373_vm2, %v9217_v4, %v9342_v25 }
  0x68   : > { %407 = vrot.lane.b32.xlu1 %v392_v9, %s8705_s19  ;;  %812 = vrot.lane.b32.xlu0 %v801_v10, %s8704_s8  ;;  %v9349_v9 = vcombine.low %v9330_v55, %v9345_v7  ;;  %v9364_v10 = vrot.slane %v9251_v18, 3 }
  0x6a   : > { %13832 = vst [vmem:[#allocation2_spill] sm:$0xff] %v9349_v9  ;;  %v803_v4 = vsel %vm413_vm0, %v800_v5, %v9364_v10  ;;  %v264_v5 = vor.u32 %v9196_v63, %v260_v23  ;;  %v9414_v63 = vrot.slane %v9271_v24, 1  ;;  %v335_v23 = vrot.slane %v9304_v6, 2  ;;  %v8438_v6 = vld [vmem:[%s13723_s1 + $0x100] sm:$0xff]  }
  0x6c   : > { %851 = vrot.lane.b32.xlu1 %v836_v50, %s8706_s11  ;;  %691 = vrot.lane.b32.xlu0 %v680_v52, %s8704_s8  ;;  %v396_v50 = vsel %vm373_vm2, %v9224_v56, %v9356_v17  ;;  %v9371_v52 = vor.u32 %v838_v58, %v837_v53  ;;  %v269_v3 = vsel %vm225_vm3, %v264_v5, %v268_v30  ;;  %v9452_v58 = vshrl.u32 %v9432_v2, 16 }
  0x6d   : > { %v9449_v53 = vor.u32 %v335_v23, %v334_v0  ;;  %v9480_v0 = vor.u32 %v9301_v48, %v652_v26 }
  0x6e   : > { %v840_v56 = vsel %vm439_vm4, %v9238_v47, %v9371_v52  ;;  %v717_v47 = vrot.slane %v9298_v28, 2  ;;  %v397_v5 = vrot.slane %v9452_v58, 2  ;;  %v741_v28 = vrot.slane %v8769_v12, 2 }
  0x70   : > { %433 = vrot.lane.b32.xlu1 %v422_v42, %s8704_s8  ;;  %279 = vrot.lane.b32.xlu0 %v261_v44, %s8705_s19  ;;  %v716_v42 = vrot.slane %v9301_v48, 1  ;;  %v459_v44 = vrot.slane %v9307_v33, 3  ;;  %v742_v48 = vrot.slane %v8771_v13, 2 }
  0x72   : > { %v9437_v61 = vor.u32 %v717_v47, %v716_v42 }
  0x74   : > { %308 = vrot.lane.b32.xlu1 %v297_v11, %s8704_s8  ;;  %735 = vrot.lane.b32.xlu0 %v715_v32, %s8706_s11  ;;  %v8441_v11 = vld [vmem:[%s13723_s1 + $0x1c0] sm:$0xff]   ;;  %v9425_v32 = vshrl.u32 %v9399_v57, 16 }
  0x75   : > { %7726 = vmatprep.subr.bf16.mxu1 %v8441_v11 }
  0x76   : > { %v777_v29 = vrot.slane %v9425_v32, 2  ;;  %v841_v23 = vrot.slane %v9425_v32, 3 }
  0x78   : > { %353 = vrot.lane.b32.xlu1 %v333_v22, %s8706_s11  ;;  %473 = vrot.lane.b32.xlu0 %v458_v31, %s8706_s11  ;;  %v7082_v22 = vld [vmem:[%s8756_s28 + $0x6c] sm:$0xf] }
  0x79   : > { %v9442_v31 = vcombine.low %v7082_v22, %v7083_v40 }
  0x7b   : > { %13833 = vst [vmem:[#allocation3_spill] sm:$0xff] %v9442_v31 }
  0x7c   : > { %665 = vrot.lane.b32.xlu1 %v653_v45, %s8705_s19  ;;  %789 = vrot.lane.b32.xlu0 %v776_v60, %s8705_s19  ;;  %v299_v45 = vsel %vm288_vm1, %v296_v41, %v9414_v63  ;;  %v9455_v60 = vshll.u32 %v9432_v2, 16  ;;  %v337_v41 = vsel %vm314_vm5, %v9316_v59, %v9449_v53 }
  0x80   : > { %409 = vrot.lane.b32.xlu1 %v396_v50, %s8705_s19  ;;  %814 = vrot.lane.b32.xlu0 %v803_v4, %s8704_s8  ;;  %v719_v50 = vsel %vm314_vm5, %v9295_v34, %v9437_v61  ;;  %v9460_v4 = vor.u32 %v460_v21, %v459_v44  ;;  %v842_v44 = vrot.slane %v9428_v46, 4  ;;  %v804_v21 = vrot.slane %v9399_v57, 3 }
  0x82   : > { %v462_v47 = vsel %vm439_vm4, %v9321_v62, %v9460_v4  ;;  %v843_v22 = vor.u32 %v842_v44, %v841_v23 }
  0x84   : > { %853 = vrot.lane.b32.xlu1 %v840_v56, %s8706_s11  ;;  %693 = vrot.lane.b32.xlu0 %v682_v1, %s8704_s8  ;;  %v778_v56 = vrot.slane %v9428_v46, 3  ;;  %v398_v1 = vrot.slane %v9455_v60, 3 }
  0x86   : > { %v399_v59 = vor.u32 %v398_v1, %v397_v5  ;;  %v743_v5 = vsel %vm359_vm6, %v741_v28, %v742_v48  ;;  %v9508_v1 = vcombine.low %v9241_v54, %v9374_v38  ;;  %v9522_v28 = vcombine.low %v9374_v38, %v9268_v19 }
  0x88   : > { %435 = vrot.lane.b32.xlu1 %v424_v49, %s8704_s8  ;;  %281 = vrot.lane.b32.xlu0 %v269_v3, %s8705_s19  ;;  %v779_v49 = vor.u32 %v778_v56, %v777_v29  ;;  %v400_v26 = vsel %vm373_vm2, %v9356_v17, %v399_v59  ;;  %v360_v56 = vrot.slane %v8800_v27, 2  ;;  %v300_v59 = vrot.slane %v9432_v2, 1 }
  0x8a   : > { %v780_v62 = vsel %vm373_vm2, %v9342_v25, %v779_v49  ;;  %v425_v49 = vrot.slane %v9432_v2, 3 }
  0x8c   : > { %310 = vrot.lane.b32.xlu1 %v299_v45, %s8704_s8  ;;  %737 = vrot.lane.b32.xlu0 %v719_v50, %s8706_s11  ;;  %v805_v45 = vsel %vm413_vm0, %v9364_v10, %v804_v21  ;;  %v683_v50 = vrot.slane %v9399_v57, 1  ;;  %v726_v21 = vrot.slane %v9428_v46, 2  ;;  %v344_v46 = vrot.slane %v9455_v60, 2 }
  0x8d   : > { %v426_v38 = vsel %vm413_vm0, %v9384_v36, %v425_v49  ;;  %v464_v49 = vrot.slane %v9455_v60, 4 }
  0x8e   : > { %v807_v42 = vpop.permute.xlu1 %806  ;;  %v9471_v34 = vpop.permute.xlu0 %685  ;;  %v684_v44 = vsel %vm288_vm1, %v9381_v8, %v683_v50  ;;  %v9539_v50 = vor.u32 %v9307_v33, %v268_v30 }
  0x90   : > { %355 = vrot.lane.b32.xlu1 %v337_v41, %s8706_s11  ;;  %475 = vrot.lane.b32.xlu0 %v462_v47, %s8706_s11  ;;  %v13726_v41 = vrot.slane %v8773_v14, 2  ;;  %v844_v47 = vsel %vm439_vm4, %v9371_v52, %v843_v22 }
  0x92   : > { %v9485_v11 = vpop.permute.xlu1 %427  ;;  %v782_v3 = vpop.permute.xlu0 %781 }
  0x93   : > { %v901_v54 = vsel %vm479_vm7, %v743_v5, %v782_v3  ;;  %v463_v3 = vrot.slane %v9452_v58, 3 }
  0x94   : > { %667 = vrot.lane.b32.xlu1 %v9480_v0, %s8705_s19  ;;  %791 = vrot.lane.b32.xlu0 %v780_v62, %s8705_s19  ;;  %v723_v62 = vrot.slane %v9425_v32, 1  ;;  %v341_v32 = vrot.slane %v9452_v58, 1  ;;  %v918_v5 = vsel %vm492_vm8, %v901_v54, %v807_v42  ;;  %v301_v58 = vsel %vm288_vm1, %v9414_v63, %v300_v59  ;;  %v8439_v59 = vld [vmem:[%s13723_s1 + $0x148] sm:$0xff]  }
  0x95   : > { %v13727_v42 = vrot.slane %v8778_v16, 2 }
  0x96   : > { %v303_v40 = vpop.permute.xlu1 %302  ;;  %v658_v29 = vpop.permute.xlu0 %657 }
  0x98   : > { %411 = vrot.lane.b32.xlu1 %v400_v26, %s8705_s19  ;;  %816 = vrot.lane.b32.xlu0 %v805_v45, %s8704_s8  ;;  %v362_v26 = vsel %vm359_vm6, %v360_v56, %v13726_v41  ;;  %v858_v45 = vsel %vm479_vm7, %v8769_v12, %v658_v29  ;;  %v9542_v12 = vshll.u32 %v9508_v1, 16  ;;  %v9545_v29 = vshrl.u32 %v9508_v1, 16 }
  0x99   : > { %v870_v41 = vsel %vm492_vm8, %v858_v45, %v9471_v34 }
  0x9a   : > { %v402_v23 = vpop.permute.xlu1 %401  ;;  %v274_v22 = vpop.permute.xlu0 %273  ;;  %v13728_v34 = vrot.slane %v9542_v12, 1  ;;  %v1379_v54 = vrot.slane %v9545_v29, 2 }
  0x9b   : > { %v481_v33 = vsel %vm479_vm7, %v8800_v27, %v274_v22  ;;  %v526_v60 = vsel %vm479_vm7, %v362_v26, %v402_v23  ;;  %v345_v27 = vor.u32 %v344_v46, %v341_v32  ;;  %v1380_v22 = vrot.slane %v9542_v12, 3 }
  0x9c   : > { %855 = vrot.lane.b32.xlu1 %v844_v47, %s8706_s11  ;;  %695 = vrot.lane.b32.xlu0 %v684_v44, %s8704_s8  ;;  %v727_v47 = vor.u32 %v726_v21, %v723_v62  ;;  %v363_v21 = vrot.slane %v8775_v15, 2  ;;  %v9573_v23 = vrot.slane %v9508_v1, 1  ;;  %v494_v32 = vsel %vm492_vm8, %v481_v33, %v303_v40  ;;  %v8443_v40 = vld [vmem:[%s13723_s1 + $0x150] sm:$0xff]  }
  0x9d   : > { %v465_v46 = vor.u32 %v464_v49, %v463_v3  ;;  %v9599_v3 = vshrl.u32 %v9522_v28, 16  ;;  %v8445_v49 = vld [vmem:[%s13723_s1 + $0x1c8] sm:$0xff]  }
  0x9e   : > { %v846_v56 = vpop.permute.xlu1 %845  ;;  %v730_v30 = vpop.permute.xlu0 %729  ;;  %v728_v45 = vsel %vm314_vm5, %v9437_v61, %v727_v47  ;;  %v8442_v47 = vld [vmem:[%s13723_s1 + $0x180] sm:$0xff]  }
  0x9f   : > { %v930_v44 = vsel %vm505_vm9, %v918_v5, %v846_v56  ;;  %v882_v62 = vsel %vm505_vm9, %v870_v41, %v730_v30  ;;  %v8440_v41 = vld [vmem:[%s13723_s1 + $0x108] sm:$0xff]   ;;  %v543_v56 = vsel %vm492_vm8, %v526_v60, %v9485_v11  ;;  %v9585_v30 = vrot.slane %v9508_v1, 3 }
  0xa0   : > { %1108 = vmatprep.mubr.bf16.mxu0 %v930_v44  ;;  %437 = vrot.lane.b32.xlu1 %v426_v38, %s8704_s8  ;;  %v9588_v44 = vshll.u32 %v9522_v28, 16  ;;  %v1399_v60 = vrot.slane %v9545_v29, 3 }
  0xa1   : > { %283 = vrot.lane.b32.xlu0 %v9539_v50, %s8705_s19  ;;  %1109 = vmatmul.mubr.bf16.vlgmr.msra.gmra.mrb[0].mxu0 %v882_v62  ;;  %v1400_v62 = vrot.slane %v9542_v12, 4 }
  0xa2   : > { %v348_v26 = vpop.permute.xlu1 %347  ;;  %7675 = vmatpush3.bf16.msra.mxu0 %v8438_v6  ;;  %v468_v38 = vpop.permute.xlu0 %467  ;;  %v346_v6 = vsel %vm314_vm5, %v9449_v53, %v345_v27  ;;  %v8446_v27 = vld [vmem:[%s13723_s1 + $0x188] sm:$0xff]  }
  0xa3   : > { %v507_v5 = vsel %vm505_vm9, %v494_v32, %v348_v26  ;;  %7676 = vmatprep.subr.bf16.mxu0 %v8439_v59  ;;  %v555_v11 = vsel %vm505_vm9, %v543_v56, %v468_v38  ;;  %v9611_v59 = vor.u32 %v1380_v22, %v1379_v54  ;;  %v8444_v26 = vld [vmem:[%s13723_s1 + $0x110] sm:$0xff]   ;;  %v1709_v32 = vrot.slane %v9588_v44, 3  ;;  %v8447_v54 = vld [vmem:[%s13723_s1 + $0x158] sm:$0xff]  }
  0xa4   : > { %312 = vrot.lane.b32.xlu1 %v301_v58, %s8704_s8  ;;  %1285 = vmatprep.mubr.bf16.mxu1 %v555_v11  ;;  %v466_v58 = vsel %vm439_vm4, %v9460_v4, %v465_v46  ;;  %v13729_v22 = vrot.slane %v9588_v44, 1  ;;  %v8449_v46 = vld [vmem:[%s13723_s1 + $0x1d0] sm:$0xff]   ;;  %v1339_v38 = vsel %vm225_vm3, %v9539_v50, %v13728_v34  ;;  %v1708_v56 = vrot.slane %v9599_v3, 2 }
  0xa5   : > { %739 = vrot.lane.b32.xlu0 %v728_v45, %s8706_s11  ;;  %1286 = vmatmul.mubr.bf16.vlgmr.msra.gmra.mrb[0].mxu1 %v507_v5  ;;  %v8450_v5 = vld [vmem:[%s13723_s1 + $0x190] sm:$0xff]   ;;  %v1382_v11 = vsel %vm373_vm2, %v9356_v17, %v9611_v59  ;;  %v1358_v50 = vrot.slane %v9545_v29, 1  ;;  %v8453_v17 = vld [vmem:[%s13723_s1 + $0x1d8] sm:$0xff]   ;;  %v1392_v34 = vsel %vm413_vm0, %v9384_v36, %v9585_v30  ;;  %v13834_v36 = vrot.slane %v8773_v14, 2 }
  0xa6   : > { %v9607_v33 = vpop.permute.xlu1 %659  ;;  %7677 = vmatpush3.bf16.msra.mxu0 %v8440_v41  ;;  %v784_v45 = vpop.permute.xlu0 %783  ;;  %7727 = vmatpush3.bf16.msra.mxu1 %v8442_v47  ;;  %v8448_v41 = vld [vmem:[%s13723_s1 + $0x118] sm:$0xff]   ;;  %v745_v47 = vsel %vm359_vm6, %v742_v48, %v13727_v42  ;;  %v1359_v48 = vrot.slane %v9542_v12, 2 }
  0xa7   : > { %7678 = vmatprep.subr.bf16.mxu0 %v8443_v40  ;;  %7728 = vmatprep.subr.bf16.mxu1 %v8445_v49  ;;  %v8451_v49 = vld [vmem:[%s13723_s1 + $0x160] sm:$0xff]  }
  0xa8   : > { %357 = vrot.lane.b32.xlu1 %v346_v6, %s8706_s11 }
  0xa9   : > { %477 = vrot.lane.b32.xlu0 %v466_v58, %s8706_s11  ;;  %v8452_v58 = vld [vmem:[%s13723_s1 + $0x120] sm:$0xff]  }
  0xaa   : > { %v9647_v40 = vpop.permute.xlu1 %403  ;;  %7679 = vmatpush3.bf16.msra.mxu0 %v8444_v26  ;;  %v809_v6 = vpop.permute.xlu0 %808  ;;  %7729 = vmatpush3.bf16.msra.mxu1 %v8446_v27  ;;  %v904_v26 = vsel %vm479_vm7, %v745_v47, %v784_v45  ;;  %v1351_v27 = vsel %vm288_vm1, %v9414_v63, %v9573_v23  ;;  %v9678_v45 = vor.u32 %v1400_v62, %v1399_v60 }
  0xab   : > { %7680 = vmatprep.subr.bf16.mxu0 %v8447_v54  ;;  %7730 = vmatprep.subr.bf16.mxu1 %v8449_v46  ;;  %v9669_v54 = vor.u32 %v1709_v32, %v1708_v56  ;;  %v8454_v46 = vld [vmem:[%s13723_s1 + $0x198] sm:$0xff]   ;;  %v8455_v32 = vld [vmem:[%s13723_s1 + $0x168] sm:$0xff]   ;;  %v9699_v62 = vcombine.low %v9268_v19, %v9268_v19  ;;  %v1728_v19 = vrot.slane %v9599_v3, 3  ;;  %v364_v63 = vsel %vm359_vm6, %v13834_v36, %v363_v21 }
  0xac   : > { %1343 = vrot.lane.b32.xlu1 %v1339_v38, %s8705_s19  ;;  %v920_v38 = vsel %vm492_vm8, %v904_v26, %v809_v6  ;;  %v1402_v56 = vsel %vm439_vm4, %v9460_v4, %v9678_v45  ;;  %v1688_v6 = vrot.slane %v9588_v44, 2  ;;  %v9716_v26 = vld [vmem:[%s8756_s28 + $0x50] sm:$0xf]  ;;  %v8458_v4 = vld [vmem:[%s13723_s1 + $0x1a0] sm:$0xff]   ;;  %v13836_v36 = vrot.slane %v9522_v28, 3 }
  0xad   : > { %1387 = vrot.lane.b32.xlu0 %v1382_v11, %s8705_s19  ;;  %v1711_v60 = vsel %vm373_vm2, %v9342_v25, %v9669_v54 }
  0xae   : > { %v848_v42 = vpop.permute.xlu1 %847  ;;  %7681 = vmatpush3.bf16.msra.mxu0 %v8448_v41  ;;  %v688_v47 = vpop.permute.xlu0 %687  ;;  %7731 = vmatpush3.bf16.msra.mxu1 %v8450_v5  ;;  %v9704_v5 = vor.u32 %v1359_v48, %v1358_v50  ;;  %v8459_v50 = vld [vmem:[%s13723_s1 + $0x170] sm:$0xff]   ;;  %v1729_v48 = vrot.slane %v9588_v44, 4 }
  0xaf   : > { %v9681_v11 = vsel %vm505_vm9, %v920_v38, %v848_v42  ;;  %7682 = vmatprep.subr.bf16.mxu0 %v8451_v49  ;;  %v8457_v42 = vld [vmem:[%s13723_s1 + $0x1e0] sm:$0xff]   ;;  %7732 = vmatprep.subr.bf16.mxu1 %v8453_v17  ;;  %v1687_v49 = vrot.slane %v9599_v3, 1  ;;  %v9713_v17 = vld [vmem:[%s8756_s28 + $0x4c] sm:$0xf]  ;;  %v9738_v38 = vshll.u32 %v9699_v62, 16 }
  0xb0   : > { %1354 = vrot.lane.b32.xlu1 %v1351_v27, %s8704_s8  ;;  %1116 = vmatprep.mubr.bf16.mxu0 %v9681_v11  ;;  %v1668_v27 = vsel %vm225_vm3, %v9480_v0, %v13729_v22  ;;  %v1361_v0 = vsel %vm314_vm5, %v9449_v53, %v9704_v5  ;;  %v9754_v22 = vcombine.low %v9713_v17, %v9716_v26  ;;  %v8463_v53 = vld [vmem:[%s13723_s1 + $0x178] sm:$0xff]  }
  0xb1   : > { %1395 = vrot.lane.b32.xlu0 %v1392_v34, %s8704_s8  ;;  %v8456_v34 = vld [vmem:[%s13723_s1 + $0x128] sm:$0xff]  }
  0xb2   : > { %v430_v41 = vpop.permute.xlu1 %429  ;;  %7683 = vmatpush3.bf16.msra.mxu0 %v8452_v58  ;;  %v276_v25 = vpop.permute.xlu0 %275  ;;  %7733 = vmatpush3.bf16.msra.mxu1 %v8454_v46  ;;  %v8461_v58 = vld [vmem:[%s13723_s1 + $0x1e8] sm:$0xff]   ;;  %v9735_v46 = vshrl.u32 %v9699_v62, 16 }
  0xb3   : > { %7684 = vmatprep.subr.bf16.mxu0 %v8455_v32  ;;  %7734 = vmatprep.subr.bf16.mxu1 %v8457_v42  ;;  %v8460_v32 = vld [vmem:[%s13723_s1 + $0x130] sm:$0xff]   ;;  %v8462_v42 = vld [vmem:[%s13723_s1 + $0x1a8] sm:$0xff]  }
  0xb4   : > { %1716 = vrot.lane.b32.xlu1 %v1711_v60, %s8705_s19  ;;  %v860_v60 = vsel %vm479_vm7, %v8771_v13, %v9607_v33  ;;  %v13835_v13 = vrot.slane %v9522_v28, 1 }
  0xb5   : > { %1407 = vrot.lane.b32.xlu0 %v1402_v56, %s8706_s11  ;;  %v872_v31 = vsel %vm492_vm8, %v860_v60, %v688_v47  ;;  %v1721_v47 = vsel %vm413_vm0, %v9364_v10, %v13836_v36  ;;  %v9777_v60 = vor.u32 %v1688_v6, %v1687_v49  ;;  %v529_v10 = vsel %vm479_vm7, %v364_v63, %v9647_v40  ;;  %v8466_v40 = vld [vmem:[%s13723_s1 + $0x1b0] sm:$0xff]   ;;  %v8472_v63 = vld [vmem:[%s13723_s1 + $0x240] sm:$0xff]  }
  0xb6   : > { %v305_v56 = vpop.permute.xlu1 %304  ;;  %7685 = vmatpush3.bf16.msra.mxu0 %v8456_v34  ;;  %v732_v9 = vpop.permute.xlu0 %731  ;;  %v1680_v33 = vsel %vm288_vm1, %v9381_v8, %v13835_v13  ;;  %7735 = vmatpush3.bf16.msra.mxu1 %v8458_v4  ;;  %v8465_v8 = vld [vmem:[%s13723_s1 + $0x1f0] sm:$0xff]   ;;  %v483_v4 = vsel %vm479_vm7, %v8773_v14, %v276_v25  ;;  %v1384_v14 = vrot.slane %v9738_v38, 3  ;;  %v8464_v25 = vld [vmem:[%s13723_s1 + $0x138] sm:$0xff]   ;;  %v13838_v36 = vrot.slane %v9542_v12, 1 }
  0xb7   : > { %7686 = vmatprep.subr.bf16.mxu0 %v8459_v50  ;;  %v9771_v34 = vsel %vm505_vm9, %v872_v31, %v732_v9  ;;  %7736 = vmatprep.subr.bf16.mxu1 %v8461_v58  ;;  %v9786_v9 = vor.u32 %v1729_v48, %v1728_v19  ;;  %v9790_v31 = vcombine.low %v9277_v35, %v9277_v35  ;;  %v1383_v50 = vrot.slane %v9735_v46, 2 }
  0xb8   : > { %1672 = vrot.lane.b32.xlu1 %v1668_v27, %s8705_s19  ;;  %1117 = vmatmul.mubr.bf16.gmra.mrb[4].mxu0 %v9771_v34  ;;  %v496_v49 = vsel %vm492_vm8, %v483_v4, %v305_v56  ;;  %v545_v19 = vsel %vm492_vm8, %v529_v10, %v430_v41  ;;  %v8467_v41 = vld [vmem:[%s13723_s1 + $0x1f8] sm:$0xff]   ;;  %v1690_v27 = vsel %vm314_vm5, %v9437_v61, %v9777_v60  ;;  %v1393_v4 = vrot.slane %v9699_v62, 3 }
  0xb9   : > { %1371 = vrot.lane.b32.xlu0 %v1361_v0, %s8706_s11  ;;  %13837 = vst [vmem:[#allocation4_spill] sm:$0xff] %v9790_v31  ;;  %v746_v0 = vrot.slane %v9022_v37, 2  ;;  %v1731_v13 = vsel %vm439_vm4, %v9371_v52, %v9786_v9  ;;  %v8468_v61 = vld [vmem:[%s13723_s1 + $0x1b8] sm:$0xff]   ;;  %v8478_v52 = vld [vmem:[%s13723_s1 + $0xc0] sm:$0xff]   ;;  %v13839_v12 = vrot.slane %v8778_v16, 2 }
  0xba   : > { %v350_v6 = vpop.permute.xlu1 %349  ;;  %7687 = vmatpush3.bf16.msra.mxu0 %v8460_v32  ;;  %v470_v48 = vpop.permute.xlu0 %469  ;;  %7737 = vmatpush3.bf16.msra.mxu1 %v8462_v42  ;;  %v9823_v32 = vshrl.u32 %v9790_v31, 16  ;;  %v9826_v42 = vshll.u32 %v9790_v31, 16 }
  0xbb   : > { %v9802_v35 = vsel %vm505_vm9, %v496_v49, %v350_v6  ;;  %7688 = vmatprep.subr.bf16.mxu0 %v8463_v53  ;;  %v9812_v58 = vsel %vm505_vm9, %v545_v19, %v470_v48  ;;  %7738 = vmatprep.subr.bf16.mxu1 %v8465_v8  ;;  %v1352_v8 = vrot.slane %v9699_v62, 1 }
  0xbc   : > { %1683 = vrot.lane.b32.xlu1 %v1680_v33, %s8704_s8  ;;  %1293 = vmatprep.mubr.bf16.mxu1 %v9812_v58  ;;  %v1385_v33 = vor.u32 %v1384_v14, %v1383_v50  ;;  %v1712_v10 = vrot.slane %v9823_v32, 2  ;;  %v1713_v49 = vrot.slane %v9826_v42, 3  ;;  %v1403_v14 = vrot.slane %v9735_v46, 3 }
  0xbd   : > { %1724 = vrot.lane.b32.xlu0 %v1721_v47, %s8704_s8  ;;  %1294 = vmatmul.mubr.bf16.gmra.mrb[4].mxu1 %v9802_v35  ;;  %v9842_v47 = vor.u32 %v9545_v29, %v13838_v36  ;;  %v747_v29 = vsel %vm359_vm6, %v13839_v12, %v746_v0  ;;  %v1365_v36 = vrot.slane %v9735_v46, 1 }
  0xbe   : > { %v9829_v56 = vpop.permute.xlu1 %661  ;;  %7689 = vmatpush3.bf16.msra.mxu0 %v8464_v25  ;;  %v786_v53 = vpop.permute.xlu0 %785  ;;  %7739 = vmatpush3.bf16.msra.mxu1 %v8466_v40  ;;  %v1386_v50 = vsel %vm373_vm2, %v9611_v59, %v1385_v33  ;;  %v1404_v25 = vrot.slane %v9738_v38, 4  ;;  %v1353_v40 = vsel %vm288_vm1, %v9573_v23, %v1352_v8 }
  0xbf   : > { %7778 = vmatprep.subr.bf16.mxu0 %v8472_v63  ;;  %7740 = vmatprep.subr.bf16.mxu1 %v8467_v41  ;;  %v907_v48 = vsel %vm479_vm7, %v747_v29, %v786_v53  ;;  %v1394_v63 = vsel %vm413_vm0, %v9585_v30, %v1393_v4  ;;  %v1714_v41 = vor.u32 %v1713_v49, %v1712_v10  ;;  %v13733_v29 = vrot.slane %v9047_v51, 2 }
  0xc0   : > { %1700 = vrot.lane.b32.xlu1 %v1690_v27, %s8706_s11  ;;  %v7073_v27 = vld [vmem:[%s8756_s28 + $0x48] sm:$0xf] }
  0xc1   : > { %1736 = vrot.lane.b32.xlu0 %v1731_v13, %s8706_s11  ;;  %v9882_v8 = vcombine.low %v7073_v27, %v9713_v17  ;;  %v1715_v46 = vsel %vm373_vm2, %v9669_v54, %v1714_v41  ;;  %v366_v54 = vsel %vm359_vm6, %v363_v21, %v13733_v29  ;;  %v1733_v41 = vrot.slane %v9826_v42, 4  ;;  %v7078_v21 = vld [vmem:[%s8756_s28 + $0x5c] sm:$0xf] }
  0xc2   : > { %v9857_v6 = vpop.permute.xlu1 %405  ;;  %v811_v19 = vpop.permute.xlu0 %810  ;;  %7741 = vmatpush3.bf16.msra.mxu1 %v8468_v61  ;;  %v1405_v61 = vor.u32 %v1404_v25, %v1403_v14  ;;  %v9893_v14 = vcombine.low %v9716_v26, %v9330_v55  ;;  %v1694_v25 = vrot.slane %v9823_v32, 1  ;;  %v13732_v26 = vrot.slane %v9149_v20, 2 }
  0xc3   : > { %7830 = vmatprep.subr.bf16.mxu1 %v8478_v52  ;;  %v922_v13 = vsel %vm492_vm8, %v907_v48, %v811_v19  ;;  %v1368_v52 = vrot.slane %v9738_v38, 2  ;;  %13840 = vst [vmem:[#allocation5_spill] sm:$0xff] %v9882_v8  ;;  %v1681_v38 = vrot.slane %v9790_v31, 1  ;;  %v1697_v19 = vrot.slane %v9826_v42, 2 }
  0xc4   : > { %1345 = vrot.lane.b32.xlu1 %v9842_v47, %s8705_s19  ;;  %v1406_v10 = vsel %vm439_vm4, %v9678_v45, %v1405_v61  ;;  %13841 = vst [vmem:[#allocation6_spill] sm:$0xff] %v9893_v14  ;;  %v13842_v48 = vrot.slane %v9588_v44, 1  ;;  %v9907_v55 = vshll.u32 %v9882_v8, 16  ;;  %v9914_v27 = vshrl.u32 %v9882_v8, 16 }
  0xc5   : > { %1389 = vrot.lane.b32.xlu0 %v1386_v50, %s8705_s19  ;;  %v1369_v49 = vor.u32 %v1368_v52, %v1365_v36  ;;  %v1722_v50 = vrot.slane %v9790_v31, 3  ;;  %v862_v44 = vsel %vm479_vm7, %v8778_v16, %v9829_v56  ;;  %v9926_v61 = vshrl.u32 %v9893_v14, 16 }
  0xc6   : > { %v850_v33 = vpop.permute.xlu1 %849  ;;  %v690_v12 = vpop.permute.xlu0 %689  ;;  %v13843_v36 = vrot.slane %v9522_v28, 1  ;;  %v1698_v56 = vor.u32 %v1697_v19, %v1694_v25  ;;  %v2958_v25 = vrot.slane %v9914_v27, 2  ;;  %v2959_v19 = vrot.slane %v9907_v55, 3 }
  0xc7   : > { %v9876_v53 = vsel %vm505_vm9, %v922_v13, %v850_v33  ;;  %v1370_v13 = vsel %vm314_vm5, %v9704_v5, %v1369_v49  ;;  %v9923_v33 = vshll.u32 %v9893_v14, 16  ;;  %v2819_v49 = vrot.slane %v9907_v55, 1 }
  0xc8   : > { %1356 = vrot.lane.b32.xlu1 %v1353_v40, %s8704_s8  ;;  %1124 = vmatprep.mubr.bf16.mxu0 %v9876_v53  ;;  %v1671_v40 = vor.u32 %v9599_v3, %v13842_v48  ;;  %v1682_v52 = vsel %vm288_vm1, %v13843_v36, %v1681_v38  ;;  %v2876_v48 = vrot.slane %v9882_v8, 1 }
  0xc9   : > { %1397 = vrot.lane.b32.xlu0 %v1394_v63, %s8704_s8  ;;  %v1732_v63 = vrot.slane %v9823_v32, 3  ;;  %v874_v32 = vsel %vm492_vm8, %v862_v44, %v690_v12  ;;  %v9942_v12 = vcombine.low %v9345_v7, %v7078_v21  ;;  %v2961_v7 = vrot.slane %v9926_v61, 2 }
  0xca   : > { %v432_v4 = vpop.permute.xlu1 %431  ;;  %v278_v17 = vpop.permute.xlu0 %277  ;;  %v2962_v21 = vrot.slane %v9923_v33, 3 }
  0xcb   : > { %13845 = vst [vmem:[#allocation7_spill] sm:$0xff] %v9942_v12  ;;  %v485_v38 = vsel %vm479_vm7, %v8775_v15, %v278_v17 }
  0xcc   : > { %1718 = vrot.lane.b32.xlu1 %v1715_v46, %s8705_s19  ;;  %v13844_v46 = vrot.slane %v9522_v28, 3 }
  0xcd   : > { %1409 = vrot.lane.b32.xlu0 %v1406_v10, %s8706_s11 }
  0xce   : > { %v307_v3 = vpop.permute.xlu1 %306  ;;  %v734_v42 = vpop.permute.xlu0 %733  ;;  %v1723_v16 = vsel %vm413_vm0, %v13844_v46, %v1722_v50  ;;  %v1734_v50 = vor.u32 %v1733_v41, %v1732_v63  ;;  %v2824_v63 = vrot.slane %v9923_v33, 1  ;;  %v13738_v41 = vrot.slane %v9893_v14, 1 }
  0xcf   : > { %v9937_v10 = vsel %vm505_vm9, %v874_v32, %v734_v42  ;;  %v498_v44 = vsel %vm492_vm8, %v485_v38, %v307_v3  ;;  %v2997_v3 = vrot.slane %v9882_v8, 3  ;;  %v13737_v42 = vrot.slane %v9893_v14, 3 }
  0xd0   : > { %1674 = vrot.lane.b32.xlu1 %v1671_v40, %s8705_s19  ;;  %1125 = vmatmul.mubr.bf16.gmra.mrb[8].mxu0 %v9937_v10  ;;  %v532_v40 = vsel %vm479_vm7, %v366_v54, %v9857_v6  ;;  %v2820_v54 = vor.u32 %v2819_v49, %v9914_v27  ;;  %v1735_v36 = vsel %vm439_vm4, %v9786_v9, %v1734_v50  ;;  %v2902_v46 = vrot.slane %v9907_v55, 2 }
  0xd1   : > { %1373 = vrot.lane.b32.xlu0 %v1370_v13, %s8706_s11  ;;  %v547_v15 = vsel %vm492_vm8, %v532_v40, %v432_v4  ;;  %v1699_v4 = vsel %vm314_vm5, %v9777_v60, %v1698_v56  ;;  %v2960_v38 = vor.u32 %v2959_v19, %v2958_v25  ;;  %v2963_v40 = vor.u32 %v2962_v21, %v2961_v7 }
  0xd2   : > { %v352_v32 = vpop.permute.xlu1 %351  ;;  %v472_v17 = vpop.permute.xlu0 %471  ;;  %v2825_v60 = vsel %vm225_vm3, %v2820_v54, %v2824_v63  ;;  %v3022_v9 = vrot.slane %v9914_v27, 3  ;;  %v3023_v56 = vrot.slane %v9907_v55, 4  ;;  %v3025_v50 = vrot.slane %v9926_v61, 3 }
  0xd3   : > { %v9957_v13 = vsel %vm505_vm9, %v498_v44, %v352_v32  ;;  %v9963_v6 = vsel %vm505_vm9, %v547_v15, %v472_v17  ;;  %v2904_v44 = vrot.slane %v9926_v61, 1  ;;  %v3026_v25 = vrot.slane %v9923_v33, 4 }
  0xd4   : > { %1685 = vrot.lane.b32.xlu1 %v1682_v52, %s8704_s8  ;;  %1301 = vmatprep.mubr.bf16.mxu1 %v9963_v6  ;;  %v2901_v52 = vrot.slane %v9914_v27, 1  ;;  %v749_v19 = vsel %vm359_vm6, %v746_v0, %v13732_v26  ;;  %v2964_v21 = vsel %vm373_vm2, %v2960_v38, %v2963_v40  ;;  %v9995_v15 = vshll.u32 %v9942_v12, 16 }
  0xd5   : > { %1726 = vrot.lane.b32.xlu0 %v1723_v16, %s8704_s8  ;;  %1302 = vmatmul.mubr.bf16.gmra.mrb[8].mxu1 %v9957_v13  ;;  %v2905_v16 = vrot.slane %v9923_v33, 2  ;;  %v9998_v27 = vshrl.u32 %v9942_v12, 16  ;;  %v2878_v33 = vsel %vm288_vm1, %v2876_v48, %v13738_v41  ;;  %v2999_v0 = vsel %vm413_vm0, %v2997_v3, %v13737_v42 }
  0xd6   : > { %v664_v49 = vpop.permute.xlu1 %663  ;;  %v788_v32 = vpop.permute.xlu0 %787  ;;  %v2879_v54 = vrot.slane %v9942_v12, 1  ;;  %v2903_v26 = vor.u32 %v2902_v46, %v2901_v52  ;;  %v3024_v17 = vor.u32 %v3023_v56, %v3022_v9  ;;  %v10014_v31 = vor.u32 %v3026_v25, %v3025_v50 }
  0xd7   : > { %v910_v38 = vsel %vm479_vm7, %v749_v19, %v788_v32  ;;  %v2906_v29 = vor.u32 %v2905_v16, %v2904_v44  ;;  %v2965_v48 = vrot.slane %v9998_v27, 2  ;;  %v2966_v3 = vrot.slane %v9995_v15, 3 }
  0xd8   : > { %1702 = vrot.lane.b32.xlu1 %v1699_v4, %s8706_s11  ;;  %v7079_v4 = vld [vmem:[%s8756_s28 + $0x60] sm:$0xf]  ;;  %v2832_v32 = vrot.slane %v9995_v15, 1  ;;  %v3000_v19 = vrot.slane %v9942_v12, 3  ;;  %v2828_v46 = vor.u32 %v9926_v61, %v2824_v63  ;;  %v2908_v50 = vrot.slane %v9998_v27, 1 }
  0xd9   : > { %1738 = vrot.lane.b32.xlu0 %v1735_v36, %s8706_s11  ;;  %v7080_v36 = vld [vmem:[%s8756_s28 + $0x64] sm:$0xf]  ;;  %v2907_v52 = vsel %vm314_vm5, %v2903_v26, %v2906_v29  ;;  %v2967_v9 = vor.u32 %v2966_v3, %v2965_v48  ;;  %v2909_v25 = vrot.slane %v9995_v15, 2  ;;  %v10055_v3 = vrot.slane %v9251_v18, 2 }
  0xda   : > { %v9991_v7 = vpop.permute.xlu1 %407  ;;  %v813_v55 = vpop.permute.xlu0 %812  ;;  %v10028_v44 = vcombine.low %v7079_v4, %v7080_v36  ;;  %v2833_v26 = vsel %vm225_vm3, %v2828_v46, %v2832_v32  ;;  %v13847_v4 = vrot.slane %v9160_v43, 2  ;;  %v13848_v36 = vrot.slane %v9047_v51, 2 }
  0xdc   : > { %2861 = vrot.lane.b32.xlu1 %v2825_v60, %s8705_s19  ;;  %v924_v60 = vsel %vm492_vm8, %v910_v38, %v813_v55  ;;  %13846 = vst [vmem:[#allocation8_spill] sm:$0xff] %v10028_v44  ;;  %v10038_v61 = vshll.u32 %v10028_v44, 16  ;;  %v10041_v63 = vshrl.u32 %v10028_v44, 16  ;;  %v368_v38 = vsel %vm359_vm6, %v13848_v36, %v13847_v4 }
  0xdd   : > { %2985 = vrot.lane.b32.xlu0 %v2964_v21, %s8705_s19  ;;  %v864_v21 = vsel %vm479_vm7, %v9022_v37, %v664_v49  ;;  %v13849_v49 = vrot.slane %v9893_v14, 1 }
  0xde   : > { %v852_v8 = vpop.permute.xlu1 %851  ;;  %v692_v42 = vpop.permute.xlu0 %691  ;;  %v2969_v46 = vrot.slane %v10041_v63, 2 }
  0xdf   : > { %v10019_v41 = vsel %vm505_vm9, %v924_v60, %v852_v8  ;;  %v3028_v8 = vsel %vm439_vm4, %v3024_v17, %v10014_v31  ;;  %v2968_v17 = vsel %vm373_vm2, %v2963_v40, %v2967_v9  ;;  %v876_v60 = vsel %vm492_vm8, %v864_v21, %v692_v42 }
  0xe0   : > { %2889 = vrot.lane.b32.xlu1 %v2878_v33, %s8704_s8  ;;  %1132 = vmatprep.mubr.bf16.mxu0 %v10019_v41  ;;  %v3029_v33 = vrot.slane %v9998_v27, 3  ;;  %v2880_v40 = vsel %vm288_vm1, %v13849_v49, %v2879_v54  ;;  %v2910_v42 = vor.u32 %v2909_v25, %v2908_v50 }
  0xe1   : > { %3010 = vrot.lane.b32.xlu0 %v2999_v0, %s8704_s8  ;;  %v3030_v0 = vrot.slane %v9995_v15, 4  ;;  %v7081_v15 = vld [vmem:[%s8756_s28 + $0x68] sm:$0xf] }
  0xe2   : > { %v434_v16 = vpop.permute.xlu1 %433  ;;  %v280_v56 = vpop.permute.xlu0 %279 }
  0xe4   : > { %2933 = vrot.lane.b32.xlu1 %v2907_v52, %s8706_s11  ;;  %v487_v52 = vsel %vm479_vm7, %v9047_v51, %v280_v56  ;;  %v13850_v51 = vrot.slane %v9893_v14, 3 }
  0xe5   : > { %3049 = vrot.lane.b32.xlu0 %v3028_v8, %s8706_s11  ;;  %v2970_v8 = vrot.slane %v10038_v61, 3 }
  0xe6   : > { %v309_v55 = vpop.permute.xlu1 %308  ;;  %v736_v48 = vpop.permute.xlu0 %735  ;;  %v3001_v56 = vsel %vm413_vm0, %v13850_v51, %v3000_v19  ;;  %v3033_v51 = vrot.slane %v10041_v63, 3 }
  0xe7   : > { %v10059_v37 = vsel %vm505_vm9, %v876_v60, %v736_v48  ;;  %v500_v21 = vsel %vm492_vm8, %v487_v52, %v309_v55  ;;  %v2840_v60 = vrot.slane %v10038_v61, 1 }
  0xe8   : > { %2863 = vrot.lane.b32.xlu1 %v2833_v26, %s8705_s19  ;;  %1133 = vmatmul.mubr.bf16.gmra.mrb[12].mxu0 %v10059_v37  ;;  %v535_v26 = vsel %vm479_vm7, %v368_v38, %v9991_v7  ;;  %v2881_v7 = vrot.slane %v10028_v44, 1 }
  0xe9   : > { %2987 = vrot.lane.b32.xlu0 %v2968_v17, %s8705_s19  ;;  %v3031_v17 = vor.u32 %v3030_v0, %v3029_v33  ;;  %v549_v50 = vsel %vm492_vm8, %v535_v26, %v434_v16  ;;  %v2911_v33 = vsel %vm314_vm5, %v2906_v29, %v2910_v42  ;;  %v2836_v16 = vor.u32 %v9998_v27, %v2832_v32  ;;  %v8684_v0 = vld [vmem:[%s8756_s28 + $0x6c] sm:$0xf] }
  0xea   : > { %v354_v4 = vpop.permute.xlu1 %353  ;;  %v474_v25 = vpop.permute.xlu0 %473  ;;  %v10096_v38 = vcombine.low %v7081_v15, %v8684_v0  ;;  %v2912_v26 = vrot.slane %v10041_v63, 1  ;;  %v13851_v29 = vrot.slane %v9149_v20, 2 }
  0xeb   : > { %v10083_v36 = vsel %vm505_vm9, %v500_v21, %v354_v4  ;;  %v10089_v55 = vsel %vm505_vm9, %v549_v50, %v474_v25  ;;  %v3032_v49 = vsel %vm439_vm4, %v10014_v31, %v3031_v17  ;;  %v2913_v21 = vrot.slane %v10038_v61, 2 }
  0xec   : > { %2891 = vrot.lane.b32.xlu1 %v2880_v40, %s8704_s8  ;;  %1309 = vmatprep.mubr.bf16.mxu1 %v10089_v55  ;;  %v2971_v40 = vor.u32 %v2970_v8, %v2969_v46  ;;  %v751_v27 = vsel %vm359_vm6, %v13851_v29, %v10055_v3  ;;  %v2841_v32 = vsel %vm225_vm3, %v2836_v16, %v2840_v60  ;;  %v10111_v15 = vshll.u32 %v10096_v38, 16 }
  0xed   : > { %3012 = vrot.lane.b32.xlu0 %v3001_v56, %s8704_s8  ;;  %1310 = vmatmul.mubr.bf16.gmra.mrb[12].mxu1 %v10083_v36  ;;  %v10114_v31 = vshrl.u32 %v10096_v38, 16  ;;  %v3002_v4 = vrot.slane %v10028_v44, 3  ;;  %v3034_v56 = vrot.slane %v10038_v61, 4  ;;  %v10121_v50 = vrot.slane %v9271_v24, 2 }
  0xee   : > { %v666_v48 = vpop.permute.xlu1 %665  ;;  %v790_v52 = vpop.permute.xlu0 %789  ;;  %v2972_v8 = vsel %vm373_vm2, %v2967_v9, %v2971_v40  ;;  %v2882_v9 = vsel %vm288_vm1, %v2879_v54, %v2881_v7  ;;  %v10132_v0 = vor.u32 %v2913_v21, %v2912_v26  ;;  %v13741_v26 = vrot.slane %v10111_v15, 1  ;;  %v8685_v21 = vld [vmem:[%s8756_s28 + $0x70] sm:$0xf] }
  0xef   : > { %v913_v16 = vsel %vm479_vm7, %v751_v27, %v790_v52  ;;  %v2973_v61 = vrot.slane %v10114_v31, 2  ;;  %v3035_v14 = vor.u32 %v3034_v56, %v3033_v51 }
  0xf0   : > { %2935 = vrot.lane.b32.xlu1 %v2911_v33, %s8706_s11  ;;  %v2915_v27 = vsel %vm314_vm5, %v2910_v42, %v10132_v0  ;;  %v3037_v42 = vrot.slane %v10114_v31, 3 }
  0xf1   : > { %3051 = vrot.lane.b32.xlu0 %v3032_v49, %s8706_s11  ;;  %v2974_v49 = vrot.slane %v10111_v15, 3  ;;  %v3036_v51 = vsel %vm439_vm4, %v3031_v17, %v3035_v14  ;;  %v3038_v17 = vrot.slane %v10111_v15, 4 }
  0xf2   : > { %v410_v46 = vpop.permute.xlu1 %409  ;;  %v815_v25 = vpop.permute.xlu0 %814 }
  0xf3   : > { %v926_v29 = vsel %vm492_vm8, %v913_v16, %v815_v25  ;;  %v10152_v56 = vor.u32 %v2974_v49, %v2973_v61  ;;  %v2916_v16 = vrot.slane %v10114_v31, 1 }
  0xf4   : > { %2865 = vrot.lane.b32.xlu1 %v2841_v32, %s8705_s19  ;;  %v3003_v32 = vsel %vm413_vm0, %v3000_v19, %v3002_v4  ;;  %v2844_v19 = vor.u32 %v10041_v63, %v2840_v60  ;;  %v866_v60 = vsel %vm479_vm7, %v9149_v20, %v666_v48 }
  0xf5   : > { %2989 = vrot.lane.b32.xlu0 %v2972_v8, %s8705_s19  ;;  %v2976_v49 = vsel %vm373_vm2, %v2971_v40, %v10152_v56  ;;  %v13855_v40 = vrot.slane %v10096_v38, 1 }
  0xf6   : > { %v854_v33 = vpop.permute.xlu1 %853  ;;  %v694_v54 = vpop.permute.xlu0 %693  ;;  %v2849_v63 = vsel %vm225_vm3, %v2844_v19, %v13741_v26 }
  0xf7   : > { %v10141_v52 = vsel %vm505_vm9, %v926_v29, %v854_v33  ;;  %v7084_v33 = vld [vmem:[%s8756_s28 + $0x74] sm:$0xf]  ;;  %v10169_v29 = vshll.u32 %v9290_v39, 16  ;;  %v2884_v12 = vsel %vm288_vm1, %v2881_v7, %v13855_v40  ;;  %v13746_v40 = vrot.slane %v9290_v39, 1 }
  0xf8   : > { %13852 = vst [vmem:[#allocation9_spill] sm:$0xff] %v10141_v52  ;;  %2893 = vrot.lane.b32.xlu1 %v2882_v9, %s8704_s8  ;;  %1140 = vmatprep.mubr.bf16.mxu0 %v10141_v52  ;;  %v2917_v9 = vrot.slane %v10111_v15, 2  ;;  %v10180_v20 = vcombine.low %v8685_v21, %v7084_v33  ;;  %v13856_v52 = vrot.slane %v10096_v38, 3 }
  0xf9   : > { %3014 = vrot.lane.b32.xlu0 %v3003_v32, %s8704_s8  ;;  %v10172_v32 = vshrl.u32 %v9290_v39, 16 }
  0xfa   : > { %v436_v8 = vpop.permute.xlu1 %435  ;;  %v282_v25 = vpop.permute.xlu0 %281  ;;  %13854 = vst [vmem:[#allocation10_spill] sm:$0xff] %v10180_v20  ;;  %v10198_v21 = vor.u32 %v2917_v9, %v2916_v16  ;;  %v10218_v9 = vshrl.u32 %v10180_v20, 16 }
  0xfc   : > { %2937 = vrot.lane.b32.xlu1 %v2915_v27, %s8706_s11  ;;  %v13853_v27 = vrot.slane %v9160_v43, 2 }
  0xfd   : > { %3053 = vrot.lane.b32.xlu0 %v3036_v51, %s8706_s11  ;;  %v878_v51 = vsel %vm492_vm8, %v866_v60, %v694_v54  ;;  %v489_v54 = vsel %vm479_vm7, %v9160_v43, %v282_v25  ;;  %v2037_v60 = vrot.slane %v10172_v32, 2 }
  0xfe   : > { %v311_v61 = vpop.permute.xlu1 %310  ;;  %v370_v19 = vsel %vm359_vm6, %v13853_v27, %v10121_v50  ;;  %v738_v26 = vpop.permute.xlu0 %737  ;;  %v3005_v27 = vsel %vm413_vm0, %v3002_v4, %v13856_v52  ;;  %v2038_v4 = vrot.slane %v10169_v29, 3 }
  0xff   : > { %v10184_v48 = vsel %vm505_vm9, %v878_v51, %v738_v26  ;;  %v10200_v26 = vor.u32 %v3038_v17, %v3037_v42  ;;  %v538_v33 = vsel %vm479_vm7, %v370_v19, %v410_v46  ;;  %v10215_v46 = vshll.u32 %v10180_v20, 16 }
 0x100   : > { %2867 = vrot.lane.b32.xlu1 %v2849_v63, %s8705_s19  ;;  %1141 = vmatmul.mubr.bf16.gmra.mrb[16].mxu0 %v10184_v48  ;;  %v502_v63 = vsel %vm492_vm8, %v489_v54, %v311_v61  ;;  %v551_v52 = vsel %vm492_vm8, %v538_v33, %v436_v8  ;;  %v752_v8 = vrot.slane %v9399_v57, 2  ;;  %v2919_v42 = vsel %vm314_vm5, %v10132_v0, %v10198_v21  ;;  %v10271_v33 = vld [vmem:[%s8756_s28 + $0x40] ss:$0 sps:$4 sm:$0x77]  }
 0x101   : > { %2991 = vrot.lane.b32.xlu0 %v2976_v49, %s8705_s19  ;;  %v3040_v61 = vsel %vm439_vm4, %v3035_v14, %v10200_v26  ;;  %v10230_v49 = vor.u32 %v2038_v4, %v2037_v60  ;;  %v371_v51 = vrot.slane %v9432_v2, 2  ;;  %v2049_v57 = vrot.slane %v9290_v39, 3 }
 0x102   : > { %v356_v7 = vpop.permute.xlu1 %355  ;;  %v476_v43 = vpop.permute.xlu0 %475  ;;  %v2977_v0 = vrot.slane %v10218_v9, 2  ;;  %v2057_v54 = vrot.slane %v10172_v32, 3  ;;  %v2058_v2 = vrot.slane %v10169_v29, 4  ;;  %v2016_v4 = vrot.slane %v10172_v32, 1 }
 0x103   : > { %v10208_v25 = vsel %vm505_vm9, %v502_v63, %v356_v7  ;;  %v10212_v16 = vsel %vm505_vm9, %v551_v52, %v476_v43  ;;  %v753_v63 = vsel %vm359_vm6, %v10055_v3, %v752_v8  ;;  %v2040_v60 = vsel %vm373_vm2, %v9611_v59, %v10230_v49 }
 0x104   : > { %2895 = vrot.lane.b32.xlu1 %v2884_v12, %s8704_s8  ;;  %1317 = vmatprep.mubr.bf16.mxu1 %v10212_v16  ;;  %v13745_v12 = vrot.slane %v10169_v29, 1  ;;  %v2017_v52 = vrot.slane %v10169_v29, 2  ;;  %v10262_v8 = vrot.slane %v10180_v20, 3  ;;  %v10278_v44 = vor.u32 %v2058_v2, %v2057_v54 }
 0x105   : > { %3016 = vrot.lane.b32.xlu0 %v3005_v27, %s8704_s8  ;;  %1318 = vmatmul.mubr.bf16.gmra.mrb[16].mxu1 %v10208_v25  ;;  %v2978_v27 = vrot.slane %v10215_v46, 3 }
 0x106   : > { %v668_v17 = vpop.permute.xlu1 %667  ;;  %v792_v19 = vpop.permute.xlu0 %791  ;;  %v1997_v14 = vsel %vm225_vm3, %v9842_v47, %v13745_v12  ;;  %v2009_v47 = vsel %vm288_vm1, %v9573_v23, %v13746_v40  ;;  %13858 = vst [vmem:[#allocation12_spill] sm:$0xff] %v10262_v8  ;;  %v2920_v12 = vrot.slane %v10218_v9, 1  ;;  %v2060_v54 = vsel %vm439_vm4, %v9678_v45, %v10278_v44 }
 0x107   : > { %v916_v59 = vsel %vm479_vm7, %v753_v63, %v792_v19  ;;  %v13860_v63 = vrot.slane %v10111_v15, 1  ;;  %v10292_v2 = vor.u32 %v2017_v52, %v2016_v4  ;;  %v13861_v15 = vrot.slane %v10215_v46, 1 }
 0x108   : > { %2939 = vrot.lane.b32.xlu1 %v2919_v42, %s8706_s11  ;;  %v10259_v42 = vrot.slane %v10180_v20, 1  ;;  %v2050_v20 = vsel %vm413_vm0, %v9585_v30, %v2049_v57  ;;  %v868_v45 = vsel %vm479_vm7, %v9251_v18, %v668_v17  ;;  %v13862_v17 = vrot.slane %v10096_v38, 1 }
 0x109   : > { %3055 = vrot.lane.b32.xlu0 %v3040_v61, %s8706_s11  ;;  %v10266_v61 = vor.u32 %v2978_v27, %v2977_v0  ;;  %v2019_v52 = vsel %vm314_vm5, %v9704_v5, %v10292_v2 }
 0x10a   : > { %v412_v7 = vpop.permute.xlu1 %411  ;;  %v817_v43 = vpop.permute.xlu0 %816  ;;  %13857 = vst [vmem:[#allocation11_spill] sm:$0xff] %v10259_v42 }
 0x10b   : > { %13859 = vst [vmem:[#allocation13_spill] sm:$0xff] %v10266_v61  ;;  %v928_v23 = vsel %vm492_vm8, %v916_v59, %v817_v43  ;;  %v2980_v27 = vsel %vm373_vm2, %v10152_v56, %v10266_v61  ;;  %v10295_v43 = vshrl.u32 %v10271_v33, 16  ;;  %v10306_v56 = vld [vmem:[%s8756_s28 + $0x78] sm:$0xf]  ;;  %v3042_v59 = vrot.slane %v10215_v46, 4 }
 0x10c   : > { %2001 = vrot.lane.b32.xlu1 %v1997_v14, %s8705_s19  ;;  %v2921_v14 = vrot.slane %v10215_v46, 2  ;;  %v10326_v5 = vcombine.low %v10306_v56, %v10306_v56 }
 0x10d   : > { %2045 = vrot.lane.b32.xlu0 %v2040_v60, %s8705_s19  ;;  %v2852_v60 = vor.u32 %v10114_v31, %v13860_v63 }
 0x10e   : > { %v856_v40 = vpop.permute.xlu1 %855  ;;  %v696_v19 = vpop.permute.xlu0 %695  ;;  %13863 = vst [vmem:[#allocation14_spill] sm:$0xff] %v10326_v5 }
 0x10f   : > { %v945_v0 = vsel %vm505_vm9, %v928_v23, %v856_v40  ;;  %v2857_v31 = vsel %vm225_vm3, %v2852_v60, %v13861_v15  ;;  %v372_v23 = vsel %vm359_vm6, %v10121_v50, %v371_v51  ;;  %v2886_v60 = vsel %vm288_vm1, %v13862_v17, %v10259_v42 }
 0x110   : > { %2012 = vrot.lane.b32.xlu1 %v2009_v47, %s8704_s8  ;;  %1148 = vmatprep.mubr.bf16.mxu0 %v945_v0  ;;  %v3041_v47 = vrot.slane %v10218_v9, 3  ;;  %v880_v0 = vsel %vm492_vm8, %v868_v45, %v696_v19  ;;  %v10331_v51 = vor.u32 %v2921_v14, %v2920_v12  ;;  %v2041_v19 = vrot.slane %v10295_v43, 2 }
 0x111   : > { %2053 = vrot.lane.b32.xlu0 %v2050_v20, %s8704_s8  ;;  %v10298_v20 = vshll.u32 %v10271_v33, 16 }
 0x112   : > { %v438_v30 = vpop.permute.xlu1 %437  ;;  %13864 = vst [vmem:[#allocation15_spill] sm:$0xff] %v10331_v51 }
 0x113   : > { %v284_v40 = vpop.permute.xlu0 %283  ;;  %v2042_v15 = vrot.slane %v10298_v20, 3 }
 0x114   : > { %2993 = vrot.lane.b32.xlu1 %v2980_v27, %s8705_s19 }
 0x115   : > { %2065 = vrot.lane.b32.xlu0 %v2060_v54, %s8706_s11  ;;  %v491_v54 = vsel %vm479_vm7, %v9271_v24, %v284_v40  ;;  %v2043_v17 = vor.u32 %v2042_v15, %v2041_v19  ;;  %v7072_v19 = vld [vmem:[%s8756_s28 + $0x44] sm:$0xf] }
 0x116   : > { %v313_v4 = vpop.permute.xlu1 %312 }
 0x117   : > { %v740_v27 = vpop.permute.xlu0 %739  ;;  %v504_v45 = vsel %vm492_vm8, %v491_v54, %v313_v4  ;;  %v10349_v4 = vshrl.u32 %v10326_v5, 16 }
 0x118   : > { %2869 = vrot.lane.b32.xlu1 %v2857_v31, %s8705_s19  ;;  %v897_v63 = vsel %vm505_vm9, %v880_v0, %v740_v27  ;;  %v541_v31 = vsel %vm479_vm7, %v372_v23, %v412_v7  ;;  %v13865_v27 = vrot.slane %v10096_v38, 3 }
 0x119   : > { %2029 = vrot.lane.b32.xlu0 %v2019_v52, %s8706_s11  ;;  %1149 = vmatmul.mubr.bf16.gmra.mrb[20].mxu0 %v897_v63  ;;  %v10342_v52 = vor.u32 %v3042_v59, %v3041_v47  ;;  %v553_v12 = vsel %vm492_vm8, %v541_v31, %v438_v30  ;;  %v10356_v47 = vshll.u32 %v10326_v5, 16  ;;  %v8473_v30 = vld [vmem:[%s13723_s1 + $0x200] sm:$0xff]   ;;  %v8474_v31 = vld [vmem:[%s13723_s1 + $0x248] sm:$0xff]  }
 0x11a   : > { %1602 = vmatprep.mubr.bf16.mxu0 %v9812_v58  ;;  %v358_v0 = vpop.permute.xlu1 %357  ;;  %v3007_v40 = vsel %vm413_vm0, %v13865_v27, %v10262_v8  ;;  %v2923_v58 = vsel %vm314_vm5, %v10198_v21, %v10331_v51  ;;  %v13867_v21 = vrot.slane %v10169_v29, 1  ;;  %v2062_v27 = vrot.slane %v10298_v20, 4 }
 0x11b   : > { %13866 = vst [vmem:[#allocation16_spill] sm:$0xff] %v10342_v52  ;;  %v478_v14 = vpop.permute.xlu0 %477  ;;  %v522_v63 = vsel %vm505_vm9, %v504_v45, %v358_v0  ;;  %v3044_v23 = vsel %vm439_vm4, %v10200_v26, %v10342_v52  ;;  %v2010_v45 = vrot.slane %v10271_v33, 1  ;;  %v2051_v0 = vrot.slane %v10271_v33, 3 }
 0x11c   : > { %2897 = vrot.lane.b32.xlu1 %v2886_v60, %s8704_s8  ;;  %v570_v7 = vsel %vm505_vm9, %v553_v12, %v478_v14  ;;  %v2000_v54 = vor.u32 %v10172_v32, %v13867_v21  ;;  %v2981_v26 = vrot.slane %v10349_v4, 2  ;;  %v2982_v29 = vrot.slane %v10356_v47, 3  ;;  %v8475_v32 = vld [vmem:[%s13723_s1 + $0x208] sm:$0xff]   ;;  %v8479_v12 = vld [vmem:[%s13723_s1 + $0x80] sm:$0xff]   ;;  %v8477_v21 = vld [vmem:[%s13723_s1 + $0x210] sm:$0xff]  }
 0x11d   : > { %3018 = vrot.lane.b32.xlu0 %v3007_v40, %s8704_s8  ;;  %1325 = vmatprep.mubr.bf16.mxu1 %v570_v7  ;;  %v2044_v33 = vsel %vm373_vm2, %v10230_v49, %v2043_v17  ;;  %v13868_v49 = vrot.slane %v9290_v39, 1  ;;  %v2023_v7 = vrot.slane %v10295_v43, 1  ;;  %v2026_v17 = vrot.slane %v10298_v20, 2  ;;  %v8485_v20 = vld [vmem:[%s13723_s1 + $0x88] sm:$0xff]  }
 0x11e   : > { %1326 = vmatmul.mubr.bf16.gmra.mrb[20].mxu1 %v522_v63  ;;  %v10361_v59 = vpop.permute.xlu1 %1343  ;;  %v2983_v63 = vor.u32 %v2982_v29, %v2981_v26 }
 0x11f   : > { %1931 = vmatprep.mubr.bf16.mxu1 %v9681_v11  ;;  %v10367_v60 = vpop.permute.xlu0 %1387  ;;  %v2061_v11 = vrot.slane %v10295_v43, 3  ;;  %v2011_v14 = vsel %vm288_vm1, %v13868_v49, %v2010_v45  ;;  %v8484_v43 = vld [vmem:[%s13723_s1 + $0xc8] sm:$0xff]   ;;  %v8488_v45 = vld [vmem:[%s13723_s1 + $0xd0] sm:$0xff]   ;;  %v2930_v49 = vrot.slane %v10356_v47, 2 }
 0x120   : > { %2941 = vrot.lane.b32.xlu1 %v2923_v58, %s8706_s11 }
 0x121   : > { %3057 = vrot.lane.b32.xlu0 %v3044_v23, %s8706_s11  ;;  %1603 = vmatmul.mubr.bf16.vlgmr.msra.gmra.mrb[24].mxu0 %v9802_v35  ;;  %v8476_v35 = vld [vmem:[%s13723_s1 + $0x250] sm:$0xff]   ;;  %v2063_v23 = vor.u32 %v2062_v27, %v2061_v11  ;;  %v2027_v11 = vor.u32 %v2026_v17, %v2023_v7  ;;  %v10475_v7 = vshll.u32 %v9754_v22, 16 }
 0x122   : > { %1610 = vmatprep.mubr.bf16.mxu0 %v9963_v6  ;;  %v10388_v15 = vpop.permute.xlu1 %1354  ;;  %7779 = vmatpush3.bf16.msra.mxu0 %v8473_v30  ;;  %v2052_v30 = vsel %vm413_vm0, %v2049_v57, %v2051_v0  ;;  %v8482_v57 = vld [vmem:[%s13723_s1 + $0x258] sm:$0xff]  }
 0x123   : > { %v10396_v40 = vpop.permute.xlu0 %1395  ;;  %7780 = vmatprep.subr.bf16.mxu0 %v8474_v31  ;;  %v2064_v26 = vsel %vm439_vm4, %v10278_v44, %v2063_v23  ;;  %v8486_v44 = vld [vmem:[%s13723_s1 + $0x260] sm:$0xff]   ;;  %v3008_v23 = vrot.slane %v10326_v5, 3 }
 0x124   : > { %2003 = vrot.lane.b32.xlu1 %v2000_v54, %s8705_s19  ;;  %v8686_v54 = vld [vmem:[%s8756_s28 + $0x48] sm:$0xf] }
 0x125   : > { %2047 = vrot.lane.b32.xlu0 %v2044_v33, %s8705_s19  ;;  %v10418_v31 = vcombine.low %v7072_v19, %v8686_v54  ;;  %v13870_v33 = vrot.slane %v10215_v46, 1  ;;  %v3046_v46 = vrot.slane %v10356_v47, 4  ;;  %v2028_v47 = vsel %vm314_vm5, %v10292_v2, %v2027_v11  ;;  %v8490_v2 = vld [vmem:[%s13723_s1 + $0x268] sm:$0xff]  }
 0x126   : > { %1932 = vmatmul.mubr.bf16.vlgmr.msra.gmra.mrb[24].mxu1 %v9771_v34  ;;  %v10408_v58 = vpop.permute.xlu1 %1716  ;;  %7781 = vmatpush3.bf16.msra.mxu0 %v8475_v32  ;;  %v8483_v32 = vld [vmem:[%s13723_s1 + $0x218] sm:$0xff]   ;;  %v10491_v54 = vrot.slane %v9508_v1, 2 }
 0x127   : > { %13869 = vst [vmem:[#allocation17_spill] sm:$0xff] %v10418_v31  ;;  %1939 = vmatprep.mubr.bf16.mxu1 %v9876_v53  ;;  %v10421_v34 = vpop.permute.xlu0 %1407  ;;  %7782 = vmatprep.subr.bf16.mxu0 %v8476_v35  ;;  %v2984_v53 = vsel %vm373_vm2, %v10266_v61, %v2983_v63  ;;  %v10446_v29 = vshll.u32 %v10418_v31, 16  ;;  %v10456_v27 = vor.u32 %v10218_v9, %v13870_v33  ;;  %v2887_v35 = vrot.slane %v10326_v5, 1  ;;  %v8489_v9 = vld [vmem:[%s13723_s1 + $0x90] sm:$0xff]  }
 0x128   : > { %2014 = vrot.lane.b32.xlu1 %v2011_v14, %s8704_s8  ;;  %7831 = vmatpush3.bf16.msra.mxu1 %v8479_v12  ;;  %v2927_v12 = vrot.slane %v10349_v4, 1  ;;  %v3045_v14 = vrot.slane %v10349_v4, 3  ;;  %v10472_v63 = vshrl.u32 %v10418_v31, 16  ;;  %v2587_v33 = vrot.slane %v10475_v7, 3 }
 0x129   : > { %2055 = vrot.lane.b32.xlu0 %v2052_v30, %s8704_s8  ;;  %1611 = vmatmul.mubr.bf16.gmra.mrb[28].mxu0 %v9957_v13  ;;  %v10478_v30 = vshrl.u32 %v9754_v22, 16  ;;  %v2444_v17 = vrot.slane %v10446_v29, 1  ;;  %v2584_v11 = vrot.slane %v10446_v29, 3  ;;  %v2530_v61 = vrot.slane %v10475_v7, 2 }
 0x12a   : > { %1618 = vmatprep.mubr.bf16.mxu0 %v10089_v55  ;;  %v10441_v0 = vpop.permute.xlu1 %1672  ;;  %7783 = vmatpush3.bf16.msra.mxu0 %v8477_v21  ;;  %v8487_v21 = vld [vmem:[%s13723_s1 + $0x220] sm:$0xff]  }
 0x12b   : > { %v10451_v19 = vpop.permute.xlu0 %1371  ;;  %7784 = vmatprep.subr.bf16.mxu0 %v8482_v57  ;;  %7832 = vmatprep.subr.bf16.mxu1 %v8484_v43  ;;  %v8492_v57 = vld [vmem:[%s13723_s1 + $0xd8] sm:$0xff]   ;;  %v13752_v43 = vrot.slane %v9522_v28, 2 }
 0x12c   : > { %2995 = vrot.lane.b32.xlu1 %v2984_v53, %s8705_s19  ;;  %7833 = vmatpush3.bf16.msra.mxu1 %v8485_v20  ;;  %v2888_v20 = vsel %vm288_vm1, %v10259_v42, %v2887_v35  ;;  %v3047_v53 = vor.u32 %v3046_v46, %v3045_v14  ;;  %v8496_v35 = vld [vmem:[%s13723_s1 + $0xe0] sm:$0xff]   ;;  %v8491_v46 = vld [vmem:[%s13723_s1 + $0x228] sm:$0xff]   ;;  %v2529_v42 = vrot.slane %v10478_v30, 1 }
 0x12d   : > { %2067 = vrot.lane.b32.xlu0 %v2064_v26, %s8706_s11  ;;  %7834 = vmatprep.subr.bf16.mxu1 %v8488_v45  ;;  %v8493_v45 = vld [vmem:[%s13723_s1 + $0x98] sm:$0xff]   ;;  %v2583_v26 = vrot.slane %v10472_v63, 2  ;;  %v13871_v14 = vld [vmem:[#allocation2_spill] sm:$0xff] }
 0x12e   : > { %1940 = vmatmul.mubr.bf16.gmra.mrb[28].mxu1 %v9937_v10  ;;  %v10481_v4 = vpop.permute.xlu1 %1683  ;;  %7785 = vmatpush3.bf16.msra.mxu0 %v8483_v32  ;;  %v2586_v32 = vrot.slane %v10478_v30, 2  ;;  %v10546_v5 = vshrl.u32 %v13871_v14, 16 }
 0x12f   : > { %1947 = vmatprep.mubr.bf16.mxu1 %v10019_v41  ;;  %v10494_v10 = vpop.permute.xlu0 %1724  ;;  %7786 = vmatprep.subr.bf16.mxu0 %v8486_v44  ;;  %v2931_v41 = vor.u32 %v2930_v49, %v2927_v12  ;;  %v3009_v12 = vsel %vm413_vm0, %v10262_v8, %v3008_v23  ;;  %v2445_v49 = vor.u32 %v2444_v17, %v10472_v63  ;;  %v8494_v23 = vld [vmem:[%s13723_s1 + $0x270] sm:$0xff]   ;;  %v13875_v8 = vrot.slane %v9754_v22, 3 }
 0x130   : > { %2871 = vrot.lane.b32.xlu1 %v10456_v27, %s8705_s19  ;;  %7835 = vmatpush3.bf16.msra.mxu1 %v8489_v9  ;;  %v1376_v9 = vsel %vm359_vm6, %v10121_v50, %v10491_v54  ;;  %v1705_v17 = vsel %vm359_vm6, %v10055_v3, %v13752_v43  ;;  %v3048_v3 = vsel %vm439_vm4, %v10342_v52, %v3047_v53  ;;  %v2622_v53 = vrot.slane %v10418_v31, 3 }
 0x131   : > { %2031 = vrot.lane.b32.xlu0 %v2028_v47, %s8706_s11  ;;  %1619 = vmatmul.mubr.bf16.gmra.mrb[32].mxu0 %v10083_v36  ;;  %v2932_v50 = vsel %vm314_vm5, %v10331_v51, %v2931_v41  ;;  %v2527_v51 = vrot.slane %v10446_v29, 2 }
 0x132   : > { %1626 = vmatprep.mubr.bf16.mxu0 %v10212_v16  ;;  %v10520_v44 = vpop.permute.xlu1 %1700  ;;  %7787 = vmatpush3.bf16.msra.mxu0 %v8487_v21  ;;  %v1377_v21 = vrot.slane %v9699_v62, 2  ;;  %v10557_v62 = vshll.u32 %v13871_v14, 16 }
 0x133   : > { %v10532_v47 = vpop.permute.xlu0 %1736  ;;  %7788 = vmatprep.subr.bf16.mxu0 %v8490_v2  ;;  %7836 = vmatprep.subr.bf16.mxu1 %v8492_v57  ;;  %v8497_v2 = vld [vmem:[%s13723_s1 + $0xa0] sm:$0xff]   ;;  %v2585_v57 = vor.u32 %v2584_v11, %v2583_v26  ;;  %v8495_v26 = vld [vmem:[%s13723_s1 + $0x230] sm:$0xff]   ;;  %v13873_v11 = vld [vmem:[#allocation9_spill] sm:$0xff] }
 0x134   : > { %2899 = vrot.lane.b32.xlu1 %v2888_v20, %s8704_s8  ;;  %7837 = vmatpush3.bf16.msra.mxu1 %v8493_v45  ;;  %v10554_v20 = vor.u32 %v2587_v33, %v2586_v32  ;;  %v13872_v45 = vrot.slane %v10475_v7, 1  ;;  %v2590_v33 = vrot.slane %v10546_v5, 2 }
 0x135   : > { %3020 = vrot.lane.b32.xlu0 %v3009_v12, %s8704_s8  ;;  %7838 = vmatprep.subr.bf16.mxu1 %v8496_v35  ;;  %v2501_v12 = vrot.slane %v10418_v31, 1  ;;  %v2647_v35 = vrot.slane %v10472_v63, 3  ;;  %v1378_v31 = vsel %vm359_vm6, %v10491_v54, %v1377_v21  ;;  %v2624_v21 = vsel %vm413_vm0, %v2622_v53, %v13875_v8  ;;  %v8503_v8 = vld [vmem:[%s13723_s1 + $0xb0] sm:$0xff]  }
 0x136   : > { %1948 = vmatmul.mubr.bf16.gmra.mrb[32].mxu1 %v10059_v37  ;;  %v10560_v41 = vpop.permute.xlu1 %1345  ;;  %v2450_v43 = vsel %vm225_vm3, %v2445_v49, %v13872_v45  ;;  %7789 = vmatpush3.bf16.msra.mxu0 %v8491_v46  ;;  %v1427_v37 = vsel %vm479_vm7, %v1376_v9, %v10367_v60  ;;  %v2648_v49 = vrot.slane %v10446_v29, 4  ;;  %v8498_v46 = vld [vmem:[%s13723_s1 + $0x278] sm:$0xff]   ;;  %v8500_v45 = vld [vmem:[%s13723_s1 + $0xe8] sm:$0xff]   ;;  %v2650_v9 = vrot.slane %v10478_v30, 3 }
 0x137   : > { %1955 = vmatprep.mubr.bf16.mxu1 %v13873_v11  ;;  %v1390_v32 = vpop.permute.xlu0 %1389  ;;  %7790 = vmatprep.subr.bf16.mxu0 %v8494_v23  ;;  %v1432_v60 = vsel %vm492_vm8, %v1427_v37, %v10396_v40  ;;  %v2651_v11 = vrot.slane %v10475_v7, 4  ;;  %v8501_v23 = vld [vmem:[%s13723_s1 + $0xa8] sm:$0xff]   ;;  %v2526_v37 = vrot.slane %v10472_v63, 1  ;;  %v8499_v63 = vld [vmem:[%s13723_s1 + $0x238] sm:$0xff]  }
 0x138   : > { %2943 = vrot.lane.b32.xlu1 %v2932_v50, %s8706_s11  ;;  %7839 = vmatpush3.bf16.msra.mxu1 %v8497_v2  ;;  %v10596_v40 = vsel %vm505_vm9, %v1432_v60, %v10421_v34  ;;  %v2591_v50 = vrot.slane %v10557_v62, 3  ;;  %v8502_v2 = vld [vmem:[%s13723_s1 + $0xf0] sm:$0xff]   ;;  %v2589_v34 = vsel %vm373_vm2, %v2585_v57, %v10554_v20  ;;  %v13874_v60 = vrot.slane %v9754_v22, 1  ;;  %v8512_v57 = vld [vmem:[%s13723_s1 + $0x40] sm:$0xff]  }
 0x139   : > { %3059 = vrot.lane.b32.xlu0 %v3048_v3, %s8706_s11  ;;  %1627 = vmatmul.mubr.bf16.gmra.mrb[36].mxu0 %v10208_v25 }
 0x13a   : > { %1634 = vmatprep.mubr.bf16.mxu0 %v10596_v40  ;;  %v10607_v3 = vpop.permute.xlu1 %1356  ;;  %7791 = vmatpush3.bf16.msra.mxu0 %v8495_v26  ;;  %v2503_v52 = vsel %vm288_vm1, %v2501_v12, %v13874_v60  ;;  %v1756_v26 = vsel %vm479_vm7, %v1705_v17, %v10408_v58  ;;  %v2649_v12 = vor.u32 %v2648_v49, %v2647_v35  ;;  %v2457_v49 = vrot.slane %v10557_v62, 1 }
 0x13b   : > { %v1398_v29 = vpop.permute.xlu0 %1397  ;;  %7792 = vmatprep.subr.bf16.mxu0 %v8498_v46  ;;  %7840 = vmatprep.subr.bf16.mxu1 %v8500_v45  ;;  %v10628_v60 = vor.u32 %v2651_v11, %v2650_v9  ;;  %v1761_v53 = vsel %vm492_vm8, %v1756_v26, %v10494_v10  ;;  %v10636_v46 = vor.u32 %v2591_v50, %v2590_v33  ;;  %v8505_v10 = vld [vmem:[%s13723_s1 + $0xf8] sm:$0xff]   ;;  %v8688_v11 = vld [vmem:[%s8756_s28 + $0x60] sm:$0xf] }
 0x13c   : > { %2486 = vrot.lane.b32.xlu1 %v2450_v43, %s8705_s19  ;;  %7841 = vmatpush3.bf16.msra.mxu1 %v8501_v23  ;;  %v2528_v45 = vor.u32 %v2527_v51, %v2526_v37  ;;  %v1412_v58 = vsel %vm479_vm7, %v9271_v24, %v10361_v59  ;;  %v1430_v43 = vsel %vm479_vm7, %v1378_v31, %v1390_v32  ;;  %v8687_v9 = vld [vmem:[%s8756_s28 + $0x5c] sm:$0xf]  ;;  %v13877_v37 = vld [vmem:[#allocation4_spill] sm:$0xff] }
 0x13d   : > { %2610 = vrot.lane.b32.xlu0 %v2589_v34, %s8705_s19  ;;  %7842 = vmatprep.subr.bf16.mxu1 %v8502_v2  ;;  %v1765_v35 = vsel %vm505_vm9, %v1761_v53, %v10532_v47  ;;  %v1416_v51 = vsel %vm492_vm8, %v1412_v58, %v10388_v15  ;;  %v1434_v33 = vsel %vm492_vm8, %v1430_v43, %v1398_v29  ;;  %v8506_v15 = vld [vmem:[%s13723_s1 + $0xb8] sm:$0xff]   ;;  %v13876_v47 = vrot.slane %v10475_v7, 1 }
 0x13e   : > { %1956 = vmatmul.mubr.bf16.gmra.mrb[36].mxu1 %v10184_v48  ;;  %v10643_v17 = vpop.permute.xlu1 %1718  ;;  %7793 = vmatpush3.bf16.msra.mxu0 %v8499_v63  ;;  %v10653_v59 = vor.u32 %v2530_v61, %v2529_v42  ;;  %v10658_v48 = vsel %vm505_vm9, %v1416_v51, %v10451_v19  ;;  %v2653_v42 = vsel %vm439_vm4, %v2649_v12, %v10628_v60  ;;  %v8518_v61 = vld [vmem:[%s13723_s1 + $0x140] sm:$0xff]   ;;  %v1706_v2 = vrot.slane %v13877_v37, 2 }
 0x13f   : > { %1963 = vmatprep.mubr.bf16.mxu1 %v1765_v35  ;;  %v1410_v24 = vpop.permute.xlu0 %1409  ;;  %7882 = vmatprep.subr.bf16.mxu0 %v8512_v57  ;;  %v2593_v19 = vsel %vm373_vm2, %v10554_v20, %v10636_v46  ;;  %v2453_v32 = vor.u32 %v10478_v30, %v13876_v47  ;;  %v10680_v23 = vcombine.low %v8687_v9, %v8688_v11  ;;  %v2504_v30 = vrot.slane %v13871_v14, 1 }
 0x140   : > { %2514 = vrot.lane.b32.xlu1 %v2503_v52, %s8704_s8  ;;  %v1439_v31 = vsel %vm505_vm9, %v1434_v33, %v1410_v24  ;;  %7843 = vmatpush3.bf16.msra.mxu1 %v8503_v8  ;;  %v1741_v50 = vsel %vm479_vm7, %v9251_v18, %v10441_v0  ;;  %v2532_v20 = vsel %vm314_vm5, %v2528_v45, %v10653_v59  ;;  %v2625_v63 = vrot.slane %v13871_v14, 3 }
 0x141   : > { %2635 = vrot.lane.b32.xlu0 %v2624_v21, %s8704_s8  ;;  %1635 = vmatmul.mubr.bf16.gmra.mrb[40].mxu0 %v10658_v48  ;;  %v1745_v7 = vsel %vm492_vm8, %v1741_v50, %v10481_v4  ;;  %v2533_v29 = vrot.slane %v10546_v5, 1  ;;  %v2534_v0 = vrot.slane %v10557_v62, 2  ;;  %v2654_v21 = vrot.slane %v10546_v5, 3 }
 0x142   : > { %1642 = vmatprep.mubr.bf16.mxu0 %v1439_v31  ;;  %v1675_v52 = vpop.permute.xlu1 %1674  ;;  %7844 = vmatprep.subr.bf16.mxu1 %v8505_v10  ;;  %v1749_v18 = vsel %vm505_vm9, %v1745_v7, %v10520_v44  ;;  %v2655_v4 = vrot.slane %v10557_v62, 4  ;;  %v1414_v57 = vsel %vm479_vm7, %v9508_v1, %v10560_v41  ;;  %v2458_v12 = vsel %vm225_vm3, %v2453_v32, %v2457_v49 }
 0x143   : > { %v1374_v34 = vpop.permute.xlu0 %1373  ;;  %v10705_v8 = vshll.u32 %v10680_v23, 16  ;;  %v10708_v44 = vshrl.u32 %v10680_v23, 16  ;;  %v1418_v53 = vsel %vm492_vm8, %v1414_v57, %v10607_v3  ;;  %v13878_v62 = vrot.slane %v9522_v28, 2 }
 0x144   : > { %2674 = vrot.lane.b32.xlu1 %v2653_v42, %s8706_s11  ;;  %7845 = vmatpush3.bf16.msra.mxu1 %v8506_v15  ;;  %v1423_v41 = vsel %vm505_vm9, %v1418_v53, %v1374_v34  ;;  %v13879_v43 = vrot.slane %v9754_v22, 1  ;;  %v13880_v10 = vrot.slane %v9754_v22, 3  ;;  %v1743_v51 = vsel %vm479_vm7, %v9522_v28, %v1675_v52  ;;  %v8690_v34 = vld [vmem:[%s8756_s28 + $0x68] sm:$0xf] }
 0x145   : > { %2612 = vrot.lane.b32.xlu0 %v2593_v19, %s8705_s19  ;;  %7934 = vmatprep.subr.bf16.mxu1 %v8518_v61  ;;  %v1707_v45 = vsel %vm359_vm6, %v13878_v62, %v1706_v2  ;;  %v10730_v33 = vor.u32 %v2534_v0, %v2533_v29  ;;  %v10732_v24 = vor.u32 %v2655_v4, %v2654_v21  ;;  %v2594_v61 = vrot.slane %v10708_v44, 2  ;;  %v8689_v2 = vld [vmem:[%s8756_s28 + $0x64] sm:$0xf]  ;;  %v8514_v0 = vld [vmem:[%s13723_s1 + $0x48] sm:$0xff]  }
 0x146   : > { %1964 = vmatmul.mubr.bf16.gmra.mrb[40].mxu1 %v1749_v18  ;;  %v1686_v26 = vpop.permute.xlu1 %1685  ;;  %v2505_v35 = vsel %vm288_vm1, %v13879_v43, %v2504_v30  ;;  %v2626_v3 = vsel %vm413_vm0, %v13880_v10, %v2625_v63  ;;  %v1759_v31 = vsel %vm479_vm7, %v1707_v45, %v10643_v17  ;;  %v2595_v28 = vrot.slane %v10705_v8, 3  ;;  %v13882_v29 = vld [vmem:[#allocation6_spill] sm:$0xff] }
 0x147   : > { %v1727_v58 = vpop.permute.xlu0 %1726  ;;  %v1747_v15 = vsel %vm492_vm8, %v1743_v51, %v1686_v26  ;;  %v2461_v32 = vor.u32 %v10546_v5, %v2457_v49  ;;  %v2536_v9 = vsel %vm314_vm5, %v10653_v59, %v10730_v33  ;;  %v2657_v50 = vsel %vm439_vm4, %v10628_v60, %v10732_v24  ;;  %v8513_v49 = vld [vmem:[%s13723_s1] sm:$0xff]  }
 0x148   : > { %2558 = vrot.lane.b32.xlu1 %v2532_v20, %s8706_s11  ;;  %v1763_v52 = vsel %vm492_vm8, %v1759_v31, %v1727_v58  ;;  %v10753_v37 = vor.u32 %v2595_v28, %v2594_v61  ;;  %v10757_v5 = vcombine.low %v8689_v2, %v8690_v34  ;;  %v13881_v20 = vld [vmem:[#allocation5_spill] sm:$0xff]  ;;  %v2946_v59 = vrot.slane %v13882_v29, 2 }
 0x149   : > { %2488 = vrot.lane.b32.xlu0 %v2458_v12, %s8705_s19  ;;  %1643 = vmatmul.mubr.bf16.gmra.mrb[44].mxu0 %v1423_v41  ;;  %v2945_v7 = vrot.slane %v13881_v20, 2  ;;  %v2506_v21 = vrot.slane %v10680_v23, 1  ;;  %v2627_v4 = vrot.slane %v10680_v23, 3  ;;  %v2537_v57 = vrot.slane %v10708_v44, 1  ;;  %v8515_v41 = vld [vmem:[%s13723_s1 + $0x8] sm:$0xff]  }
 0x14a   : > { %2260 = vmatprep.mubr.bf16.mxu0 %v9963_v6  ;;  %v1703_v42 = vpop.permute.xlu1 %1702  ;;  %v2465_v6 = vrot.slane %v10705_v8, 1  ;;  %v2538_v26 = vrot.slane %v10705_v8, 2  ;;  %v2658_v12 = vrot.slane %v10708_v44, 3  ;;  %v2659_v53 = vrot.slane %v10705_v8, 4 }
 0x14b   : > { %v1739_v19 = vpop.permute.xlu0 %1738  ;;  %v1752_v47 = vsel %vm505_vm9, %v1747_v15, %v1703_v42  ;;  %v2597_v45 = vsel %vm373_vm2, %v10636_v46, %v10753_v37  ;;  %v10782_v58 = vshll.u32 %v10757_v5, 16  ;;  %v8516_v46 = vld [vmem:[%s13723_s1 + $0x50] sm:$0xff]   ;;  %v2507_v43 = vsel %vm288_vm1, %v2504_v30, %v2506_v21 }
 0x14c   : > { %2516 = vrot.lane.b32.xlu1 %v2505_v35, %s8704_s8  ;;  %v1768_v17 = vsel %vm505_vm9, %v1763_v52, %v1739_v19  ;;  %v2466_v60 = vsel %vm225_vm3, %v2461_v32, %v2465_v6  ;;  %v2628_v35 = vsel %vm413_vm0, %v2625_v63, %v2627_v4  ;;  %v10808_v10 = vor.u32 %v2538_v26, %v2537_v57  ;;  %v8517_v52 = vld [vmem:[%s13723_s1 + $0x10] sm:$0xff]  }
 0x14d   : > { %2637 = vrot.lane.b32.xlu0 %v2626_v3, %s8704_s8  ;;  %1971 = vmatprep.mubr.bf16.mxu1 %v1768_v17  ;;  %v10810_v3 = vor.u32 %v2659_v53, %v2658_v12  ;;  %v2599_v30 = vrot.slane %v10782_v58, 3  ;;  %v2469_v17 = vor.u32 %v10708_v44, %v2465_v6  ;;  %v2473_v32 = vrot.slane %v10782_v58, 1 }
 0x14e   : > { %1972 = vmatmul.mubr.bf16.gmra.mrb[44].mxu1 %v1752_v47  ;;  %v2862_v11 = vpop.permute.xlu1 %2861  ;;  %v2663_v26 = vrot.slane %v10782_v58, 4 }
 0x14f   : > { %v2986_v18 = vpop.permute.xlu0 %2985  ;;  %v3062_v51 = vsel %vm479_vm7, %v13881_v20, %v2862_v11  ;;  %v2540_v11 = vsel %vm314_vm5, %v10730_v33, %v10808_v10  ;;  %v2661_v6 = vsel %vm439_vm4, %v10732_v24, %v10810_v3  ;;  %v13883_v33 = vld [vmem:[#allocation7_spill] sm:$0xff]  ;;  %v2474_v24 = vsel %vm225_vm3, %v2469_v17, %v2473_v32 }
 0x150   : > { %2560 = vrot.lane.b32.xlu1 %v2536_v9, %s8706_s11  ;;  %v8519_v9 = vld [vmem:[%s13723_s1 + $0x100] sm:$0xff]   ;;  %v2948_v34 = vrot.slane %v13883_v33, 2  ;;  %v2508_v20 = vrot.slane %v10757_v5, 1 }
 0x151   : > { %2676 = vrot.lane.b32.xlu0 %v2657_v50, %s8706_s11  ;;  %2261 = vmatmul.mubr.bf16.vlgmr.msra.gmra.mrb[48].mxu0 %v9957_v13  ;;  %v10785_v13 = vshrl.u32 %v10757_v5, 16  ;;  %v8520_v50 = vld [vmem:[%s13723_s1 + $0x58] sm:$0xff]  }
 0x152   : > { %2268 = vmatprep.mubr.bf16.mxu0 %v10089_v55  ;;  %v2890_v62 = vpop.permute.xlu1 %2889  ;;  %7883 = vmatpush3.bf16.msra.mxu0 %v8513_v49  ;;  %v2947_v55 = vsel %vm359_vm6, %v2945_v7, %v2946_v59  ;;  %v2629_v7 = vrot.slane %v10757_v5, 3 }
 0x153   : > { %v3011_v8 = vpop.permute.xlu0 %3010  ;;  %7884 = vmatprep.subr.bf16.mxu0 %v8514_v0  ;;  %v3105_v31 = vsel %vm479_vm7, %v2947_v55, %v2986_v18  ;;  %v2598_v42 = vrot.slane %v10785_v13, 2  ;;  %v3074_v61 = vsel %vm492_vm8, %v3062_v51, %v2890_v62  ;;  %v8523_v18 = vld [vmem:[%s13723_s1 + $0x108] sm:$0xff]   ;;  %v2541_v0 = vrot.slane %v10785_v13, 1  ;;  %v8524_v55 = vld [vmem:[%s13723_s1 + $0x60] sm:$0xff]   ;;  %v8527_v51 = vld [vmem:[%s13723_s1 + $0x110] sm:$0xff]  }
 0x154   : > { %2490 = vrot.lane.b32.xlu1 %v2466_v60, %s8705_s19  ;;  %v3122_v28 = vsel %vm492_vm8, %v3105_v31, %v3011_v8  ;;  %v2542_v60 = vrot.slane %v10782_v58, 2  ;;  %v2662_v57 = vrot.slane %v10785_v13, 3  ;;  %v13884_v62 = vld [vmem:[#allocation3_spill] sm:$0xff]  ;;  %v2949_v8 = vsel %vm359_vm6, %v2946_v59, %v2948_v34 }
 0x155   : > { %2614 = vrot.lane.b32.xlu0 %v2597_v45, %s8705_s19  ;;  %v10842_v2 = vor.u32 %v2599_v30, %v2598_v42  ;;  %v10869_v45 = vshll.u32 %v13884_v62, 16  ;;  %v2630_v59 = vsel %vm413_vm0, %v2627_v4, %v2629_v7  ;;  %v2477_v17 = vor.u32 %v10785_v13, %v2473_v32 }
 0x156   : > { %v2934_v15 = vpop.permute.xlu1 %2933  ;;  %7885 = vmatpush3.bf16.msra.mxu0 %v8515_v41  ;;  %v10872_v41 = vshrl.u32 %v13884_v62, 16 }
 0x157   : > { %v3050_v63 = vpop.permute.xlu0 %3049  ;;  %7886 = vmatprep.subr.bf16.mxu0 %v8516_v46  ;;  %v3086_v19 = vsel %vm505_vm9, %v3074_v61, %v2934_v15  ;;  %v2601_v53 = vsel %vm373_vm2, %v10753_v37, %v10842_v2  ;;  %v8525_v37 = vld [vmem:[%s13723_s1 + $0x20] sm:$0xff]   ;;  %v10906_v15 = vor.u32 %v2542_v60, %v2541_v0  ;;  %v10975_v0 = vrot.slane %v13884_v62, 3 }
 0x158   : > { %2518 = vrot.lane.b32.xlu1 %v2507_v43, %s8704_s8  ;;  %v3134_v47 = vsel %vm505_vm9, %v3122_v28, %v3050_v63  ;;  %v8526_v43 = vld [vmem:[%s13723_s1 + $0x150] sm:$0xff]   ;;  %v2602_v61 = vrot.slane %v10872_v41, 2  ;;  %v2603_v28 = vrot.slane %v10869_v45, 3  ;;  %v8536_v60 = vld [vmem:[%s13723_s1 + $0x120] sm:$0xff]  }
 0x159   : > { %2639 = vrot.lane.b32.xlu0 %v2628_v35, %s8704_s8  ;;  %2269 = vmatmul.mubr.bf16.gmra.mrb[52].mxu0 %v10083_v36  ;;  %v8522_v36 = vld [vmem:[%s13723_s1 + $0x148] sm:$0xff]   ;;  %v2509_v35 = vsel %vm288_vm1, %v2506_v21, %v2508_v20  ;;  %v10908_v21 = vor.u32 %v2663_v26, %v2662_v57  ;;  %v2545_v57 = vrot.slane %v10872_v41, 1  ;;  %v2546_v26 = vrot.slane %v10869_v45, 2 }
 0x15a   : > { %3311 = vmatprep.mubr.bf16.mxu1 %v3134_v47  ;;  %2276 = vmatprep.mubr.bf16.mxu0 %v10212_v16  ;;  %v2864_v44 = vpop.permute.xlu1 %2863  ;;  %v8521_v16 = vld [vmem:[%s13723_s1 + $0x18] sm:$0xff]  }
 0x15b   : > { %3312 = vmatmul.mubr.bf16.vlgmr.msra.gmra.mrb[48].mxu1 %v3086_v19  ;;  %v2988_v49 = vpop.permute.xlu0 %2987  ;;  %7887 = vmatpush3.bf16.msra.mxu0 %v8517_v52  ;;  %v3064_v31 = vsel %vm479_vm7, %v13882_v29, %v2864_v44  ;;  %v8530_v19 = vld [vmem:[%s13723_s1 + $0x158] sm:$0xff]   ;;  %v10945_v44 = vld [vmem:[%s8756_s28 + $0x74] sm:$0xf]  ;;  %v2665_v32 = vsel %vm439_vm4, %v10810_v3, %v10908_v21 }
 0x15c   : > { %2562 = vrot.lane.b32.xlu1 %v2540_v11, %s8706_s11  ;;  %7935 = vmatpush3.bf16.msra.mxu1 %v8519_v9  ;;  %v3108_v42 = vsel %vm479_vm7, %v2949_v8, %v2988_v49  ;;  %v2481_v9 = vrot.slane %v10869_v45, 1  ;;  %v8531_v11 = vld [vmem:[%s13723_s1 + $0x118] sm:$0xff]   ;;  %v10949_v58 = vcombine.low %v10945_v44, %v10306_v56  ;;  %v13885_v56 = vld [vmem:[#allocation8_spill] sm:$0xff] }
 0x15d   : > { %2678 = vrot.lane.b32.xlu0 %v2661_v6, %s8706_s11  ;;  %7888 = vmatprep.subr.bf16.mxu0 %v8520_v50  ;;  %v2544_v50 = vsel %vm314_vm5, %v10808_v10, %v10906_v15  ;;  %v10955_v6 = vor.u32 %v2603_v28, %v2602_v61  ;;  %v8532_v10 = vld [vmem:[%s13723_s1 + $0x70] sm:$0xff]   ;;  %v2950_v49 = vrot.slane %v13885_v56, 2 }
 0x15e   : > { %v2892_v12 = vpop.permute.xlu1 %2891  ;;  %7936 = vmatprep.subr.bf16.mxu1 %v8522_v36  ;;  %v8535_v36 = vld [vmem:[%s13723_s1 + $0x160] sm:$0xff]   ;;  %v8534_v3 = vld [vmem:[%s13723_s1 + $0x30] sm:$0xff]  }
 0x15f   : > { %v3013_v46 = vpop.permute.xlu0 %3012  ;;  %7889 = vmatpush3.bf16.msra.mxu0 %v8521_v16  ;;  %v3076_v4 = vsel %vm492_vm8, %v3064_v31, %v2892_v12  ;;  %v2666_v12 = vrot.slane %v10872_v41, 3  ;;  %v2632_v31 = vsel %vm413_vm0, %v2629_v7, %v10975_v0 }
 0x160   : > { %2492 = vrot.lane.b32.xlu1 %v2474_v24, %s8705_s19  ;;  %7937 = vmatpush3.bf16.msra.mxu1 %v8523_v18  ;;  %v3124_v29 = vsel %vm492_vm8, %v3108_v42, %v3013_v46  ;;  %v2482_v24 = vsel %vm225_vm3, %v2477_v17, %v2481_v9  ;;  %v10972_v18 = vrot.slane %v13884_v62, 1  ;;  %v2605_v46 = vsel %vm373_vm2, %v10842_v2, %v10955_v6  ;;  %v8538_v2 = vld [vmem:[%s13723_s1 + $0x38] sm:$0xff]  }
 0x161   : > { %2616 = vrot.lane.b32.xlu0 %v2601_v53, %s8705_s19  ;;  %2277 = vmatmul.mubr.bf16.gmra.mrb[56].mxu0 %v10208_v25  ;;  %v8528_v25 = vld [vmem:[%s13723_s1 + $0x68] sm:$0xff]   ;;  %v2667_v53 = vrot.slane %v10869_v45, 4  ;;  %v11071_v45 = vcombine.low %v10945_v44, %v10945_v44  ;;  %v8545_v44 = vld [vmem:[%s13723_s1 + $0x138] sm:$0xff]  }
 0x162   : > { %2284 = vmatprep.mubr.bf16.mxu0 %v10596_v40  ;;  %v2936_v30 = vpop.permute.xlu1 %2935  ;;  %7890 = vmatprep.subr.bf16.mxu0 %v8524_v55  ;;  %v8529_v40 = vld [vmem:[%s13723_s1 + $0x28] sm:$0xff]   ;;  %v8537_v55 = vld [vmem:[%s13723_s1 + $0x78] sm:$0xff]  }
 0x163   : > { %v3052_v63 = vpop.permute.xlu0 %3051  ;;  %v10920_v52 = vsel %vm505_vm9, %v3076_v4, %v2936_v30  ;;  %7891 = vmatpush3.bf16.msra.mxu0 %v8525_v37  ;;  %7938 = vmatprep.subr.bf16.mxu1 %v8526_v43  ;;  %v10993_v37 = vshll.u32 %v10949_v58, 16  ;;  %v8539_v43 = vld [vmem:[%s13723_s1 + $0x168] sm:$0xff]   ;;  %v11024_v4 = vor.u32 %v2546_v26, %v2545_v57  ;;  %v11026_v30 = vor.u32 %v2667_v53, %v2666_v12 }
 0x164   : > { %2520 = vrot.lane.b32.xlu1 %v2509_v35, %s8704_s8  ;;  %v10930_v47 = vsel %vm505_vm9, %v3124_v29, %v3052_v63  ;;  %7939 = vmatpush3.bf16.msra.mxu1 %v8527_v51  ;;  %v2951_v35 = vsel %vm359_vm6, %v2948_v34, %v2950_v49  ;;  %v2511_v51 = vsel %vm288_vm1, %v2508_v20, %v10972_v18  ;;  %v8540_v34 = vld [vmem:[%s13723_s1 + $0x128] sm:$0xff]  }
 0x165   : > { %2641 = vrot.lane.b32.xlu0 %v2630_v59, %s8704_s8  ;;  %3319 = vmatprep.mubr.bf16.mxu1 %v10930_v47  ;;  %v3562_v57 = vrot.slane %v10993_v37, 2 }
 0x166   : > { %3320 = vmatmul.mubr.bf16.gmra.mrb[52].mxu1 %v10920_v52  ;;  %v2866_v13 = vpop.permute.xlu1 %2865  ;;  %7892 = vmatprep.subr.bf16.mxu0 %v8528_v25  ;;  %v3583_v25 = vrot.slane %v10993_v37, 3 }
 0x167   : > { %v2990_v16 = vpop.permute.xlu0 %2989  ;;  %7893 = vmatpush3.bf16.msra.mxu0 %v8529_v40  ;;  %7940 = vmatprep.subr.bf16.mxu1 %v8530_v19  ;;  %v3066_v42 = vsel %vm479_vm7, %v13883_v33, %v2866_v13  ;;  %v8542_v33 = vld [vmem:[%s13723_s1 + $0x170] sm:$0xff]   ;;  %v8552_v19 = vld [vmem:[%s13723_s1 + $0x1c0] sm:$0xff]   ;;  %v11057_v13 = vor.u32 %v10872_v41, %v2481_v9  ;;  %v2952_v41 = vrot.slane %v10096_v38, 2  ;;  %v11075_v9 = vrot.slane %v10949_v58, 1 }
 0x168   : > { %2564 = vrot.lane.b32.xlu1 %v2544_v50, %s8706_s11  ;;  %7941 = vmatpush3.bf16.msra.mxu1 %v8531_v11  ;;  %v3111_v20 = vsel %vm479_vm7, %v2951_v35, %v2990_v16  ;;  %v8543_v11 = vld [vmem:[%s13723_s1 + $0x130] sm:$0xff]   ;;  %v2548_v50 = vsel %vm314_vm5, %v10906_v15, %v11024_v4  ;;  %v2669_v16 = vsel %vm439_vm4, %v10908_v21, %v11026_v30 }
 0x169   : > { %2680 = vrot.lane.b32.xlu0 %v2665_v32, %s8706_s11  ;;  %2285 = vmatmul.mubr.bf16.gmra.mrb[60].mxu0 %v10658_v48  ;;  %v10996_v48 = vshrl.u32 %v10949_v58, 16  ;;  %v3541_v32 = vrot.slane %v10993_v37, 1 }
 0x16a   : > { %v2894_v8 = vpop.permute.xlu1 %2893  ;;  %7894 = vmatprep.subr.bf16.mxu0 %v8532_v10  ;;  %7942 = vmatprep.subr.bf16.mxu1 %v8535_v36  ;;  %v8544_v10 = vld [vmem:[%s13723_s1 + $0x178] sm:$0xff]  }
 0x16b   : > { %v3015_v59 = vpop.permute.xlu0 %3014  ;;  %7895 = vmatpush3.bf16.msra.mxu0 %v8534_v3  ;;  %v3078_v61 = vsel %vm492_vm8, %v3066_v42, %v2894_v8  ;;  %v3582_v28 = vrot.slane %v10996_v48, 2  ;;  %v3561_v21 = vrot.slane %v10996_v48, 1  ;;  %v3542_v12 = vsel %vm225_vm3, %v11057_v13, %v3541_v32  ;;  %v8558_v8 = vld [vmem:[%s13723_s1 + $0x240] sm:$0xff]  }
 0x16c   : > { %2494 = vrot.lane.b32.xlu1 %v2482_v24, %s8705_s19  ;;  %7943 = vmatpush3.bf16.msra.mxu1 %v8536_v60  ;;  %v3126_v29 = vsel %vm492_vm8, %v3111_v20, %v3015_v59  ;;  %v11079_v60 = vrot.slane %v10949_v58, 3  ;;  %v3602_v53 = vrot.slane %v10996_v48, 3 }
 0x16d   : > { %2618 = vrot.lane.b32.xlu0 %v2605_v46, %s8705_s19  ;;  %7896 = vmatprep.subr.bf16.mxu0 %v8537_v55  ;;  %v11067_v3 = vor.u32 %v3583_v25, %v3582_v28  ;;  %v3603_v55 = vrot.slane %v10993_v37, 4  ;;  %v11120_v25 = vor.u32 %v3562_v57, %v3561_v21 }
 0x16e   : > { %v2938_v7 = vpop.permute.xlu1 %2937  ;;  %7944 = vmatprep.subr.bf16.mxu1 %v8539_v43  ;;  %v3595_v28 = vsel %vm413_vm0, %v10975_v0, %v11079_v60 }
 0x16f   : > { %v3054_v63 = vpop.permute.xlu0 %3053  ;;  %v11037_v40 = vsel %vm505_vm9, %v3078_v61, %v2938_v7  ;;  %7897 = vmatpush3.bf16.msra.mxu0 %v8538_v2  ;;  %v3585_v59 = vsel %vm373_vm2, %v10955_v6, %v11067_v3  ;;  %v11100_v2 = vshrl.u32 %v11071_v45, 16  ;;  %v3554_v61 = vsel %vm288_vm1, %v10972_v18, %v11075_v9 }
 0x170   : > { %13886 = vst [vmem:[#allocation2_spill] sm:$0xff] %v11037_v40  ;;  %2522 = vrot.lane.b32.xlu1 %v2511_v51, %s8704_s8  ;;  %v11044_v17 = vsel %vm505_vm9, %v3126_v29, %v3054_v63  ;;  %7945 = vmatpush3.bf16.msra.mxu1 %v8540_v34  ;;  %v11103_v51 = vshll.u32 %v11071_v45, 16  ;;  %v2953_v34 = vsel %vm359_vm6, %v2950_v49, %v2952_v41 }
 0x171   : > { %2643 = vrot.lane.b32.xlu0 %v2632_v31, %s8704_s8  ;;  %3327 = vmatprep.mubr.bf16.mxu1 %v11044_v17  ;;  %v11106_v31 = vld [vmem:[%s8756_s28 + $0x7c] sm:$0xf]  ;;  %v11125_v29 = vor.u32 %v3603_v55, %v3602_v53 }
 0x172   : > { %3328 = vmatmul.mubr.bf16.gmra.mrb[56].mxu1 %v11037_v40  ;;  %v2868_v36 = vpop.permute.xlu1 %2867  ;;  %7946 = vmatprep.subr.bf16.mxu1 %v8542_v33  ;;  %v11129_v63 = vcombine.low %v11106_v31, %v11106_v31  ;;  %v8580_v40 = vld [vmem:[%s13723_s1 + $0x268] sm:$0xff]  }
 0x173   : > { %v2992_v15 = vpop.permute.xlu0 %2991  ;;  %7986 = vmatprep.subr.bf16.mxu0 %v8552_v19  ;;  %v3068_v33 = vsel %vm479_vm7, %v13885_v56, %v2868_v36  ;;  %v2607_v56 = vrot.slane %v11103_v51, 3 }
 0x174   : > { %2566 = vrot.lane.b32.xlu1 %v2548_v50, %s8706_s11  ;;  %v7586_v24 = vpop.f32.mrb[0].mxu0  ;;  %7947 = vmatpush3.bf16.msra.mxu1 %v8543_v11  ;;  %v3114_v19 = vsel %vm479_vm7, %v2953_v34, %v2992_v15 }
 0x175   : > { %2682 = vrot.lane.b32.xlu0 %v2669_v16, %s8706_s11  ;;  %v7587_v26 = vpop.f32.mrb[1].mxu0  ;;  %7948 = vmatprep.subr.bf16.mxu1 %v8544_v10  ;;  %v2606_v16 = vrot.slane %v11100_v2, 2 }
 0x176   : > { %v7588_v46 = vadd.f32 %v7587_v26, %v7586_v24  ;;  %v2896_v43 = vpop.permute.xlu1 %2895  ;;  %v7589_v35 = vpop.f32.mrb[2].mxu0 }
 0x177   : > { %v3017_v42 = vpop.permute.xlu0 %3016  ;;  %v7590_v20 = vpop.f32.mrb[3].mxu0  ;;  %v3080_v11 = vsel %vm492_vm8, %v3068_v33, %v2896_v43  ;;  %v11154_v43 = vshll.u32 %v11129_v63, 16 }
 0x178   : > { %v7591_v7 = vadd.f32 %v7590_v20, %v7589_v35  ;;  %3546 = vrot.lane.b32.xlu1 %v3542_v12, %s8705_s19  ;;  %7949 = vmatpush3.bf16.msra.mxu1 %v8545_v44  ;;  %v7638_v49 = vpop.f32.mrb[0].mxu1  ;;  %v3128_v36 = vsel %vm492_vm8, %v3114_v19, %v3017_v42  ;;  %v3564_v12 = vsel %vm314_vm5, %v11024_v4, %v11120_v25  ;;  %v2033_v42 = vrot.slane %v9290_v39, 2 }
 0x179   : > { %3590 = vrot.lane.b32.xlu0 %v3585_v59, %s8705_s19  ;;  %8038 = vmatprep.subr.bf16.mxu1 %v8558_v8  ;;  %v7639_v50 = vpop.f32.mrb[1].mxu1  ;;  %v11151_v8 = vshrl.u32 %v11129_v63, 16  ;;  %v3605_v59 = vsel %vm439_vm4, %v11026_v30, %v11125_v29 }
 0x17a   : > { %v2940_v10 = vpop.permute.xlu1 %2939  ;;  %v7640_v24 = vadd.f32 %v7639_v50, %v7638_v49  ;;  %v7641_v21 = vpop.f32.mrb[2].mxu1  ;;  %v3587_v49 = vrot.slane %v11154_v43, 3  ;;  %v2671_v50 = vrot.slane %v11103_v51, 4 }
 0x17b   : > { %v3056_v57 = vpop.permute.xlu0 %3055  ;;  %v11137_v44 = vsel %vm505_vm9, %v3080_v11, %v2940_v10  ;;  %v7642_v26 = vpop.f32.mrb[3].mxu1  ;;  %v3586_v33 = vrot.slane %v11151_v8, 2  ;;  %v2670_v11 = vrot.slane %v11100_v2, 3  ;;  %v2034_v10 = vsel %vm359_vm6, %v10491_v54, %v2033_v42 }
 0x17c   : > { %13887 = vst [vmem:[#allocation9_spill] sm:$0xff] %v11137_v44  ;;  %3557 = vrot.lane.b32.xlu1 %v3554_v61, %s8704_s8  ;;  %v11141_v15 = vsel %vm505_vm9, %v3128_v36, %v3056_v57  ;;  %v11146_v53 = vadd.f32 %v7640_v24, %v7588_v46  ;;  %v7643_v55 = vadd.f32 %v7642_v26, %v7641_v21  ;;  %v2512_v61 = vrot.slane %v11071_v45, 1 }
 0x17d   : > { %13888 = vst [vmem:[#allocation4_spill] sm:$0xff] %v11141_v15  ;;  %3598 = vrot.lane.b32.xlu0 %v3595_v28, %s8704_s8  ;;  %3335 = vmatprep.mubr.bf16.mxu1 %v11141_v15  ;;  %v2608_v46 = vor.u32 %v2607_v56, %v2606_v16  ;;  %v2633_v28 = vrot.slane %v11071_v45, 3  ;;  %v3588_v36 = vor.u32 %v3587_v49, %v3586_v33  ;;  %v2552_v54 = vrot.slane %v11100_v2, 1 }
 0x17e   : > { %3336 = vmatmul.mubr.bf16.gmra.mrb[60].mxu1 %v11137_v44  ;;  %v2002_v35 = vpop.permute.xlu1 %2001  ;;  %v11160_v34 = vadd.f32 %v7643_v55, %v7591_v7  ;;  %v2513_v56 = vsel %vm288_vm1, %v10972_v18, %v2512_v61  ;;  %v2672_v57 = vor.u32 %v2671_v50, %v2670_v11  ;;  %v2555_v26 = vrot.slane %v11103_v51, 2  ;;  %v11206_v11 = vld [vmem:[%s8756_s28 + $0x80] sm:$0xf] }
 0x17f   : > { %v2046_v20 = vpop.permute.xlu0 %2045  ;;  %v2609_v7 = vsel %vm373_vm2, %v10955_v6, %v2608_v46  ;;  %v2634_v6 = vsel %vm413_vm0, %v10975_v0, %v2633_v28  ;;  %v3589_v0 = vsel %vm373_vm2, %v11067_v3, %v3588_v36  ;;  %v2070_v55 = vsel %vm479_vm7, %v9508_v1, %v2002_v35  ;;  %v13890_v28 = vld [vmem:[#allocation10_spill] sm:$0xff] }
 0x180   : > { %3574 = vrot.lane.b32.xlu1 %v3564_v12, %s8706_s11  ;;  %v2085_v24 = vsel %vm479_vm7, %v2034_v10, %v2046_v20  ;;  %v2673_v46 = vsel %vm439_vm4, %v11026_v30, %v2672_v57  ;;  %v2556_v20 = vor.u32 %v2555_v26, %v2552_v54  ;;  %v11203_v33 = vrot.slane %v13890_v28, 2 }
 0x181   : > { %3610 = vrot.lane.b32.xlu0 %v3605_v59, %s8706_s11  ;;  %v8692_v59 = vld [vmem:[%s8756_s28 + $0x78] sm:$0xf]  ;;  %v11213_v35 = vor.u32 %v10996_v48, %v3541_v32  ;;  %v3568_v30 = vrot.slane %v11151_v8, 1  ;;  %v3555_v10 = vrot.slane %v11129_v63, 1 }
 0x182   : > { %v2013_v19 = vpop.permute.xlu1 %2012  ;;  %v11197_v51 = vcombine.low %v8692_v59, %v11106_v31  ;;  %13891 = vst [vmem:[#allocation6_spill] sm:$0xff] %v11203_v33  ;;  %v2557_v32 = vsel %vm314_vm5, %v11024_v4, %v2556_v20  ;;  %v2955_v54 = vsel %vm359_vm6, %v2952_v41, %v11203_v33 }
 0x183   : > { %v2054_v16 = vpop.permute.xlu0 %2053  ;;  %v2074_v61 = vsel %vm492_vm8, %v2070_v55, %v2013_v19  ;;  %v3571_v19 = vrot.slane %v11154_v43, 2  ;;  %v3556_v41 = vsel %vm288_vm1, %v11075_v9, %v3555_v10 }
 0x184   : > { %2496 = vrot.lane.b32.xlu1 %v11057_v13, %s8705_s19  ;;  %v2090_v13 = vsel %vm492_vm8, %v2085_v24, %v2054_v16  ;;  %13889 = vst [vmem:[#allocation5_spill] sm:$0xff] %v11197_v51  ;;  %v3596_v16 = vrot.slane %v11129_v63, 3  ;;  %v11225_v24 = vshll.u32 %v11197_v51, 16  ;;  %v11228_v57 = vshrl.u32 %v11197_v51, 16 }
 0x185   : > { %2620 = vrot.lane.b32.xlu0 %v2609_v7, %s8705_s19  ;;  %v3572_v4 = vor.u32 %v3571_v19, %v3568_v30 }
 0x186   : > { %v2994_v21 = vpop.permute.xlu1 %2993  ;;  %v13764_v10 = vrot.slane %v11225_v24, 1 }
 0x187   : > { %v2066_v12 = vpop.permute.xlu0 %2065 }
 0x188   : > { %2524 = vrot.lane.b32.xlu1 %v2513_v56, %s8704_s8  ;;  %v2094_v18 = vsel %vm505_vm9, %v2090_v13, %v2066_v12  ;;  %v3606_v56 = vrot.slane %v11151_v8, 3 }
 0x189   : > { %2645 = vrot.lane.b32.xlu0 %v2634_v6, %s8704_s8  ;;  %2292 = vmatprep.mubr.bf16.mxu0 %v2094_v18  ;;  %v3607_v6 = vrot.slane %v11154_v43, 4  ;;  %v11236_v43 = vcombine.low %v11106_v31, %v11206_v11  ;;  %v3117_v31 = vsel %vm479_vm7, %v2955_v54, %v2994_v21 }
 0x18a   : > { %v2870_v2 = vpop.permute.xlu1 %2869 }
 0x18b   : > { %v2030_v49 = vpop.permute.xlu0 %2029  ;;  %v7592_v7 = vpop.f32.mrb[4].mxu0  ;;  %13892 = vst [vmem:[#allocation7_spill] sm:$0xff] %v11236_v43  ;;  %v3070_v12 = vsel %vm479_vm7, %v10096_v38, %v2870_v2  ;;  %v3608_v55 = vor.u32 %v3607_v6, %v3606_v56  ;;  %v3911_v38 = vrot.slane %v11225_v24, 3  ;;  %v11267_v6 = vshll.u32 %v11236_v43, 16 }
 0x18c   : > { %3592 = vrot.lane.b32.xlu1 %v3589_v0, %s8705_s19  ;;  %v2078_v1 = vsel %vm505_vm9, %v2074_v61, %v2030_v49  ;;  %v7593_v50 = vpop.f32.mrb[5].mxu0  ;;  %v3597_v0 = vsel %vm413_vm0, %v11079_v60, %v3596_v16  ;;  %v3910_v61 = vrot.slane %v11228_v57, 2 }
 0x18d   : > { %2684 = vrot.lane.b32.xlu0 %v2673_v46, %s8706_s11  ;;  %2293 = vmatmul.mubr.bf16.gmra.mrb[64].mxu0 %v2078_v1  ;;  %v7594_v37 = vadd.f32 %v7593_v50, %v7592_v7  ;;  %v7595_v36 = vpop.f32.mrb[6].mxu0  ;;  %v3573_v50 = vsel %vm314_vm5, %v11120_v25, %v3572_v4 }
 0x18e   : > { %v2898_v48 = vpop.permute.xlu1 %2897  ;;  %v7596_v8 = vpop.f32.mrb[7].mxu0  ;;  %v11275_v54 = vor.u32 %v3911_v38, %v3910_v61  ;;  %v13896_v38 = vld [vmem:[#allocation11_spill] sm:$0xff] }
 0x18f   : > { %v3019_v26 = vpop.permute.xlu0 %3018  ;;  %v7597_v13 = vadd.f32 %v7596_v8, %v7595_v36  ;;  %v3082_v59 = vsel %vm492_vm8, %v3070_v12, %v2898_v48  ;;  %v11270_v36 = vshrl.u32 %v11236_v43, 16  ;;  %v8693_v8 = vld [vmem:[%s8756_s28 + $0x40] ss:$0 sps:$4 sm:$0x77]   ;;  %v3870_v12 = vsel %vm225_vm3, %v10456_v27, %v13764_v10 }
 0x190   : > { %3548 = vrot.lane.b32.xlu1 %v11213_v35, %s8705_s19  ;;  %v7644_v18 = vpop.f32.mrb[4].mxu1  ;;  %v3130_v2 = vsel %vm492_vm8, %v3117_v31, %v3019_v26  ;;  %v2035_v26 = vrot.slane %v8693_v8, 2  ;;  %v13895_v31 = vld [vmem:[#allocation13_spill] sm:$0xff] }
 0x191   : > { %2568 = vrot.lane.b32.xlu0 %v2557_v32, %s8706_s11  ;;  %v7645_v46 = vpop.f32.mrb[5].mxu1  ;;  %v3609_v32 = vsel %vm439_vm4, %v11125_v29, %v3608_v55 }
 0x192   : > { %v2942_v20 = vpop.permute.xlu1 %2941  ;;  %v7646_v49 = vadd.f32 %v7645_v46, %v7644_v18  ;;  %v7647_v7 = vpop.f32.mrb[6].mxu1  ;;  %v13763_v18 = vrot.slane %v11197_v51, 1  ;;  %v3930_v46 = vrot.slane %v11228_v57, 3  ;;  %v2036_v27 = vsel %vm359_vm6, %v2033_v42, %v2035_v26 }
 0x193   : > { %v3058_v1 = vpop.permute.xlu0 %3057  ;;  %v11253_v30 = vsel %vm505_vm9, %v3082_v59, %v2942_v20  ;;  %v7648_v19 = vpop.f32.mrb[7].mxu1  ;;  %v3913_v59 = vsel %vm373_vm2, %v13895_v31, %v11275_v54  ;;  %v3931_v20 = vrot.slane %v11225_v24, 4  ;;  %v13760_v31 = vrot.slane %v11267_v6, 1 }
 0x194   : > { %13893 = vst [vmem:[#allocation3_spill] sm:$0xff] %v11253_v30  ;;  %3559 = vrot.lane.b32.xlu1 %v3556_v41, %s8704_s8  ;;  %v11257_v21 = vsel %vm505_vm9, %v3130_v2, %v3058_v1  ;;  %v11262_v16 = vadd.f32 %v7646_v49, %v7594_v37  ;;  %v7649_v56 = vadd.f32 %v7648_v19, %v7647_v7  ;;  %v13762_v41 = vrot.slane %v11197_v51, 3  ;;  %v13897_v49 = vld [vmem:[#allocation12_spill] sm:$0xff] }
 0x195   : > { %13894 = vst [vmem:[#allocation8_spill] sm:$0xff] %v11257_v21  ;;  %3600 = vrot.lane.b32.xlu0 %v3597_v0, %s8704_s8  ;;  %3343 = vmatprep.mubr.bf16.mxu1 %v11257_v21  ;;  %v4238_v0 = vrot.slane %v11270_v36, 2  ;;  %v3882_v2 = vsel %vm288_vm1, %v13896_v38, %v13763_v18  ;;  %v13900_v38 = vld [vmem:[#allocation14_spill] sm:$0xff] }
 0x196   : > { %3344 = vmatmul.mubr.bf16.gmra.mrb[64].mxu1 %v11253_v30  ;;  %v2004_v48 = vpop.permute.xlu1 %2003  ;;  %v11277_v37 = vadd.f32 %v7649_v56, %v7597_v13  ;;  %v4239_v13 = vrot.slane %v11267_v6, 3  ;;  %v3923_v7 = vsel %vm413_vm0, %v13897_v49, %v13762_v41  ;;  %v3889_v56 = vrot.slane %v11228_v57, 1 }
 0x197   : > { %v2048_v4 = vpop.permute.xlu0 %2047 }
 0x198   : > { %3576 = vrot.lane.b32.xlu1 %v3573_v50, %s8706_s11  ;;  %v11308_v1 = vor.u32 %v4239_v13, %v4238_v0  ;;  %v2088_v19 = vsel %vm479_vm7, %v2036_v27, %v2048_v4  ;;  %v11311_v50 = vor.u32 %v3931_v20, %v3930_v46  ;;  %v2072_v0 = vsel %vm479_vm7, %v9290_v39, %v2004_v48 }
 0x199   : > { %3612 = vrot.lane.b32.xlu0 %v3609_v32, %s8706_s11  ;;  %v3890_v32 = vrot.slane %v11225_v24, 2  ;;  %v11332_v27 = vcombine.low %v11206_v11, %v11206_v11  ;;  %v4198_v48 = vsel %vm225_vm3, %v11213_v35, %v13760_v31  ;;  %v4250_v11 = vrot.slane %v11236_v43, 3 }
 0x19a   : > { %v2015_v55 = vpop.permute.xlu1 %2014  ;;  %v4241_v4 = vsel %vm373_vm2, %v11067_v3, %v11308_v1 }
 0x19b   : > { %v2056_v61 = vpop.permute.xlu0 %2055  ;;  %v11328_v20 = vor.u32 %v3890_v32, %v3889_v56  ;;  %13899 = vst [vmem:[#allocation13_spill] sm:$0xff] %v11332_v27  ;;  %v4218_v56 = vrot.slane %v11267_v6, 2  ;;  %v4258_v32 = vrot.slane %v11270_v36, 3 }
 0x19c   : > { %3874 = vrot.lane.b32.xlu1 %v3870_v12, %s8705_s19  ;;  %v2092_v8 = vsel %vm492_vm8, %v2088_v19, %v2056_v61  ;;  %v2076_v61 = vsel %vm492_vm8, %v2072_v0, %v2015_v55  ;;  %v4217_v55 = vrot.slane %v11270_v36, 1 }
 0x19d   : > { %3918 = vrot.lane.b32.xlu0 %v3913_v59, %s8705_s19  ;;  %v13898_v59 = vld [vmem:[#allocation16_spill] sm:$0xff] }
 0x19e   : > { %v2996_v42 = vpop.permute.xlu1 %2995  ;;  %v3933_v46 = vsel %vm439_vm4, %v13898_v59, %v11311_v50  ;;  %v11353_v59 = vshrl.u32 %v11332_v27, 16 }
 0x19f   : > { %v2068_v26 = vpop.permute.xlu0 %2067 }
 0x1a0   : > { %3885 = vrot.lane.b32.xlu1 %v3882_v2, %s8704_s8  ;;  %v2097_v12 = vsel %vm505_vm9, %v2092_v8, %v2068_v26  ;;  %v2956_v2 = vrot.slane %v13900_v38, 2  ;;  %v4259_v8 = vrot.slane %v11267_v6, 4 }
 0x1a1   : > { %3926 = vrot.lane.b32.xlu0 %v3923_v7, %s8704_s8  ;;  %2300 = vmatprep.mubr.bf16.mxu0 %v2097_v12  ;;  %v13761_v7 = vrot.slane %v11236_v43, 1 }
 0x1a2   : > { %v2872_v13 = vpop.permute.xlu1 %2871 }
 0x1a3   : > { %v2032_v49 = vpop.permute.xlu0 %2031  ;;  %v7598_v3 = vpop.f32.mrb[8].mxu0 }
 0x1a4   : > { %4246 = vrot.lane.b32.xlu1 %v4241_v4, %s8705_s19  ;;  %v2081_v39 = vsel %vm505_vm9, %v2076_v61, %v2032_v49  ;;  %v7599_v19 = vpop.f32.mrb[9].mxu0  ;;  %v13901_v4 = vld [vmem:[#allocation15_spill] sm:$0xff]  ;;  %v2957_v61 = vsel %vm359_vm6, %v11203_v33, %v2956_v2  ;;  %v4251_v2 = vsel %vm413_vm0, %v11079_v60, %v4250_v11 }
 0x1a5   : > { %3938 = vrot.lane.b32.xlu0 %v3933_v46, %s8706_s11  ;;  %2301 = vmatmul.mubr.bf16.gmra.mrb[68].mxu0 %v2081_v39  ;;  %v7600_v26 = vadd.f32 %v7599_v19, %v7598_v3  ;;  %v7601_v12 = vpop.f32.mrb[10].mxu0  ;;  %v3892_v0 = vsel %vm314_vm5, %v13901_v4, %v11328_v20  ;;  %v11356_v46 = vshll.u32 %v11332_v27, 16  ;;  %v4210_v3 = vsel %vm288_vm1, %v11075_v9, %v13761_v7  ;;  %v11366_v19 = vld [vmem:[%s8756_s28 + $0x84] ss:$0 sps:$4 sm:$0x77]  }
 0x1a6   : > { %v2900_v35 = vpop.permute.xlu1 %2899  ;;  %v7602_v38 = vpop.f32.mrb[11].mxu0  ;;  %v3072_v4 = vsel %vm479_vm7, %v13890_v28, %v2872_v13  ;;  %v3914_v13 = vrot.slane %v11353_v59, 2 }
 0x1a7   : > { %v3021_v49 = vpop.permute.xlu0 %3020  ;;  %v7603_v39 = vadd.f32 %v7602_v38, %v7601_v12  ;;  %v11375_v12 = vor.u32 %v4218_v56, %v4217_v55  ;;  %v3120_v38 = vsel %vm479_vm7, %v2957_v61, %v2996_v42  ;;  %v3084_v9 = vsel %vm492_vm8, %v3072_v4, %v2900_v35 }
 0x1a8   : > { %4202 = vrot.lane.b32.xlu1 %v4198_v48, %s8705_s19  ;;  %v7650_v31 = vpop.f32.mrb[8].mxu1  ;;  %v11377_v48 = vor.u32 %v4259_v8, %v4258_v32  ;;  %v3915_v18 = vrot.slane %v11356_v46, 3  ;;  %v11388_v56 = vshrl.u32 %v11366_v19, 16  ;;  %v11391_v32 = vshll.u32 %v11366_v19, 16 }
 0x1a9   : > { %3902 = vrot.lane.b32.xlu0 %v3892_v0, %s8706_s11  ;;  %v7651_v7 = vpop.f32.mrb[9].mxu1  ;;  %v3132_v0 = vsel %vm492_vm8, %v3120_v38, %v3021_v49  ;;  %v2571_v61 = vrot.slane %v9754_v22, 2  ;;  %v3934_v38 = vrot.slane %v11353_v59, 3 }
 0x1aa   : > { %v2944_v41 = vpop.permute.xlu1 %2943  ;;  %v7652_v10 = vadd.f32 %v7651_v7, %v7650_v31  ;;  %v7653_v28 = vpop.f32.mrb[10].mxu1  ;;  %v13902_v7 = vld [vmem:[#allocation17_spill] sm:$0xff]  ;;  %v4261_v49 = vsel %vm439_vm4, %v11125_v29, %v11377_v48  ;;  %v3883_v29 = vrot.slane %v11332_v27, 1 }
 0x1ab   : > { %v3060_v30 = vpop.permute.xlu0 %3059  ;;  %v3101_v60 = vsel %vm505_vm9, %v3084_v9, %v2944_v41  ;;  %v7654_v55 = vpop.f32.mrb[11].mxu1  ;;  %v4220_v41 = vsel %vm314_vm5, %v11120_v25, %v11375_v12  ;;  %v4242_v25 = vrot.slane %v11388_v56, 2  ;;  %v3935_v9 = vrot.slane %v11356_v46, 4 }
 0x1ac   : > { %4213 = vrot.lane.b32.xlu1 %v4210_v3, %s8704_s8  ;;  %v3149_v42 = vsel %vm505_vm9, %v3132_v0, %v3060_v30  ;;  %v11393_v8 = vadd.f32 %v7652_v10, %v7600_v26  ;;  %v7655_v35 = vadd.f32 %v7654_v55, %v7653_v28  ;;  %v2570_v30 = vrot.slane %v13902_v7, 2 }
 0x1ad   : > { %4254 = vrot.lane.b32.xlu0 %v4251_v2, %s8704_s8  ;;  %3351 = vmatprep.mubr.bf16.mxu1 %v3149_v42  ;;  %v3916_v10 = vor.u32 %v3915_v18, %v3914_v13  ;;  %v13903_v3 = vrot.slane %v11225_v24, 1  ;;  %v4243_v2 = vrot.slane %v11391_v32, 3  ;;  %v13904_v42 = vrot.slane %v11197_v51, 1 }
 0x1ae   : > { %3352 = vmatmul.mubr.bf16.gmra.mrb[68].mxu1 %v3101_v60  ;;  %v2487_v31 = vpop.permute.xlu1 %2486  ;;  %v11404_v26 = vadd.f32 %v7655_v35, %v7603_v39  ;;  %v2572_v24 = vsel %vm359_vm6, %v2570_v30, %v2571_v61  ;;  %v3924_v39 = vrot.slane %v11332_v27, 3  ;;  %v3936_v60 = vor.u32 %v3935_v9, %v3934_v38  ;;  %v7321_v30 = vld [vmem:[%s8756_s28 + $0x8c] sm:$0xf] }
 0x1af   : > { %v2611_v28 = vpop.permute.xlu0 %2610  ;;  %v3873_v4 = vor.u32 %v11228_v57, %v13903_v3  ;;  %v3917_v57 = vsel %vm373_vm2, %v11275_v54, %v3916_v10  ;;  %v4244_v0 = vor.u32 %v4243_v2, %v4242_v25  ;;  %v3884_v35 = vsel %vm288_vm1, %v13904_v42, %v3883_v29  ;;  %v11436_v2 = vld [vmem:[%s8756_s28 + $0x98] sm:$0xf]  ;;  %v7320_v29 = vld [vmem:[%s8756_s28 + $0x88] sm:$0xf] }
 0x1b0   : > { %4230 = vrot.lane.b32.xlu1 %v4220_v41, %s8706_s11  ;;  %v2730_v55 = vsel %vm479_vm7, %v2572_v24, %v2611_v28  ;;  %v3896_v54 = vrot.slane %v11353_v59, 1  ;;  %v3899_v41 = vrot.slane %v11356_v46, 2  ;;  %v7323_v28 = vld [vmem:[%s8756_s28 + $0x94] sm:$0xf]  ;;  %v13767_v59 = vrot.slane %v13871_v14, 2 }
 0x1b1   : > { %4266 = vrot.lane.b32.xlu0 %v4261_v49, %s8706_s11  ;;  %v7322_v49 = vld [vmem:[%s8756_s28 + $0x90] sm:$0xf]  ;;  %v4245_v46 = vsel %vm373_vm2, %v11308_v1, %v4244_v0  ;;  %v3937_v24 = vsel %vm439_vm4, %v11311_v50, %v3936_v60  ;;  %v11455_v42 = vcombine.low %v7323_v28, %v11436_v2  ;;  %v8553_v1 = vld [vmem:[%s13723_s1 + $0x180] sm:$0xff]   ;;  %v4252_v60 = vrot.slane %v11366_v19, 3 }
 0x1b2   : > { %v2515_v18 = vpop.permute.xlu1 %2514 }
 0x1b3   : > { %v2636_v13 = vpop.permute.xlu0 %2635  ;;  %13907 = vst [vmem:[#allocation12_spill] sm:$0xff] %v11455_v42 }
 0x1b4   : > { %3876 = vrot.lane.b32.xlu1 %v3873_v4, %s8705_s19  ;;  %v2747_v10 = vsel %vm492_vm8, %v2730_v55, %v2636_v13  ;;  %v13905_v4 = vrot.slane %v11197_v51, 3  ;;  %v3900_v13 = vor.u32 %v3899_v41, %v3896_v54  ;;  %v4211_v55 = vrot.slane %v11366_v19, 1 }
 0x1b5   : > { %3920 = vrot.lane.b32.xlu0 %v3917_v57, %s8705_s19  ;;  %v11448_v57 = vcombine.low %v7321_v30, %v7322_v49  ;;  %v2574_v19 = vsel %vm359_vm6, %v2571_v61, %v13767_v59  ;;  %v13911_v61 = vrot.slane %v11236_v43, 1 }
 0x1b6   : > { %v2675_v3 = vpop.permute.xlu1 %2674  ;;  %v3925_v25 = vsel %vm413_vm0, %v13905_v4, %v3924_v39  ;;  %v2687_v39 = vsel %vm479_vm7, %v13902_v7, %v2487_v31  ;;  %v11463_v31 = vcombine.low %v7320_v29, %v7321_v30  ;;  %v8554_v7 = vld [vmem:[%s13723_s1 + $0x1c8] sm:$0xff]   ;;  %v13909_v30 = vrot.slane %v11267_v6, 1 }
 0x1b7   : > { %v11438_v38 = vpop.permute.xlu0 %2612  ;;  %v2759_v9 = vsel %vm505_vm9, %v2747_v10, %v2675_v3  ;;  %13906 = vst [vmem:[#allocation11_spill] sm:$0xff] %v11448_v57  ;;  %v2699_v0 = vsel %vm492_vm8, %v2687_v39, %v2515_v18  ;;  %v4227_v10 = vrot.slane %v11391_v32, 2  ;;  %v4262_v3 = vrot.slane %v11388_v56, 3 }
 0x1b8   : > { %3887 = vrot.lane.b32.xlu1 %v3884_v35, %s8704_s8  ;;  %3488 = vmatprep.mubr.bf16.mxu0 %v2759_v9  ;;  %v4224_v35 = vrot.slane %v11388_v56, 1  ;;  %13908 = vst [vmem:[#allocation16_spill] sm:$0xff] %v11463_v31  ;;  %v4263_v18 = vrot.slane %v11391_v32, 4  ;;  %v11480_v9 = vshrl.u32 %v11448_v57, 16  ;;  %v11482_v29 = vcombine.low %v7322_v49, %v7323_v28 }
 0x1b9   : > { %3928 = vrot.lane.b32.xlu0 %v3925_v25, %s8704_s8  ;;  %v4201_v25 = vor.u32 %v11270_v36, %v13909_v30  ;;  %v3901_v32 = vsel %vm314_vm5, %v11328_v20, %v3900_v13  ;;  %v11491_v39 = vshll.u32 %v11448_v57, 16  ;;  %v11494_v6 = vshrl.u32 %v11455_v42, 16  ;;  %v8555_v36 = vld [vmem:[%s13723_s1 + $0x188] sm:$0xff]  }
 0x1ba   : > { %v2559_v50 = vpop.permute.xlu1 %2558  ;;  %13910 = vst [vmem:[#allocation14_spill] sm:$0xff] %v11482_v29  ;;  %v4253_v20 = vsel %vm413_vm0, %v4250_v11, %v4252_v60  ;;  %v11503_v13 = vshll.u32 %v11455_v42, 16  ;;  %v4264_v30 = vor.u32 %v4263_v18, %v4262_v3  ;;  %v5152_v60 = vrot.slane %v11480_v9, 2 }
 0x1bb   : > { %v2711_v54 = vsel %vm505_vm9, %v2699_v0, %v2559_v50  ;;  %v2489_v41 = vpop.permute.xlu0 %2488  ;;  %v7604_v4 = vpop.f32.mrb[12].mxu0  ;;  %v5155_v3 = vrot.slane %v11494_v6, 2  ;;  %v2733_v18 = vsel %vm479_vm7, %v2574_v19, %v11438_v38  ;;  %v8557_v38 = vld [vmem:[%s13723_s1 + $0x190] sm:$0xff]  }
 0x1bc   : > { %4248 = vrot.lane.b32.xlu1 %v4245_v46, %s8705_s19  ;;  %3489 = vmatmul.mubr.bf16.vlgmr.msra.gmra.mrb[72].mxu0 %v2711_v54  ;;  %v7605_v56 = vpop.f32.mrb[13].mxu0  ;;  %v4212_v46 = vsel %vm288_vm1, %v13911_v61, %v4211_v55  ;;  %v11506_v55 = vshrl.u32 %v11463_v31, 16  ;;  %v11521_v61 = vshrl.u32 %v11482_v29, 16  ;;  %v2689_v59 = vsel %vm479_vm7, %v9754_v22, %v2489_v41 }
 0x1bd   : > { %3940 = vrot.lane.b32.xlu0 %v3937_v24, %s8706_s11  ;;  %7987 = vmatpush3.bf16.msra.mxu0 %v8553_v1  ;;  %v7606_v49 = vadd.f32 %v7605_v56, %v7604_v4  ;;  %v7607_v28 = vpop.f32.mrb[14].mxu0  ;;  %v8556_v1 = vld [vmem:[%s13723_s1 + $0x1d0] sm:$0xff]   ;;  %v4228_v4 = vor.u32 %v4227_v10, %v4224_v35  ;;  %v11513_v56 = vshll.u32 %v11463_v31, 16  ;;  %v5013_v35 = vrot.slane %v11491_v39, 1 }
 0x1be   : > { %v2517_v24 = vpop.permute.xlu1 %2516  ;;  %7988 = vmatprep.subr.bf16.mxu0 %v8554_v7  ;;  %v7608_v0 = vpop.f32.mrb[15].mxu0  ;;  %v11518_v7 = vshll.u32 %v11482_v29, 16  ;;  %v5153_v10 = vrot.slane %v11491_v39, 3  ;;  %v5156_v27 = vrot.slane %v11503_v13, 3  ;;  %v4777_v22 = vrot.slane %v11506_v55, 2 }
 0x1bf   : > { %v2638_v50 = vpop.permute.xlu0 %2637  ;;  %v7609_v11 = vadd.f32 %v7608_v0, %v7607_v28 }
 0x1c0   : > { %4204 = vrot.lane.b32.xlu1 %v4201_v25, %s8705_s19  ;;  %v7656_v54 = vpop.f32.mrb[12].mxu1  ;;  %v2701_v25 = vsel %vm492_vm8, %v2689_v59, %v2517_v24  ;;  %v2749_v41 = vsel %vm492_vm8, %v2733_v18, %v2638_v50  ;;  %v4229_v24 = vsel %vm314_vm5, %v11375_v12, %v4228_v4  ;;  %v4781_v50 = vrot.slane %v11518_v7, 3  ;;  %v8560_v12 = vld [vmem:[%s13723_s1 + $0x1d8] sm:$0xff]  }
 0x1c1   : > { %3904 = vrot.lane.b32.xlu0 %v3901_v32, %s8706_s11  ;;  %7989 = vmatpush3.bf16.msra.mxu0 %v8555_v36  ;;  %v7657_v28 = vpop.f32.mrb[13].mxu1  ;;  %v4778_v36 = vrot.slane %v11513_v56, 3 }
 0x1c2   : > { %v2561_v0 = vpop.permute.xlu1 %2560  ;;  %7990 = vmatprep.subr.bf16.mxu0 %v8556_v1  ;;  %v7658_v32 = vadd.f32 %v7657_v28, %v7656_v54  ;;  %v7659_v43 = vpop.f32.mrb[14].mxu1  ;;  %v4780_v1 = vrot.slane %v11521_v61, 2  ;;  %v8559_v54 = vld [vmem:[%s13723_s1 + $0x200] sm:$0xff]   ;;  %v4265_v28 = vsel %vm439_vm4, %v11377_v48, %v4264_v30  ;;  %v5217_v30 = vrot.slane %v11491_v39, 4 }
 0x1c3   : > { %v2677_v33 = vpop.permute.xlu0 %2676  ;;  %v2714_v21 = vsel %vm505_vm9, %v2701_v25, %v2561_v0  ;;  %v7660_v59 = vpop.f32.mrb[15].mxu1  ;;  %v11559_v0 = vor.u32 %v5156_v27, %v5155_v3  ;;  %v8561_v27 = vld [vmem:[%s13723_s1 + $0x198] sm:$0xff]   ;;  %v8565_v3 = vld [vmem:[%s13723_s1 + $0x1e0] sm:$0xff]  }
 0x1c4   : > { %4215 = vrot.lane.b32.xlu1 %v4212_v46, %s8704_s8  ;;  %v2762_v19 = vsel %vm505_vm9, %v2749_v41, %v2677_v33  ;;  %v11549_v18 = vadd.f32 %v7658_v32, %v7606_v49  ;;  %v7661_v25 = vadd.f32 %v7660_v59, %v7659_v43  ;;  %v5014_v46 = vor.u32 %v5013_v35, %v11480_v9 }
 0x1c5   : > { %4256 = vrot.lane.b32.xlu0 %v4253_v20, %s8704_s8  ;;  %3496 = vmatprep.mubr.bf16.mxu0 %v2762_v19  ;;  %v13775_v33 = vrot.slane %v11503_v13, 1  ;;  %v5154_v49 = vor.u32 %v5153_v10, %v5152_v60  ;;  %v5191_v43 = vrot.slane %v11448_v57, 3  ;;  %v8562_v20 = vld [vmem:[%s13723_s1 + $0x248] sm:$0xff]   ;;  %v4779_v32 = vor.u32 %v4778_v36, %v4777_v22 }
 0x1c6   : > { %13912 = vst [vmem:[#allocation15_spill] sm:$0xff] %v11549_v18  ;;  %3804 = vmatprep.mubr.bf16.mxu1 %v2762_v19  ;;  %3497 = vmatmul.mubr.bf16.gmra.mrb[76].mxu0 %v2714_v21  ;;  %v2491_v4 = vpop.permute.xlu1 %2490  ;;  %v11565_v35 = vadd.f32 %v7661_v25, %v7609_v11  ;;  %v13774_v59 = vrot.slane %v11455_v42, 3  ;;  %v5216_v19 = vrot.slane %v11480_v9, 3  ;;  %v11573_v48 = vor.u32 %v4781_v50, %v4780_v1  ;;  %v8563_v60 = vld [vmem:[%s13723_s1 + $0x208] sm:$0xff]  }
 0x1c7   : > { %3805 = vmatmul.mubr.bf16.vlgmr.msra.gmra.mrb[72].mxu1 %v2714_v21  ;;  %v2615_v41 = vpop.permute.xlu0 %2614  ;;  %7991 = vmatpush3.bf16.msra.mxu0 %v8557_v38  ;;  %v5219_v11 = vrot.slane %v11494_v6, 3  ;;  %v5220_v21 = vrot.slane %v11503_v13, 4  ;;  %v5019_v10 = vsel %vm225_vm3, %v5014_v46, %v13775_v33  ;;  %v5158_v36 = vsel %vm373_vm2, %v5154_v49, %v11559_v0  ;;  %v8567_v38 = vld [vmem:[%s13723_s1 + $0x250] sm:$0xff]   ;;  %v8566_v46 = vld [vmem:[%s13723_s1 + $0x1a0] sm:$0xff]  }
 0x1c8   : > { %13913 = vst [vmem:[#allocation17_spill] sm:$0xff] %v11565_v35  ;;  %4232 = vrot.lane.b32.xlu1 %v4229_v24, %s8706_s11  ;;  %8039 = vmatpush3.bf16.msra.mxu1 %v8559_v54  ;;  %v13914_v24 = vrot.slane %v10680_v23, 2  ;;  %v13915_v1 = vrot.slane %v13871_v14, 2  ;;  %v5193_v25 = vsel %vm413_vm0, %v5191_v43, %v13774_v59  ;;  %v8568_v43 = vld [vmem:[%s13723_s1 + $0x210] sm:$0xff]   ;;  %v4720_v59 = vrot.slane %v11506_v55, 1 }
 0x1c9   : > { %4268 = vrot.lane.b32.xlu0 %v4265_v28, %s8706_s11  ;;  %7992 = vmatprep.subr.bf16.mxu0 %v8560_v12  ;;  %v4783_v12 = vsel %vm373_vm2, %v4779_v32, %v11573_v48  ;;  %v5218_v28 = vor.u32 %v5217_v30, %v5216_v19  ;;  %v11607_v49 = vor.u32 %v5220_v21, %v5219_v11  ;;  %v4638_v32 = vrot.slane %v11513_v56, 1 }
 0x1ca   : > { %v2519_v22 = vpop.permute.xlu1 %2518  ;;  %8040 = vmatprep.subr.bf16.mxu1 %v8562_v20  ;;  %v2576_v50 = vsel %vm359_vm6, %v13915_v1, %v13914_v24  ;;  %v5070_v20 = vrot.slane %v11448_v57, 1  ;;  %v5095_v19 = vrot.slane %v11480_v9, 1  ;;  %v5099_v1 = vrot.slane %v11503_v13, 2  ;;  %v7325_v9 = vld [vmem:[%s8756_s28 + $0x9c] sm:$0xf] }
 0x1cb   : > { %v2640_v54 = vpop.permute.xlu0 %2639  ;;  %7993 = vmatpush3.bf16.msra.mxu0 %v8561_v27  ;;  %v2691_v27 = vsel %vm479_vm7, %v13871_v14, %v2491_v4  ;;  %v2736_v30 = vsel %vm479_vm7, %v2576_v50, %v2615_v41  ;;  %v5098_v14 = vrot.slane %v11494_v6, 1  ;;  %v8570_v41 = vld [vmem:[%s13723_s1 + $0x1e8] sm:$0xff]   ;;  %v4721_v33 = vrot.slane %v11513_v56, 2 }
 0x1cc   : > { %5055 = vrot.lane.b32.xlu1 %v5019_v10, %s8705_s19  ;;  %8041 = vmatpush3.bf16.msra.mxu1 %v8563_v60  ;;  %v13773_v10 = vrot.slane %v11455_v42, 1  ;;  %v2703_v11 = vsel %vm492_vm8, %v2691_v27, %v2519_v22  ;;  %v5096_v60 = vrot.slane %v11491_v39, 2  ;;  %v2751_v4 = vsel %vm492_vm8, %v2736_v30, %v2640_v54  ;;  %v8571_v50 = vld [vmem:[%s13723_s1 + $0x1a8] sm:$0xff]  }
 0x1cd   : > { %5179 = vrot.lane.b32.xlu0 %v5158_v36, %s8705_s19  ;;  %7994 = vmatprep.subr.bf16.mxu0 %v8565_v3  ;;  %v11630_v3 = vld [vmem:[%s8756_s28 + $0xa0] sm:$0xf]  ;;  %v4639_v27 = vor.u32 %v4638_v32, %v11506_v55  ;;  %v4695_v30 = vrot.slane %v11463_v31, 1  ;;  %v8573_v32 = vld [vmem:[%s13723_s1 + $0x218] sm:$0xff]   ;;  %v4845_v57 = vrot.slane %v11518_v7, 4 }
 0x1ce   : > { %v2563_v21 = vpop.permute.xlu1 %2562  ;;  %8042 = vmatprep.subr.bf16.mxu1 %v8567_v38  ;;  %v5222_v38 = vsel %vm439_vm4, %v5218_v28, %v11607_v49  ;;  %v5072_v54 = vsel %vm288_vm1, %v5070_v20, %v13773_v10  ;;  %v8572_v28 = vld [vmem:[%s13723_s1 + $0x258] sm:$0xff]   ;;  %v11671_v10 = vor.u32 %v5099_v1, %v5098_v14  ;;  %v8576_v20 = vld [vmem:[%s13723_s1 + $0x260] sm:$0xff]   ;;  %v8575_v14 = vld [vmem:[%s13723_s1 + $0x1b0] sm:$0xff]  }
 0x1cf   : > { %v2679_v36 = vpop.permute.xlu0 %2678  ;;  %v11625_v24 = vsel %vm505_vm9, %v2703_v11, %v2563_v21  ;;  %7995 = vmatpush3.bf16.msra.mxu0 %v8566_v46  ;;  %v4816_v46 = vrot.slane %v11463_v31, 3  ;;  %v11662_v11 = vcombine.low %v7325_v9, %v11630_v3  ;;  %v8574_v21 = vld [vmem:[%s13723_s1 + $0x1f0] sm:$0xff]   ;;  %v4844_v31 = vrot.slane %v11521_v61, 3 }
 0x1d0   : > { %13916 = vst [vmem:[#allocation18_spill] sm:$0xff] %v11625_v24  ;;  %4804 = vrot.lane.b32.xlu1 %v4783_v12, %s8705_s19  ;;  %v11637_v39 = vsel %vm505_vm9, %v2751_v4, %v2679_v36  ;;  %8043 = vmatpush3.bf16.msra.mxu1 %v8568_v43  ;;  %v5097_v36 = vor.u32 %v5096_v60, %v5095_v19  ;;  %v4723_v43 = vrot.slane %v11521_v61, 1  ;;  %v4724_v12 = vrot.slane %v11518_v7, 2 }
 0x1d1   : > { %5204 = vrot.lane.b32.xlu0 %v5193_v25, %s8704_s8  ;;  %3504 = vmatprep.mubr.bf16.mxu0 %v11637_v39  ;;  %13917 = vst [vmem:[#allocation19_spill] sm:$0xff] %v11662_v11  ;;  %v4841_v19 = vrot.slane %v11506_v55, 3  ;;  %v4842_v60 = vrot.slane %v11513_v56, 4  ;;  %v11693_v55 = vcombine.low %v11436_v2, %v7325_v9  ;;  %v8578_v56 = vld [vmem:[%s13723_s1 + $0x1f8] sm:$0xff]   ;;  %v8577_v2 = vld [vmem:[%s13723_s1 + $0x220] sm:$0xff]   ;;  %v13921_v9 = vrot.slane %v10757_v5, 2 }
 0x1d2   : > { %3812 = vmatprep.mubr.bf16.mxu1 %v11637_v39  ;;  %3505 = vmatmul.mubr.bf16.gmra.mrb[80].mxu0 %v11625_v24  ;;  %v2493_v25 = vpop.permute.xlu1 %2492  ;;  %v11724_v18 = vor.u32 %v4724_v12, %v4723_v43 }
 0x1d3   : > { %3813 = vmatmul.mubr.bf16.gmra.mrb[76].mxu1 %v11625_v24  ;;  %v2617_v4 = vpop.permute.xlu0 %2616  ;;  %7996 = vmatprep.subr.bf16.mxu0 %v8570_v41  ;;  %v7610_v22 = vpop.f32.mrb[16].mxu0  ;;  %v13918_v41 = vrot.slane %v11482_v29, 3  ;;  %13919 = vst [vmem:[#allocation20_spill] sm:$0xff] %v11693_v55  ;;  %v11738_v12 = vshrl.u32 %v11693_v55, 16 }
 0x1d4   : > { %5243 = vrot.lane.b32.xlu1 %v5222_v38, %s8706_s11  ;;  %7997 = vmatpush3.bf16.msra.mxu0 %v8571_v50  ;;  %v7611_v1 = vpop.f32.mrb[17].mxu0 }
 0x1d5   : > { %5083 = vrot.lane.b32.xlu0 %v5072_v54, %s8704_s8  ;;  %v4818_v38 = vsel %vm413_vm0, %v4816_v46, %v13918_v41  ;;  %8044 = vmatprep.subr.bf16.mxu1 %v8572_v28  ;;  %v7612_v50 = vadd.f32 %v7611_v1, %v7610_v22  ;;  %v7613_v44 = vpop.f32.mrb[18].mxu0  ;;  %v13920_v54 = vrot.slane %v11518_v7, 1  ;;  %v11702_v46 = vshll.u32 %v11662_v11, 16 }
 0x1d6   : > { %v2521_v51 = vpop.permute.xlu1 %2520  ;;  %v11705_v41 = vshrl.u32 %v11662_v11, 16  ;;  %8045 = vmatpush3.bf16.msra.mxu1 %v8573_v32  ;;  %7998 = vmatprep.subr.bf16.mxu0 %v8574_v21  ;;  %v13922_v22 = vrot.slane %v10680_v23, 2  ;;  %v7614_v1 = vpop.f32.mrb[19].mxu0  ;;  %v5101_v32 = vsel %vm314_vm5, %v5097_v36, %v11671_v10  ;;  %v4722_v21 = vor.u32 %v4721_v33, %v4720_v59 }
 0x1d7   : > { %v4644_v15 = vsel %vm225_vm3, %v4639_v27, %v13920_v54  ;;  %v2642_v27 = vpop.permute.xlu0 %2641  ;;  %v13923_v54 = vrot.slane %v11482_v29, 1  ;;  %8046 = vmatprep.subr.bf16.mxu1 %v8576_v20  ;;  %v7615_v35 = vadd.f32 %v7614_v1, %v7613_v44  ;;  %v2693_v36 = vsel %vm479_vm7, %v10680_v23, %v2493_v25 }
 0x1d8   : > { %v2578_v28 = vsel %vm359_vm6, %v13922_v22, %v13921_v9  ;;  %4829 = vrot.lane.b32.xlu1 %v4818_v38, %s8704_s8  ;;  %v4843_v9 = vor.u32 %v4842_v60, %v4841_v19  ;;  %7999 = vmatpush3.bf16.msra.mxu0 %v8575_v14  ;;  %v7662_v33 = vpop.f32.mrb[16].mxu1  ;;  %v11732_v59 = vor.u32 %v4845_v57, %v4844_v31  ;;  %v11735_v44 = vshll.u32 %v11693_v55, 16 }
 0x1d9   : > { %v4697_v24 = vsel %vm288_vm1, %v4695_v30, %v13923_v54  ;;  %v8579_v30 = vld [vmem:[%s13723_s1 + $0x1b8] sm:$0xff]   ;;  %4680 = vrot.lane.b32.xlu0 %v4644_v15, %s8705_s19  ;;  %8000 = vmatprep.subr.bf16.mxu0 %v8578_v56  ;;  %v2739_v43 = vsel %vm479_vm7, %v2578_v28, %v2617_v4  ;;  %v2705_v20 = vsel %vm492_vm8, %v2693_v36, %v2521_v51  ;;  %v7663_v19 = vpop.f32.mrb[17].mxu1  ;;  %v5159_v23 = vrot.slane %v11705_v41, 2  ;;  %v8590_v51 = vld [vmem:[%s13723_s1 + $0xc0] sm:$0xff]  }
 0x1da   : > { %v2565_v60 = vpop.permute.xlu1 %2564  ;;  %v5160_v25 = vrot.slane %v11702_v46, 3  ;;  %8047 = vmatpush3.bf16.msra.mxu1 %v8577_v2  ;;  %v2753_v15 = vsel %vm492_vm8, %v2739_v43, %v2642_v27  ;;  %v7664_v57 = vadd.f32 %v7663_v19, %v7662_v33  ;;  %v7665_v31 = vpop.f32.mrb[18].mxu1  ;;  %v4726_v2 = vsel %vm314_vm5, %v4722_v21, %v11724_v18  ;;  %v8583_v43 = vld [vmem:[%s13723_s1 + $0x230] sm:$0xff]  }
 0x1db   : > { %v2681_v14 = vpop.permute.xlu0 %2680  ;;  %v11746_v38 = vsel %vm505_vm9, %v2705_v20, %v2565_v60  ;;  %8048 = vmatprep.subr.bf16.mxu1 %v8580_v40  ;;  %v7666_v4 = vpop.f32.mrb[19].mxu1  ;;  %v13924_v22 = vrot.slane %v11503_v13, 1  ;;  %v13790_v1 = vrot.slane %v11702_v46, 1  ;;  %v8581_v40 = vld [vmem:[%s13723_s1 + $0x228] sm:$0xff]   ;;  %v4784_v54 = vrot.slane %v11738_v12, 2  ;;  %v8584_v60 = vld [vmem:[%s13723_s1 + $0x278] sm:$0xff]  }
 0x1dc   : > { %4708 = vrot.lane.b32.xlu1 %v4697_v24, %s8704_s8  ;;  %v11753_v56 = vsel %vm505_vm9, %v2753_v15, %v2681_v14  ;;  %8001 = vmatpush3.bf16.msra.mxu0 %v8579_v30  ;;  %v11764_v27 = vadd.f32 %v7664_v57, %v7612_v50  ;;  %v7667_v24 = vadd.f32 %v7666_v4, %v7665_v31  ;;  %v4785_v13 = vrot.slane %v11735_v44, 3 }
 0x1dd   : > { %v5022_v28 = vor.u32 %v11494_v6, %v13924_v22  ;;  %5127 = vrot.lane.b32.xlu0 %v5101_v32, %s8706_s11  ;;  %3512 = vmatprep.mubr.bf16.mxu0 %v11753_v56  ;;  %v8582_v6 = vld [vmem:[%s13723_s1 + $0x270] sm:$0xff]   ;;  %v4847_v50 = vsel %vm439_vm4, %v4843_v9, %v11732_v59  ;;  %v11777_v30 = vor.u32 %v5160_v25, %v5159_v23  ;;  %v11783_v36 = vrot.slane %v13884_v62, 2 }
 0x1de   : > { %3820 = vmatprep.mubr.bf16.mxu1 %v11753_v56  ;;  %3513 = vmatmul.mubr.bf16.gmra.mrb[84].mxu0 %v11746_v38  ;;  %v2495_v21 = vpop.permute.xlu1 %2494  ;;  %v11779_v32 = vadd.f32 %v7667_v24, %v7615_v35  ;;  %v11793_v9 = vor.u32 %v4785_v13, %v4784_v54  ;;  %v5223_v20 = vrot.slane %v11705_v41, 3  ;;  %v5224_v19 = vrot.slane %v11702_v46, 4 }
 0x1df   : > { %3821 = vmatmul.mubr.bf16.gmra.mrb[80].mxu1 %v11746_v38  ;;  %v2619_v33 = vpop.permute.xlu0 %2618  ;;  %8090 = vmatprep.subr.bf16.mxu0 %v8590_v51  ;;  %v5027_v35 = vsel %vm225_vm3, %v5022_v28, %v13790_v1  ;;  %v5162_v25 = vsel %vm373_vm2, %v11559_v0, %v11777_v30  ;;  %v13789_v15 = vrot.slane %v11662_v11, 3  ;;  %v13925_v57 = vrot.slane %v10757_v5, 2  ;;  %v8585_v51 = vld [vmem:[%s13723_s1 + $0x238] sm:$0xff]  }
 0x1e0   : > { %4752 = vrot.lane.b32.xlu1 %v4726_v2, %s8706_s11  ;;  %8049 = vmatpush3.bf16.msra.mxu1 %v8581_v40  ;;  %v2695_v0 = vsel %vm479_vm7, %v10757_v5, %v2495_v21  ;;  %v4787_v4 = vsel %vm373_vm2, %v11573_v48, %v11793_v9  ;;  %v11818_v2 = vor.u32 %v5224_v19, %v5223_v20  ;;  %v13926_v24 = vrot.slane %v11455_v42, 3  ;;  %v7327_v21 = vld [vmem:[%s8756_s28 + $0xa4] sm:$0xf] }
 0x1e1   : > { %4868 = vrot.lane.b32.xlu0 %v4847_v50, %s8706_s11  ;;  %8050 = vmatprep.subr.bf16.mxu1 %v8582_v6  ;;  %v2580_v31 = vsel %vm359_vm6, %v13925_v57, %v11783_v36  ;;  %v13786_v54 = vrot.slane %v11662_v11, 1  ;;  %v11834_v50 = vld [vmem:[%s8756_s28 + $0xa8] sm:$0xf]  ;;  %v5103_v20 = vrot.slane %v11702_v46, 2 }
 0x1e2   : > { %v2523_v23 = vpop.permute.xlu1 %2522  ;;  %v2742_v22 = vsel %vm479_vm7, %v2580_v31, %v2619_v33  ;;  %v5195_v5 = vsel %vm413_vm0, %v13926_v24, %v13789_v15  ;;  %v8594_v33 = vld [vmem:[%s13723_s1 + $0x40] sm:$0xff]   ;;  %v5226_v19 = vsel %vm439_vm4, %v11607_v49, %v11818_v2  ;;  %v13930_v31 = vrot.slane %v11518_v7, 1 }
 0x1e3   : > { %v2644_v14 = vpop.permute.xlu0 %2643  ;;  %v2707_v28 = vsel %vm492_vm8, %v2695_v0, %v2523_v23  ;;  %v11863_v49 = vcombine.low %v7327_v21, %v11834_v50  ;;  %v11867_v0 = vrot.slane %v10949_v58, 2 }
 0x1e4   : > { %5057 = vrot.lane.b32.xlu1 %v5027_v35, %s8705_s19  ;;  %8051 = vmatpush3.bf16.msra.mxu1 %v8583_v43  ;;  %v2755_v13 = vsel %vm492_vm8, %v2742_v22, %v2644_v14  ;;  %v5102_v35 = vrot.slane %v11705_v41, 1  ;;  %v4647_v14 = vor.u32 %v11521_v61, %v13930_v31  ;;  %v4727_v61 = vrot.slane %v11738_v12, 1 }
 0x1e5   : > { %5181 = vrot.lane.b32.xlu0 %v5162_v25, %s8705_s19  ;;  %8052 = vmatprep.subr.bf16.mxu1 %v8584_v60  ;;  %v13787_v60 = vrot.slane %v11693_v55, 3  ;;  %v13929_v25 = vrot.slane %v11455_v42, 1  ;;  %13931 = vst [vmem:[#allocation23_spill] sm:$0xff] %v11863_v49  ;;  %v11890_v31 = vshll.u32 %v11863_v49, 16 }
 0x1e6   : > { %v2567_v40 = vpop.permute.xlu1 %2566  ;;  %v11871_v7 = vor.u32 %v5103_v20, %v5102_v35  ;;  %v11884_v35 = vcombine.low %v11630_v3, %v7327_v21 }
 0x1e7   : > { %v2683_v6 = vpop.permute.xlu0 %2682  ;;  %v11830_v48 = vsel %vm505_vm9, %v2707_v28, %v2567_v40  ;;  %v5074_v57 = vsel %vm288_vm1, %v13929_v25, %v13786_v54  ;;  %v13791_v28 = vrot.slane %v11693_v55, 1  ;;  %v4728_v40 = vrot.slane %v11735_v44, 2 }
 0x1e8   : > { %13927 = vst [vmem:[#allocation21_spill] sm:$0xff] %v11830_v48  ;;  %4806 = vrot.lane.b32.xlu1 %v4787_v4, %s8705_s19  ;;  %v11841_v43 = vsel %vm505_vm9, %v2755_v13, %v2683_v6  ;;  %8053 = vmatpush3.bf16.msra.mxu1 %v8585_v51  ;;  %v13788_v51 = vrot.slane %v11735_v44, 1  ;;  %v4848_v6 = vrot.slane %v11738_v12, 3  ;;  %13933 = vst [vmem:[#allocation24_spill] sm:$0xff] %v11884_v35  ;;  %v11893_v54 = vshrl.u32 %v11863_v49, 16 }
 0x1e9   : > { %13928 = vst [vmem:[#allocation22_spill] sm:$0xff] %v11841_v43  ;;  %5206 = vrot.lane.b32.xlu0 %v5195_v5, %s8704_s8  ;;  %3520 = vmatprep.mubr.bf16.mxu0 %v11841_v43  ;;  %v13932_v5 = vrot.slane %v11482_v29, 3 }
 0x1ea   : > { %3828 = vmatprep.mubr.bf16.mxu1 %v11841_v43  ;;  %3521 = vmatmul.mubr.bf16.gmra.mrb[88].mxu0 %v11830_v48  ;;  %v3547_v23 = vpop.permute.xlu1 %3546 }
 0x1eb   : > { %3829 = vmatmul.mubr.bf16.gmra.mrb[84].mxu1 %v11830_v48  ;;  %v3591_v4 = vpop.permute.xlu0 %3590  ;;  %8142 = vmatprep.subr.bf16.mxu1 %v8594_v33  ;;  %v4820_v13 = vsel %vm413_vm0, %v13932_v5, %v13787_v60  ;;  %v4849_v33 = vrot.slane %v11735_v44, 4  ;;  %v3579_v5 = vsel %vm359_vm6, %v11783_v36, %v11867_v0  ;;  %v3615_v15 = vsel %vm479_vm7, %v13884_v62, %v3547_v23 }
 0x1ec   : > { %v7616_v22 = vpop.f32.mrb[20].mxu0  ;;  %5245 = vrot.lane.b32.xlu1 %v5226_v19, %s8706_s11  ;;  %v5164_v23 = vrot.slane %v11890_v31, 3 }
 0x1ed   : > { %v7617_v24 = vpop.f32.mrb[21].mxu0  ;;  %5085 = vrot.lane.b32.xlu0 %v5074_v57, %s8704_s8  ;;  %v4652_v57 = vsel %vm225_vm3, %v4647_v14, %v13788_v51  ;;  %v11907_v51 = vor.u32 %v4728_v40, %v4727_v61 }
 0x1ee   : > { %v7618_v20 = vadd.f32 %v7617_v24, %v7616_v22  ;;  %v7619_v19 = vpop.f32.mrb[22].mxu0  ;;  %v3558_v25 = vpop.permute.xlu1 %3557  ;;  %v13934_v22 = vrot.slane %v11482_v29, 1  ;;  %v5105_v24 = vsel %vm314_vm5, %v11671_v10, %v11871_v7 }
 0x1ef   : > { %v7620_v60 = vpop.f32.mrb[23].mxu0  ;;  %v3599_v3 = vpop.permute.xlu0 %3598  ;;  %v3619_v10 = vsel %vm492_vm8, %v3615_v15, %v3558_v25  ;;  %v13935_v25 = vrot.slane %v11702_v46, 1 }
 0x1f0   : > { %v7621_v21 = vadd.f32 %v7620_v60, %v7619_v19  ;;  %4831 = vrot.lane.b32.xlu1 %v4820_v13, %s8704_s8  ;;  %v4699_v14 = vsel %vm288_vm1, %v13934_v22, %v13791_v28  ;;  %v11912_v60 = vor.u32 %v4849_v33, %v4848_v6  ;;  %v11915_v13 = vshll.u32 %v11884_v35, 16 }
 0x1f1   : > { %v7668_v1 = vpop.f32.mrb[20].mxu1  ;;  %4682 = vrot.lane.b32.xlu0 %v4652_v57, %s8705_s19  ;;  %v11918_v19 = vshrl.u32 %v11884_v35, 16  ;;  %v3630_v22 = vsel %vm479_vm7, %v3579_v5, %v3591_v4  ;;  %v5163_v28 = vrot.slane %v11893_v54, 2  ;;  %v4730_v4 = vsel %vm314_vm5, %v11724_v18, %v11907_v51 }
 0x1f2   : > { %v7669_v61 = vpop.f32.mrb[21].mxu1  ;;  %v3575_v40 = vpop.permute.xlu1 %3574  ;;  %v3635_v57 = vsel %vm492_vm8, %v3630_v22, %v3599_v3  ;;  %v13798_v5 = vrot.slane %v11890_v31, 1 }
 0x1f3   : > { %v7670_v6 = vadd.f32 %v7669_v61, %v7668_v1  ;;  %v7671_v33 = vpop.f32.mrb[22].mxu1  ;;  %v3611_v29 = vpop.permute.xlu0 %3610  ;;  %v11926_v42 = vsel %vm505_vm9, %v3619_v10, %v3575_v40  ;;  %v5030_v1 = vor.u32 %v11705_v41, %v13935_v25  ;;  %v4851_v41 = vsel %vm439_vm4, %v11732_v59, %v11912_v60 }
 0x1f4   : > { %v7672_v48 = vpop.f32.mrb[23].mxu1  ;;  %v7690_v43 = vpop.f32.mrb[24].mxu0  ;;  %4710 = vrot.lane.b32.xlu1 %v4699_v14, %s8704_s8  ;;  %v11930_v15 = vsel %vm505_vm9, %v3635_v57, %v3611_v29  ;;  %v4788_v29 = vrot.slane %v11918_v19, 2  ;;  %v4789_v14 = vrot.slane %v11915_v13, 3  ;;  %v2581_v40 = vrot.slane %v11071_v45, 2 }
 0x1f5   : > { %v11939_v3 = vadd.f32 %v7670_v6, %v7618_v20  ;;  %v7673_v22 = vadd.f32 %v7672_v48, %v7671_v33  ;;  %v7691_v10 = vpop.f32.mrb[25].mxu0  ;;  %5129 = vrot.lane.b32.xlu0 %v5105_v24, %s8706_s11  ;;  %3836 = vmatprep.mubr.bf16.mxu1 %v11930_v15  ;;  %v11951_v48 = vor.u32 %v5164_v23, %v5163_v28  ;;  %v5227_v6 = vrot.slane %v11893_v54, 3 }
 0x1f6   : > { %v7692_v61 = vadd.f32 %v7691_v10, %v7690_v43  ;;  %v7693_v18 = vpop.f32.mrb[26].mxu0  ;;  %3837 = vmatmul.mubr.bf16.gmra.mrb[88].mxu1 %v11926_v42  ;;  %v11946_v46 = vpop.permute.xlu1 %2496  ;;  %v5228_v43 = vrot.slane %v11890_v31, 4  ;;  %v5035_v59 = vsel %vm225_vm3, %v5030_v1, %v13798_v5  ;;  %v11964_v28 = vor.u32 %v4789_v14, %v4788_v29 }
 0x1f7   : > { %v11953_v20 = vadd.f32 %v7673_v22, %v7621_v21  ;;  %v7694_v24 = vpop.f32.mrb[27].mxu0  ;;  %v2621_v57 = vpop.permute.xlu0 %2620  ;;  %v13799_v22 = vrot.slane %v11863_v49, 3 }
 0x1f8   : > { %v1651_v33 = vadd.f32 %v7692_v61, %v11146_v53  ;;  %v7695_v25 = vadd.f32 %v7694_v24, %v7693_v18  ;;  %4754 = vrot.lane.b32.xlu1 %v4730_v4, %s8706_s11  ;;  %v5166_v53 = vsel %vm373_vm2, %v11777_v30, %v11951_v48  ;;  %v2582_v4 = vsel %vm359_vm6, %v11783_v36, %v2581_v40 }
 0x1f9   : > { %v7742_v10 = vpop.f32.mrb[24].mxu1  ;;  %4870 = vrot.lane.b32.xlu0 %v4851_v41, %s8706_s11  ;;  %v11973_v24 = vor.u32 %v5228_v43, %v5227_v6  ;;  %v4791_v36 = vsel %vm373_vm2, %v11793_v9, %v11964_v28  ;;  %v13800_v40 = vrot.slane %v11863_v49, 1  ;;  %v2745_v6 = vsel %vm479_vm7, %v2582_v4, %v2621_v57 }
 0x1fa   : > { %v1652_v45 = vadd.f32 %v7695_v25, %v11160_v34  ;;  %v7743_v21 = vpop.f32.mrb[25].mxu1  ;;  %v2525_v23 = vpop.permute.xlu1 %2524  ;;  %v5107_v34 = vrot.slane %v11890_v31, 2 }
 0x1fb   : > { %v7744_v61 = vadd.f32 %v7743_v21, %v7742_v10  ;;  %v7745_v18 = vpop.f32.mrb[26].mxu1  ;;  %v2646_v41 = vpop.permute.xlu0 %2645 }
 0x1fc   : > { %v7696_v1 = vpop.f32.mrb[28].mxu0  ;;  %v7746_v29 = vpop.f32.mrb[27].mxu1  ;;  %5059 = vrot.lane.b32.xlu1 %v5035_v59, %s8705_s19  ;;  %v2757_v9 = vsel %vm492_vm8, %v2745_v6, %v2646_v41 }
 0x1fd   : > { %v11977_v14 = vadd.f32 %v7744_v61, %v1651_v33  ;;  %v7747_v30 = vadd.f32 %v7746_v29, %v7745_v18  ;;  %v7697_v25 = vpop.f32.mrb[29].mxu0  ;;  %5183 = vrot.lane.b32.xlu0 %v5166_v53, %s8705_s19  ;;  %v13936_v33 = vrot.slane %v11662_v11, 3  ;;  %v13801_v53 = vrot.slane %v11884_v35, 3  ;;  %v7329_v61 = vld [vmem:[%s8756_s28 + $0xac] sm:$0xf] }
 0x1fe   : > { %v7698_v43 = vadd.f32 %v7697_v25, %v7696_v1  ;;  %v7699_v10 = vpop.f32.mrb[30].mxu0  ;;  %v11985_v21 = vpop.permute.xlu1 %3592  ;;  %v11995_v18 = vld [vmem:[%s8756_s28 + $0xb0] sm:$0xf]  ;;  %v5230_v1 = vsel %vm439_vm4, %v11818_v2, %v11973_v24  ;;  %v5106_v25 = vrot.slane %v11893_v54, 1 }
 0x1ff   : > { %v5197_v59 = vsel %vm413_vm0, %v13936_v33, %v13799_v22  ;;  %v11998_v29 = vadd.f32 %v7747_v30, %v1652_v45  ;;  %v7700_v57 = vpop.f32.mrb[31].mxu0  ;;  %v2685_v4 = vpop.permute.xlu0 %2684  ;;  %v13937_v45 = vrot.slane %v11662_v11, 1  ;;  %v13938_v30 = vrot.slane %v11735_v44, 1 }
 0x200   : > { %v1653_v5 = vadd.f32 %v7698_v43, %v11262_v16  ;;  %v7701_v33 = vadd.f32 %v7700_v57, %v7699_v10  ;;  %4808 = vrot.lane.b32.xlu1 %v4791_v36, %s8705_s19  ;;  %v2774_v22 = vsel %vm505_vm9, %v2757_v9, %v2685_v4  ;;  %v12019_v6 = vcombine.low %v7329_v61, %v11995_v18 }
 0x201   : > { %v7748_v41 = vpop.f32.mrb[28].mxu1  ;;  %5208 = vrot.lane.b32.xlu0 %v5197_v59, %s8704_s8  ;;  %3528 = vmatprep.mubr.bf16.mxu0 %v2774_v22  ;;  %v5076_v2 = vsel %vm288_vm1, %v13937_v45, %v13800_v40  ;;  %v4655_v16 = vor.u32 %v11738_v12, %v13938_v30  ;;  %v2697_v43 = vsel %vm479_vm7, %v13884_v62, %v11946_v46  ;;  %v13939_v9 = vrot.slane %v11693_v55, 3 }
 0x202   : > { %v1654_v22 = vadd.f32 %v7701_v33, %v11277_v37  ;;  %v7749_v10 = vpop.f32.mrb[29].mxu1  ;;  %v3549_v59 = vpop.permute.xlu1 %3548  ;;  %v13802_v12 = vrot.slane %v11884_v35, 1  ;;  %v2709_v57 = vsel %vm492_vm8, %v2697_v43, %v2525_v23  ;;  %v4731_v40 = vrot.slane %v11918_v19, 1 }
 0x203   : > { %v4822_v44 = vsel %vm413_vm0, %v13939_v9, %v13801_v53  ;;  %v7750_v4 = vadd.f32 %v7749_v10, %v7748_v41  ;;  %v7751_v45 = vpop.f32.mrb[30].mxu1  ;;  %v2569_v30 = vpop.permute.xlu0 %2568  ;;  %v4732_v62 = vrot.slane %v11915_v13, 2  ;;  %v12036_v36 = vor.u32 %v5107_v34, %v5106_v25 }
 0x204   : > { %v7702_v37 = vpop.f32.mrb[32].mxu0  ;;  %v7752_v46 = vpop.f32.mrb[31].mxu1  ;;  %5247 = vrot.lane.b32.xlu1 %v5230_v1, %s8706_s11  ;;  %v2726_v33 = vsel %vm505_vm9, %v2709_v57, %v2569_v30  ;;  %v4852_v9 = vrot.slane %v11918_v19, 3  ;;  %v12040_v53 = vcombine.low %v11834_v50, %v7329_v61  ;;  %v4853_v10 = vrot.slane %v11915_v13, 4 }
 0x205   : > { %v12042_v23 = vadd.f32 %v7750_v4, %v1653_v5  ;;  %v7753_v41 = vadd.f32 %v7752_v46, %v7751_v45  ;;  %v7703_v43 = vpop.f32.mrb[33].mxu0  ;;  %5087 = vrot.lane.b32.xlu0 %v5076_v2, %s8704_s8  ;;  %3529 = vmatmul.mubr.bf16.gmra.mrb[92].mxu0 %v2726_v33  ;;  %v12047_v1 = vshrl.u32 %v12019_v6, 16  ;;  %v13940_v50 = vrot.slane %v11915_v13, 1 }
 0x206   : > { %v7704_v57 = vadd.f32 %v7703_v43, %v7702_v37  ;;  %v7705_v34 = vpop.f32.mrb[34].mxu0  ;;  %4132 = vmatprep.mubr.bf16.mxu0 %v10930_v47  ;;  %v3560_v25 = vpop.permute.xlu1 %3559  ;;  %v12054_v61 = vshll.u32 %v12019_v6, 16  ;;  %v13941_v2 = vrot.slane %v11129_v63, 2  ;;  %v13942_v47 = vrot.slane %v11693_v55, 1 }
 0x207   : > { %v4660_v5 = vsel %vm225_vm3, %v4655_v16, %v13940_v50  ;;  %v12060_v45 = vadd.f32 %v7753_v41, %v1654_v22  ;;  %v7706_v30 = vpop.f32.mrb[35].mxu0  ;;  %v3601_v37 = vpop.permute.xlu0 %3600  ;;  %v12067_v33 = vor.u32 %v4732_v62, %v4731_v40  ;;  %v12072_v63 = vshll.u32 %v12040_v53, 16 }
 0x208   : > { %v3581_v4 = vsel %vm359_vm6, %v11867_v0, %v13941_v2  ;;  %v4701_v46 = vsel %vm288_vm1, %v13942_v47, %v13802_v12  ;;  %v1655_v16 = vadd.f32 %v7704_v57, %v11393_v8  ;;  %v7707_v43 = vadd.f32 %v7706_v30, %v7705_v34  ;;  %4833 = vrot.lane.b32.xlu1 %v4822_v44, %s8704_s8 }
 0x209   : > { %v12075_v22 = vshrl.u32 %v12040_v53, 16  ;;  %v3617_v41 = vsel %vm479_vm7, %v10949_v58, %v3549_v59  ;;  %v7754_v50 = vpop.f32.mrb[32].mxu1  ;;  %4684 = vrot.lane.b32.xlu0 %v4660_v5, %s8705_s19  ;;  %v5109_v40 = vsel %vm314_vm5, %v11871_v7, %v12036_v36  ;;  %v12083_v8 = vor.u32 %v4853_v10, %v4852_v9 }
 0x20a   : > { %v5167_v44 = vrot.slane %v12047_v1, 2  ;;  %v3633_v62 = vsel %vm479_vm7, %v3581_v4, %v11985_v21  ;;  %v3621_v57 = vsel %vm492_vm8, %v3617_v41, %v3560_v25  ;;  %v1656_v34 = vadd.f32 %v7707_v43, %v11404_v26  ;;  %v7755_v2 = vpop.f32.mrb[33].mxu1  ;;  %v3577_v59 = vpop.permute.xlu1 %3576 }
 0x20b   : > { %v5168_v30 = vrot.slane %v12054_v61, 3  ;;  %v3637_v5 = vsel %vm492_vm8, %v3633_v62, %v3601_v37  ;;  %v7756_v47 = vadd.f32 %v7755_v2, %v7754_v50  ;;  %v7757_v12 = vpop.f32.mrb[34].mxu1  ;;  %v3613_v7 = vpop.permute.xlu0 %3612  ;;  %v3626_v9 = vsel %vm505_vm9, %v3621_v57, %v3577_v59  ;;  %v8591_v37 = vld [vmem:[%s13723_s1 + $0x80] sm:$0xff]   ;;  %v8592_v57 = vld [vmem:[%s13723_s1 + $0xc8] sm:$0xff]  }
 0x20c   : > { %v7708_v10 = vpop.f32.mrb[36].mxu0  ;;  %v7758_v55 = vpop.f32.mrb[35].mxu1  ;;  %4712 = vrot.lane.b32.xlu1 %v4701_v46, %s8704_s8  ;;  %v3642_v21 = vsel %vm505_vm9, %v3637_v5, %v3613_v7  ;;  %v4734_v26 = vsel %vm314_vm5, %v11907_v51, %v12067_v33  ;;  %v4792_v25 = vrot.slane %v12075_v22, 2  ;;  %v4793_v4 = vrot.slane %v12072_v63, 3 }
 0x20d   : > { %v12103_v43 = vadd.f32 %v7756_v47, %v1655_v16  ;;  %v7759_v41 = vadd.f32 %v7758_v55, %v7757_v12  ;;  %v7709_v50 = vpop.f32.mrb[37].mxu0  ;;  %5131 = vrot.lane.b32.xlu0 %v5109_v40, %s8706_s11  ;;  %3844 = vmatprep.mubr.bf16.mxu1 %v3642_v21  ;;  %v13943_v46 = vrot.slane %v11890_v31, 1  ;;  %v13807_v51 = vrot.slane %v12054_v61, 1 }
 0x20e   : > { %v7710_v2 = vadd.f32 %v7709_v50, %v7708_v10  ;;  %4133 = vmatmul.mubr.bf16.vlgmr.msra.gmra.mrb[96].mxu0 %v10920_v52  ;;  %v7711_v16 = vpop.f32.mrb[38].mxu0  ;;  %3845 = vmatmul.mubr.bf16.gmra.mrb[92].mxu1 %v3626_v9  ;;  %v12114_v55 = vpop.permute.xlu1 %3874  ;;  %v4855_v12 = vsel %vm439_vm4, %v11912_v60, %v12083_v8  ;;  %v12119_v31 = vor.u32 %v5168_v30, %v5167_v44  ;;  %v13945_v52 = vld [vmem:[#allocation15_spill] sm:$0xff]  ;;  %v8596_v30 = vld [vmem:[%s13723_s1 + $0xd0] sm:$0xff]   ;;  %v13946_v9 = vld [vmem:[#allocation17_spill] sm:$0xff] }
 0x20f   : > { %v5038_v62 = vor.u32 %v11893_v54, %v13943_v46  ;;  %v12121_v54 = vadd.f32 %v7759_v41, %v1656_v34  ;;  %4140 = vmatprep.mubr.bf16.mxu0 %v11044_v17  ;;  %v7712_v40 = vpop.f32.mrb[39].mxu0  ;;  %4460 = vmatprep.mubr.bf16.mxu1 %v11637_v39  ;;  %v12125_v59 = vpop.permute.xlu0 %3918  ;;  %v12129_v7 = vor.u32 %v4793_v4, %v4792_v25  ;;  %v8593_v60 = vld [vmem:[%s13723_s1 + $0x88] sm:$0xff]   ;;  %v5231_v39 = vrot.slane %v12047_v1, 3 }
 0x210   : > { %v1657_v5 = vadd.f32 %v7710_v2, %v13945_v52  ;;  %v7713_v47 = vadd.f32 %v7712_v40, %v7711_v16  ;;  %4756 = vrot.lane.b32.xlu1 %v4734_v26, %s8706_s11  ;;  %8091 = vmatpush3.bf16.msra.mxu0 %v8591_v37  ;;  %v5232_v34 = vrot.slane %v12054_v61, 4  ;;  %v5170_v25 = vsel %vm373_vm2, %v11951_v48, %v12119_v31  ;;  %v8595_v48 = vld [vmem:[%s13723_s1] sm:$0xff]   ;;  %v12163_v40 = vld [vmem:[%s8756_s28 + $0xb8] sm:$0xf] }
 0x211   : > { %13944 = vst [vmem:[#allocation25_spill] sm:$0xff] %v12121_v54  ;;  %v7760_v44 = vpop.f32.mrb[36].mxu1  ;;  %4872 = vrot.lane.b32.xlu0 %v4855_v12, %s8706_s11  ;;  %v5043_v17 = vsel %vm225_vm3, %v5038_v62, %v13807_v51  ;;  %8092 = vmatprep.subr.bf16.mxu0 %v8592_v57  ;;  %v13805_v4 = vrot.slane %v12019_v6, 3  ;;  %v7331_v57 = vld [vmem:[%s8756_s28 + $0xb4] sm:$0xf]  ;;  %v4795_v2 = vsel %vm373_vm2, %v11964_v28, %v12129_v7  ;;  %v4856_v51 = vrot.slane %v12075_v22, 3 }
 0x212   : > { %v1658_v10 = vadd.f32 %v7713_v47, %v13946_v9  ;;  %v7761_v21 = vpop.f32.mrb[37].mxu1  ;;  %v12144_v26 = vpop.permute.xlu1 %3885  ;;  %v12166_v47 = vor.u32 %v5232_v34, %v5231_v39  ;;  %v8597_v28 = vld [vmem:[%s13723_s1 + $0x90] sm:$0xff]   ;;  %v13949_v9 = vld [vmem:[#allocation18_spill] sm:$0xff]  ;;  %v13950_v39 = vrot.slane %v11863_v49, 3 }
 0x213   : > { %v7762_v37 = vadd.f32 %v7761_v21, %v7760_v44  ;;  %v7763_v41 = vpop.f32.mrb[38].mxu1  ;;  %v12150_v50 = vpop.permute.xlu0 %3926  ;;  %v13806_v44 = vrot.slane %v12019_v6, 1 }
 0x214   : > { %v7714_v46 = vpop.f32.mrb[40].mxu0  ;;  %v7764_v62 = vpop.f32.mrb[39].mxu1  ;;  %5061 = vrot.lane.b32.xlu1 %v5043_v17, %s8705_s19  ;;  %8093 = vmatpush3.bf16.msra.mxu0 %v8593_v60  ;;  %v13948_v17 = vld [vmem:[#allocation2_spill] sm:$0xff]  ;;  %v5199_v34 = vsel %vm413_vm0, %v13950_v39, %v13805_v4  ;;  %v5110_v4 = vrot.slane %v12047_v1, 1  ;;  %v12231_v39 = vcombine.low %v11995_v18, %v7331_v57 }
 0x215   : > { %v12160_v16 = vadd.f32 %v7762_v37, %v1657_v5  ;;  %v7765_v12 = vadd.f32 %v7764_v62, %v7763_v41  ;;  %v7715_v52 = vpop.f32.mrb[41].mxu0  ;;  %5185 = vrot.lane.b32.xlu0 %v5170_v25, %s8705_s19  ;;  %8094 = vmatprep.subr.bf16.mxu0 %v8596_v30  ;;  %v8598_v30 = vld [vmem:[%s13723_s1 + $0x48] sm:$0xff]   ;;  %v8600_v25 = vld [vmem:[%s13723_s1 + $0xd8] sm:$0xff]   ;;  %v13952_v41 = vld [vmem:[#allocation4_spill] sm:$0xff] }
 0x216   : > { %v7716_v60 = vadd.f32 %v7715_v52, %v7714_v46  ;;  %4141 = vmatmul.mubr.bf16.gmra.mrb[100].mxu0 %v13948_v17  ;;  %v7717_v5 = vpop.f32.mrb[42].mxu0  ;;  %4461 = vmatmul.mubr.bf16.vlgmr.msra.gmra.mrb[96].mxu1 %v13949_v9  ;;  %v12174_v21 = vpop.permute.xlu1 %4246  ;;  %v12194_v52 = vcombine.low %v7331_v57, %v12163_v40  ;;  %13957 = vst [vmem:[#allocation18_spill] sm:$0xff] %v12231_v39  ;;  %v13961_v57 = vrot.slane %v12072_v63, 1 }
 0x217   : > { %13947 = vst [vmem:[#allocation15_spill] sm:$0xff] %v12160_v16  ;;  %v12187_v37 = vadd.f32 %v7765_v12, %v1658_v10  ;;  %4148 = vmatprep.mubr.bf16.mxu0 %v13952_v41  ;;  %v7718_v46 = vpop.f32.mrb[43].mxu0  ;;  %4468 = vmatprep.mubr.bf16.mxu1 %v11753_v56  ;;  %v12191_v62 = vpop.permute.xlu0 %3938  ;;  %v8599_v10 = vld [vmem:[%s13723_s1 + $0x8] sm:$0xff]   ;;  %v5234_v56 = vsel %vm439_vm4, %v11973_v24, %v12166_v47  ;;  %v8605_v16 = vld [vmem:[%s13723_s1 + $0xa0] sm:$0xff]  }
 0x218   : > { %13953 = vst [vmem:[#allocation2_spill] sm:$0xff] %v12194_v52  ;;  %v1659_v17 = vadd.f32 %v7716_v60, %v11764_v27  ;;  %v7719_v9 = vadd.f32 %v7718_v46, %v7717_v5  ;;  %4810 = vrot.lane.b32.xlu1 %v4795_v2, %s8705_s19  ;;  %8143 = vmatpush3.bf16.msra.mxu1 %v8595_v48  ;;  %v13954_v27 = vrot.slane %v11863_v49, 1  ;;  %v13955_v60 = vrot.slane %v11915_v13, 1 }
 0x219   : > { %13951 = vst [vmem:[#allocation17_spill] sm:$0xff] %v12187_v37  ;;  %v7766_v12 = vpop.f32.mrb[40].mxu1  ;;  %5210 = vrot.lane.b32.xlu0 %v5199_v34, %s8704_s8  ;;  %8095 = vmatpush3.bf16.msra.mxu0 %v8597_v28  ;;  %v8601_v34 = vld [vmem:[%s13723_s1 + $0x98] sm:$0xff]   ;;  %v4735_v13 = vrot.slane %v12075_v22, 1 }
 0x21a   : > { %v5078_v2 = vsel %vm288_vm1, %v13954_v27, %v13806_v44  ;;  %v4663_v48 = vor.u32 %v11918_v19, %v13955_v60  ;;  %v1660_v41 = vadd.f32 %v7719_v9, %v11779_v32  ;;  %v7767_v24 = vpop.f32.mrb[41].mxu1  ;;  %v12219_v46 = vpop.permute.xlu1 %4202  ;;  %v5111_v27 = vrot.slane %v12054_v61, 2  ;;  %8144 = vmatprep.subr.bf16.mxu1 %v8598_v30  ;;  %8096 = vmatprep.subr.bf16.mxu0 %v8600_v25  ;;  %v13956_v9 = vld [vmem:[#allocation5_spill] sm:$0xff] }
 0x21b   : > { %v7768_v19 = vadd.f32 %v7767_v24, %v7766_v12  ;;  %v7769_v60 = vpop.f32.mrb[42].mxu1  ;;  %v12224_v28 = vpop.permute.xlu0 %3902  ;;  %v4736_v44 = vrot.slane %v12072_v63, 2  ;;  %v4857_v32 = vrot.slane %v12072_v63, 4  ;;  %v13958_v30 = vrot.slane %v12040_v53, 3  ;;  %v8602_v24 = vld [vmem:[%s13723_s1 + $0x50] sm:$0xff]  }
 0x21c   : > { %v7720_v49 = vpop.f32.mrb[44].mxu0  ;;  %v7770_v11 = vpop.f32.mrb[43].mxu1  ;;  %5249 = vrot.lane.b32.xlu1 %v5234_v56, %s8706_s11  ;;  %v13959_v25 = vrot.slane %v11884_v35, 3  ;;  %8145 = vmatpush3.bf16.msra.mxu1 %v8599_v10  ;;  %v4668_v56 = vsel %vm225_vm3, %v4663_v48, %v13961_v57  ;;  %v8603_v10 = vld [vmem:[%s13723_s1 + $0x10] sm:$0xff]   ;;  %v12262_v48 = vshrl.u32 %v12194_v52, 16 }
 0x21d   : > { %v12242_v37 = vadd.f32 %v7768_v19, %v1659_v17  ;;  %v7771_v5 = vadd.f32 %v7770_v11, %v7769_v60  ;;  %v7721_v18 = vpop.f32.mrb[45].mxu0  ;;  %5089 = vrot.lane.b32.xlu0 %v5078_v2, %s8704_s8  ;;  %8097 = vmatpush3.bf16.msra.mxu0 %v8601_v34  ;;  %v12256_v2 = vor.u32 %v5111_v27, %v5110_v4  ;;  %v12259_v19 = vshll.u32 %v12194_v52, 16  ;;  %v8604_v34 = vld [vmem:[%s13723_s1 + $0xe0] sm:$0xff]  }
 0x21e   : > { %v4824_v12 = vsel %vm413_vm0, %v13959_v25, %v13958_v30  ;;  %v7722_v30 = vadd.f32 %v7721_v18, %v7720_v49  ;;  %v13962_v25 = vld [vmem:[#allocation9_spill] sm:$0xff]  ;;  %v7723_v17 = vpop.f32.mrb[46].mxu0  ;;  %4469 = vmatmul.mubr.bf16.gmra.mrb[100].mxu1 %v11746_v38  ;;  %v12254_v11 = vpop.permute.xlu1 %4213  ;;  %v13964_v38 = vld [vmem:[#allocation8_spill] sm:$0xff]  ;;  %v13965_v27 = vld [vmem:[#allocation22_spill] sm:$0xff]  ;;  %v12276_v57 = vor.u32 %v4736_v44, %v4735_v13  ;;  %8146 = vmatprep.subr.bf16.mxu1 %v8602_v24  ;;  %v13967_v44 = vrot.slane %v13956_v9, 2 }
 0x21f   : > { %13960 = vst [vmem:[#allocation4_spill] sm:$0xff] %v12242_v37  ;;  %4149 = vmatmul.mubr.bf16.gmra.mrb[104].mxu0 %v13962_v25  ;;  %v8606_v49 = vld [vmem:[%s13723_s1 + $0x58] sm:$0xff]   ;;  %v12270_v60 = vadd.f32 %v7771_v5, %v1660_v41  ;;  %v7724_v4 = vpop.f32.mrb[47].mxu0  ;;  %4476 = vmatprep.mubr.bf16.mxu1 %v13965_v27  ;;  %v12274_v18 = vpop.permute.xlu0 %4254  ;;  %v12278_v25 = vor.u32 %v4857_v32, %v4856_v51  ;;  %v12286_v5 = vshll.u32 %v12231_v39, 16  ;;  %v12289_v41 = vshrl.u32 %v12231_v39, 16  ;;  %v8611_v51 = vld [vmem:[%s13723_s1 + $0xe8] sm:$0xff]  }
 0x220   : > { %4156 = vmatprep.mubr.bf16.mxu0 %v13964_v38  ;;  %v1661_v37 = vadd.f32 %v7722_v30, %v11939_v3  ;;  %v7725_v54 = vadd.f32 %v7724_v4, %v7723_v17  ;;  %4835 = vrot.lane.b32.xlu1 %v4824_v12, %s8704_s8  ;;  %v13968_v13 = vld [vmem:[#allocation6_spill] sm:$0xff]  ;;  %v13969_v12 = vrot.slane %v12040_v53, 1  ;;  %v13970_v30 = vrot.slane %v11884_v35, 1  ;;  %v8607_v24 = vld [vmem:[%s13723_s1 + $0x18] sm:$0xff]  }
 0x221   : > { %13963 = vst [vmem:[#allocation5_spill] sm:$0xff] %v12270_v60  ;;  %13966 = vst [vmem:[#allocation9_spill] sm:$0xff] %v12278_v25  ;;  %v3907_v32 = vsel %vm359_vm6, %v13968_v13, %v13967_v44  ;;  %v7772_v3 = vpop.f32.mrb[44].mxu1  ;;  %4686 = vrot.lane.b32.xlu0 %v4668_v56, %s8705_s19  ;;  %8147 = vmatpush3.bf16.msra.mxu1 %v8603_v10  ;;  %v5113_v56 = vsel %vm314_vm5, %v12036_v36, %v12256_v2  ;;  %v5171_v44 = vrot.slane %v12262_v48, 2  ;;  %v13971_v10 = vld [vmem:[#allocation7_spill] sm:$0xff] }
 0x222   : > { %v4703_v17 = vsel %vm288_vm1, %v13970_v30, %v13969_v12  ;;  %v1662_v38 = vadd.f32 %v7725_v54, %v11953_v20  ;;  %v7773_v4 = vpop.f32.mrb[45].mxu1  ;;  %v12308_v27 = vpop.permute.xlu1 %4230  ;;  %v5172_v13 = vrot.slane %v12259_v19, 3  ;;  %8098 = vmatprep.subr.bf16.mxu0 %v8604_v34  ;;  %8148 = vmatprep.subr.bf16.mxu1 %v8606_v49  ;;  %v4738_v20 = vsel %vm314_vm5, %v12067_v33, %v12276_v57 }
 0x223   : > { %v7774_v30 = vadd.f32 %v7773_v4, %v7772_v3  ;;  %v7775_v35 = vpop.f32.mrb[46].mxu1  ;;  %v12316_v60 = vpop.permute.xlu0 %4266  ;;  %v4859_v36 = vsel %vm439_vm4, %v12083_v8, %v12278_v25  ;;  %8099 = vmatpush3.bf16.msra.mxu0 %v8605_v16  ;;  %v3958_v54 = vsel %vm479_vm7, %v3907_v32, %v12125_v59  ;;  %v13972_v3 = vrot.slane %v12054_v61, 1  ;;  %v8612_v8 = vld [vmem:[%s13723_s1 + $0xa8] sm:$0xff]   ;;  %v8613_v61 = vld [vmem:[%s13723_s1 + $0x60] sm:$0xff]  }
 0x224   : > { %v7776_v34 = vpop.f32.mrb[47].mxu1  ;;  %v7794_v49 = vpop.f32.mrb[48].mxu0  ;;  %4714 = vrot.lane.b32.xlu1 %v4703_v17, %s8704_s8  ;;  %v4796_v12 = vrot.slane %v12289_v41, 2  ;;  %v4797_v33 = vrot.slane %v12286_v5, 3  ;;  %8100 = vmatprep.subr.bf16.mxu0 %v8611_v51  ;;  %v3963_v59 = vsel %vm492_vm8, %v3958_v54, %v12150_v50  ;;  %v12351_v54 = vor.u32 %v5172_v13, %v5171_v44  ;;  %v8618_v13 = vld [vmem:[%s13723_s1 + $0x68] sm:$0xff]  }
 0x225   : > { %v5046_v4 = vor.u32 %v12047_v1, %v13972_v3  ;;  %v12337_v16 = vadd.f32 %v7774_v30, %v1661_v37  ;;  %v7777_v32 = vadd.f32 %v7776_v34, %v7775_v35  ;;  %v7795_v17 = vpop.f32.mrb[49].mxu0  ;;  %5133 = vrot.lane.b32.xlu0 %v5113_v56, %s8706_s11  ;;  %v13815_v1 = vrot.slane %v12259_v19, 1  ;;  %8149 = vmatpush3.bf16.msra.mxu1 %v8607_v24  ;;  %v13973_v3 = vld [vmem:[#allocation3_spill] sm:$0xff]  ;;  %v13974_v37 = vld [vmem:[#allocation21_spill] sm:$0xff]  ;;  %v8614_v24 = vld [vmem:[%s13723_s1 + $0x20] sm:$0xff]  }
 0x226   : > { %v7796_v51 = vadd.f32 %v7795_v17, %v7794_v49  ;;  %v7797_v25 = vpop.f32.mrb[50].mxu0  ;;  %v3967_v50 = vsel %vm505_vm9, %v3963_v59, %v12191_v62  ;;  %4477 = vmatmul.mubr.bf16.gmra.mrb[104].mxu1 %v13974_v37  ;;  %v12348_v35 = vpop.permute.xlu1 %3876  ;;  %v13975_v30 = vld [vmem:[#allocation13_spill] sm:$0xff]  ;;  %v8616_v34 = vld [vmem:[%s13723_s1 + $0xf0] sm:$0xff]   ;;  %v5235_v17 = vrot.slane %v12262_v48, 3  ;;  %v5236_v44 = vrot.slane %v12259_v19, 4  ;;  %8150 = vmatprep.subr.bf16.mxu1 %v8613_v61 }
 0x227   : > { %4157 = vmatmul.mubr.bf16.gmra.mrb[108].mxu0 %v13973_v3  ;;  %v3908_v56 = vrot.slane %v13975_v30, 2  ;;  %v12359_v49 = vadd.f32 %v7777_v32, %v1662_v38  ;;  %v7798_v62 = vpop.f32.mrb[51].mxu0  ;;  %4484 = vmatprep.mubr.bf16.mxu1 %v11930_v15  ;;  %v12362_v59 = vpop.permute.xlu0 %3920  ;;  %v12373_v38 = vor.u32 %v4797_v33, %v4796_v12  ;;  %v8617_v15 = vld [vmem:[%s13723_s1 + $0xb0] sm:$0xff]   ;;  %v13976_v32 = vrot.slane %v13971_v10, 2  ;;  %v8620_v12 = vld [vmem:[%s13723_s1 + $0xf8] sm:$0xff]  }
 0x228   : > { %4164 = vmatprep.mubr.bf16.mxu0 %v3967_v50  ;;  %v12370_v3 = vadd.f32 %v7796_v51, %v11977_v14  ;;  %v7799_v37 = vadd.f32 %v7798_v62, %v7797_v25  ;;  %4758 = vrot.lane.b32.xlu1 %v4738_v20, %s8706_s11  ;;  %v5051_v14 = vsel %vm225_vm3, %v5046_v4, %v13815_v1  ;;  %v12387_v25 = vrot.slane %v12194_v52, 3 }
 0x229   : > { %8101 = vmatpush3.bf16.msra.mxu0 %v8612_v8  ;;  %v4235_v50 = vsel %vm359_vm6, %v11867_v0, %v13976_v32  ;;  %4874 = vrot.lane.b32.xlu0 %v4859_v36, %s8706_s11  ;;  %v13977_v33 = vrot.slane %v13956_v9, 2  ;;  %v5174_v4 = vsel %vm373_vm2, %v12119_v31, %v12351_v54  ;;  %v13978_v8 = vld [vmem:[#allocation10_spill] sm:$0xff]  ;;  %v12406_v30 = vor.u32 %v5236_v44, %v5235_v17  ;;  %v8619_v31 = vld [vmem:[%s13723_s1 + $0x28] sm:$0xff]   ;;  %v8621_v17 = vld [vmem:[%s13723_s1 + $0xb8] sm:$0xff]  }
 0x22a   : > { %v12393_v20 = vadd.f32 %v7799_v37, %v11998_v29  ;;  %v12398_v36 = vpop.permute.xlu1 %3887  ;;  %8151 = vmatpush3.bf16.msra.mxu1 %v8614_v24  ;;  %8102 = vmatprep.subr.bf16.mxu0 %v8616_v34  ;;  %v3943_v61 = vsel %vm479_vm7, %v13978_v8, %v12114_v55  ;;  %v12409_v29 = vrot.slane %v12194_v52, 1  ;;  %v4286_v55 = vsel %vm479_vm7, %v4235_v50, %v12174_v21  ;;  %v12434_v21 = vld [vmem:[%s8756_s28 + $0x84] ss:$0 sps:$4 sm:$0x77]  }
 0x22b   : > { %v3909_v0 = vsel %vm359_vm6, %v13977_v33, %v3908_v56  ;;  %v3929_v51 = vpop.permute.xlu0 %3928  ;;  %v12412_v56 = vrot.slane %v12231_v39, 3  ;;  %8152 = vmatprep.subr.bf16.mxu1 %v8618_v13  ;;  %v3947_v24 = vsel %vm492_vm8, %v3943_v61, %v12144_v26  ;;  %v4799_v62 = vsel %vm373_vm2, %v12129_v7, %v12373_v38  ;;  %v8630_v8 = vld [vmem:[%s13723_s1 + $0x140] sm:$0xff]  }
 0x22c   : > { %v7800_v34 = vpop.f32.mrb[52].mxu0  ;;  %5063 = vrot.lane.b32.xlu1 %v5051_v14, %s8705_s19  ;;  %v4291_v44 = vsel %vm492_vm8, %v4286_v55, %v12274_v18  ;;  %v3951_v26 = vsel %vm505_vm9, %v3947_v24, %v12224_v28  ;;  %v4236_v37 = vrot.slane %v12434_v21, 2  ;;  %v13979_v7 = vrot.slane %v12019_v6, 3  ;;  %v8622_v18 = vld [vmem:[%s13723_s1 + $0x70] sm:$0xff]  }
 0x22d   : > { %8103 = vmatpush3.bf16.msra.mxu0 %v8617_v15  ;;  %v7801_v13 = vpop.f32.mrb[53].mxu0  ;;  %5187 = vrot.lane.b32.xlu0 %v5174_v4, %s8705_s19  ;;  %v4295_v28 = vsel %vm505_vm9, %v4291_v44, %v12316_v60  ;;  %v13980_v33 = vrot.slane %v12072_v63, 1  ;;  %v13981_v60 = vrot.slane %v12019_v6, 1  ;;  %v12471_v44 = vld [vmem:[%s8756_s28 + $0xbc] sm:$0xf]  ;;  %v13987_v21 = vrot.slane %v12040_v53, 1 }
 0x22e   : > { %v5201_v15 = vsel %vm413_vm0, %v13979_v7, %v12387_v25  ;;  %8104 = vmatprep.subr.bf16.mxu0 %v8620_v12  ;;  %v7802_v32 = vadd.f32 %v7801_v13, %v7800_v34  ;;  %v7846_v50 = vpop.f32.mrb[48].mxu1  ;;  %v7803_v14 = vpop.f32.mrb[54].mxu0  ;;  %4485 = vmatmul.mubr.bf16.gmra.mrb[108].mxu1 %v11926_v42  ;;  %v4675_v12 = vrot.slane %v12286_v5, 1  ;;  %v5238_v42 = vsel %vm439_vm4, %v12166_v47, %v12406_v30  ;;  %v8623_v47 = vld [vmem:[%s13723_s1 + $0x30] sm:$0xff]  }
 0x22f   : > { %4165 = vmatmul.mubr.bf16.gmra.mrb[112].mxu0 %v3951_v26  ;;  %v4671_v4 = vor.u32 %v12075_v22, %v13980_v33  ;;  %v7847_v61 = vpop.f32.mrb[49].mxu1  ;;  %v12454_v24 = vpop.permute.xlu1 %4248  ;;  %4492 = vmatprep.mubr.bf16.mxu1 %v4295_v28  ;;  %v5080_v63 = vsel %vm288_vm1, %v13981_v60, %v12409_v29  ;;  %v13982_v22 = vrot.slane %v12040_v53, 3  ;;  %v5114_v34 = vrot.slane %v12262_v48, 1 }
 0x230   : > { %8153 = vmatpush3.bf16.msra.mxu1 %v8619_v31  ;;  %v3961_v13 = vsel %vm479_vm7, %v3909_v0, %v12362_v59  ;;  %v12479_v26 = vadd.f32 %v7802_v32, %v12042_v23  ;;  %v12481_v7 = vadd.f32 %v7847_v61, %v7846_v50  ;;  %v7804_v28 = vpop.f32.mrb[55].mxu0  ;;  %v7849_v33 = vpop.f32.mrb[50].mxu1  ;;  %4812 = vrot.lane.b32.xlu1 %v4799_v62, %s8705_s19  ;;  %v5115_v60 = vrot.slane %v12259_v19, 2  ;;  %v8624_v31 = vld [vmem:[%s13723_s1 + $0x78] sm:$0xff]  }
 0x231   : > { %v12467_v55 = vsel %vm413_vm0, %v13982_v22, %v12412_v56  ;;  %8105 = vmatpush3.bf16.msra.mxu0 %v8621_v17  ;;  %v3965_v22 = vsel %vm492_vm8, %v3961_v13, %v3929_v51  ;;  %v7805_v1 = vadd.f32 %v7804_v28, %v7803_v14  ;;  %v3941_v59 = vpop.permute.xlu0 %3940  ;;  %v7850_v0 = vpop.f32.mrb[51].mxu1  ;;  %5212 = vrot.lane.b32.xlu0 %v5201_v15, %s8704_s8  ;;  %v4739_v23 = vrot.slane %v12289_v41, 1 }
 0x232   : > { %v4740_v32 = vrot.slane %v12286_v5, 2  ;;  %8154 = vmatprep.subr.bf16.mxu1 %v8622_v18  ;;  %v12492_v62 = vadd.f32 %v7850_v0, %v7849_v33  ;;  %v3970_v17 = vsel %vm505_vm9, %v3965_v22, %v3941_v59  ;;  %v4676_v50 = vsel %vm225_vm3, %v4671_v4, %v4675_v12  ;;  %8194 = vmatprep.subr.bf16.mxu0 %v8630_v8  ;;  %v8625_v8 = vld [vmem:[%s13723_s1 + $0x38] sm:$0xff]  }
 0x233   : > { %v12500_v51 = vcombine.low %v12471_v44, %v12471_v44  ;;  %v4271_v15 = vsel %vm479_vm7, %v10949_v58, %v12219_v46  ;;  %v12506_v14 = vadd.f32 %v7805_v1, %v12060_v45  ;;  %4172 = vmatprep.mubr.bf16.mxu0 %v3970_v17  ;;  %v4205_v18 = vpop.permute.xlu1 %4204  ;;  %v12509_v61 = vrot.slane %v12231_v39, 1 }
 0x234   : > { %13983 = vst [vmem:[#allocation8_spill] sm:$0xff] %v12492_v62  ;;  %v12513_v4 = vcombine.low %v12163_v40, %v12163_v40  ;;  %8155 = vmatpush3.bf16.msra.mxu1 %v8623_v47  ;;  %v4275_v58 = vsel %vm492_vm8, %v4271_v15, %v12254_v11  ;;  %v3945_v45 = vsel %vm479_vm7, %v13956_v9, %v12348_v35  ;;  %v7806_v46 = vpop.f32.mrb[56].mxu0  ;;  %v4860_v13 = vrot.slane %v12289_v41, 3  ;;  %v8632_v47 = vld [vmem:[%s13723_s1 + $0x1c0] sm:$0xff]  }
 0x235   : > { %13984 = vst [vmem:[#allocation22_spill] sm:$0xff] %v12500_v51  ;;  %5251 = vrot.lane.b32.xlu1 %v5238_v42, %s8706_s11  ;;  %v12524_v1 = vor.u32 %v5115_v60, %v5114_v34  ;;  %8156 = vmatprep.subr.bf16.mxu1 %v8624_v31  ;;  %v3949_v28 = vsel %vm492_vm8, %v3945_v45, %v12398_v36  ;;  %v3905_v11 = vpop.permute.xlu0 %3904  ;;  %v7807_v33 = vpop.f32.mrb[57].mxu0  ;;  %v4861_v42 = vrot.slane %v12286_v5, 4  ;;  %v12540_v22 = vshrl.u32 %v12500_v51, 16 }
 0x236   : > { %13985 = vst [vmem:[#allocation6_spill] sm:$0xff] %v12513_v4  ;;  %5091 = vrot.lane.b32.xlu0 %v5080_v63, %s8704_s8  ;;  %v4279_v9 = vsel %vm505_vm9, %v4275_v58, %v12308_v27  ;;  %v12535_v35 = vor.u32 %v4740_v32, %v4739_v23  ;;  %v7808_v34 = vadd.f32 %v7807_v33, %v7806_v46  ;;  %v7809_v31 = vpop.f32.mrb[58].mxu0  ;;  %v12543_v36 = vshll.u32 %v12500_v51, 16 }
 0x237   : > { %v3954_v60 = vsel %vm505_vm9, %v3949_v28, %v3905_v11  ;;  %4493 = vmatmul.mubr.bf16.gmra.mrb[112].mxu1 %v4279_v9  ;;  %v13986_v27 = vrot.slane %v13971_v10, 2  ;;  %v4216_v59 = vpop.permute.xlu1 %4215  ;;  %v7810_v0 = vpop.f32.mrb[59].mxu0  ;;  %v12551_v23 = vshrl.u32 %v12513_v4, 16  ;;  %v12569_v45 = vor.u32 %v4861_v42, %v4860_v13 }
 0x238   : > { %4173 = vmatmul.mubr.bf16.gmra.mrb[116].mxu0 %v3954_v60  ;;  %8157 = vmatpush3.bf16.msra.mxu1 %v8625_v8  ;;  %v12554_v32 = vadd.f32 %v7808_v34, %v12103_v43  ;;  %v7811_v17 = vadd.f32 %v7810_v0, %v7809_v31  ;;  %v5117_v8 = vsel %vm314_vm5, %v12256_v2, %v12524_v1  ;;  %v5175_v11 = vrot.slane %v12540_v22, 2 }
 0x239   : > { %v4237_v63 = vsel %vm359_vm6, %v13986_v27, %v4236_v37  ;;  %4837 = vrot.lane.b32.xlu1 %v12467_v55, %s8704_s8  ;;  %v4705_v37 = vsel %vm288_vm1, %v13987_v21, %v12509_v61  ;;  %8246 = vmatprep.subr.bf16.mxu1 %v8632_v47  ;;  %v4257_v15 = vpop.permute.xlu0 %4256  ;;  %v7852_v58 = vpop.f32.mrb[52].mxu1  ;;  %v4742_v43 = vsel %vm314_vm5, %v12276_v57, %v12535_v35  ;;  %v12572_v55 = vshll.u32 %v12513_v4, 16  ;;  %v13988_v47 = vld [vmem:[#allocation25_spill] sm:$0xff] }
 0x23a   : > { %4688 = vrot.lane.b32.xlu0 %v4676_v50, %s8705_s19  ;;  %v12577_v28 = vadd.f32 %v7811_v17, %v13988_v47  ;;  %v7853_v50 = vpop.f32.mrb[53].mxu1  ;;  %v5176_v2 = vrot.slane %v12543_v36, 3  ;;  %v12583_v33 = vsel %vm2338_vm10, %v12393_v20, -inf  ;;  %v4273_v57 = vsel %vm479_vm7, %v13971_v10, %v4205_v18  ;;  %v13991_v27 = vld [vmem:[#allocation9_spill] sm:$0xff] }
 0x23b   : > { %v12587_v13 = vadd.f32 %v7853_v50, %v7852_v58  ;;  %v4233_v9 = vpop.permute.xlu1 %4232  ;;  %v7855_v42 = vpop.f32.mrb[54].mxu1  ;;  %v4800_v34 = vrot.slane %v12551_v23, 2  ;;  %v4289_v60 = vsel %vm479_vm7, %v4237_v63, %v12454_v24  ;;  %v4277_v31 = vsel %vm492_vm8, %v4273_v57, %v4216_v59 }
 0x23c   : > { %v7812_v17 = vpop.f32.mrb[60].mxu0  ;;  %v7856_v21 = vpop.f32.mrb[55].mxu1  ;;  %v4293_v10 = vsel %vm492_vm8, %v4289_v60, %v4257_v15  ;;  %v4282_v24 = vsel %vm505_vm9, %v4277_v31, %v4233_v9  ;;  %v4801_v63 = vrot.slane %v12572_v55, 3  ;;  %v5177_v0 = vor.u32 %v5176_v2, %v5175_v11  ;;  %v13992_v60 = vld [vmem:[#allocation11_spill] sm:$0xff] }
 0x23d   : > { %13989 = vst [vmem:[#allocation7_spill] sm:$0xff] %v12587_v13  ;;  %4716 = vrot.lane.b32.xlu1 %v4705_v37, %s8704_s8  ;;  %v4269_v18 = vpop.permute.xlu0 %4268  ;;  %v12599_v58 = vadd.f32 %v7856_v21, %v7855_v42  ;;  %v7813_v47 = vpop.f32.mrb[61].mxu0  ;;  %v4863_v37 = vsel %vm439_vm4, %v13991_v27, %v12569_v45  ;;  %v5139_v21 = vrot.slane %v13992_v60, 2  ;;  %v13994_v9 = vrot.slane %v12259_v19, 1 }
 0x23e   : > { %5135 = vrot.lane.b32.xlu0 %v5117_v8, %s8706_s11  ;;  %v7814_v59 = vadd.f32 %v7813_v47, %v7812_v17  ;;  %v4298_v50 = vsel %vm505_vm9, %v4293_v10, %v4269_v18  ;;  %v7815_v57 = vpop.f32.mrb[62].mxu0  ;;  %v13993_v8 = vld [vmem:[#allocation12_spill] sm:$0xff]  ;;  %v13995_v17 = vld [vmem:[#allocation15_spill] sm:$0xff]  ;;  %v5239_v11 = vrot.slane %v12540_v22, 3  ;;  %v5240_v2 = vrot.slane %v12543_v36, 4 }
 0x23f   : > { %13990 = vst [vmem:[#allocation3_spill] sm:$0xff] %v12599_v58  ;;  %4500 = vmatprep.mubr.bf16.mxu1 %v4298_v50  ;;  %v12608_v15 = vpop.permute.xlu1 %5055  ;;  %v7816_v42 = vpop.f32.mrb[63].mxu0  ;;  %v13816_v46 = vrot.slane %v13993_v8, 2  ;;  %v12615_v31 = vor.u32 %v12262_v48, %v13994_v9  ;;  %v12625_v27 = vsel %vm2355_vm11, %v12479_v26, -inf  ;;  %v4802_v19 = vor.u32 %v4801_v63, %v4800_v34 }
 0x240   : > { %v12618_v10 = vadd.f32 %v7814_v59, %v13995_v17  ;;  %4501 = vmatmul.mubr.bf16.gmra.mrb[116].mxu1 %v4282_v24  ;;  %v7817_v18 = vadd.f32 %v7816_v42, %v7815_v57  ;;  %v5202_v48 = vrot.slane %v12500_v51, 3  ;;  %v13996_v59 = vld [vmem:[#allocation17_spill] sm:$0xff]  ;;  %v5178_v57 = vsel %vm373_vm2, %v12351_v54, %v5177_v0 }
 0x241   : > { %4760 = vrot.lane.b32.xlu1 %v4742_v43, %s8706_s11  ;;  %v5180_v47 = vpop.permute.xlu0 %5179  ;;  %v5141_v42 = vsel %vm359_vm6, %v5139_v21, %v13816_v46  ;;  %v4803_v0 = vsel %vm373_vm2, %v12373_v38, %v4802_v19  ;;  %v5256_v5 = vsel %vm479_vm7, %v13992_v60, %v12608_v15  ;;  %v8634_v60 = vld [vmem:[%s13723_s1 + $0x148] sm:$0xff]  }
 0x242   : > { %4876 = vrot.lane.b32.xlu0 %v4863_v37, %s8706_s11  ;;  %v12631_v24 = vmax.f32 %v12479_v26, %v12618_v10  ;;  %v2316_v50 = vadd.f32 %v7817_v18, %v13996_v59  ;;  %v5241_v26 = vor.u32 %v5240_v2, %v5239_v11  ;;  %v5299_v21 = vsel %vm479_vm7, %v5141_v42, %v5180_v47 }
 0x243   : > { %v12641_v37 = vpop.permute.xlu1 %4804  ;;  %v5081_v59 = vrot.slane %v12500_v51, 1  ;;  %v4864_v51 = vrot.slane %v12551_v23, 3 }
 0x244   : > { %v12644_v34 = vmax.f32 %v12506_v14, %v2316_v50  ;;  %v5203_v14 = vsel %vm413_vm0, %v12387_v25, %v5202_v48  ;;  %v5242_v47 = vsel %vm439_vm4, %v12406_v30, %v5241_v26  ;;  %v4827_v48 = vrot.slane %v12513_v4, 3 }
 0x245   : > { %5065 = vrot.lane.b32.xlu1 %v12615_v31, %s8705_s19  ;;  %v5205_v63 = vpop.permute.xlu0 %5204  ;;  %v7858_v9 = vpop.f32.mrb[56].mxu1  ;;  %v5082_v26 = vsel %vm288_vm1, %v12409_v29, %v5081_v59  ;;  %v4679_v59 = vor.u32 %v12289_v41, %v4675_v12  ;;  %v8631_v12 = vld [vmem:[%s13723_s1 + $0x100] sm:$0xff]  }
 0x246   : > { %5189 = vrot.lane.b32.xlu0 %v5178_v57, %s8705_s19  ;;  %v7859_v18 = vpop.f32.mrb[57].mxu1  ;;  %v5316_v11 = vsel %vm492_vm8, %v5299_v21, %v5205_v63  ;;  %v5121_v63 = vrot.slane %v12540_v22, 1  ;;  %v12682_v22 = vld [vmem:[%s8756_s28 + $0xc0] sm:$0xf] }
 0x247   : > { %v12658_v2 = vadd.f32 %v7859_v18, %v7858_v9  ;;  %v5244_v50 = vpop.permute.xlu1 %5243  ;;  %v7861_v57 = vpop.f32.mrb[58].mxu1  ;;  %v5124_v9 = vrot.slane %v12543_v36, 2  ;;  %v4749_v18 = vrot.slane %v12572_v55, 2  ;;  %v12704_v41 = vcombine.low %v12471_v44, %v12682_v22 }
 0x248   : > { %v7862_v43 = vpop.f32.mrb[59].mxu1  ;;  %v5328_v19 = vsel %vm505_vm9, %v5316_v11, %v5244_v50  ;;  %v14001_v50 = vld [vmem:[#allocation14_spill] sm:$0xff] }
 0x249   : > { %13997 = vst [vmem:[#allocation21_spill] sm:$0xff] %v12658_v2  ;;  %4814 = vrot.lane.b32.xlu1 %v4803_v0, %s8705_s19  ;;  %v5084_v42 = vpop.permute.xlu0 %5083  ;;  %v12664_v17 = vadd.f32 %v7862_v43, %v7861_v57  ;;  %5505 = vmatprep.mubr.bf16.mxu0 %v5328_v19  ;;  %v12672_v0 = vcombine.low %v12163_v40, %v12471_v44  ;;  %v4746_v43 = vrot.slane %v12551_v23, 1  ;;  %v4706_v19 = vrot.slane %v12513_v4, 1  ;;  %v8650_v2 = vld [vmem:[%s13723_s1 + $0x168] sm:$0xff]  }
 0x24a   : > { %5214 = vrot.lane.b32.xlu0 %v5203_v14, %s8704_s8  ;;  %v14000_v14 = vld [vmem:[#allocation16_spill] sm:$0xff]  ;;  %v4828_v40 = vsel %vm413_vm0, %v12412_v56, %v4827_v48  ;;  %v5125_v46 = vor.u32 %v5124_v9, %v5121_v63  ;;  %v4865_v57 = vrot.slane %v12572_v55, 4  ;;  %v14002_v23 = vrot.slane %v14001_v50, 2 }
 0x24b   : > { %13998 = vst [vmem:[#allocation13_spill] sm:$0xff] %v12664_v17  ;;  %13999 = vst [vmem:[#allocation10_spill] sm:$0xff] %v12672_v0  ;;  %v4830_v21 = vpop.permute.xlu1 %4829  ;;  %v4764_v11 = vrot.slane %v14000_v14, 2  ;;  %v12697_v39 = vshrl.u32 %v12672_v0, 16  ;;  %v4750_v17 = vor.u32 %v4749_v18, %v4746_v43  ;;  %v5268_v48 = vsel %vm492_vm8, %v5256_v5, %v5084_v42 }
 0x24c   : > { %v4707_v44 = vsel %vm288_vm1, %v12509_v61, %v4706_v19  ;;  %v5126_v15 = vsel %vm314_vm5, %v12524_v1, %v5125_v46 }
 0x24d   : > { %5253 = vrot.lane.b32.xlu1 %v5242_v47, %s8706_s11  ;;  %v4681_v36 = vpop.permute.xlu0 %4680  ;;  %v12694_v47 = vshll.u32 %v12672_v0, 16  ;;  %v4766_v55 = vsel %vm359_vm6, %v4764_v11, %v14002_v23  ;;  %v4866_v11 = vor.u32 %v4865_v57, %v4864_v51  ;;  %v5776_v42 = vrot.slane %v12697_v39, 2 }
 0x24e   : > { %5093 = vrot.lane.b32.xlu0 %v5082_v26, %s8704_s8  ;;  %v4881_v5 = vsel %vm479_vm7, %v14000_v14, %v4681_v36  ;;  %v4751_v4 = vsel %vm314_vm5, %v12535_v35, %v4750_v17  ;;  %v12737_v14 = vshll.u32 %v12704_v41, 16 }
 0x24f   : > { %v4709_v26 = vpop.permute.xlu1 %4708 }
 0x250   : > { %v4893_v51 = vsel %vm492_vm8, %v4881_v5, %v4709_v26  ;;  %v8633_v26 = vld [vmem:[%s13723_s1 + $0x180] sm:$0xff]   ;;  %v14005_v5 = vld [vmem:[#allocation19_spill] sm:$0xff] }
 0x251   : > { %4839 = vrot.lane.b32.xlu1 %v4828_v40, %s8704_s8  ;;  %v5128_v63 = vpop.permute.xlu0 %5127  ;;  %v7864_v9 = vpop.f32.mrb[60].mxu1  ;;  %v5777_v40 = vrot.slane %v12694_v47, 3 }
 0x252   : > { %4690 = vrot.lane.b32.xlu0 %v4679_v59, %s8705_s19  ;;  %v5280_v43 = vsel %vm505_vm9, %v5268_v48, %v5128_v63  ;;  %v7865_v18 = vpop.f32.mrb[61].mxu1  ;;  %v4924_v48 = vsel %vm479_vm7, %v4766_v55, %v12641_v37  ;;  %v13821_v63 = vrot.slane %v12694_v47, 1  ;;  %v12745_v37 = vshrl.u32 %v12704_v41, 16 }
 0x253   : > { %5506 = vmatmul.mubr.bf16.vlgmr.msra.gmra.mrb[120].mxu0 %v5280_v43  ;;  %v12727_v19 = vadd.f32 %v7865_v18, %v7864_v9  ;;  %v4753_v23 = vpop.permute.xlu1 %4752  ;;  %v7867_v46 = vpop.f32.mrb[62].mxu1  ;;  %v4941_v36 = vsel %vm492_vm8, %v4924_v48, %v4830_v21  ;;  %v4867_v21 = vsel %vm439_vm4, %v12569_v45, %v4866_v11  ;;  %v6105_v48 = vrot.slane %v12737_v14, 3 }
 0x254   : > { %v7868_v57 = vpop.f32.mrb[63].mxu1  ;;  %8195 = vmatpush3.bf16.msra.mxu0 %v8631_v12  ;;  %v4905_v9 = vsel %vm505_vm9, %v4893_v51, %v4753_v23  ;;  %v12753_v12 = vor.u32 %v5777_v40, %v5776_v42  ;;  %v8638_v23 = vld [vmem:[%s13723_s1 + $0x150] sm:$0xff]   ;;  %v5736_v42 = vsel %vm225_vm3, %v4679_v59, %v13821_v63  ;;  %v12773_v40 = vrot.slane %v12672_v0, 1  ;;  %v8637_v51 = vld [vmem:[%s13723_s1 + $0x188] sm:$0xff]  }
 0x255   : > { %14003 = vst [vmem:[#allocation25_spill] sm:$0xff] %v12727_v19  ;;  %4718 = vrot.lane.b32.xlu1 %v4707_v44, %s8704_s8  ;;  %v4869_v43 = vpop.permute.xlu0 %4868  ;;  %v12741_v17 = vadd.f32 %v7868_v57, %v7867_v46  ;;  %8196 = vmatprep.subr.bf16.mxu0 %v8634_v60  ;;  %v8635_v44 = vld [vmem:[%s13723_s1 + $0x108] sm:$0xff]   ;;  %v13822_v60 = vrot.slane %v14005_v5, 2  ;;  %v6104_v46 = vrot.slane %v12745_v37, 2  ;;  %v12784_v57 = vrot.slane %v12672_v0, 3  ;;  %v14007_v0 = vld [vmem:[#allocation20_spill] sm:$0xff] }
 0x256   : > { %5137 = vrot.lane.b32.xlu0 %v5126_v15, %s8706_s11  ;;  %v4953_v55 = vsel %vm505_vm9, %v4941_v36, %v4869_v43  ;;  %v8636_v15 = vld [vmem:[%s13723_s1 + $0x1c8] sm:$0xff]   ;;  %v5796_v59 = vrot.slane %v12697_v39, 3  ;;  %v5797_v36 = vrot.slane %v12694_v47, 4  ;;  %v8640_v43 = vld [vmem:[%s13723_s1 + $0x1d0] sm:$0xff]  }
 0x257   : > { %14004 = vst [vmem:[#allocation9_spill] sm:$0xff] %v12741_v17  ;;  %5682 = vmatprep.mubr.bf16.mxu1 %v4953_v55  ;;  %v12761_v18 = vpop.permute.xlu1 %5057  ;;  %v13825_v17 = vrot.slane %v14007_v0, 2 }
 0x258   : > { %5683 = vmatmul.mubr.bf16.vlgmr.msra.gmra.mrb[120].mxu1 %v4905_v9  ;;  %8197 = vmatpush3.bf16.msra.mxu0 %v8635_v44  ;;  %v8639_v9 = vld [vmem:[%s13723_s1 + $0x110] sm:$0xff]   ;;  %v5755_v44 = vrot.slane %v12697_v39, 1  ;;  %v12818_v19 = vor.u32 %v5797_v36, %v5796_v59 }
 0x259   : > { %4762 = vrot.lane.b32.xlu1 %v4751_v4, %s8706_s11  ;;  %v5182_v11 = vpop.permute.xlu0 %5181  ;;  %8247 = vmatpush3.bf16.msra.mxu1 %v8633_v26  ;;  %v5779_v4 = vsel %vm373_vm2, %v12373_v38, %v12753_v12  ;;  %v14006_v38 = vrot.slane %v13993_v8, 2 }
 0x25a   : > { %4878 = vrot.lane.b32.xlu0 %v4867_v21, %s8706_s11  ;;  %8248 = vmatprep.subr.bf16.mxu1 %v8636_v15  ;;  %v8642_v21 = vld [vmem:[%s13723_s1 + $0x158] sm:$0xff]   ;;  %v5756_v15 = vrot.slane %v12694_v47, 2 }
 0x25b   : > { %v5143_v26 = vsel %vm359_vm6, %v14006_v38, %v13822_v60  ;;  %v12799_v55 = vpop.permute.xlu1 %4806  ;;  %8198 = vmatprep.subr.bf16.mxu0 %v8638_v23  ;;  %v5748_v38 = vsel %vm288_vm1, %v12509_v61, %v12773_v40  ;;  %v12811_v60 = vor.u32 %v6105_v48, %v6104_v46  ;;  %v8643_v61 = vld [vmem:[%s13723_s1 + $0x118] sm:$0xff]   ;;  %v13827_v48 = vrot.slane %v12737_v14, 1 }
 0x25c   : > { %v5302_v23 = vsel %vm479_vm7, %v5143_v26, %v5182_v11  ;;  %8199 = vmatpush3.bf16.msra.mxu0 %v8639_v9  ;;  %v12838_v9 = vor.u32 %v5756_v15, %v5755_v44  ;;  %v14010_v44 = vrot.slane %v14001_v50, 2 }
 0x25d   : > { %5740 = vrot.lane.b32.xlu1 %v5736_v42, %s8705_s19  ;;  %v5207_v63 = vpop.permute.xlu0 %5206  ;;  %8249 = vmatpush3.bf16.msra.mxu1 %v8637_v51  ;;  %v5789_v42 = vsel %vm413_vm0, %v12412_v56, %v12784_v57  ;;  %v8644_v56 = vld [vmem:[%s13723_s1 + $0x1d8] sm:$0xff]   ;;  %v8646_v51 = vld [vmem:[%s13723_s1 + $0x160] sm:$0xff]  }
 0x25e   : > { %5784 = vrot.lane.b32.xlu0 %v5779_v4, %s8705_s19  ;;  %8250 = vmatprep.subr.bf16.mxu1 %v8640_v43  ;;  %v8641_v4 = vld [vmem:[%s13723_s1 + $0x190] sm:$0xff]   ;;  %v5318_v11 = vsel %vm492_vm8, %v5302_v23, %v5207_v63  ;;  %v4768_v15 = vsel %vm359_vm6, %v14010_v44, %v13825_v17 }
 0x25f   : > { %v5246_v46 = vpop.permute.xlu1 %5245  ;;  %8200 = vmatprep.subr.bf16.mxu0 %v8642_v21  ;;  %v6107_v21 = vsel %vm373_vm2, %v12351_v54, %v12811_v60  ;;  %v8645_v54 = vld [vmem:[%s13723_s1 + $0x198] sm:$0xff]   ;;  %v14011_v44 = vld [vmem:[#allocation4_spill] sm:$0xff] }
 0x260   : > { %v7818_v59 = vpop.f32.mrb[64].mxu0  ;;  %v12836_v36 = vsel %vm505_vm9, %v5318_v11, %v5246_v46  ;;  %v5799_v46 = vsel %vm439_vm4, %v12569_v45, %v12818_v19  ;;  %8201 = vmatpush3.bf16.msra.mxu0 %v8643_v61  ;;  %v6084_v45 = vrot.slane %v12737_v14, 2  ;;  %v8648_v61 = vld [vmem:[%s13723_s1 + $0x1e0] sm:$0xff]  }
 0x261   : > { %5751 = vrot.lane.b32.xlu1 %v5748_v38, %s8704_s8  ;;  %14008 = vst [vmem:[#allocation11_spill] sm:$0xff] %v12836_v36  ;;  %v5086_v43 = vpop.permute.xlu0 %5085  ;;  %v7819_v26 = vpop.f32.mrb[65].mxu0  ;;  %5513 = vmatprep.mubr.bf16.mxu0 %v12836_v36  ;;  %v12849_v38 = vcombine.low %v12682_v22, %v12682_v22 }
 0x262   : > { %5792 = vrot.lane.b32.xlu0 %v5789_v42, %s8704_s8  ;;  %v7820_v11 = vadd.f32 %v7819_v26, %v7818_v59  ;;  %v7821_v42 = vpop.f32.mrb[66].mxu0  ;;  %8251 = vmatpush3.bf16.msra.mxu1 %v8641_v4  ;;  %v6064_v59 = vsel %vm225_vm3, %v12615_v31, %v13827_v48  ;;  %v6083_v26 = vrot.slane %v12745_v37, 1  ;;  %v8647_v4 = vld [vmem:[%s13723_s1 + $0x120] sm:$0xff]   ;;  %v5758_v31 = vsel %vm314_vm5, %v12535_v35, %v12838_v9 }
 0x263   : > { %14009 = vst [vmem:[#allocation12_spill] sm:$0xff] %v12849_v38  ;;  %v12862_v23 = vpop.permute.xlu1 %4831  ;;  %v7822_v63 = vpop.f32.mrb[67].mxu0  ;;  %8252 = vmatprep.subr.bf16.mxu1 %v8644_v56  ;;  %8202 = vmatprep.subr.bf16.mxu0 %v8646_v51  ;;  %v14012_v56 = vrot.slane %v12704_v41, 1  ;;  %v12886_v48 = vld [vmem:[%s8756_s28 + $0xc4] sm:$0xf]  ;;  %v6124_v35 = vrot.slane %v12745_v37, 3 }
 0x264   : > { %v2317_v17 = vadd.f32 %v7820_v11, %v14011_v44  ;;  %v7823_v36 = vadd.f32 %v7822_v63, %v7821_v42  ;;  %v14013_v63 = vrot.slane %v12704_v41, 3  ;;  %v6125_v11 = vrot.slane %v12737_v14, 4  ;;  %8203 = vmatpush3.bf16.msra.mxu0 %v8647_v4 }
 0x265   : > { %6112 = vrot.lane.b32.xlu1 %v6107_v21, %s8705_s19  ;;  %v6076_v51 = vsel %vm288_vm1, %v12409_v29, %v14012_v56  ;;  %v4683_v58 = vpop.permute.xlu0 %4682  ;;  %v12899_v29 = vshrl.u32 %v12849_v38, 16  ;;  %v14014_v42 = vmax.f32 %v12370_v3, %v12554_v32  ;;  %v12909_v13 = vshll.u32 %v12849_v38, 16  ;;  %8204 = vmatprep.subr.bf16.mxu0 %v8650_v2  ;;  %v8654_v2 = vld [vmem:[%s13723_s1 + $0x170] sm:$0xff]  }
 0x266   : > { %5804 = vrot.lane.b32.xlu0 %v5799_v46, %s8706_s11  ;;  %v6117_v21 = vsel %vm413_vm0, %v12387_v25, %v14013_v63  ;;  %v12905_v56 = vmax.f32 %v12554_v32, %v2317_v17  ;;  %v14015_v46 = vld [vmem:[#allocation5_spill] sm:$0xff]  ;;  %8253 = vmatpush3.bf16.msra.mxu1 %v8645_v54  ;;  %v8649_v25 = vld [vmem:[%s13723_s1 + $0x1a0] sm:$0xff]   ;;  %v5258_v63 = vsel %vm479_vm7, %v13993_v8, %v12761_v18 }
 0x267   : > { %v2325_v44 = vmax.f32 %v14014_v42, %v2317_v17  ;;  %v2318_v52 = vadd.f32 %v7823_v36, %v14015_v46  ;;  %v4711_v62 = vpop.permute.xlu1 %4710  ;;  %v12917_v3 = vor.u32 %v6084_v45, %v6083_v26  ;;  %v12921_v32 = vcombine.low %v12886_v48, %v12886_v48  ;;  %8254 = vmatprep.subr.bf16.mxu1 %v8648_v61  ;;  %v8652_v17 = vld [vmem:[%s13723_s1 + $0x1e8] sm:$0xff]  }
 0x268   : > { %v14016_v8 = vmax.f32 %v12583_v33, %v12577_v28  ;;  %v8651_v45 = vld [vmem:[%s13723_s1 + $0x128] sm:$0xff]   ;;  %v5270_v4 = vsel %vm492_vm8, %v5258_v63, %v5086_v43  ;;  %v14017_v61 = vmax.f32 %v12393_v20, %v12577_v28  ;;  %v12944_v33 = vor.u32 %v6125_v11, %v6124_v35 }
 0x269   : > { %v2327_v54 = vsel %vm2326_vm12, %v2318_v52, -inf  ;;  %v2358_v26 = vmax.f32 %v12577_v28, %v2318_v52  ;;  %6068 = vrot.lane.b32.xlu1 %v6064_v59, %s8705_s19  ;;  %v5130_v46 = vpop.permute.xlu0 %5129  ;;  %v7870_v36 = vpop.f32.mrb[64].mxu1  ;;  %v4927_v59 = vsel %vm479_vm7, %v4768_v15, %v12799_v55  ;;  %v8653_v35 = vld [vmem:[%s13723_s1 + $0x1a8] sm:$0xff]   ;;  %v4883_v63 = vsel %vm479_vm7, %v14001_v50, %v4683_v58  ;;  %8205 = vmatpush3.bf16.msra.mxu0 %v8651_v45 }
 0x26a   : > { %v12932_v18 = vmax.f32 %v14016_v8, %v2318_v52  ;;  %v2328_v42 = vmax.f32 %v14017_v61, %v2327_v54  ;;  %5768 = vrot.lane.b32.xlu0 %v5758_v31, %s8706_s11  ;;  %v5780_v52 = vrot.slane %v12899_v29, 2  ;;  %v12956_v20 = vsel %vm505_vm9, %v5270_v4, %v5130_v46  ;;  %v7871_v28 = vpop.f32.mrb[65].mxu1  ;;  %8255 = vmatpush3.bf16.msra.mxu1 %v8649_v25  ;;  %v8656_v8 = vld [vmem:[%s13723_s1 + $0x1f0] sm:$0xff]   ;;  %v8658_v46 = vld [vmem:[%s13723_s1 + $0x178] sm:$0xff]  }
 0x26b   : > { %v12953_v43 = vmax.f32 %v12905_v56, %v2358_v26  ;;  %v5781_v31 = vrot.slane %v12909_v13, 3  ;;  %5514 = vmatmul.mubr.bf16.gmra.mrb[124].mxu0 %v12956_v20  ;;  %v12965_v55 = vadd.f32 %v7871_v28, %v7870_v36  ;;  %v4755_v15 = vpop.permute.xlu1 %4754  ;;  %v7873_v54 = vpop.f32.mrb[66].mxu1  ;;  %8256 = vmatprep.subr.bf16.mxu1 %v8652_v17  ;;  %v4943_v25 = vsel %vm492_vm8, %v4927_v59, %v12862_v23  ;;  %v14019_v59 = vld [vmem:[#allocation23_spill] sm:$0xff] }
 0x26c   : > { %v2329_v11 = vmax.f32 %v2325_v44, %v2328_v42  ;;  %v4895_v26 = vsel %vm492_vm8, %v4883_v63, %v4711_v62  ;;  %v7874_v44 = vpop.f32.mrb[67].mxu1  ;;  %v6086_v58 = vsel %vm314_vm5, %v12524_v1, %v12917_v3  ;;  %v12978_v50 = vshrl.u32 %v12921_v32, 16  ;;  %8206 = vmatprep.subr.bf16.mxu0 %v8654_v2  ;;  %v8655_v1 = vld [vmem:[%s13723_s1 + $0x130] sm:$0xff]  }
 0x26d   : > { %6079 = vrot.lane.b32.xlu1 %v6076_v51, %s8704_s8  ;;  %v14018_v17 = vmax.f32 %v12631_v24, %v12644_v34  ;;  %v4871_v4 = vpop.permute.xlu0 %4870  ;;  %v12985_v23 = vadd.f32 %v7874_v44, %v7873_v54  ;;  %v12989_v62 = vsel %vm505_vm9, %v4895_v26, %v4755_v15  ;;  %v12992_v51 = vshll.u32 %v12921_v32, 16  ;;  %8207 = vmatpush3.bf16.msra.mxu0 %v8655_v1  ;;  %v8659_v54 = vld [vmem:[%s13723_s1 + $0x138] sm:$0xff]   ;;  %v8662_v44 = vld [vmem:[%s13723_s1 + $0x240] sm:$0xff]  }
 0x26e   : > { %6120 = vrot.lane.b32.xlu0 %v6117_v21, %s8704_s8  ;;  %v12998_v45 = vsel %vm505_vm9, %v4943_v25, %v4871_v4  ;;  %v6127_v61 = vsel %vm439_vm4, %v12406_v30, %v12944_v33  ;;  %v5782_v42 = vor.u32 %v5781_v31, %v5780_v52  ;;  %8257 = vmatpush3.bf16.msra.mxu1 %v8653_v35  ;;  %v8657_v21 = vld [vmem:[%s13723_s1 + $0x1b0] sm:$0xff]   ;;  %v13830_v28 = vrot.slane %v14019_v59, 2  ;;  %v8660_v30 = vld [vmem:[%s13723_s1 + $0x1f8] sm:$0xff]  }
 0x26f   : > { %v12983_v36 = vmax.f32 %v2329_v11, %v14018_v17  ;;  %5690 = vmatprep.mubr.bf16.mxu1 %v12998_v45  ;;  %v13010_v2 = vpop.permute.xlu1 %5059  ;;  %8258 = vmatprep.subr.bf16.mxu1 %v8656_v8  ;;  %v14020_v52 = vrot.slane %v12694_v47, 1  ;;  %v5749_v11 = vrot.slane %v12849_v38, 1  ;;  %v6108_v63 = vrot.slane %v12978_v50, 2  ;;  %v8661_v26 = vld [vmem:[%s13723_s1 + $0x1b8] sm:$0xff]  }
 0x270   : > { %5691 = vmatmul.mubr.bf16.gmra.mrb[124].mxu1 %v12989_v62  ;;  %v6109_v15 = vrot.slane %v12992_v51, 3  ;;  %v5783_v47 = vsel %vm373_vm2, %v12753_v12, %v5782_v42  ;;  %v5800_v8 = vrot.slane %v12899_v29, 3  ;;  %v5801_v25 = vrot.slane %v12909_v13, 4  ;;  %8208 = vmatprep.subr.bf16.mxu0 %v8658_v46 }
 0x271   : > { %6096 = vrot.lane.b32.xlu1 %v6086_v58, %s8706_s11  ;;  %v13021_v31 = vor.u32 %v12697_v39, %v14020_v52  ;;  %v5184_v35 = vpop.permute.xlu0 %5183  ;;  %v5790_v39 = vrot.slane %v12849_v38, 3  ;;  %v14021_v58 = vrot.slane %v14005_v5, 2  ;;  %v5765_v46 = vrot.slane %v12909_v13, 2  ;;  %8209 = vmatpush3.bf16.msra.mxu0 %v8659_v54  ;;  %v14022_v13 = vld [vmem:[#allocation24_spill] sm:$0xff] }
 0x272   : > { %6132 = vrot.lane.b32.xlu0 %v6127_v61, %s8706_s11  ;;  %8259 = vmatpush3.bf16.msra.mxu1 %v8657_v21  ;;  %v5750_v61 = vsel %vm288_vm1, %v12773_v40, %v5749_v11  ;;  %v6110_v42 = vor.u32 %v6109_v15, %v6108_v63  ;;  %v5762_v21 = vrot.slane %v12899_v29, 1  ;;  %v4769_v11 = vrot.slane %v14022_v13, 2 }
 0x273   : > { %v5145_v17 = vsel %vm359_vm6, %v14021_v58, %v13830_v28  ;;  %v13046_v4 = vpop.permute.xlu1 %4808  ;;  %8260 = vmatprep.subr.bf16.mxu1 %v8660_v30  ;;  %v5791_v30 = vsel %vm413_vm0, %v12784_v57, %v5790_v39  ;;  %v5802_v58 = vor.u32 %v5801_v25, %v5800_v8  ;;  %8298 = vmatprep.subr.bf16.mxu0 %v8662_v44  ;;  %v2332_v8 = vrot.slane %v12983_v36, 4 }
 0x274   : > { %v5305_v52 = vsel %vm479_vm7, %v5145_v17, %v5184_v35  ;;  %v6111_v15 = vsel %vm373_vm2, %v12811_v60, %v6110_v42  ;;  %v13070_v54 = vcombine.low %v12682_v22, %v12886_v48  ;;  %v5766_v39 = vor.u32 %v5765_v46, %v5762_v21 }
 0x275   : > { %5742 = vrot.lane.b32.xlu1 %v13021_v31, %s8705_s19  ;;  %v5209_v1 = vpop.permute.xlu0 %5208  ;;  %v6077_v60 = vrot.slane %v12921_v32, 1  ;;  %v6118_v42 = vrot.slane %v12921_v32, 3  ;;  %v6090_v22 = vrot.slane %v12978_v50, 1  ;;  %v6093_v48 = vrot.slane %v12992_v51, 2 }
 0x276   : > { %5786 = vrot.lane.b32.xlu0 %v5783_v47, %s8705_s19  ;;  %8261 = vmatpush3.bf16.msra.mxu1 %v8661_v26  ;;  %v5320_v28 = vsel %vm492_vm8, %v5305_v52, %v5209_v1  ;;  %v5803_v26 = vsel %vm439_vm4, %v12818_v19, %v5802_v58  ;;  %v6128_v46 = vrot.slane %v12978_v50, 3  ;;  %v5767_v52 = vsel %vm314_vm5, %v12838_v9, %v5766_v39 }
 0x277   : > { %v5248_v47 = vpop.permute.xlu1 %5247  ;;  %8350 = vmatprep.subr.bf16.mxu1 %v8662_v44  ;;  %v14023_v44 = vrot.slane %v12737_v14, 1  ;;  %v6129_v14 = vrot.slane %v12992_v51, 4  ;;  %v13093_v58 = vshrl.u32 %v13070_v54, 16  ;;  %v14024_v50 = vmax.f32 %v12625_v27, %v12618_v10 }
 0x278   : > { %v7824_v38 = vpop.f32.mrb[68].mxu0  ;;  %v13061_v29 = vsel %vm505_vm9, %v5320_v28, %v5248_v47 }
 0x279   : > { %5753 = vrot.lane.b32.xlu1 %v5750_v61, %s8704_s8  ;;  %v5088_v63 = vpop.permute.xlu0 %5087  ;;  %v7825_v35 = vpop.f32.mrb[69].mxu0  ;;  %5521 = vmatprep.mubr.bf16.mxu0 %v13061_v29  ;;  %v6067_v17 = vor.u32 %v12745_v37, %v14023_v44  ;;  %v6094_v44 = vor.u32 %v6093_v48, %v6090_v22 }
 0x27a   : > { %5794 = vrot.lane.b32.xlu0 %v5791_v30, %s8704_s8  ;;  %v7826_v28 = vadd.f32 %v7825_v35, %v7824_v38  ;;  %v7827_v25 = vpop.f32.mrb[70].mxu0  ;;  %v13090_v30 = vshll.u32 %v13070_v54, 16 }
 0x27b   : > { %v4834_v1 = vpop.permute.xlu1 %4833  ;;  %v7828_v61 = vpop.f32.mrb[71].mxu0 }
 0x27c   : > { %v2319_v38 = vadd.f32 %v7826_v28, %v12337_v16  ;;  %v7829_v21 = vadd.f32 %v7828_v61, %v7827_v25  ;;  %v2333_v16 = vmax.f32 %v12983_v36, %v2332_v8  ;;  %v14027_v8 = vrot.slane %v12704_v41, 3 }
 0x27d   : > { %6114 = vrot.lane.b32.xlu1 %v6111_v15, %s8705_s19  ;;  %v4685_v37 = vpop.permute.xlu0 %4684  ;;  %v14025_v15 = vrot.slane %v14007_v0, 2  ;;  %v6130_v61 = vor.u32 %v6129_v14, %v6128_v46 }
 0x27e   : > { %5806 = vrot.lane.b32.xlu0 %v5803_v26, %s8706_s11  ;;  %v2344_v47 = vsel %vm413_vm0, %v2319_v38, -inf  ;;  %v2359_v51 = vmax.f32 %v14024_v50, %v2319_v38  ;;  %v2320_v35 = vadd.f32 %v7829_v21, %v12359_v49  ;;  %v14026_v26 = vrot.slane %v12704_v41, 1 }
 0x27f   : > { %v4770_v39 = vsel %vm359_vm6, %v14025_v15, %v4769_v11  ;;  %v2345_v28 = vmax.f32 %v12631_v24, %v2344_v47  ;;  %v4713_v25 = vpop.permute.xlu1 %4712  ;;  %v6119_v10 = vsel %vm413_vm0, %v14027_v8, %v6118_v42  ;;  %v5260_v49 = vsel %vm479_vm7, %v14005_v5, %v13010_v2 }
 0x280   : > { %v6078_v36 = vsel %vm288_vm1, %v14026_v26, %v6077_v60  ;;  %v2361_v27 = vsel %vm288_vm1, %v2320_v35, -inf  ;;  %v5272_v24 = vsel %vm492_vm8, %v5260_v49, %v5088_v63  ;;  %v6433_v42 = vrot.slane %v13090_v30, 3 }
 0x281   : > { %6070 = vrot.lane.b32.xlu1 %v6067_v17, %s8705_s19  ;;  %v2346_v38 = vmax.f32 %v12932_v18, %v2345_v28  ;;  %v2362_v60 = vmax.f32 %v12644_v34, %v2361_v27  ;;  %v5132_v21 = vpop.permute.xlu0 %5131  ;;  %v7876_v47 = vpop.f32.mrb[68].mxu1  ;;  %v2334_v50 = vrot.slane %v2333_v16, 2  ;;  %v4930_v5 = vsel %vm479_vm7, %v4770_v39, %v13046_v4 }
 0x282   : > { %5770 = vrot.lane.b32.xlu0 %v5767_v52, %s8706_s11  ;;  %v13126_v2 = vsel %vm505_vm9, %v5272_v24, %v5132_v21  ;;  %v7877_v17 = vpop.f32.mrb[69].mxu1  ;;  %v6432_v63 = vrot.slane %v13093_v58, 2  ;;  %v14028_v18 = vmax.f32 %v12644_v34, %v12905_v56  ;;  %v4885_v46 = vsel %vm479_vm7, %v14007_v0, %v4685_v37 }
 0x283   : > { %v2363_v48 = vmax.f32 %v2359_v51, %v2362_v60  ;;  %5522 = vmatmul.mubr.bf16.gmra.mrb[128].mxu0 %v13126_v2  ;;  %v13135_v14 = vadd.f32 %v7877_v17, %v7876_v47  ;;  %v4757_v4 = vpop.permute.xlu1 %4756  ;;  %v7879_v52 = vpop.f32.mrb[70].mxu1  ;;  %v4945_v35 = vsel %vm492_vm8, %v4930_v5, %v4834_v1  ;;  %v4897_v15 = vsel %vm492_vm8, %v4885_v46, %v4713_v25  ;;  %v13144_v51 = vld [vmem:[%s8756_s28 + $0xc8] ss:$0 sps:$4 sm:$0x77]  }
 0x284   : > { %v2348_v22 = vmax.f32 %v2346_v38, %v14028_v18  ;;  %v7880_v39 = vpop.f32.mrb[71].mxu1  ;;  %v6095_v34 = vsel %vm314_vm5, %v12917_v3, %v6094_v44  ;;  %v6391_v56 = vrot.slane %v13090_v30, 1  ;;  %v13151_v1 = vsel %vm505_vm9, %v4897_v15, %v4757_v4 }
 0x285   : > { %6081 = vrot.lane.b32.xlu1 %v6078_v36, %s8704_s8  ;;  %v2365_v37 = vmax.f32 %v2363_v48, %v12953_v43  ;;  %v4873_v28 = vpop.permute.xlu0 %4872  ;;  %v13147_v26 = vadd.f32 %v7880_v39, %v7879_v52  ;;  %v6131_v3 = vsel %vm439_vm4, %v12944_v33, %v6130_v61  ;;  %v13158_v36 = vor.u32 %v6433_v42, %v6432_v63 }
 0x286   : > { %v2349_v0 = vrot.slane %v2348_v22, 4  ;;  %6122 = vrot.lane.b32.xlu0 %v6119_v10, %s8704_s8  ;;  %v13154_v25 = vsel %vm505_vm9, %v4945_v35, %v4873_v28  ;;  %v2335_v8 = vmax.f32 %v2333_v16, %v2334_v50  ;;  %v5146_v10 = vrot.slane %v12019_v6, 2 }
 0x287   : > { %v2366_v27 = vrot.slane %v2365_v37, 4  ;;  %5698 = vmatprep.mubr.bf16.mxu1 %v13154_v25  ;;  %v13161_v43 = vpop.permute.xlu1 %5061  ;;  %v6411_v44 = vrot.slane %v13093_v58, 1  ;;  %v6412_v24 = vrot.slane %v13090_v30, 2  ;;  %v13169_v33 = vshrl.u32 %v13144_v51, 16 }
 0x288   : > { %v2350_v49 = vmax.f32 %v2348_v22, %v2349_v0  ;;  %5699 = vmatmul.mubr.bf16.gmra.mrb[128].mxu1 %v13151_v1  ;;  %v13172_v16 = vshll.u32 %v13144_v51, 16  ;;  %v6392_v21 = vsel %vm225_vm3, %v13021_v31, %v6391_v56  ;;  %v6403_v47 = vrot.slane %v13070_v54, 1 }
 0x289   : > { %6098 = vrot.lane.b32.xlu1 %v6095_v34, %s8706_s11  ;;  %v2367_v38 = vmax.f32 %v2365_v37, %v2366_v27  ;;  %v5186_v60 = vpop.permute.xlu0 %5185  ;;  %v6435_v42 = vsel %vm373_vm2, %v12753_v12, %v13158_v36  ;;  %v6444_v50 = vrot.slane %v13070_v54, 3  ;;  %v6452_v5 = vrot.slane %v13093_v58, 3 }
 0x28a   : > { %v2351_v61 = vrot.slane %v2350_v49, 2  ;;  %6134 = vrot.lane.b32.xlu0 %v6131_v3, %s8706_s11  ;;  %v6453_v17 = vrot.slane %v13090_v30, 4  ;;  %v2336_v63 = vrot.slane %v2335_v8, 1  ;;  %v14029_v48 = vrot.slane %v14019_v59, 2 }
 0x28b   : > { %v2368_v22 = vrot.slane %v2367_v38, 2  ;;  %v13191_v46 = vpop.permute.xlu1 %4810  ;;  %v13194_v12 = vor.u32 %v6412_v24, %v6411_v44  ;;  %v6436_v4 = vrot.slane %v13169_v33, 2  ;;  %v6437_v52 = vrot.slane %v13172_v16, 3 }
 0x28c   : > { %v2352_v18 = vmax.f32 %v2350_v49, %v2351_v61  ;;  %v5147_v31 = vsel %vm359_vm6, %v14029_v48, %v5146_v10  ;;  %v6404_v34 = vsel %vm288_vm1, %v12773_v40, %v6403_v47  ;;  %v6445_v37 = vsel %vm413_vm0, %v12784_v57, %v6444_v50 }
 0x28d   : > { %6396 = vrot.lane.b32.xlu1 %v6392_v21, %s8705_s19  ;;  %v2369_v15 = vmax.f32 %v2367_v38, %v2368_v22  ;;  %v5211_v39 = vpop.permute.xlu0 %5210  ;;  %v5308_v0 = vsel %vm479_vm7, %v5147_v31, %v5186_v60  ;;  %v13208_v28 = vor.u32 %v6453_v17, %v6452_v5  ;;  %v2337_v3 = vmax.f32 %v2335_v8, %v2336_v63 }
 0x28e   : > { %v2353_v35 = vrot.slane %v2352_v18, 1  ;;  %6440 = vrot.lane.b32.xlu0 %v6435_v42, %s8705_s19  ;;  %v5322_v44 = vsel %vm492_vm8, %v5308_v0, %v5211_v39  ;;  %v6414_v57 = vsel %vm314_vm5, %v12838_v9, %v13194_v12  ;;  %v6438_v60 = vor.u32 %v6437_v52, %v6436_v4  ;;  %v7070_v42 = vld [vmem:[%s13724_s2] ss:$0 sm:$0xff] }
 0x28f   : > { %v2370_v27 = vrot.slane %v2369_v15, 1  ;;  %v5250_v24 = vpop.permute.xlu1 %5249  ;;  %v7898_v61 = vpop.f32.mrb[72].mxu0  ;;  %v6455_v9 = vsel %vm439_vm4, %v12818_v19, %v13208_v28  ;;  %v14030_v19 = vld [vmem:[#allocation8_spill] sm:$0xff]  ;;  %v6446_v30 = vrot.slane %v13144_v51, 3 }
 0x290   : > { %v2354_v49 = vmax.f32 %v2352_v18, %v2353_v35  ;;  %v7899_v40 = vpop.f32.mrb[73].mxu0  ;;  %v13213_v38 = vsel %vm505_vm9, %v5322_v44, %v5250_v24  ;;  %v4771_v35 = vrot.slane %v12040_v53, 2  ;;  %v6439_v39 = vsel %vm373_vm2, %v13158_v36, %v6438_v60 }
 0x291   : > { %6407 = vrot.lane.b32.xlu1 %v6404_v34, %s8704_s8  ;;  %v2371_v21 = vmax.f32 %v2369_v15, %v2370_v27  ;;  %v5090_v5 = vpop.permute.xlu0 %5089  ;;  %v7900_v17 = vadd.f32 %v7899_v40, %v7898_v61  ;;  %5529 = vmatprep.mubr.bf16.mxu0 %v13213_v38  ;;  %v7901_v63 = vpop.f32.mrb[74].mxu0  ;;  %v6395_v15 = vor.u32 %v13093_v58, %v6391_v56  ;;  %v6456_v58 = vrot.slane %v13169_v33, 3 }
 0x292   : > { %v2373_v8 = vsel %vm2372_vm13, %v2337_v3, %v2354_v49  ;;  %6448 = vrot.lane.b32.xlu0 %v6445_v37, %s8704_s8  ;;  %v7902_v18 = vpop.f32.mrb[75].mxu0  ;;  %v6418_v37 = vrot.slane %v13169_v33, 1  ;;  %v6421_v3 = vrot.slane %v13172_v16, 2  ;;  %v6457_v56 = vrot.slane %v13172_v16, 4 }
 0x293   : > { %v2375_v22 = vsel %vm2374_vm14, %v2373_v8, %v2371_v21  ;;  %v3491_v48 = vadd.f32 %v7900_v17, %v12481_v7  ;;  %v4836_v31 = vpop.permute.xlu1 %4835  ;;  %v7903_v4 = vadd.f32 %v7902_v18, %v7901_v63  ;;  %v6405_v7 = vrot.slane %v13144_v51, 1 }
 0x294   : > { %v13229_v52 = vadd.f32 %v7070_v42, %v2375_v22  ;;  %v5262_v44 = vsel %vm479_vm7, %v14019_v59, %v13161_v43  ;;  %v4772_v24 = vsel %vm359_vm6, %v4769_v11, %v4771_v35  ;;  %v6422_v40 = vor.u32 %v6421_v3, %v6418_v37  ;;  %v14031_v22 = vld [vmem:[#allocation7_spill] sm:$0xff] }
 0x295   : > { %6424 = vrot.lane.b32.xlu1 %v6414_v57, %s8706_s11  ;;  %v3494_v34 = vadd.f32 %v7903_v4, %v14030_v19  ;;  %v4687_v0 = vpop.permute.xlu0 %4686  ;;  %v5274_v51 = vsel %vm492_vm8, %v5262_v44, %v5090_v5  ;;  %v6406_v16 = vsel %vm288_vm1, %v6403_v47, %v6405_v7  ;;  %v6447_v11 = vsel %vm413_vm0, %v6444_v50, %v6446_v30  ;;  %v14032_v30 = vld [vmem:[#allocation2_spill] sm:$0xff] }
 0x296   : > { %6460 = vrot.lane.b32.xlu0 %v6455_v9, %s8706_s11  ;;  %v2385_v49 = vmin.f32 %v13229_v52, 0.0  ;;  %v6458_v60 = vor.u32 %v6457_v56, %v6456_v58  ;;  %v4887_v8 = vsel %vm479_vm7, %v14022_v13, %v4687_v0  ;;  %v4933_v5 = vsel %vm479_vm7, %v4772_v24, %v13191_v46  ;;  %v14033_v56 = vld [vmem:[#allocation3_spill] sm:$0xff] }
 0x297   : > { %v4715_v36 = vpop.permute.xlu1 %4714  ;;  %v4947_v50 = vsel %vm492_vm8, %v4933_v5, %v4836_v31  ;;  %v6423_v46 = vsel %vm314_vm5, %v13194_v12, %v6422_v40  ;;  %v13291_v58 = vrot.slane %v14032_v30, 2  ;;  %vm2384_vm15 = vcmp.gt.f32.partialorder %v13229_v52, 0.0 }
 0x298   : > { %v2386_v27 = vmul.f32 1.442695, %v2385_v49  ;;  %v4899_v17 = vsel %vm492_vm8, %v4887_v8, %v4715_v36  ;;  %v6459_v31 = vsel %vm439_vm4, %v13208_v28, %v6458_v60 }
 0x299   : > { %6398 = vrot.lane.b32.xlu1 %v6395_v15, %s8705_s19  ;;  %v5134_v61 = vpop.permute.xlu0 %5133  ;;  %v7904_v33 = vpop.f32.mrb[76].mxu0  ;;  %v5149_v28 = vsel %vm359_vm6, %v5146_v10, %v13291_v58 }
 0x29a   : > { %6442 = vrot.lane.b32.xlu0 %v6439_v39, %s8705_s19  ;;  %8678 = vpow2.f32 %v2386_v27  ;;  %v7950_v59 = vpop.f32.mrb[72].mxu1  ;;  %v13262_v43 = vsel %vm505_vm9, %v5274_v51, %v5134_v61  ;;  %v7905_v57 = vpop.f32.mrb[77].mxu0 }
 0x29b   : > { %5530 = vmatmul.mubr.bf16.gmra.mrb[132].mxu0 %v13262_v43  ;;  %v7906_v21 = vadd.f32 %v7905_v57, %v7904_v33  ;;  %v7951_v42 = vpop.f32.mrb[73].mxu1  ;;  %v4759_v47 = vpop.permute.xlu1 %4758 }
 0x29c   : > { %v7952_v63 = vadd.f32 %v7951_v42, %v7950_v59  ;;  %v7907_v18 = vpop.f32.mrb[78].mxu0  ;;  %v7953_v9 = vpop.f32.mrb[74].mxu1  ;;  %v13278_v39 = vsel %vm505_vm9, %v4899_v17, %v4759_v47  ;;  %v14034_v47 = vld [vmem:[#allocation21_spill] sm:$0xff] }
 0x29d   : > { %6409 = vrot.lane.b32.xlu1 %v6406_v16, %s8704_s8  ;;  %v3499_v4 = vadd.f32 %v7906_v21, %v14031_v22  ;;  %v4875_v13 = vpop.permute.xlu0 %4874  ;;  %v7908_v15 = vpop.f32.mrb[79].mxu0 }
 0x29e   : > { %6450 = vrot.lane.b32.xlu0 %v6447_v11, %s8704_s8  ;;  %v13282_v19 = vadd.f32 %v7952_v63, %v3491_v48  ;;  %v7909_v0 = vadd.f32 %v7908_v15, %v7907_v18  ;;  %v7954_v7 = vpop.f32.mrb[75].mxu1  ;;  %v13285_v37 = vsel %vm505_vm9, %v4947_v50, %v4875_v13  ;;  %s6841_s8 = sshll.u32 %s14045_s14, 2  ;;  %v14035_v13 = vld [vmem:[#allocation13_spill] sm:$0xff] }
 0x29f   : > { %v7955_v3 = vadd.f32 %v7954_v7, %v7953_v9  ;;  %5706 = vmatprep.mubr.bf16.mxu1 %v13285_v37  ;;  %v5064_v49 = vpop.permute.xlu1 %5063  ;;  %s13307_s30 = scalar_lea.vmem %s13725_s3, %s6841_s8 }
 0x2a0   : > { %v3502_v12 = vadd.f32 %v7909_v0, %v14033_v56  ;;  %5707 = vmatmul.mubr.bf16.gmra.mrb[132].mxu1 %v13278_v39  ;;  %v5264_v56 = vsel %vm479_vm7, %v12019_v6, %v5064_v49 }
 0x2a1   : > { %6426 = vrot.lane.b32.xlu1 %v6423_v46, %s8706_s11  ;;  %v13296_v48 = vadd.f32 %v7955_v3, %v3494_v34  ;;  %v5188_v36 = vpop.permute.xlu0 %5187  ;;  %v14036_v46 = vld [vmem:[#allocation18_spill] sm:$0xff] }
 0x2a2   : > { %6462 = vrot.lane.b32.xlu0 %v6459_v31, %s8706_s11  ;;  %v5311_v61 = vsel %vm479_vm7, %v5149_v28, %v5188_v36  ;;  %v13323_v0 = vrot.slane %v14036_v46, 2 }
 0x2a3   : > { %v4813_v27 = vpop.permute.xlu1 %4812 }
 0x2a4   : > { %v8679_v44 = vpop.eup %8678 }
 0x2a5   : > { %v7071_v24 = vadd.f32 -1.0, %v8679_v44  ;;  %v5213_v34 = vpop.permute.xlu0 %5212  ;;  %v7910_v51 = vpop.f32.mrb[80].mxu0 }
 0x2a6   : > { %v7956_v33 = vpop.f32.mrb[76].mxu1  ;;  %v7911_v16 = vpop.f32.mrb[81].mxu0  ;;  %v5324_v10 = vsel %vm492_vm8, %v5311_v61, %v5213_v34 }
 0x2a7   : > { %v2389_v40 = vsel %vm2384_vm15, %v13229_v52, %v7071_v24  ;;  %v7912_v59 = vadd.f32 %v7911_v16, %v7910_v51  ;;  %v7957_v57 = vpop.f32.mrb[77].mxu1  ;;  %v5252_v11 = vpop.permute.xlu1 %5251 }
 0x2a8   : > { %2390 = vst [vmem:[%s13307_s30] sm:$0x7] %v2389_v40  ;;  %v7958_v60 = vadd.f32 %v7957_v57, %v7956_v33  ;;  %v7913_v8 = vpop.f32.mrb[82].mxu0  ;;  %v7959_v21 = vpop.f32.mrb[78].mxu1  ;;  %v13315_v42 = vsel %vm505_vm9, %v5324_v10, %v5252_v11  ;;  %v14037_v57 = vld [vmem:[#allocation25_spill] sm:$0xff] }
 0x2a9   : > { %v3507_v5 = vadd.f32 %v7912_v59, %v14034_v47  ;;  %v5092_v17 = vpop.permute.xlu0 %5091  ;;  %v7914_v63 = vpop.f32.mrb[83].mxu0  ;;  %5537 = vmatprep.mubr.bf16.mxu0 %v13315_v42 }
 0x2aa   : > { %v13319_v18 = vadd.f32 %v7958_v60, %v3499_v4  ;;  %v7915_v52 = vadd.f32 %v7914_v63, %v7913_v8  ;;  %v7960_v9 = vpop.f32.mrb[79].mxu1  ;;  %v4774_v4 = vsel %vm359_vm6, %v4771_v35, %v13323_v0  ;;  %v5276_v36 = vsel %vm492_vm8, %v5264_v56, %v5092_v17 }
 0x2ab   : > { %v7961_v50 = vadd.f32 %v7960_v9, %v7959_v21  ;;  %v4838_v22 = vpop.permute.xlu1 %4837  ;;  %v4936_v33 = vsel %vm479_vm7, %v4774_v4, %v4813_v27  ;;  %v14038_v9 = vld [vmem:[#allocation22_spill] sm:$0xff] }
 0x2ac   : > { %v3510_v15 = vadd.f32 %v7915_v52, %v14035_v13  ;;  %v4949_v59 = vsel %vm492_vm8, %v4936_v33, %v4838_v22  ;;  %v14039_v22 = vld [vmem:[#allocation9_spill] sm:$0xff] }
 0x2ad   : > { %v13325_v7 = vadd.f32 %v7961_v50, %v3502_v12  ;;  %v4689_v31 = vpop.permute.xlu0 %4688  ;;  %v5150_v50 = vrot.slane %v14038_v9, 2 }
 0x2ae   : > { %v4889_v51 = vsel %vm479_vm7, %v12040_v53, %v4689_v31 }
 0x2af   : > { %v4717_v3 = vpop.permute.xlu1 %4716 }
 0x2b0   : > { %v4901_v35 = vsel %vm492_vm8, %v4889_v51, %v4717_v3 }
 0x2b1   : > { %v5136_v28 = vpop.permute.xlu0 %5135  ;;  %v7916_v44 = vpop.f32.mrb[84].mxu0 }
 0x2b2   : > { %v7962_v24 = vpop.f32.mrb[80].mxu1  ;;  %v13335_v34 = vsel %vm505_vm9, %v5276_v36, %v5136_v28  ;;  %v7917_v12 = vpop.f32.mrb[85].mxu0 }
 0x2b3   : > { %5538 = vmatmul.mubr.bf16.gmra.mrb[136].mxu0 %v13335_v34  ;;  %v7918_v6 = vadd.f32 %v7917_v12, %v7916_v44  ;;  %v7963_v49 = vpop.f32.mrb[81].mxu1  ;;  %v4761_v61 = vpop.permute.xlu1 %4760 }
 0x2b4   : > { %v7964_v16 = vadd.f32 %v7963_v49, %v7962_v24  ;;  %v7919_v40 = vpop.f32.mrb[86].mxu0  ;;  %v7965_v10 = vpop.f32.mrb[82].mxu1  ;;  %v13345_v53 = vsel %vm505_vm9, %v4901_v35, %v4761_v61 }
 0x2b5   : > { %v3515_v11 = vadd.f32 %v7918_v6, %v14037_v57  ;;  %v4877_v60 = vpop.permute.xlu0 %4876  ;;  %v7920_v8 = vpop.f32.mrb[87].mxu0 }
 0x2b6   : > { %v13347_v21 = vadd.f32 %v7964_v16, %v3507_v5  ;;  %v7921_v47 = vadd.f32 %v7920_v8, %v7919_v40  ;;  %v7966_v17 = vpop.f32.mrb[83].mxu1  ;;  %v13350_v27 = vsel %vm505_vm9, %v4949_v59, %v4877_v60  ;;  %v5151_v5 = vsel %vm359_vm6, %v13291_v58, %v5150_v50 }
 0x2b7   : > { %v7967_v63 = vadd.f32 %v7966_v17, %v7965_v10  ;;  %5714 = vmatprep.mubr.bf16.mxu1 %v13350_v27  ;;  %v5066_v52 = vpop.permute.xlu1 %5065 }
 0x2b8   : > { %v3518_v13 = vadd.f32 %v7921_v47, %v14039_v22  ;;  %5715 = vmatmul.mubr.bf16.gmra.mrb[136].mxu1 %v13345_v53 }
 0x2b9   : > { %v13356_v31 = vadd.f32 %v7967_v63, %v3510_v15  ;;  %v5190_v3 = vpop.permute.xlu0 %5189  ;;  %v14040_v63 = vld [vmem:[#allocation6_spill] sm:$0xff] }
 0x2ba   : > { %v5314_v28 = vsel %vm479_vm7, %v5151_v5, %v5190_v3  ;;  %v4775_v9 = vrot.slane %v14040_v63, 2  ;;  %v8666_v63 = vld [vmem:[%s13723_s1 + $0x250] sm:$0xff]  }
 0x2bb   : > { %v4815_v56 = vpop.permute.xlu1 %4814 }
 0x2bc   : > { %v4776_v5 = vsel %vm359_vm6, %v13323_v0, %v4775_v9 }
 0x2bd   : > { %v5215_v4 = vpop.permute.xlu0 %5214  ;;  %v7922_v36 = vpop.f32.mrb[88].mxu0 }
 0x2be   : > { %v7968_v44 = vpop.f32.mrb[84].mxu1  ;;  %v7923_v24 = vpop.f32.mrb[89].mxu0  ;;  %v5326_v12 = vsel %vm492_vm8, %v5314_v28, %v5215_v4 }
 0x2bf   : > { %v7924_v51 = vadd.f32 %v7923_v24, %v7922_v36  ;;  %v7969_v6 = vpop.f32.mrb[85].mxu1  ;;  %v5254_v49 = vpop.permute.xlu1 %5253 }
 0x2c0   : > { %v7970_v61 = vadd.f32 %v7969_v6, %v7968_v44  ;;  %v7925_v33 = vpop.f32.mrb[90].mxu0  ;;  %v7971_v15 = vpop.f32.mrb[86].mxu1  ;;  %v5343_v35 = vsel %vm505_vm9, %v5326_v12, %v5254_v49 }
 0x2c1   : > { %v3523_v16 = vadd.f32 %v7924_v51, %v12965_v55  ;;  %v5094_v40 = vpop.permute.xlu0 %5093  ;;  %v7926_v10 = vpop.f32.mrb[91].mxu0  ;;  %5545 = vmatprep.mubr.bf16.mxu0 %v5343_v35  ;;  %v5266_v55 = vsel %vm479_vm7, %v14032_v30, %v5066_v52  ;;  %v4939_v51 = vsel %vm479_vm7, %v4776_v5, %v4815_v56  ;;  %v14041_v56 = vld [vmem:[#allocation11_spill] sm:$0xff]  ;;  %v8668_v5 = vld [vmem:[%s13723_s1 + $0x258] sm:$0xff]  }
 0x2c2   : > { %v13364_v59 = vadd.f32 %v7970_v61, %v3515_v11  ;;  %v7927_v57 = vadd.f32 %v7926_v10, %v7925_v33  ;;  %v7972_v60 = vpop.f32.mrb[87].mxu1  ;;  %v5278_v11 = vsel %vm492_vm8, %v5266_v55, %v5094_v40 }
 0x2c3   : > { %v7973_v8 = vadd.f32 %v7972_v60, %v7971_v15  ;;  %v4840_v47 = vpop.permute.xlu1 %4839  ;;  %v8664_v60 = vld [vmem:[%s13723_s1 + $0x248] sm:$0xff]  }
 0x2c4   : > { %v3526_v17 = vadd.f32 %v7927_v57, %v12985_v23  ;;  %v4951_v49 = vsel %vm492_vm8, %v4939_v51, %v4840_v47  ;;  %v8665_v47 = vld [vmem:[%s13723_s1 + $0x208] sm:$0xff]  }
 0x2c5   : > { %v13368_v50 = vadd.f32 %v7973_v8, %v3518_v13  ;;  %v4691_v22 = vpop.permute.xlu0 %4690 }
 0x2c6   : > { %v4891_v23 = vsel %vm479_vm7, %v14036_v46, %v4691_v22  ;;  %v8667_v22 = vld [vmem:[%s13723_s1 + $0x210] sm:$0xff]  }
 0x2c7   : > { %v4719_v3 = vpop.permute.xlu1 %4718 }
 0x2c8   : > { %v4903_v52 = vsel %vm492_vm8, %v4891_v23, %v4719_v3 }
 0x2c9   : > { %v5138_v4 = vpop.permute.xlu0 %5137  ;;  %v7974_v36 = vpop.f32.mrb[88].mxu1 }
 0x2ca   : > { %v5295_v28 = vsel %vm505_vm9, %v5278_v11, %v5138_v4  ;;  %v7975_v44 = vpop.f32.mrb[89].mxu1 }
 0x2cb   : > { %5546 = vmatmul.mubr.bf16.gmra.mrb[140].mxu0 %v5295_v28  ;;  %v7976_v13 = vadd.f32 %v7975_v44, %v7974_v36  ;;  %v4763_v24 = vpop.permute.xlu1 %4762  ;;  %v7977_v12 = vpop.f32.mrb[90].mxu1  ;;  %v8669_v44 = vld [vmem:[%s13723_s1 + $0x218] sm:$0xff]  }
 0x2cc   : > { %5998 = vmatprep.mubr.bf16.mxu0 %v12998_v45  ;;  %v7978_v6 = vpop.f32.mrb[91].mxu1  ;;  %v4920_v35 = vsel %vm505_vm9, %v4903_v52, %v4763_v24  ;;  %v8663_v45 = vld [vmem:[%s13723_s1 + $0x200] sm:$0xff]  }
 0x2cd   : > { %v13382_v61 = vadd.f32 %v7976_v13, %v3523_v16  ;;  %v4879_v33 = vpop.permute.xlu0 %4878  ;;  %v7979_v15 = vadd.f32 %v7978_v6, %v7977_v12  ;;  %v8670_v24 = vld [vmem:[%s13723_s1 + $0x260] sm:$0xff]  }
 0x2ce   : > { %v4968_v40 = vsel %vm505_vm9, %v4951_v49, %v4879_v33  ;;  %v8671_v12 = vld [vmem:[%s13723_s1 + $0x220] sm:$0xff]  }
 0x2cf   : > { %v13386_v10 = vadd.f32 %v7979_v15, %v3526_v17  ;;  %5722 = vmatprep.mubr.bf16.mxu1 %v4968_v40  ;;  %v13388_v57 = vpop.permute.xlu1 %5740  ;;  %v14042_v6 = vld [vmem:[#allocation10_spill] sm:$0xff] }
 0x2d0   : > { %5723 = vmatmul.mubr.bf16.gmra.mrb[140].mxu1 %v4920_v35  ;;  %v13450_v49 = vrot.slane %v14042_v6, 2 }
 0x2d1   : > { %6326 = vmatprep.mubr.bf16.mxu1 %v14041_v56  ;;  %v13394_v16 = vpop.permute.xlu0 %5784 }
 0x2d3   : > { %5999 = vmatmul.mubr.bf16.vlgmr.msra.gmra.mrb[144].mxu0 %v12989_v62  ;;  %v13400_v8 = vpop.permute.xlu1 %5751 }
 0x2d4   : > { %6006 = vmatprep.mubr.bf16.mxu0 %v13154_v25  ;;  %8299 = vmatpush3.bf16.msra.mxu0 %v8663_v45 }
 0x2d5   : > { %v13406_v17 = vpop.permute.xlu0 %5792  ;;  %8300 = vmatprep.subr.bf16.mxu0 %v8664_v60 }
 0x2d7   : > { %v13411_v9 = vpop.permute.xlu1 %6112 }
 0x2d8   : > { %6327 = vmatmul.mubr.bf16.vlgmr.msra.gmra.mrb[144].mxu1 %v12956_v20  ;;  %v7928_v62 = vpop.f32.mrb[92].mxu0  ;;  %8301 = vmatpush3.bf16.msra.mxu0 %v8665_v47 }
 0x2d9   : > { %8358 = vmatpush3.bf16.msra.mxu1 %v8663_v45  ;;  %6334 = vmatprep.mubr.bf16.mxu1 %v13061_v29  ;;  %v13418_v3 = vpop.permute.xlu0 %5804  ;;  %v7929_v55 = vpop.f32.mrb[93].mxu0 }
 0x2da   : > { %v7930_v11 = vadd.f32 %v7929_v55, %v7928_v62  ;;  %v7931_v4 = vpop.f32.mrb[94].mxu0  ;;  %8351 = vmatprep.subr.bf16.mxu1 %v8664_v60  ;;  %8302 = vmatprep.subr.bf16.mxu0 %v8666_v63  ;;  %v8673_v60 = vld [vmem:[%s13723_s1 + $0x228] sm:$0xff]  }
 0x2db   : > { %6007 = vmatmul.mubr.bf16.gmra.mrb[148].mxu0 %v13151_v1  ;;  %v13424_v20 = vpop.permute.xlu1 %6068  ;;  %v7932_v36 = vpop.f32.mrb[95].mxu0 }
 0x2dc   : > { %v3531_v28 = vadd.f32 %v7930_v11, %v13135_v14  ;;  %6014 = vmatprep.mubr.bf16.mxu0 %v13285_v37  ;;  %v7933_v29 = vadd.f32 %v7932_v36, %v7931_v4  ;;  %8303 = vmatpush3.bf16.msra.mxu0 %v8667_v22  ;;  %v8674_v4 = vld [vmem:[%s13723_s1 + $0x270] sm:$0xff]   ;;  %v6100_v36 = vrot.slane %v12704_v41, 2 }
 0x2dd   : > { %v13431_v23 = vpop.permute.xlu0 %5768  ;;  %8359 = vmatpush3.bf16.msra.mxu1 %v8665_v47  ;;  %8304 = vmatprep.subr.bf16.mxu0 %v8668_v5 }
 0x2de   : > { %v3534_v13 = vadd.f32 %v7933_v29, %v13147_v26  ;;  %8352 = vmatprep.subr.bf16.mxu1 %v8666_v63  ;;  %v8672_v26 = vld [vmem:[%s13723_s1 + $0x268] sm:$0xff]  }
 0x2df   : > { %v13437_v14 = vpop.permute.xlu1 %6079 }
 0x2e0   : > { %6335 = vmatmul.mubr.bf16.gmra.mrb[148].mxu1 %v13126_v2  ;;  %8305 = vmatpush3.bf16.msra.mxu0 %v8669_v44 }
 0x2e1   : > { %6342 = vmatprep.mubr.bf16.mxu1 %v13213_v38  ;;  %v13444_v51 = vpop.permute.xlu0 %6120  ;;  %v8002_v52 = vpop.f32.mrb[96].mxu0  ;;  %8360 = vmatpush3.bf16.msra.mxu1 %v8667_v22  ;;  %v5773_v22 = vsel %vm359_vm6, %v13323_v0, %v13450_v49  ;;  %v8675_v0 = vld [vmem:[%s13723_s1 + $0x230] sm:$0xff]  }
 0x2e2   : > { %v7980_v33 = vpop.f32.mrb[92].mxu1  ;;  %v8003_v2 = vpop.f32.mrb[97].mxu0  ;;  %8353 = vmatprep.subr.bf16.mxu1 %v8668_v5  ;;  %8306 = vmatprep.subr.bf16.mxu0 %v8670_v24 }
 0x2e3   : > { %v8004_v15 = vadd.f32 %v8003_v2, %v8002_v52  ;;  %6015 = vmatmul.mubr.bf16.gmra.mrb[152].mxu0 %v13278_v39  ;;  %v7981_v35 = vpop.f32.mrb[93].mxu1  ;;  %v8005_v38 = vpop.f32.mrb[98].mxu0  ;;  %v14043_v52 = vld [vmem:[#allocation12_spill] sm:$0xff] }
 0x2e4   : > { %v7982_v40 = vadd.f32 %v7981_v35, %v7980_v33  ;;  %6022 = vmatprep.mubr.bf16.mxu0 %v13350_v27  ;;  %v13454_v45 = vpop.permute.xlu1 %6096  ;;  %v7983_v56 = vpop.f32.mrb[94].mxu1  ;;  %8307 = vmatpush3.bf16.msra.mxu0 %v8671_v12  ;;  %v5774_v33 = vrot.slane %v14043_v52, 2 }
 0x2e5   : > { %v4181_v47 = vadd.f32 %v8004_v15, %v13282_v19  ;;  %v8006_v63 = vpop.f32.mrb[99].mxu0  ;;  %v6133_v62 = vpop.permute.xlu0 %6132  ;;  %8361 = vmatpush3.bf16.msra.mxu1 %v8669_v44  ;;  %8308 = vmatprep.subr.bf16.mxu0 %v8672_v26 }
 0x2e6   : > { %v13463_v55 = vadd.f32 %v7982_v40, %v3531_v28  ;;  %v8007_v5 = vadd.f32 %v8006_v63, %v8005_v38  ;;  %v7984_v11 = vpop.f32.mrb[95].mxu1  ;;  %8354 = vmatprep.subr.bf16.mxu1 %v8670_v24  ;;  %v5824_v28 = vsel %vm479_vm7, %v5773_v22, %v13394_v16  ;;  %v8677_v63 = vld [vmem:[%s13723_s1 + $0x238] sm:$0xff]  }
 0x2e7   : > { %v7985_v19 = vadd.f32 %v7984_v11, %v7983_v56  ;;  %v5829_v15 = vsel %vm492_vm8, %v5824_v28, %v13406_v17 }
 0x2e8   : > { %v4182_v29 = vadd.f32 %v8007_v5, %v13296_v48  ;;  %6343 = vmatmul.mubr.bf16.gmra.mrb[152].mxu1 %v13262_v43  ;;  %v13471_v44 = vpop.permute.xlu1 %5742  ;;  %8309 = vmatpush3.bf16.msra.mxu0 %v8673_v60  ;;  %v8676_v43 = vld [vmem:[%s13723_s1 + $0x278] sm:$0xff]   ;;  %v13494_v40 = vsel %vm505_vm9, %v5829_v15, %v13418_v3 }
 0x2e9   : > { %v13478_v24 = vadd.f32 %v7985_v19, %v3534_v13  ;;  %6350 = vmatprep.mubr.bf16.mxu1 %v13315_v42  ;;  %v5787_v2 = vpop.permute.xlu0 %5786  ;;  %v8008_v48 = vpop.f32.mrb[100].mxu0  ;;  %8362 = vmatpush3.bf16.msra.mxu1 %v8671_v12  ;;  %v6101_v42 = vsel %vm359_vm6, %v13291_v58, %v6100_v36  ;;  %v5775_v58 = vsel %vm359_vm6, %v13450_v49, %v5774_v33 }
 0x2ea   : > { %v8009_v35 = vpop.f32.mrb[101].mxu0  ;;  %v8054_v38 = vpop.f32.mrb[96].mxu1  ;;  %8355 = vmatprep.subr.bf16.mxu1 %v8672_v26  ;;  %8310 = vmatprep.subr.bf16.mxu0 %v8674_v4  ;;  %v6152_v3 = vsel %vm479_vm7, %v6101_v42, %v13411_v9 }
 0x2eb   : > { %v8010_v16 = vadd.f32 %v8009_v35, %v8008_v48  ;;  %6023 = vmatmul.mubr.bf16.gmra.mrb[156].mxu0 %v13345_v53  ;;  %v8011_v13 = vpop.f32.mrb[102].mxu0  ;;  %v8055_v12 = vpop.f32.mrb[97].mxu1  ;;  %v6157_v48 = vsel %vm492_vm8, %v6152_v3, %v13444_v51 }
 0x2ec   : > { %v8056_v56 = vadd.f32 %v8055_v12, %v8054_v38  ;;  %6030 = vmatprep.mubr.bf16.mxu0 %v13494_v40  ;;  %v5754_v17 = vpop.permute.xlu1 %5753  ;;  %v8012_v26 = vpop.f32.mrb[103].mxu0  ;;  %8311 = vmatpush3.bf16.msra.mxu0 %v8675_v0  ;;  %v6161_v9 = vsel %vm505_vm9, %v6157_v48, %v6133_v62  ;;  %v6102_v12 = vrot.slane %v12921_v32, 2  ;;  %v5811_v32 = vsel %vm479_vm7, %v14042_v6, %v13471_v44 }
 0x2ed   : > { %v4183_v22 = vadd.f32 %v8010_v16, %v13319_v18  ;;  %v8013_v5 = vadd.f32 %v8012_v26, %v8011_v13  ;;  %v8057_v11 = vpop.f32.mrb[98].mxu1  ;;  %v5795_v19 = vpop.permute.xlu0 %5794  ;;  %8363 = vmatpush3.bf16.msra.mxu1 %v8673_v60  ;;  %8312 = vmatprep.subr.bf16.mxu0 %v8676_v43  ;;  %v5809_v18 = vsel %vm479_vm7, %v14036_v46, %v13388_v57 }
 0x2ee   : > { %v13505_v28 = vadd.f32 %v8056_v56, %v4181_v47  ;;  %v8058_v52 = vpop.f32.mrb[99].mxu1  ;;  %8356 = vmatprep.subr.bf16.mxu1 %v8674_v4  ;;  %v5827_v60 = vsel %vm479_vm7, %v5775_v58, %v5787_v2  ;;  %v5813_v47 = vsel %vm492_vm8, %v5809_v18, %v13400_v8 }
 0x2ef   : > { %v4184_v15 = vadd.f32 %v8013_v5, %v13325_v7  ;;  %v8059_v33 = vadd.f32 %v8058_v52, %v8057_v11  ;;  %v5831_v51 = vsel %vm492_vm8, %v5827_v60, %v5795_v19 }
 0x2f0   : > { %6351 = vmatmul.mubr.bf16.gmra.mrb[156].mxu1 %v13335_v34  ;;  %v6115_v35 = vpop.permute.xlu1 %6114  ;;  %8313 = vmatpush3.bf16.msra.mxu0 %v8677_v63  ;;  %v13523_v34 = vsel %vm505_vm9, %v5813_v47, %v13431_v23 }
 0x2f1   : > { %v13519_v4 = vadd.f32 %v8059_v33, %v4182_v29  ;;  %6358 = vmatprep.mubr.bf16.mxu1 %v6161_v9  ;;  %v5807_v7 = vpop.permute.xlu0 %5806  ;;  %8364 = vmatpush3.bf16.msra.mxu1 %v8675_v0  ;;  %v8060_v57 = vpop.f32.mrb[100].mxu1  ;;  %v6137_v0 = vsel %vm479_vm7, %v14032_v30, %v13424_v20  ;;  %v5815_v20 = vsel %vm492_vm8, %v5811_v32, %v5754_v17 }
 0x2f2   : > { %v8014_v38 = vpop.f32.mrb[104].mxu0  ;;  %v5836_v62 = vsel %vm505_vm9, %v5831_v51, %v5807_v7  ;;  %8357 = vmatprep.subr.bf16.mxu1 %v8676_v43  ;;  %v8061_v42 = vpop.f32.mrb[101].mxu1  ;;  %v6141_v58 = vsel %vm492_vm8, %v6137_v0, %v13437_v14  ;;  %v6103_v14 = vsel %vm359_vm6, %v6100_v36, %v6102_v12 }
 0x2f3   : > { %v8015_v46 = vpop.f32.mrb[105].mxu0  ;;  %6031 = vmatmul.mubr.bf16.gmra.mrb[160].mxu0 %v13523_v34  ;;  %v8062_v29 = vadd.f32 %v8061_v42, %v8060_v57  ;;  %v8063_v26 = vpop.f32.mrb[102].mxu1  ;;  %v6145_v30 = vsel %vm505_vm9, %v6141_v58, %v13454_v45  ;;  %v6155_v17 = vsel %vm479_vm7, %v6103_v14, %v6115_v35  ;;  %v13569_v12 = vsel %vm2338_vm10, %v13519_v4, -inf }
 0x2f4   : > { %v8016_v2 = vadd.f32 %v8015_v46, %v8014_v38  ;;  %v8017_v8 = vpop.f32.mrb[106].mxu0  ;;  %6038 = vmatprep.mubr.bf16.mxu0 %v5836_v62  ;;  %v6071_v16 = vpop.permute.xlu1 %6070 }
 0x2f5   : > { %v8018_v13 = vpop.f32.mrb[107].mxu0  ;;  %v5771_v43 = vpop.permute.xlu0 %5770  ;;  %8365 = vmatpush3.bf16.msra.mxu1 %v8677_v63  ;;  %v13534_v5 = vadd.f32 %v8062_v29, %v4183_v22  ;;  %v6139_v33 = vsel %vm479_vm7, %v12704_v41, %v6071_v16  ;;  %v6428_v16 = vrot.slane %v13070_v54, 2 }
 0x2f6   : > { %v4185_v23 = vadd.f32 %v8016_v2, %v13347_v21  ;;  %v8019_v56 = vadd.f32 %v8018_v13, %v8017_v8  ;;  %v8064_v11 = vpop.f32.mrb[103].mxu1  ;;  %v5820_v45 = vsel %vm505_vm9, %v5815_v20, %v5771_v43 }
 0x2f7   : > { %v8065_v3 = vadd.f32 %v8064_v11, %v8063_v26 }
 0x2f8   : > { %v4186_v19 = vadd.f32 %v8019_v56, %v13356_v31  ;;  %6359 = vmatmul.mubr.bf16.gmra.mrb[160].mxu1 %v6145_v30  ;;  %v6082_v21 = vpop.permute.xlu1 %6081  ;;  %v6429_v30 = vsel %vm359_vm6, %v13450_v49, %v6428_v16 }
 0x2f9   : > { %v13546_v63 = vadd.f32 %v8065_v3, %v4184_v15  ;;  %v6123_v22 = vpop.permute.xlu0 %6122  ;;  %v8066_v48 = vpop.f32.mrb[104].mxu1  ;;  %v6143_v9 = vsel %vm492_vm8, %v6139_v33, %v6082_v21 }
 0x2fa   : > { %v8020_v31 = vpop.f32.mrb[108].mxu0  ;;  %v8067_v60 = vpop.f32.mrb[105].mxu1  ;;  %v6159_v51 = vsel %vm492_vm8, %v6155_v17, %v6123_v22 }
 0x2fb   : > { %v8021_v52 = vpop.f32.mrb[109].mxu0  ;;  %6039 = vmatmul.mubr.bf16.gmra.mrb[164].mxu0 %v5820_v45  ;;  %v8068_v36 = vadd.f32 %v8067_v60, %v8066_v48  ;;  %v8069_v46 = vpop.f32.mrb[106].mxu1 }
 0x2fc   : > { %v8022_v44 = vadd.f32 %v8021_v52, %v8020_v31  ;;  %v8023_v18 = vpop.f32.mrb[110].mxu0  ;;  %6654 = vmatprep.mubr.bf16.mxu0 %v13154_v25  ;;  %v6099_v15 = vpop.permute.xlu1 %6098  ;;  %v13586_v31 = vsel %vm2355_vm11, %v13534_v5, -inf }
 0x2fd   : > { %v8024_v47 = vpop.f32.mrb[111].mxu0  ;;  %v6135_v41 = vpop.permute.xlu0 %6134  ;;  %v6148_v57 = vsel %vm505_vm9, %v6143_v9, %v6099_v15  ;;  %v13557_v62 = vadd.f32 %v8068_v36, %v4185_v23 }
 0x2fe   : > { %v4187_v7 = vadd.f32 %v8022_v44, %v13364_v59  ;;  %v8025_v38 = vadd.f32 %v8024_v47, %v8023_v18  ;;  %v8070_v2 = vpop.f32.mrb[107].mxu1  ;;  %v6164_v35 = vsel %vm505_vm9, %v6159_v51, %v6135_v41 }
 0x2ff   : > { %v8071_v42 = vadd.f32 %v8070_v2, %v8069_v46  ;;  %6366 = vmatprep.mubr.bf16.mxu1 %v6164_v35  ;;  %v4521_v25 = vmax.f32 %v13505_v28, %v13557_v62 }
 0x300   : > { %v4188_v8 = vadd.f32 %v8025_v38, %v13368_v50  ;;  %6367 = vmatmul.mubr.bf16.gmra.mrb[164].mxu1 %v6148_v57  ;;  %v6397_v29 = vpop.permute.xlu1 %6396  ;;  %v8695_v57 = vld [vmem:[%s8756_s28 + $0xc8] ss:$0 sps:$4 sm:$0x77]  }
 0x301   : > { %v13563_v59 = vadd.f32 %v8071_v42, %v4186_v19  ;;  %6678 = vmatprep.mubr.bf16.mxu1 %v13494_v40  ;;  %v6441_v13 = vpop.permute.xlu0 %6440  ;;  %v8072_v23 = vpop.f32.mrb[108].mxu1  ;;  %v6465_v38 = vsel %vm479_vm7, %v14042_v6, %v6397_v29  ;;  %v6430_v2 = vrot.slane %v8695_v57, 2 }
 0x302   : > { %v8026_v0 = vpop.f32.mrb[112].mxu0  ;;  %v8073_v58 = vpop.f32.mrb[109].mxu1  ;;  %v6480_v48 = vsel %vm479_vm7, %v6429_v30, %v6441_v13 }
 0x303   : > { %v8027_v50 = vpop.f32.mrb[113].mxu0  ;;  %v4522_v56 = vmax.f32 %v13519_v4, %v13563_v59  ;;  %v4538_v26 = vmax.f32 %v13569_v12, %v13563_v59  ;;  %6655 = vmatmul.mubr.bf16.vlgmr.msra.gmra.mrb[168].mxu0 %v13151_v1  ;;  %v8074_v11 = vadd.f32 %v8073_v58, %v8072_v23  ;;  %v8075_v20 = vpop.f32.mrb[110].mxu1 }
 0x304   : > { %v8028_v43 = vadd.f32 %v8027_v50, %v8026_v0  ;;  %v8029_v40 = vpop.f32.mrb[114].mxu0  ;;  %6662 = vmatprep.mubr.bf16.mxu0 %v13285_v37  ;;  %v6408_v19 = vpop.permute.xlu1 %6407 }
 0x305   : > { %v8030_v3 = vpop.f32.mrb[115].mxu0  ;;  %v6449_v14 = vpop.permute.xlu0 %6448  ;;  %v13582_v22 = vadd.f32 %v8074_v11, %v4187_v7 }
 0x306   : > { %v4189_v32 = vadd.f32 %v8028_v43, %v13382_v61  ;;  %v8031_v21 = vadd.f32 %v8030_v3, %v8029_v40  ;;  %v8076_v1 = vpop.f32.mrb[111].mxu1  ;;  %v6485_v33 = vsel %vm492_vm8, %v6480_v48, %v6449_v14 }
 0x307   : > { %v8077_v52 = vadd.f32 %v8076_v1, %v8075_v20  ;;  %v13592_v49 = vmax.f32 %v13534_v5, %v13582_v22  ;;  %v4553_v61 = vmax.f32 %v13586_v31, %v13582_v22 }
 0x308   : > { %v4190_v37 = vadd.f32 %v8031_v21, %v13386_v10  ;;  %6679 = vmatmul.mubr.bf16.vlgmr.msra.gmra.mrb[168].mxu1 %v13523_v34  ;;  %v6425_v45 = vpop.permute.xlu1 %6424 }
 0x309   : > { %v4516_v44 = vadd.f32 %v8077_v52, %v4188_v8  ;;  %v6461_v18 = vpop.permute.xlu0 %6460 }
 0x30a   : > { %v8078_v60 = vpop.f32.mrb[112].mxu1  ;;  %v6489_v10 = vsel %vm505_vm9, %v6485_v33, %v6461_v18 }
 0x30b   : > { %v8032_v17 = vpop.f32.mrb[116].mxu0  ;;  %v8079_v9 = vpop.f32.mrb[113].mxu1  ;;  %v13600_v36 = vmax.f32 %v13546_v63, %v4516_v44  ;;  %6663 = vmatmul.mubr.bf16.gmra.mrb[172].mxu0 %v13278_v39  ;;  %6686 = vmatprep.mubr.bf16.mxu1 %v6489_v10  ;;  %v6469_v39 = vsel %vm492_vm8, %v6465_v38, %v6408_v19 }
 0x30c   : > { %v8033_v5 = vpop.f32.mrb[117].mxu0  ;;  %v8080_v15 = vadd.f32 %v8079_v9, %v8078_v60  ;;  %v8081_v34 = vpop.f32.mrb[114].mxu1  ;;  %6670 = vmatprep.mubr.bf16.mxu0 %v13350_v27  ;;  %v6473_v0 = vsel %vm505_vm9, %v6469_v39, %v6425_v45 }
 0x30d   : > { %v8034_v47 = vadd.f32 %v8033_v5, %v8032_v17  ;;  %v8035_v51 = vpop.f32.mrb[118].mxu0  ;;  %v6399_v7 = vpop.permute.xlu1 %6398  ;;  %v4529_v46 = vmax.f32 %v13592_v49, %v13600_v36 }
 0x30e   : > { %v4517_v41 = vadd.f32 %v8080_v15, %v4189_v32  ;;  %v8036_v63 = vpop.f32.mrb[119].mxu0  ;;  %v6443_v35 = vpop.permute.xlu0 %6442  ;;  %v6467_v28 = vsel %vm479_vm7, %v13070_v54, %v6399_v7 }
 0x30f   : > { %v4191_v8 = vadd.f32 %v8034_v47, %v13463_v55  ;;  %v8037_v42 = vadd.f32 %v8036_v63, %v8035_v51  ;;  %v8082_v13 = vpop.f32.mrb[115].mxu1  ;;  %v6431_v55 = vsel %vm359_vm6, %v6428_v16, %v6430_v2 }
 0x310   : > { %v4525_v27 = vmax.f32 %v4521_v25, %v4517_v41  ;;  %v4539_v6 = vmax.f32 %v13557_v62, %v4517_v41  ;;  %v8083_v29 = vadd.f32 %v8082_v13, %v8081_v34  ;;  %6687 = vmatmul.mubr.bf16.gmra.mrb[172].mxu1 %v6473_v0  ;;  %v6483_v19 = vsel %vm479_vm7, %v6431_v55, %v6443_v35 }
 0x311   : > { %v4192_v50 = vadd.f32 %v8037_v42, %v13478_v24  ;;  %v6410_v23 = vpop.permute.xlu1 %6409 }
 0x312   : > { %v4544_v43 = vmax.f32 %v13600_v36, %v4539_v6  ;;  %v4518_v40 = vadd.f32 %v8083_v29, %v4190_v37  ;;  %v6451_v58 = vpop.permute.xlu0 %6450  ;;  %v6471_v3 = vsel %vm492_vm8, %v6467_v28, %v6410_v23 }
 0x313   : > { %v8084_v11 = vpop.f32.mrb[116].mxu1  ;;  %6671 = vmatmul.mubr.bf16.gmra.mrb[176].mxu0 %v13345_v53  ;;  %v6487_v21 = vsel %vm492_vm8, %v6483_v19, %v6451_v58 }
 0x314   : > { %v4526_v62 = vsel %vm2326_vm12, %v4518_v40, -inf  ;;  %v4540_v25 = vmax.f32 %v4538_v26, %v4518_v40  ;;  %v4554_v24 = vmax.f32 %v13563_v59, %v4518_v40  ;;  %v8085_v54 = vpop.f32.mrb[117].mxu1 }
 0x315   : > { %v4527_v16 = vmax.f32 %v4522_v56, %v4526_v62  ;;  %v6427_v30 = vpop.permute.xlu1 %6426  ;;  %v8086_v12 = vadd.f32 %v8085_v54, %v8084_v11  ;;  %v8087_v26 = vpop.f32.mrb[118].mxu1 }
 0x316   : > { %v4559_v32 = vmax.f32 %v4539_v6, %v4554_v24  ;;  %v6463_v20 = vpop.permute.xlu0 %6462  ;;  %v6476_v14 = vsel %vm505_vm9, %v6471_v3, %v6427_v30  ;;  %v8088_v53 = vpop.f32.mrb[119].mxu1 }
 0x317   : > { %v4528_v1 = vmax.f32 %v4525_v27, %v4527_v16  ;;  %v6492_v37 = vsel %vm505_vm9, %v6487_v21, %v6463_v20  ;;  %v4519_v52 = vadd.f32 %v8086_v12, %v4191_v8  ;;  %v8089_v48 = vadd.f32 %v8088_v53, %v8087_v26 }
 0x318   : > { %6694 = vmatprep.mubr.bf16.mxu1 %v6492_v37 }
 0x319   : > { %v4530_v4 = vmax.f32 %v4528_v1, %v4529_v46  ;;  %6695 = vmatmul.mubr.bf16.gmra.mrb[176].mxu1 %v6476_v14  ;;  %v4541_v59 = vsel %vm413_vm0, %v4519_v52, -inf  ;;  %v4555_v56 = vmax.f32 %v4553_v61, %v4519_v52  ;;  %v4520_v45 = vadd.f32 %v8089_v48, %v4192_v50  ;;  %v13648_v50 = vld [vmem:[%s13724_s2] ss:$0 sm:$0xff] }
 0x31a   : > { %v4542_v44 = vmax.f32 %v13592_v49, %v4541_v59 }
 0x31b   : > { %v4531_v33 = vrot.slane %v4530_v4, 4  ;;  %v4556_v18 = vsel %vm288_vm1, %v4520_v45, -inf }
 0x31c   : > { %v4543_v17 = vmax.f32 %v4540_v25, %v4542_v44  ;;  %v4557_v10 = vmax.f32 %v13600_v36, %v4556_v18 }
 0x31d   : > { %v4532_v60 = vmax.f32 %v4530_v4, %v4531_v33 }
 0x31e   : > { %v4545_v5 = vmax.f32 %v4543_v17, %v4544_v43  ;;  %v4558_v15 = vmax.f32 %v4555_v56, %v4557_v10 }
 0x31f   : > { %v4533_v9 = vrot.slane %v4532_v60, 2 }
 0x320   : > { %v4546_v34 = vrot.slane %v4545_v5, 4  ;;  %v4560_v47 = vmax.f32 %v4558_v15, %v4559_v32 }
 0x321   : > { %v4534_v51 = vmax.f32 %v4532_v60, %v4533_v9 }
 0x322   : > { %v4547_v7 = vmax.f32 %v4545_v5, %v4546_v34  ;;  %v4561_v38 = vrot.slane %v4560_v47, 4 }
 0x323   : > { %v4535_v61 = vrot.slane %v4534_v51, 1 }
 0x324   : > { %v4548_v22 = vrot.slane %v4547_v7, 2  ;;  %v4562_v31 = vmax.f32 %v4560_v47, %v4561_v38 }
 0x325   : > { %v4536_v8 = vmax.f32 %v4534_v51, %v4535_v61 }
 0x326   : > { %v4549_v46 = vmax.f32 %v4547_v7, %v4548_v22  ;;  %v4563_v41 = vrot.slane %v4562_v31, 2  ;;  %v8106_v49 = vpop.f32.mrb[120].mxu0 }
 0x327   : > { %v8107_v63 = vpop.f32.mrb[121].mxu0 }
 0x328   : > { %v4550_v57 = vrot.slane %v4549_v46, 1  ;;  %v4564_v2 = vmax.f32 %v4562_v31, %v4563_v41  ;;  %v8108_v35 = vadd.f32 %v8107_v63, %v8106_v49  ;;  %v8109_v39 = vpop.f32.mrb[122].mxu0 }
 0x329   : > { %v8110_v36 = vpop.f32.mrb[123].mxu0 }
 0x32a   : > { %v4551_v42 = vmax.f32 %v4549_v46, %v4550_v57  ;;  %v4565_v13 = vrot.slane %v4564_v2, 1  ;;  %v8111_v27 = vadd.f32 %v8110_v36, %v8109_v39 }
 0x32b   : > { %v8158_v6 = vpop.f32.mrb[120].mxu1 }
 0x32c   : > { %v4567_v29 = vsel %vm2372_vm13, %v4536_v8, %v4551_v42  ;;  %v4566_v0 = vmax.f32 %v4564_v2, %v4565_v13  ;;  %v8159_v23 = vpop.f32.mrb[121].mxu1 }
 0x32d   : > { %v8160_v43 = vadd.f32 %v8159_v23, %v8158_v6  ;;  %v8161_v55 = vpop.f32.mrb[122].mxu1 }
 0x32e   : > { %v4568_v40 = vsel %vm2374_vm14, %v4567_v29, %v4566_v0  ;;  %v8162_v58 = vpop.f32.mrb[123].mxu1 }
 0x32f   : > { %v4576_v28 = vadd.f32 %v13648_v50, %v4568_v40  ;;  %v13652_v62 = vadd.f32 %v8160_v43, %v8108_v35  ;;  %v8163_v25 = vadd.f32 %v8162_v58, %v8161_v55 }
 0x331   : > { %v4578_v24 = vmin.f32 %v4576_v28, 0.0  ;;  %v13654_v11 = vadd.f32 %v8163_v25, %v8111_v27  ;;  %vm4577_vm2 = vcmp.gt.f32.partialorder %v4576_v28, 0.0 }
 0x333   : > { %v4579_v19 = vmul.f32 1.442695, %v4578_v24 }
 0x335   : > { %8680 = vpow2.f32 %v4579_v19 }
 0x33e   : > { %v8112_v16 = vpop.f32.mrb[124].mxu0 }
 0x33f   : > { %v8681_v3 = vpop.eup %8680  ;;  %v8113_v54 = vpop.f32.mrb[125].mxu0 }
 0x340   : > { %v7318_v30 = vadd.f32 -1.0, %v8681_v3  ;;  %v8114_v32 = vadd.f32 %v8113_v54, %v8112_v16  ;;  %v8115_v21 = vpop.f32.mrb[126].mxu0 }
 0x341   : > { %v8116_v12 = vpop.f32.mrb[127].mxu0 }
 0x342   : > { %v4582_v26 = vsel %vm4577_vm2, %v4576_v28, %v7318_v30  ;;  %v8117_v20 = vadd.f32 %v8116_v12, %v8115_v21 }
 0x343   : > { %7319 = vst [vmem:[%s13307_s30 + $0x4] sm:$0x7] %v4582_v26  ;;  %v8164_v14 = vpop.f32.mrb[124].mxu1 }
 0x344   : > { %v8165_v1 = vpop.f32.mrb[125].mxu1 }
 0x345   : > { %v8166_v53 = vadd.f32 %v8165_v1, %v8164_v14  ;;  %v8167_v37 = vpop.f32.mrb[126].mxu1 }
 0x346   : > { %v8168_v52 = vpop.f32.mrb[127].mxu1 }
 0x347   : > { %v13657_v48 = vadd.f32 %v8166_v53, %v8114_v32  ;;  %v8169_v4 = vadd.f32 %v8168_v52, %v8167_v37 }
 0x349   : > { %v13659_v59 = vadd.f32 %v8169_v4, %v8117_v20 }
 0x356   : > { %v8118_v56 = vpop.f32.mrb[128].mxu0 }
 0x357   : > { %v8119_v45 = vpop.f32.mrb[129].mxu0 }
 0x358   : > { %v8120_v33 = vadd.f32 %v8119_v45, %v8118_v56  ;;  %v8121_v44 = vpop.f32.mrb[130].mxu0 }
 0x359   : > { %v8122_v18 = vpop.f32.mrb[131].mxu0 }
 0x35a   : > { %v8123_v60 = vadd.f32 %v8122_v18, %v8121_v44 }
 0x35b   : > { %v8170_v17 = vpop.f32.mrb[128].mxu1 }
 0x35c   : > { %v8171_v10 = vpop.f32.mrb[129].mxu1 }
 0x35d   : > { %v8172_v9 = vadd.f32 %v8171_v10, %v8170_v17  ;;  %v8173_v5 = vpop.f32.mrb[130].mxu1 }
 0x35e   : > { %v8174_v15 = vpop.f32.mrb[131].mxu1 }
 0x35f   : > { %v13661_v34 = vadd.f32 %v8172_v9, %v8120_v33  ;;  %v8175_v47 = vadd.f32 %v8174_v15, %v8173_v5 }
 0x361   : > { %v13663_v51 = vadd.f32 %v8175_v47, %v8123_v60 }
 0x36e   : > { %v8124_v7 = vpop.f32.mrb[132].mxu0 }
 0x36f   : > { %v8125_v38 = vpop.f32.mrb[133].mxu0 }
 0x370   : > { %v8126_v22 = vadd.f32 %v8125_v38, %v8124_v7  ;;  %v8127_v31 = vpop.f32.mrb[134].mxu0 }
 0x371   : > { %v8128_v61 = vpop.f32.mrb[135].mxu0 }
 0x372   : > { %v8129_v46 = vadd.f32 %v8128_v61, %v8127_v31 }
 0x373   : > { %v8176_v41 = vpop.f32.mrb[132].mxu1 }
 0x374   : > { %v8177_v49 = vpop.f32.mrb[133].mxu1 }
 0x375   : > { %v8178_v63 = vadd.f32 %v8177_v49, %v8176_v41  ;;  %v8179_v57 = vpop.f32.mrb[134].mxu1 }
 0x376   : > { %v8180_v2 = vpop.f32.mrb[135].mxu1 }
 0x377   : > { %v13665_v35 = vadd.f32 %v8178_v63, %v8126_v22  ;;  %v8181_v39 = vadd.f32 %v8180_v2, %v8179_v57 }
 0x379   : > { %v13667_v36 = vadd.f32 %v8181_v39, %v8129_v46 }
 0x386   : > { %v8130_v8 = vpop.f32.mrb[136].mxu0 }
 0x387   : > { %v8131_v42 = vpop.f32.mrb[137].mxu0 }
 0x388   : > { %v8132_v13 = vadd.f32 %v8131_v42, %v8130_v8  ;;  %v8133_v27 = vpop.f32.mrb[138].mxu0 }
 0x389   : > { %v8134_v6 = vpop.f32.mrb[139].mxu0 }
 0x38a   : > { %v8135_v29 = vadd.f32 %v8134_v6, %v8133_v27 }
 0x38b   : > { %v8182_v0 = vpop.f32.mrb[136].mxu1 }
 0x38c   : > { %v8183_v23 = vpop.f32.mrb[137].mxu1 }
 0x38d   : > { %v8184_v43 = vadd.f32 %v8183_v23, %v8182_v0  ;;  %v8185_v55 = vpop.f32.mrb[138].mxu1 }
 0x38e   : > { %v8186_v40 = vpop.f32.mrb[139].mxu1 }
 0x38f   : > { %v13669_v58 = vadd.f32 %v8184_v43, %v8132_v13  ;;  %v8187_v28 = vadd.f32 %v8186_v40, %v8185_v55 }
 0x391   : > { %v13671_v25 = vadd.f32 %v8187_v28, %v8135_v29 }
 0x39e   : > { %v8136_v24 = vpop.f32.mrb[140].mxu0 }
 0x39f   : > { %v8137_v19 = vpop.f32.mrb[141].mxu0 }
 0x3a0   : > { %v8138_v16 = vadd.f32 %v8137_v19, %v8136_v24  ;;  %v8139_v3 = vpop.f32.mrb[142].mxu0 }
 0x3a1   : > { %v8140_v54 = vpop.f32.mrb[143].mxu0 }
 0x3a2   : > { %v8141_v30 = vadd.f32 %v8140_v54, %v8139_v3 }
 0x3a3   : > { %v8188_v32 = vpop.f32.mrb[140].mxu1 }
 0x3a4   : > { %v8189_v21 = vpop.f32.mrb[141].mxu1 }
 0x3a5   : > { %v8190_v12 = vadd.f32 %v8189_v21, %v8188_v32  ;;  %v8191_v26 = vpop.f32.mrb[142].mxu1 }
 0x3a6   : > { %v8192_v20 = vpop.f32.mrb[143].mxu1  ;;  %v8210_v14 = vpop.f32.mrb[144].mxu0 }
 0x3a7   : > { %v13673_v1 = vadd.f32 %v8190_v12, %v8138_v16  ;;  %v8193_v53 = vadd.f32 %v8192_v20, %v8191_v26  ;;  %v8211_v37 = vpop.f32.mrb[145].mxu0 }
 0x3a8   : > { %v8212_v52 = vadd.f32 %v8211_v37, %v8210_v14  ;;  %v8213_v4 = vpop.f32.mrb[146].mxu0 }
 0x3a9   : > { %v13675_v56 = vadd.f32 %v8193_v53, %v8141_v30  ;;  %v8214_v45 = vpop.f32.mrb[147].mxu0 }
 0x3aa   : > { %v6047_v33 = vadd.f32 %v8212_v52, %v13652_v62  ;;  %v8215_v44 = vadd.f32 %v8214_v45, %v8213_v4 }
 0x3ab   : > { %v8262_v18 = vpop.f32.mrb[144].mxu1 }
 0x3ac   : > { %v6048_v60 = vadd.f32 %v8215_v44, %v13654_v11  ;;  %v8263_v17 = vpop.f32.mrb[145].mxu1 }
 0x3ad   : > { %v8264_v10 = vadd.f32 %v8263_v17, %v8262_v18  ;;  %v8265_v9 = vpop.f32.mrb[146].mxu1 }
 0x3ae   : > { %v8216_v5 = vpop.f32.mrb[148].mxu0  ;;  %v8266_v15 = vpop.f32.mrb[147].mxu1 }
 0x3af   : > { %v13679_v47 = vadd.f32 %v8264_v10, %v6047_v33  ;;  %v8267_v7 = vadd.f32 %v8266_v15, %v8265_v9  ;;  %v8217_v38 = vpop.f32.mrb[149].mxu0 }
 0x3b0   : > { %v8218_v22 = vadd.f32 %v8217_v38, %v8216_v5  ;;  %v8219_v31 = vpop.f32.mrb[150].mxu0 }
 0x3b1   : > { %v13681_v61 = vadd.f32 %v8267_v7, %v6048_v60  ;;  %v8220_v46 = vpop.f32.mrb[151].mxu0 }
 0x3b2   : > { %v6049_v62 = vadd.f32 %v8218_v22, %v13657_v48  ;;  %v8221_v41 = vadd.f32 %v8220_v46, %v8219_v31 }
 0x3b3   : > { %v8268_v49 = vpop.f32.mrb[148].mxu1 }
 0x3b4   : > { %v6050_v11 = vadd.f32 %v8221_v41, %v13659_v59  ;;  %v8269_v63 = vpop.f32.mrb[149].mxu1 }
 0x3b5   : > { %v8270_v57 = vadd.f32 %v8269_v63, %v8268_v49  ;;  %v8271_v2 = vpop.f32.mrb[150].mxu1 }
 0x3b6   : > { %v8222_v39 = vpop.f32.mrb[152].mxu0  ;;  %v8272_v8 = vpop.f32.mrb[151].mxu1 }
 0x3b7   : > { %v13685_v42 = vadd.f32 %v8270_v57, %v6049_v62  ;;  %v8273_v13 = vadd.f32 %v8272_v8, %v8271_v2  ;;  %v8223_v27 = vpop.f32.mrb[153].mxu0 }
 0x3b8   : > { %v8224_v6 = vadd.f32 %v8223_v27, %v8222_v39  ;;  %v8225_v29 = vpop.f32.mrb[154].mxu0 }
 0x3b9   : > { %v13687_v0 = vadd.f32 %v8273_v13, %v6050_v11  ;;  %v8226_v23 = vpop.f32.mrb[155].mxu0 }
 0x3ba   : > { %v6051_v48 = vadd.f32 %v8224_v6, %v13661_v34  ;;  %v8227_v43 = vadd.f32 %v8226_v23, %v8225_v29 }
 0x3bb   : > { %v8274_v55 = vpop.f32.mrb[152].mxu1 }
 0x3bc   : > { %v6052_v59 = vadd.f32 %v8227_v43, %v13663_v51  ;;  %v8275_v40 = vpop.f32.mrb[153].mxu1 }
 0x3bd   : > { %v8276_v28 = vadd.f32 %v8275_v40, %v8274_v55  ;;  %v8277_v24 = vpop.f32.mrb[154].mxu1 }
 0x3be   : > { %v8228_v19 = vpop.f32.mrb[156].mxu0  ;;  %v8278_v16 = vpop.f32.mrb[155].mxu1 }
 0x3bf   : > { %v13691_v3 = vadd.f32 %v8276_v28, %v6051_v48  ;;  %v8279_v54 = vadd.f32 %v8278_v16, %v8277_v24  ;;  %v8229_v30 = vpop.f32.mrb[157].mxu0 }
 0x3c0   : > { %v8230_v32 = vadd.f32 %v8229_v30, %v8228_v19  ;;  %v8231_v21 = vpop.f32.mrb[158].mxu0 }
 0x3c1   : > { %v13693_v12 = vadd.f32 %v8279_v54, %v6052_v59  ;;  %v8232_v26 = vpop.f32.mrb[159].mxu0 }
 0x3c2   : > { %v6053_v34 = vadd.f32 %v8230_v32, %v13665_v35  ;;  %v8233_v20 = vadd.f32 %v8232_v26, %v8231_v21 }
 0x3c3   : > { %v8280_v14 = vpop.f32.mrb[156].mxu1 }
 0x3c4   : > { %v6054_v51 = vadd.f32 %v8233_v20, %v13667_v36  ;;  %v8281_v53 = vpop.f32.mrb[157].mxu1 }
 0x3c5   : > { %v8282_v37 = vadd.f32 %v8281_v53, %v8280_v14  ;;  %v8283_v52 = vpop.f32.mrb[158].mxu1 }
 0x3c6   : > { %v8234_v4 = vpop.f32.mrb[160].mxu0  ;;  %v8284_v45 = vpop.f32.mrb[159].mxu1 }
 0x3c7   : > { %v6381_v33 = vadd.f32 %v8282_v37, %v6053_v34  ;;  %v8285_v44 = vadd.f32 %v8284_v45, %v8283_v52  ;;  %v8235_v18 = vpop.f32.mrb[161].mxu0 }
 0x3c8   : > { %v8236_v60 = vadd.f32 %v8235_v18, %v8234_v4  ;;  %v8237_v17 = vpop.f32.mrb[162].mxu0 }
 0x3c9   : > { %v6382_v10 = vadd.f32 %v8285_v44, %v6054_v51  ;;  %v8238_v9 = vpop.f32.mrb[163].mxu0 }
 0x3ca   : > { %v6055_v5 = vadd.f32 %v8236_v60, %v13669_v58  ;;  %v8239_v15 = vadd.f32 %v8238_v9, %v8237_v17 }
 0x3cb   : > { %v8286_v35 = vpop.f32.mrb[160].mxu1 }
 0x3cc   : > { %v6056_v7 = vadd.f32 %v8239_v15, %v13671_v25  ;;  %v8287_v38 = vpop.f32.mrb[161].mxu1 }
 0x3cd   : > { %v8288_v36 = vadd.f32 %v8287_v38, %v8286_v35  ;;  %v8289_v22 = vpop.f32.mrb[162].mxu1 }
 0x3ce   : > { %v8240_v31 = vpop.f32.mrb[164].mxu0  ;;  %v8290_v46 = vpop.f32.mrb[163].mxu1 }
 0x3cf   : > { %v6383_v62 = vadd.f32 %v8288_v36, %v6055_v5  ;;  %v8291_v41 = vadd.f32 %v8290_v46, %v8289_v22  ;;  %v8241_v49 = vpop.f32.mrb[165].mxu0 }
 0x3d0   : > { %v8242_v11 = vadd.f32 %v8241_v49, %v8240_v31  ;;  %v8243_v63 = vpop.f32.mrb[166].mxu0 }
 0x3d1   : > { %v6384_v57 = vadd.f32 %v8291_v41, %v6056_v7  ;;  %v8244_v2 = vpop.f32.mrb[167].mxu0 }
 0x3d2   : > { %v6057_v39 = vadd.f32 %v8242_v11, %v13673_v1  ;;  %v8245_v8 = vadd.f32 %v8244_v2, %v8243_v63 }
 0x3d3   : > { %v8292_v58 = vpop.f32.mrb[164].mxu1 }
 0x3d4   : > { %v6058_v13 = vadd.f32 %v8245_v8, %v13675_v56  ;;  %v8293_v27 = vpop.f32.mrb[165].mxu1 }
 0x3d5   : > { %v8294_v25 = vadd.f32 %v8293_v27, %v8292_v58  ;;  %v8295_v6 = vpop.f32.mrb[166].mxu1 }
 0x3d6   : > { %v8296_v29 = vpop.f32.mrb[167].mxu1  ;;  %v8314_v23 = vpop.f32.mrb[168].mxu0 }
 0x3d7   : > { %v6385_v48 = vadd.f32 %v8294_v25, %v6057_v39  ;;  %v8297_v43 = vadd.f32 %v8296_v29, %v8295_v6  ;;  %v8315_v55 = vpop.f32.mrb[169].mxu0 }
 0x3d8   : > { %v8316_v59 = vadd.f32 %v8315_v55, %v8314_v23  ;;  %v8317_v40 = vpop.f32.mrb[170].mxu0 }
 0x3d9   : > { %v13701_v28 = vadd.f32 %v8297_v43, %v6058_v13  ;;  %v8318_v24 = vpop.f32.mrb[171].mxu0 }
 0x3da   : > { %v6703_v19 = vadd.f32 %v8316_v59, %v13679_v47  ;;  %v8319_v1 = vadd.f32 %v8318_v24, %v8317_v40 }
 0x3db   : > { %v8332_v16 = vpop.f32.mrb[168].mxu1 }
 0x3dc   : > { %v6704_v54 = vadd.f32 %v8319_v1, %v13681_v61  ;;  %v8333_v56 = vpop.f32.mrb[169].mxu1 }
 0x3dd   : > { %v8334_v30 = vadd.f32 %v8333_v56, %v8332_v16  ;;  %v8335_v32 = vpop.f32.mrb[170].mxu1 }
 0x3de   : > { %v8320_v21 = vpop.f32.mrb[172].mxu0  ;;  %v8336_v26 = vpop.f32.mrb[171].mxu1  ;;  %v6731_v8 = vsel %vm2338_vm10, %v6704_v54, -inf }
 0x3df   : > { %v6709_v34 = vadd.f32 %v8334_v30, %v6381_v33  ;;  %v8337_v20 = vadd.f32 %v8336_v26, %v8335_v32  ;;  %v8321_v14 = vpop.f32.mrb[173].mxu0 }
 0x3e0   : > { %v8322_v51 = vadd.f32 %v8321_v14, %v8320_v21  ;;  %v8323_v53 = vpop.f32.mrb[174].mxu0 }
 0x3e1   : > { %v6710_v37 = vadd.f32 %v8337_v20, %v6382_v10  ;;  %v8324_v52 = vpop.f32.mrb[175].mxu0 }
 0x3e2   : > { %v6705_v4 = vadd.f32 %v8322_v51, %v13685_v42  ;;  %v8325_v45 = vadd.f32 %v8324_v52, %v8323_v53 }
 0x3e3   : > { %v8338_v47 = vpop.f32.mrb[172].mxu1 }
 0x3e4   : > { %v6717_v44 = vmax.f32 %v6705_v4, %v6709_v34  ;;  %v6746_v18 = vsel %vm2355_vm11, %v6705_v4, -inf  ;;  %v6706_v61 = vadd.f32 %v8325_v45, %v13687_v0  ;;  %v8339_v60 = vpop.f32.mrb[173].mxu1 }
 0x3e5   : > { %v6747_v17 = vmax.f32 %v6746_v18, %v6709_v34  ;;  %v8340_v9 = vadd.f32 %v8339_v60, %v8338_v47  ;;  %v8341_v5 = vpop.f32.mrb[174].mxu1 }
 0x3e6   : > { %v6718_v33 = vmax.f32 %v6706_v61, %v6710_v37  ;;  %v8326_v15 = vpop.f32.mrb[176].mxu0  ;;  %v8342_v35 = vpop.f32.mrb[175].mxu1 }
 0x3e7   : > { %v6711_v7 = vadd.f32 %v8340_v9, %v6383_v62  ;;  %v8343_v38 = vadd.f32 %v8342_v35, %v8341_v5  ;;  %v8327_v10 = vpop.f32.mrb[177].mxu0 }
 0x3e8   : > { %v6723_v36 = vmax.f32 %v6717_v44, %v6718_v33  ;;  %v8328_v22 = vadd.f32 %v8327_v10, %v8326_v15  ;;  %v8329_v42 = vpop.f32.mrb[178].mxu0 }
 0x3e9   : > { %v6712_v31 = vadd.f32 %v8343_v38, %v6384_v57  ;;  %v8330_v46 = vpop.f32.mrb[179].mxu0 }
 0x3ea   : > { %v6707_v41 = vadd.f32 %v8328_v22, %v13691_v3  ;;  %v8331_v49 = vadd.f32 %v8330_v46, %v8329_v42 }
 0x3eb   : > { %v6720_v57 = vsel %vm2326_vm12, %v6712_v31, -inf }
 0x3ec   : > { %v8344_v11 = vpop.f32.mrb[176].mxu1  ;;  %v6715_v0 = vmax.f32 %v6703_v19, %v6707_v41  ;;  %v6733_v63 = vmax.f32 %v6707_v41, %v6711_v7  ;;  %v6708_v2 = vadd.f32 %v8331_v49, %v13693_v12 }
 0x3ed   : > { %v8345_v39 = vpop.f32.mrb[177].mxu1 }
 0x3ee   : > { %v8346_v58 = vadd.f32 %v8345_v39, %v8344_v11  ;;  %v8347_v62 = vpop.f32.mrb[178].mxu1  ;;  %v6719_v13 = vmax.f32 %v6715_v0, %v6711_v7  ;;  %v6738_v27 = vmax.f32 %v6718_v33, %v6733_v63  ;;  %v6716_v25 = vmax.f32 %v6704_v54, %v6708_v2 }
 0x3ef   : > { %v6732_v6 = vmax.f32 %v6731_v8, %v6708_v2  ;;  %v8348_v29 = vpop.f32.mrb[179].mxu1  ;;  %v6748_v23 = vmax.f32 %v6708_v2, %v6712_v31 }
 0x3f0   : > { %v6713_v3 = vadd.f32 %v8346_v58, %v6385_v48  ;;  %v8349_v43 = vadd.f32 %v8348_v29, %v8347_v62  ;;  %v6721_v55 = vmax.f32 %v6716_v25, %v6720_v57 }
 0x3f1   : > { %v6734_v59 = vmax.f32 %v6732_v6, %v6712_v31  ;;  %v6753_v40 = vmax.f32 %v6733_v63, %v6748_v23 }
 0x3f2   : > { %v6735_v12 = vsel %vm413_vm0, %v6713_v3, -inf  ;;  %v6749_v24 = vmax.f32 %v6747_v17, %v6713_v3  ;;  %v6714_v19 = vadd.f32 %v8349_v43, %v13701_v28  ;;  %v6722_v1 = vmax.f32 %v6719_v13, %v6721_v55 }
 0x3f3   : > { %v6736_v16 = vmax.f32 %v6717_v44, %v6735_v12 }
 0x3f4   : > { %v6750_v56 = vsel %vm288_vm1, %v6714_v19, -inf  ;;  %v6724_v54 = vmax.f32 %v6722_v1, %v6723_v36 }
 0x3f5   : > { %v6737_v30 = vmax.f32 %v6734_v59, %v6736_v16  ;;  %v6751_v32 = vmax.f32 %v6718_v33, %v6750_v56 }
 0x3f6   : > { %v6725_v21 = vrot.slane %v6724_v54, 4 }
 0x3f7   : > { %v6739_v26 = vmax.f32 %v6737_v30, %v6738_v27  ;;  %v6752_v34 = vmax.f32 %v6749_v24, %v6751_v32 }
 0x3f8   : > { %v6726_v48 = vmax.f32 %v6724_v54, %v6725_v21 }
 0x3f9   : > { %v6740_v20 = vrot.slane %v6739_v26, 4  ;;  %v6754_v14 = vmax.f32 %v6752_v34, %v6753_v40 }
 0x3fa   : > { %v6727_v51 = vrot.slane %v6726_v48, 2 }
 0x3fb   : > { %v6741_v53 = vmax.f32 %v6739_v26, %v6740_v20  ;;  %v6755_v37 = vrot.slane %v6754_v14, 4 }
 0x3fc   : > { %v6728_v52 = vmax.f32 %v6726_v48, %v6727_v51 }
 0x3fd   : > { %v6742_v4 = vrot.slane %v6741_v53, 2  ;;  %v6756_v45 = vmax.f32 %v6754_v14, %v6755_v37 }
 0x3fe   : > { %v6729_v28 = vrot.slane %v6728_v52, 1 }
 0x3ff   : > { %v6743_v47 = vmax.f32 %v6741_v53, %v6742_v4  ;;  %v6757_v44 = vrot.slane %v6756_v45, 2 }
 0x400   : > { %v6730_v60 = vmax.f32 %v6728_v52, %v6729_v28 }
 0x401   : > { %v6744_v18 = vrot.slane %v6743_v47, 1  ;;  %v6758_v61 = vmax.f32 %v6756_v45, %v6757_v44 }
 0x403   : > { %v6745_v17 = vmax.f32 %v6743_v47, %v6744_v18  ;;  %v6759_v9 = vrot.slane %v6758_v61, 1 }
 0x405   : > { %v6761_v5 = vsel %vm2372_vm13, %v6730_v60, %v6745_v17  ;;  %v6760_v33 = vmax.f32 %v6758_v61, %v6759_v9 }
 0x407   : > { %v6762_v15 = vsel %vm2374_vm14, %v6761_v5, %v6760_v33 }
 0x408   : > { %v6770_v35 = vadd.f32 %v13648_v50, %v6762_v15 }
 0x40a   : > { %v6772_v7 = vmin.f32 %v6770_v35, 0.0  ;;  %vm6771_vm0 = vcmp.gt.f32.partialorder %v6770_v35, 0.0 }
 0x40c   : > { %v6773_v38 = vmul.f32 1.442695, %v6772_v7 }
 0x40e   : > { %8682 = vpow2.f32 %v6773_v38 }
 0x418   : > { %v8683_v10 = vpop.eup %8682 }
 0x419   : > { %v7566_v36 = vadd.f32 -1.0, %v8683_v10 }
 0x41b   : > { %v6776_v22 = vsel %vm6771_vm0, %v6770_v35, %v7566_v36 }
 0x41c   : > { %7567 = vst [vmem:[%s13307_s30 + $0x8] sm:$0x7] %v6776_v22 }
 0x41d PF: > { %s13_s12 = sadd.s32 1, %s8702_s12  }
 0x41e   : > { %p10_p4 = scmp.ge.s32.totalorder %s13_s12, 4  }
 0x420   :  { %12 = sbr.rel (!%p10_p4) target bundleno = 1 (0x1), region = 70 }

</bundles_post_ra>
